<compile_context>
chip_gen: v6e
topology: v6e:2x2x1
jax: 0.10.0
libtpu: 0.0.40
codegen_flags: <defaults>
</compile_context>

<pallas_src>
import functools

import jax
import jax.numpy as jnp
from jax.experimental import pallas as pl
from jax.experimental.pallas import tpu as pltpu

# ---------------- constants (mirroring the PyTorch module) ----------------
ENCODER_REGULAR_VTH = 0.999
NEURON_CDECAY = 1.0 / 2.0
NEURON_VDECAY = 3.0 / 4.0
# NEURON_VTH_*_temporal start as constant 0.5; the host-side `a = np.exp(...)`
# lines and the `shape[0] == 100` reset branch in the reference are dead code
# for a single forward call and are intentionally omitted. The kernel models
# one forward from the fresh 0.5 global-threshold state.
VTH_TEMPORAL_INIT = 0.5


# ------------ fused kernel: encoder + SpikeMLP (adaptive LIF) + decoder ------------
def actor_kernel(obs_ref, expand_ref, mean_ref, std_ref,
                 w1_ref, b1_ref, w2_ref, b2_ref, w3_ref, b3_ref,
                 dec_wbd_ref, dec_b_ref, act_ref,
                 *, spike_ts, act_limit):
    f32 = jnp.float32
    B = obs_ref.shape[0]
    H1 = w1_ref.shape[1]
    H2 = w2_ref.shape[1]
    OUT = w3_ref.shape[1]

    # ---- encoder: gaussian population coding + regular spike trains ----
    # obs (B, obs_dim) -> (B, obs_dim*pop_dim) repeat via one exact 0/1 matmul
    # (precomputed expansion matrix) — no in-kernel reshape/relayout.
    obs_rep = jnp.dot(obs_ref[...], expand_ref[...], preferred_element_type=f32)
    mean = mean_ref[...]                       # (1, n_in)
    std = std_ref[...]                         # (1, n_in)
    pop_act = jnp.exp(-0.5 * (obs_rep - mean) ** 2 / (std * std))   # (B, n_in)

    # Iterative regular spike generation (exact '>' parity with the reference;
    # 5 elementwise steps on one vreg-sized tile — negligible cost).
    spikes = []
    volt = jnp.zeros_like(pop_act)
    for _ in range(spike_ts):
        volt = volt + pop_act
        spk = (volt > ENCODER_REGULAR_VTH).astype(f32)
        spikes.append(spk)
        volt = volt - spk * ENCODER_REGULAR_VTH

    w1 = w1_ref[...]; b1 = b1_ref[...]
    w2 = w2_ref[...]; b2 = b2_ref[...]
    w3 = w3_ref[...]; b3 = b3_ref[...]

    # LIF state per layer: current, volt, spike + adaptive-threshold temporal state.
    # NOTE: the reference's NEURON_VTH_*_temporal buffers start as (1,H) but are
    # overwritten with (B,H) tensors after the first step, so carrying the
    # temporal state per-(B,H) element (init 0.5) matches the reference.
    c1 = jnp.zeros((B, H1), f32); v1 = jnp.zeros((B, H1), f32); s1 = jnp.zeros((B, H1), f32)
    c2 = jnp.zeros((B, H2), f32); v2 = jnp.zeros((B, H2), f32); s2 = jnp.zeros((B, H2), f32)
    c3 = jnp.zeros((B, OUT), f32); v3 = jnp.zeros((B, OUT), f32); s3 = jnp.zeros((B, OUT), f32)
    t1 = jnp.full((B, H1), VTH_TEMPORAL_INIT, f32)
    t2 = jnp.full((B, H2), VTH_TEMPORAL_INIT, f32)
    t3 = jnp.full((B, OUT), VTH_TEMPORAL_INIT, f32)
    out_act = jnp.zeros((B, OUT), f32)

    def stable_softplus(x):
        # == log(1 + exp(x)) of the reference, overflow-safe.
        # (kept as log(1+exp(-|x|)) rather than log1p for guaranteed Mosaic lowering;
        # the precision difference is negligible since the argument is near 1..2.)
        return jnp.maximum(x, 0.0) + jnp.log(1.0 + jnp.exp(-jnp.abs(x)))

    def adaptive_lif(lin_out, c, v_prev, s, temporal):
        # current = current*CDECAY + Linear(x); volt = volt*VDECAY*(1-spike) + current
        c_new = c * NEURON_CDECAY + lin_out
        v_new = v_prev * NEURON_VDECAY * (1.0 - s) + c_new
        # NEURON_VTH = 0.5*temporal + 0.5*(exp((v_prev - v_new)/3) - 1)
        energy = jnp.exp((v_prev - v_new) / 3.0) - 1.0
        vth = 0.5 * temporal + 0.5 * energy
        s_new = (v_new > vth).astype(f32)
        # temporal update (SpikeMLP.forward, right after the neuron model).
        # keepdims=True keeps the batch-global stats as (1,1) vector values —
        # no scalar vreg<->sreg round trips on this serial chain.
        v_m = (jnp.mean(v_new, keepdims=True)
               - 0.2 * (jnp.max(v_new, keepdims=True) - jnp.min(v_new, keepdims=True)))
        v_theta = (jnp.mean(vth, keepdims=True)
                   - 0.2 * (jnp.max(vth, keepdims=True) - jnp.min(vth, keepdims=True)))
        dv = v_new - v_m
        temporal_new = 0.01 * dv + v_theta + stable_softplus(dv / 6.0)
        return c_new, v_new, s_new, temporal_new

    for t in range(spike_ts):
        # layer-1 projection per timestep (no concat / row-slice relayouts)
        x1 = jnp.dot(spikes[t], w1, preferred_element_type=f32) + b1
        c1, v1, s1, t1 = adaptive_lif(x1, c1, v1, s1, t1)            # dth  (VTH_1)
        l2 = jnp.dot(s1, w2, preferred_element_type=f32) + b2
        c2, v2, s2, t2 = adaptive_lif(l2, c2, v2, s2, t2)            # dth2 (VTH_2)
        l3 = jnp.dot(s2, w3, preferred_element_type=f32) + b3
        c3, v3, s3, t3 = adaptive_lif(l3, c3, v3, s3, t3)            # dth3 (VTH_3)
        out_act = out_act + s3

    out_act = out_act / float(spike_ts)                              # (B, ACT*DE_POP)

    # ---- decoder: grouped Conv1d == block-diagonal matmul (no reshape) ----
    raw = jnp.dot(out_act, dec_wbd_ref[...], preferred_element_type=f32) + dec_b_ref[...]
    act_ref[...] = jnp.tanh(raw) * act_limit


# ---------------- wrapper (no per-call XLA ops before the kernel) ----------------
def pop_spike_actor_forward(obs, params, *, spike_ts, act_limit):
    B = obs.shape[0]
    obs_dim, n_in = params["expand"].shape
    assert obs.shape[1] == obs_dim
    h1 = params["w1"].shape[1]
    h2 = params["w2"].shape[1]
    out_pop = params["w3"].shape[1]
    act_dim = params["dec_wbd"].shape[1]

    def fs(shape):
        nd = len(shape)
        return pl.BlockSpec(shape, lambda i, _nd=nd: (0,) * _nd)

    kernel = functools.partial(actor_kernel, spike_ts=spike_ts, act_limit=float(act_limit))
    return pl.pallas_call(
        kernel,
        out_shape=jax.ShapeDtypeStruct((B, act_dim), jnp.float32),
        grid=(1,),
        in_specs=[
            fs((B, obs_dim)), fs((obs_dim, n_in)), fs((1, n_in)), fs((1, n_in)),
            fs((n_in, h1)), fs((1, h1)),
            fs((h1, h2)), fs((1, h2)),
            fs((h2, out_pop)), fs((1, out_pop)),
            fs((out_pop, act_dim)), fs((1, act_dim)),
        ],
        out_specs=fs((B, act_dim)),
        compiler_params=pltpu.CompilerParams(dimension_semantics=("arbitrary",)),
    )(obs, params["expand"], params["enc_mean"], params["enc_std"],
      params["w1"], params["b1"], params["w2"], params["b2"],
      params["w3"], params["b3"],
      params["dec_wbd"], params["dec_b"])


# ---------------- parameter construction (mirrors torch init shapes) ----------------
# All derived constants (expansion matrix, block-diagonal decoder weight) are
# built ONCE here and cached in `params` — nothing is rebuilt per forward call.
def init_params(key, obs_dim, act_dim, en_pop_dim, de_pop_dim, hidden_sizes,
                mean_range, std):
    assert len(hidden_sizes) == 2, "kernel is written for the Ant config (2 hidden layers)"
    n_in = obs_dim * en_pop_dim
    h1, h2 = hidden_sizes
    out_pop = act_dim * de_pop_dim

    # encoder gaussian receptive-field centers (same for every obs dim)
    delta_mean = (mean_range[1] - mean_range[0]) / (en_pop_dim - 1)
    mean_1d = mean_range[0] + delta_mean * jnp.arange(en_pop_dim, dtype=jnp.float32)
    enc_mean = jnp.tile(mean_1d, (obs_dim,)).reshape(1, n_in)        # (1, obs_dim*en_pop_dim)
    enc_std = jnp.full((1, n_in), std, jnp.float32)

    # obs -> population expansion: expand[d, d*P + p] = 1  (obs.view(-1,obs_dim,1) broadcast)
    expand = jnp.repeat(jnp.eye(obs_dim, dtype=jnp.float32), en_pop_dim, axis=1)  # (obs_dim, n_in)

    ks = jax.random.split(key, 8)

    def lin(kw, kb, fan_in, fan_out):
        bound = 1.0 / jnp.sqrt(float(fan_in))
        w = jax.random.uniform(kw, (fan_in, fan_out), jnp.float32, -bound, bound)
        b = jax.random.uniform(kb, (1, fan_out), jnp.float32, -bound, bound)
        return w, b

    w1, b1 = lin(ks[0], ks[1], n_in, h1)
    w2, b2 = lin(ks[2], ks[3], h1, h2)
    w3, b3 = lin(ks[4], ks[5], h2, out_pop)

    # grouped Conv1d decoder -> block-diagonal (act_dim*de_pop_dim, act_dim) weight
    dec_bound = 1.0 / jnp.sqrt(float(de_pop_dim))   # Conv1d: (in_ch/groups)*k = de_pop_dim
    dec_w = jax.random.uniform(ks[6], (act_dim, de_pop_dim), jnp.float32, -dec_bound, dec_bound)
    dec_b = jax.random.uniform(ks[7], (1, act_dim), jnp.float32, -dec_bound, dec_bound)
    eye = jnp.eye(act_dim, dtype=jnp.float32)
    dec_wbd = (dec_w[:, :, None] * eye[:, None, :]).reshape(out_pop, act_dim)

    return dict(enc_mean=enc_mean, enc_std=enc_std, expand=expand,
                w1=w1, b1=b1, w2=w2, b2=b2, w3=w3, b3=b3,
                dec_wbd=dec_wbd, dec_b=dec_b)


if __name__ == "__main__":
    # small Ant-like config (hidden sizes kept at 256 to match the (1,256)/(1,80)
    # global threshold shapes of the reference module; act_dim*de_pop_dim = 80)
    obs_dim, act_dim = 8, 8
    en_pop_dim, de_pop_dim = 10, 10
    hidden_sizes = (256, 256)
    spike_ts = 5
    mean_range = (-3.0, 3.0)
    std = 0.15
    act_limit = 1.0
    batch = 2

    key = jax.random.PRNGKey(0)
    k_obs, k_par = jax.random.split(key)
    obs = jax.random.normal(k_obs, (batch, obs_dim), jnp.float32)
    params = init_params(k_par, obs_dim, act_dim, en_pop_dim, de_pop_dim,
                         hidden_sizes, mean_range, std)

    fwd = jax.jit(functools.partial(
        pop_spike_actor_forward, spike_ts=spike_ts, act_limit=act_limit))

    action = fwd(obs, params)
    action = jax.block_until_ready(action)

    assert action.shape == (batch, act_dim)
    assert bool(jnp.all(jnp.isfinite(action)))
    assert bool(jnp.all(jnp.abs(action) <= act_limit + 1e-6))
    print("KERNEL_OK")
</pallas_src>

<mosaic_0001>
module attributes {stable_mosaic.version = 11 : i64} {
  func.func @actor_kernel(%arg0: i32, %arg1: memref<2x8xf32, #tpu.memory_space<vmem>>, %arg2: memref<8x80xf32, #tpu.memory_space<vmem>>, %arg3: memref<1x80xf32, #tpu.memory_space<vmem>>, %arg4: memref<1x80xf32, #tpu.memory_space<vmem>>, %arg5: memref<80x256xf32, #tpu.memory_space<vmem>>, %arg6: memref<1x256xf32, #tpu.memory_space<vmem>>, %arg7: memref<256x256xf32, #tpu.memory_space<vmem>>, %arg8: memref<1x256xf32, #tpu.memory_space<vmem>>, %arg9: memref<256x80xf32, #tpu.memory_space<vmem>>, %arg10: memref<1x80xf32, #tpu.memory_space<vmem>>, %arg11: memref<80x8xf32, #tpu.memory_space<vmem>>, %arg12: memref<1x8xf32, #tpu.memory_space<vmem>>, %arg13: memref<2x8xf32, #tpu.memory_space<vmem>>) attributes {dimension_semantics = [#tpu.dimension_semantics<arbitrary>], iteration_bounds = array<i64: 1>, scalar_prefetch = 0 : i64, scratch_operands = 0 : i64, tpu.core_type = #tpu.core_type<tc>, window_params = [{pipeline_mode = #tpu.pipeline_mode<synchronous>, transform_indices = @transform_0, window_bounds = array<i64: 2, 8>}, {pipeline_mode = #tpu.pipeline_mode<synchronous>, transform_indices = @transform_1, window_bounds = array<i64: 8, 80>}, {pipeline_mode = #tpu.pipeline_mode<synchronous>, transform_indices = @transform_2, window_bounds = array<i64: 1, 80>}, {pipeline_mode = #tpu.pipeline_mode<synchronous>, transform_indices = @transform_3, window_bounds = array<i64: 1, 80>}, {pipeline_mode = #tpu.pipeline_mode<synchronous>, transform_indices = @transform_4, window_bounds = array<i64: 80, 256>}, {pipeline_mode = #tpu.pipeline_mode<synchronous>, transform_indices = @transform_5, window_bounds = array<i64: 1, 256>}, {pipeline_mode = #tpu.pipeline_mode<synchronous>, transform_indices = @transform_6, window_bounds = array<i64: 256, 256>}, {pipeline_mode = #tpu.pipeline_mode<synchronous>, transform_indices = @transform_7, window_bounds = array<i64: 1, 256>}, {pipeline_mode = #tpu.pipeline_mode<synchronous>, transform_indices = @transform_8, window_bounds = array<i64: 256, 80>}, {pipeline_mode = #tpu.pipeline_mode<synchronous>, transform_indices = @transform_9, window_bounds = array<i64: 1, 80>}, {pipeline_mode = #tpu.pipeline_mode<synchronous>, transform_indices = @transform_10, window_bounds = array<i64: 80, 8>}, {pipeline_mode = #tpu.pipeline_mode<synchronous>, transform_indices = @transform_11, window_bounds = array<i64: 1, 8>}, {pipeline_mode = #tpu.pipeline_mode<synchronous>, transform_indices = @transform_12, window_bounds = array<i64: 2, 8>}]} {
    %c0 = arith.constant 0 : index
    %c0_0 = arith.constant 0 : index
    %0 = vector.load %arg1[%c0, %c0_0] : memref<2x8xf32, #tpu.memory_space<vmem>>, vector<2x8xf32>
    %c0_1 = arith.constant 0 : index
    %c0_2 = arith.constant 0 : index
    %1 = vector.load %arg2[%c0_1, %c0_2] : memref<8x80xf32, #tpu.memory_space<vmem>>, vector<8x80xf32>
    %cst = arith.constant dense<0.000000e+00> : vector<2x80xf32>
    %2 = tpu.matmul %0, %1, %cst {dimension_numbers = #tpu.dot_dimension_numbers<[1], [0], [0], [1], [0, 0, 1, 1], [], []>} : vector<2x8xf32>, vector<8x80xf32>, vector<2x80xf32> -> vector<2x80xf32>
    %c0_3 = arith.constant 0 : index
    %c0_4 = arith.constant 0 : index
    %3 = vector.load %arg3[%c0_3, %c0_4] : memref<1x80xf32, #tpu.memory_space<vmem>>, vector<1x80xf32>
    %c0_5 = arith.constant 0 : index
    %c0_6 = arith.constant 0 : index
    %4 = vector.load %arg4[%c0_5, %c0_6] : memref<1x80xf32, #tpu.memory_space<vmem>>, vector<1x80xf32>
    %5 = vector.broadcast %3 : vector<1x80xf32> to vector<2x80xf32>
    %6 = arith.subf %2, %5 : vector<2x80xf32>
    %7 = arith.mulf %6, %6 : vector<2x80xf32>
    %cst_7 = arith.constant -5.000000e-01 : f32
    %8 = vector.broadcast %cst_7 : f32 to vector<2x80xf32>
    %9 = arith.mulf %8, %7 : vector<2x80xf32>
    %10 = arith.mulf %4, %4 : vector<1x80xf32>
    %11 = vector.broadcast %10 : vector<1x80xf32> to vector<2x80xf32>
    %12 = arith.divf %9, %11 : vector<2x80xf32>
    %13 = math.exp %12 : vector<2x80xf32>
    %cst_8 = arith.constant 0.000000e+00 : f32
    %14 = vector.broadcast %cst_8 : f32 to vector<2x80xf32>
    %15 = arith.addf %14, %13 : vector<2x80xf32>
    %cst_9 = arith.constant 9.990000e-01 : f32
    %16 = vector.broadcast %cst_9 : f32 to vector<2x80xf32>
    %17 = arith.cmpf ogt, %15, %16 : vector<2x80xf32>
    %18 = arith.extui %17 : vector<2x80xi1> to vector<2x80xi32>
    %19 = arith.sitofp %18 : vector<2x80xi32> to vector<2x80xf32>
    %cst_10 = arith.constant 9.990000e-01 : f32
    %20 = vector.broadcast %cst_10 : f32 to vector<2x80xf32>
    %21 = arith.mulf %19, %20 : vector<2x80xf32>
    %22 = arith.subf %15, %21 : vector<2x80xf32>
    %23 = arith.addf %22, %13 : vector<2x80xf32>
    %cst_11 = arith.constant 9.990000e-01 : f32
    %24 = vector.broadcast %cst_11 : f32 to vector<2x80xf32>
    %25 = arith.cmpf ogt, %23, %24 : vector<2x80xf32>
    %26 = arith.extui %25 : vector<2x80xi1> to vector<2x80xi32>
    %27 = arith.sitofp %26 : vector<2x80xi32> to vector<2x80xf32>
    %cst_12 = arith.constant 9.990000e-01 : f32
    %28 = vector.broadcast %cst_12 : f32 to vector<2x80xf32>
    %29 = arith.mulf %27, %28 : vector<2x80xf32>
    %30 = arith.subf %23, %29 : vector<2x80xf32>
    %31 = arith.addf %30, %13 : vector<2x80xf32>
    %cst_13 = arith.constant 9.990000e-01 : f32
    %32 = vector.broadcast %cst_13 : f32 to vector<2x80xf32>
    %33 = arith.cmpf ogt, %31, %32 : vector<2x80xf32>
    %34 = arith.extui %33 : vector<2x80xi1> to vector<2x80xi32>
    %35 = arith.sitofp %34 : vector<2x80xi32> to vector<2x80xf32>
    %cst_14 = arith.constant 9.990000e-01 : f32
    %36 = vector.broadcast %cst_14 : f32 to vector<2x80xf32>
    %37 = arith.mulf %35, %36 : vector<2x80xf32>
    %38 = arith.subf %31, %37 : vector<2x80xf32>
    %39 = arith.addf %38, %13 : vector<2x80xf32>
    %cst_15 = arith.constant 9.990000e-01 : f32
    %40 = vector.broadcast %cst_15 : f32 to vector<2x80xf32>
    %41 = arith.cmpf ogt, %39, %40 : vector<2x80xf32>
    %42 = arith.extui %41 : vector<2x80xi1> to vector<2x80xi32>
    %43 = arith.sitofp %42 : vector<2x80xi32> to vector<2x80xf32>
    %cst_16 = arith.constant 9.990000e-01 : f32
    %44 = vector.broadcast %cst_16 : f32 to vector<2x80xf32>
    %45 = arith.mulf %43, %44 : vector<2x80xf32>
    %46 = arith.subf %39, %45 : vector<2x80xf32>
    %47 = arith.addf %46, %13 : vector<2x80xf32>
    %cst_17 = arith.constant 9.990000e-01 : f32
    %48 = vector.broadcast %cst_17 : f32 to vector<2x80xf32>
    %49 = arith.cmpf ogt, %47, %48 : vector<2x80xf32>
    %50 = arith.extui %49 : vector<2x80xi1> to vector<2x80xi32>
    %51 = arith.sitofp %50 : vector<2x80xi32> to vector<2x80xf32>
    %c0_18 = arith.constant 0 : index
    %c0_19 = arith.constant 0 : index
    %52 = vector.load %arg5[%c0_18, %c0_19] : memref<80x256xf32, #tpu.memory_space<vmem>>, vector<80x256xf32>
    %c0_20 = arith.constant 0 : index
    %c0_21 = arith.constant 0 : index
    %53 = vector.load %arg6[%c0_20, %c0_21] : memref<1x256xf32, #tpu.memory_space<vmem>>, vector<1x256xf32>
    %c0_22 = arith.constant 0 : index
    %c0_23 = arith.constant 0 : index
    %54 = vector.load %arg7[%c0_22, %c0_23] : memref<256x256xf32, #tpu.memory_space<vmem>>, vector<256x256xf32>
    %c0_24 = arith.constant 0 : index
    %c0_25 = arith.constant 0 : index
    %55 = vector.load %arg8[%c0_24, %c0_25] : memref<1x256xf32, #tpu.memory_space<vmem>>, vector<1x256xf32>
    %c0_26 = arith.constant 0 : index
    %c0_27 = arith.constant 0 : index
    %56 = vector.load %arg9[%c0_26, %c0_27] : memref<256x80xf32, #tpu.memory_space<vmem>>, vector<256x80xf32>
    %c0_28 = arith.constant 0 : index
    %c0_29 = arith.constant 0 : index
    %57 = vector.load %arg10[%c0_28, %c0_29] : memref<1x80xf32, #tpu.memory_space<vmem>>, vector<1x80xf32>
    %cst_30 = arith.constant 0.000000e+00 : f32
    %58 = vector.broadcast %cst_30 : f32 to vector<2x256xf32>
    %cst_31 = arith.constant 0.000000e+00 : f32
    %59 = vector.broadcast %cst_31 : f32 to vector<2x256xf32>
    %cst_32 = arith.constant 0.000000e+00 : f32
    %60 = vector.broadcast %cst_32 : f32 to vector<2x256xf32>
    %cst_33 = arith.constant 0.000000e+00 : f32
    %61 = vector.broadcast %cst_33 : f32 to vector<2x256xf32>
    %cst_34 = arith.constant 0.000000e+00 : f32
    %62 = vector.broadcast %cst_34 : f32 to vector<2x256xf32>
    %cst_35 = arith.constant 0.000000e+00 : f32
    %63 = vector.broadcast %cst_35 : f32 to vector<2x256xf32>
    %cst_36 = arith.constant 0.000000e+00 : f32
    %64 = vector.broadcast %cst_36 : f32 to vector<2x80xf32>
    %cst_37 = arith.constant 0.000000e+00 : f32
    %65 = vector.broadcast %cst_37 : f32 to vector<2x80xf32>
    %cst_38 = arith.constant 0.000000e+00 : f32
    %66 = vector.broadcast %cst_38 : f32 to vector<2x80xf32>
    %cst_39 = arith.constant 5.000000e-01 : f32
    %67 = vector.broadcast %cst_39 : f32 to vector<2x256xf32>
    %cst_40 = arith.constant 5.000000e-01 : f32
    %68 = vector.broadcast %cst_40 : f32 to vector<2x256xf32>
    %cst_41 = arith.constant 5.000000e-01 : f32
    %69 = vector.broadcast %cst_41 : f32 to vector<2x80xf32>
    %cst_42 = arith.constant 0.000000e+00 : f32
    %70 = vector.broadcast %cst_42 : f32 to vector<2x80xf32>
    %cst_43 = arith.constant dense<0.000000e+00> : vector<2x256xf32>
    %71 = tpu.matmul %19, %52, %cst_43 {dimension_numbers = #tpu.dot_dimension_numbers<[1], [0], [0], [1], [0, 0, 1, 1], [], []>} : vector<2x80xf32>, vector<80x256xf32>, vector<2x256xf32> -> vector<2x256xf32>
    %72 = vector.broadcast %53 : vector<1x256xf32> to vector<2x256xf32>
    %73 = arith.addf %71, %72 : vector<2x256xf32>
    %cst_44 = arith.constant 5.000000e-01 : f32
    %74 = vector.broadcast %cst_44 : f32 to vector<2x256xf32>
    %75 = arith.mulf %58, %74 : vector<2x256xf32>
    %76 = arith.addf %75, %73 : vector<2x256xf32>
    %cst_45 = arith.constant 7.500000e-01 : f32
    %77 = vector.broadcast %cst_45 : f32 to vector<2x256xf32>
    %78 = arith.mulf %59, %77 : vector<2x256xf32>
    %cst_46 = arith.constant 1.000000e+00 : f32
    %79 = vector.broadcast %cst_46 : f32 to vector<2x256xf32>
    %80 = arith.subf %79, %60 : vector<2x256xf32>
    %81 = arith.mulf %78, %80 : vector<2x256xf32>
    %82 = arith.addf %81, %76 : vector<2x256xf32>
    %83 = arith.subf %59, %82 : vector<2x256xf32>
    %cst_47 = arith.constant 3.000000e+00 : f32
    %84 = vector.broadcast %cst_47 : f32 to vector<2x256xf32>
    %85 = arith.divf %83, %84 : vector<2x256xf32>
    %86 = math.exp %85 : vector<2x256xf32>
    %cst_48 = arith.constant 1.000000e+00 : f32
    %87 = vector.broadcast %cst_48 : f32 to vector<2x256xf32>
    %88 = arith.subf %86, %87 : vector<2x256xf32>
    %cst_49 = arith.constant 5.000000e-01 : f32
    %89 = vector.broadcast %cst_49 : f32 to vector<2x256xf32>
    %90 = arith.mulf %89, %67 : vector<2x256xf32>
    %cst_50 = arith.constant 5.000000e-01 : f32
    %91 = vector.broadcast %cst_50 : f32 to vector<2x256xf32>
    %92 = arith.mulf %91, %88 : vector<2x256xf32>
    %93 = arith.addf %90, %92 : vector<2x256xf32>
    %94 = arith.cmpf ogt, %82, %93 : vector<2x256xf32>
    %95 = arith.extui %94 : vector<2x256xi1> to vector<2x256xi32>
    %96 = arith.sitofp %95 : vector<2x256xi32> to vector<2x256xf32>
    %97 = vector.shape_cast %82 : vector<2x256xf32> to vector<1x2x256xf32>
    %cst_51 = arith.constant dense<0.000000e+00> : vector<1xf32>
    %98 = vector.multi_reduction <add>, %97, %cst_51 [1, 2] : vector<1x2x256xf32> to vector<1xf32>
    %99 = vector.shape_cast %98 : vector<1xf32> to vector<1x1x1xf32>
    %100 = vector.extract %99[0, 0, 0] : f32 from vector<1x1x1xf32>
    %101 = vector.broadcast %100 : f32 to vector<1x1xf32>
    %cst_52 = arith.constant 5.120000e+02 : f32
    %102 = vector.broadcast %cst_52 : f32 to vector<1x1xf32>
    %103 = arith.divf %101, %102 : vector<1x1xf32>
    %104 = vector.shape_cast %82 : vector<2x256xf32> to vector<1x2x256xf32>
    %cst_53 = arith.constant dense<0xFF800000> : vector<1xf32>
    %105 = vector.multi_reduction <maximumf>, %104, %cst_53 [1, 2] : vector<1x2x256xf32> to vector<1xf32>
    %106 = vector.shape_cast %105 : vector<1xf32> to vector<1x1x1xf32>
    %107 = vector.extract %106[0, 0, 0] : f32 from vector<1x1x1xf32>
    %108 = vector.broadcast %107 : f32 to vector<1x1xf32>
    %109 = vector.shape_cast %82 : vector<2x256xf32> to vector<1x2x256xf32>
    %cst_54 = arith.constant dense<0x7F800000> : vector<1xf32>
    %110 = vector.multi_reduction <minimumf>, %109, %cst_54 [1, 2] : vector<1x2x256xf32> to vector<1xf32>
    %111 = vector.shape_cast %110 : vector<1xf32> to vector<1x1x1xf32>
    %112 = vector.extract %111[0, 0, 0] : f32 from vector<1x1x1xf32>
    %113 = vector.broadcast %112 : f32 to vector<1x1xf32>
    %114 = arith.subf %108, %113 : vector<1x1xf32>
    %cst_55 = arith.constant 2.000000e-01 : f32
    %115 = vector.broadcast %cst_55 : f32 to vector<1x1xf32>
    %116 = arith.mulf %115, %114 : vector<1x1xf32>
    %117 = arith.subf %103, %116 : vector<1x1xf32>
    %118 = vector.shape_cast %93 : vector<2x256xf32> to vector<1x2x256xf32>
    %cst_56 = arith.constant dense<0.000000e+00> : vector<1xf32>
    %119 = vector.multi_reduction <add>, %118, %cst_56 [1, 2] : vector<1x2x256xf32> to vector<1xf32>
    %120 = vector.shape_cast %119 : vector<1xf32> to vector<1x1x1xf32>
    %121 = vector.extract %120[0, 0, 0] : f32 from vector<1x1x1xf32>
    %122 = vector.broadcast %121 : f32 to vector<1x1xf32>
    %cst_57 = arith.constant 5.120000e+02 : f32
    %123 = vector.broadcast %cst_57 : f32 to vector<1x1xf32>
    %124 = arith.divf %122, %123 : vector<1x1xf32>
    %125 = vector.shape_cast %93 : vector<2x256xf32> to vector<1x2x256xf32>
    %cst_58 = arith.constant dense<0xFF800000> : vector<1xf32>
    %126 = vector.multi_reduction <maximumf>, %125, %cst_58 [1, 2] : vector<1x2x256xf32> to vector<1xf32>
    %127 = vector.shape_cast %126 : vector<1xf32> to vector<1x1x1xf32>
    %128 = vector.extract %127[0, 0, 0] : f32 from vector<1x1x1xf32>
    %129 = vector.broadcast %128 : f32 to vector<1x1xf32>
    %130 = vector.shape_cast %93 : vector<2x256xf32> to vector<1x2x256xf32>
    %cst_59 = arith.constant dense<0x7F800000> : vector<1xf32>
    %131 = vector.multi_reduction <minimumf>, %130, %cst_59 [1, 2] : vector<1x2x256xf32> to vector<1xf32>
    %132 = vector.shape_cast %131 : vector<1xf32> to vector<1x1x1xf32>
    %133 = vector.extract %132[0, 0, 0] : f32 from vector<1x1x1xf32>
    %134 = vector.broadcast %133 : f32 to vector<1x1xf32>
    %135 = arith.subf %129, %134 : vector<1x1xf32>
    %cst_60 = arith.constant 2.000000e-01 : f32
    %136 = vector.broadcast %cst_60 : f32 to vector<1x1xf32>
    %137 = arith.mulf %136, %135 : vector<1x1xf32>
    %138 = arith.subf %124, %137 : vector<1x1xf32>
    %139 = vector.broadcast %117 : vector<1x1xf32> to vector<2x256xf32>
    %140 = arith.subf %82, %139 : vector<2x256xf32>
    %cst_61 = arith.constant 0.00999999977 : f32
    %141 = vector.broadcast %cst_61 : f32 to vector<2x256xf32>
    %142 = arith.mulf %141, %140 : vector<2x256xf32>
    %143 = vector.broadcast %138 : vector<1x1xf32> to vector<2x256xf32>
    %144 = arith.addf %142, %143 : vector<2x256xf32>
    %cst_62 = arith.constant 6.000000e+00 : f32
    %145 = vector.broadcast %cst_62 : f32 to vector<2x256xf32>
    %146 = arith.divf %140, %145 : vector<2x256xf32>
    %cst_63 = arith.constant 0.000000e+00 : f32
    %147 = vector.broadcast %cst_63 : f32 to vector<2x256xf32>
    %148 = arith.maximumf %146, %147 : vector<2x256xf32>
    %149 = math.absf %146 : vector<2x256xf32>
    %cst_64 = arith.constant 0.000000e+00 : f32
    %150 = vector.broadcast %cst_64 : f32 to vector<2x256xf32>
    %151 = arith.subf %150, %149 : vector<2x256xf32>
    %152 = math.exp %151 : vector<2x256xf32>
    %cst_65 = arith.constant 1.000000e+00 : f32
    %153 = vector.broadcast %cst_65 : f32 to vector<2x256xf32>
    %154 = arith.addf %153, %152 : vector<2x256xf32>
    %155 = math.log %154 : vector<2x256xf32>
    %156 = arith.addf %148, %155 : vector<2x256xf32>
    %157 = arith.addf %144, %156 : vector<2x256xf32>
    %cst_66 = arith.constant dense<0.000000e+00> : vector<2x256xf32>
    %158 = tpu.matmul %96, %54, %cst_66 {dimension_numbers = #tpu.dot_dimension_numbers<[1], [0], [0], [1], [0, 0, 1, 1], [], []>} : vector<2x256xf32>, vector<256x256xf32>, vector<2x256xf32> -> vector<2x256xf32>
    %159 = vector.broadcast %55 : vector<1x256xf32> to vector<2x256xf32>
    %160 = arith.addf %158, %159 : vector<2x256xf32>
    %cst_67 = arith.constant 5.000000e-01 : f32
    %161 = vector.broadcast %cst_67 : f32 to vector<2x256xf32>
    %162 = arith.mulf %61, %161 : vector<2x256xf32>
    %163 = arith.addf %162, %160 : vector<2x256xf32>
    %cst_68 = arith.constant 7.500000e-01 : f32
    %164 = vector.broadcast %cst_68 : f32 to vector<2x256xf32>
    %165 = arith.mulf %62, %164 : vector<2x256xf32>
    %cst_69 = arith.constant 1.000000e+00 : f32
    %166 = vector.broadcast %cst_69 : f32 to vector<2x256xf32>
    %167 = arith.subf %166, %63 : vector<2x256xf32>
    %168 = arith.mulf %165, %167 : vector<2x256xf32>
    %169 = arith.addf %168, %163 : vector<2x256xf32>
    %170 = arith.subf %62, %169 : vector<2x256xf32>
    %cst_70 = arith.constant 3.000000e+00 : f32
    %171 = vector.broadcast %cst_70 : f32 to vector<2x256xf32>
    %172 = arith.divf %170, %171 : vector<2x256xf32>
    %173 = math.exp %172 : vector<2x256xf32>
    %cst_71 = arith.constant 1.000000e+00 : f32
    %174 = vector.broadcast %cst_71 : f32 to vector<2x256xf32>
    %175 = arith.subf %173, %174 : vector<2x256xf32>
    %cst_72 = arith.constant 5.000000e-01 : f32
    %176 = vector.broadcast %cst_72 : f32 to vector<2x256xf32>
    %177 = arith.mulf %176, %68 : vector<2x256xf32>
    %cst_73 = arith.constant 5.000000e-01 : f32
    %178 = vector.broadcast %cst_73 : f32 to vector<2x256xf32>
    %179 = arith.mulf %178, %175 : vector<2x256xf32>
    %180 = arith.addf %177, %179 : vector<2x256xf32>
    %181 = arith.cmpf ogt, %169, %180 : vector<2x256xf32>
    %182 = arith.extui %181 : vector<2x256xi1> to vector<2x256xi32>
    %183 = arith.sitofp %182 : vector<2x256xi32> to vector<2x256xf32>
    %184 = vector.shape_cast %169 : vector<2x256xf32> to vector<1x2x256xf32>
    %cst_74 = arith.constant dense<0.000000e+00> : vector<1xf32>
    %185 = vector.multi_reduction <add>, %184, %cst_74 [1, 2] : vector<1x2x256xf32> to vector<1xf32>
    %186 = vector.shape_cast %185 : vector<1xf32> to vector<1x1x1xf32>
    %187 = vector.extract %186[0, 0, 0] : f32 from vector<1x1x1xf32>
    %188 = vector.broadcast %187 : f32 to vector<1x1xf32>
    %cst_75 = arith.constant 5.120000e+02 : f32
    %189 = vector.broadcast %cst_75 : f32 to vector<1x1xf32>
    %190 = arith.divf %188, %189 : vector<1x1xf32>
    %191 = vector.shape_cast %169 : vector<2x256xf32> to vector<1x2x256xf32>
    %cst_76 = arith.constant dense<0xFF800000> : vector<1xf32>
    %192 = vector.multi_reduction <maximumf>, %191, %cst_76 [1, 2] : vector<1x2x256xf32> to vector<1xf32>
    %193 = vector.shape_cast %192 : vector<1xf32> to vector<1x1x1xf32>
    %194 = vector.extract %193[0, 0, 0] : f32 from vector<1x1x1xf32>
    %195 = vector.broadcast %194 : f32 to vector<1x1xf32>
    %196 = vector.shape_cast %169 : vector<2x256xf32> to vector<1x2x256xf32>
    %cst_77 = arith.constant dense<0x7F800000> : vector<1xf32>
    %197 = vector.multi_reduction <minimumf>, %196, %cst_77 [1, 2] : vector<1x2x256xf32> to vector<1xf32>
    %198 = vector.shape_cast %197 : vector<1xf32> to vector<1x1x1xf32>
    %199 = vector.extract %198[0, 0, 0] : f32 from vector<1x1x1xf32>
    %200 = vector.broadcast %199 : f32 to vector<1x1xf32>
    %201 = arith.subf %195, %200 : vector<1x1xf32>
    %cst_78 = arith.constant 2.000000e-01 : f32
    %202 = vector.broadcast %cst_78 : f32 to vector<1x1xf32>
    %203 = arith.mulf %202, %201 : vector<1x1xf32>
    %204 = arith.subf %190, %203 : vector<1x1xf32>
    %205 = vector.shape_cast %180 : vector<2x256xf32> to vector<1x2x256xf32>
    %cst_79 = arith.constant dense<0.000000e+00> : vector<1xf32>
    %206 = vector.multi_reduction <add>, %205, %cst_79 [1, 2] : vector<1x2x256xf32> to vector<1xf32>
    %207 = vector.shape_cast %206 : vector<1xf32> to vector<1x1x1xf32>
    %208 = vector.extract %207[0, 0, 0] : f32 from vector<1x1x1xf32>
    %209 = vector.broadcast %208 : f32 to vector<1x1xf32>
    %cst_80 = arith.constant 5.120000e+02 : f32
    %210 = vector.broadcast %cst_80 : f32 to vector<1x1xf32>
    %211 = arith.divf %209, %210 : vector<1x1xf32>
    %212 = vector.shape_cast %180 : vector<2x256xf32> to vector<1x2x256xf32>
    %cst_81 = arith.constant dense<0xFF800000> : vector<1xf32>
    %213 = vector.multi_reduction <maximumf>, %212, %cst_81 [1, 2] : vector<1x2x256xf32> to vector<1xf32>
    %214 = vector.shape_cast %213 : vector<1xf32> to vector<1x1x1xf32>
    %215 = vector.extract %214[0, 0, 0] : f32 from vector<1x1x1xf32>
    %216 = vector.broadcast %215 : f32 to vector<1x1xf32>
    %217 = vector.shape_cast %180 : vector<2x256xf32> to vector<1x2x256xf32>
    %cst_82 = arith.constant dense<0x7F800000> : vector<1xf32>
    %218 = vector.multi_reduction <minimumf>, %217, %cst_82 [1, 2] : vector<1x2x256xf32> to vector<1xf32>
    %219 = vector.shape_cast %218 : vector<1xf32> to vector<1x1x1xf32>
    %220 = vector.extract %219[0, 0, 0] : f32 from vector<1x1x1xf32>
    %221 = vector.broadcast %220 : f32 to vector<1x1xf32>
    %222 = arith.subf %216, %221 : vector<1x1xf32>
    %cst_83 = arith.constant 2.000000e-01 : f32
    %223 = vector.broadcast %cst_83 : f32 to vector<1x1xf32>
    %224 = arith.mulf %223, %222 : vector<1x1xf32>
    %225 = arith.subf %211, %224 : vector<1x1xf32>
    %226 = vector.broadcast %204 : vector<1x1xf32> to vector<2x256xf32>
    %227 = arith.subf %169, %226 : vector<2x256xf32>
    %cst_84 = arith.constant 0.00999999977 : f32
    %228 = vector.broadcast %cst_84 : f32 to vector<2x256xf32>
    %229 = arith.mulf %228, %227 : vector<2x256xf32>
    %230 = vector.broadcast %225 : vector<1x1xf32> to vector<2x256xf32>
    %231 = arith.addf %229, %230 : vector<2x256xf32>
    %cst_85 = arith.constant 6.000000e+00 : f32
    %232 = vector.broadcast %cst_85 : f32 to vector<2x256xf32>
    %233 = arith.divf %227, %232 : vector<2x256xf32>
    %cst_86 = arith.constant 0.000000e+00 : f32
    %234 = vector.broadcast %cst_86 : f32 to vector<2x256xf32>
    %235 = arith.maximumf %233, %234 : vector<2x256xf32>
    %236 = math.absf %233 : vector<2x256xf32>
    %cst_87 = arith.constant 0.000000e+00 : f32
    %237 = vector.broadcast %cst_87 : f32 to vector<2x256xf32>
    %238 = arith.subf %237, %236 : vector<2x256xf32>
    %239 = math.exp %238 : vector<2x256xf32>
    %cst_88 = arith.constant 1.000000e+00 : f32
    %240 = vector.broadcast %cst_88 : f32 to vector<2x256xf32>
    %241 = arith.addf %240, %239 : vector<2x256xf32>
    %242 = math.log %241 : vector<2x256xf32>
    %243 = arith.addf %235, %242 : vector<2x256xf32>
    %244 = arith.addf %231, %243 : vector<2x256xf32>
    %cst_89 = arith.constant dense<0.000000e+00> : vector<2x80xf32>
    %245 = tpu.matmul %183, %56, %cst_89 {dimension_numbers = #tpu.dot_dimension_numbers<[1], [0], [0], [1], [0, 0, 1, 1], [], []>} : vector<2x256xf32>, vector<256x80xf32>, vector<2x80xf32> -> vector<2x80xf32>
    %246 = vector.broadcast %57 : vector<1x80xf32> to vector<2x80xf32>
    %247 = arith.addf %245, %246 : vector<2x80xf32>
    %cst_90 = arith.constant 5.000000e-01 : f32
    %248 = vector.broadcast %cst_90 : f32 to vector<2x80xf32>
    %249 = arith.mulf %64, %248 : vector<2x80xf32>
    %250 = arith.addf %249, %247 : vector<2x80xf32>
    %cst_91 = arith.constant 7.500000e-01 : f32
    %251 = vector.broadcast %cst_91 : f32 to vector<2x80xf32>
    %252 = arith.mulf %65, %251 : vector<2x80xf32>
    %cst_92 = arith.constant 1.000000e+00 : f32
    %253 = vector.broadcast %cst_92 : f32 to vector<2x80xf32>
    %254 = arith.subf %253, %66 : vector<2x80xf32>
    %255 = arith.mulf %252, %254 : vector<2x80xf32>
    %256 = arith.addf %255, %250 : vector<2x80xf32>
    %257 = arith.subf %65, %256 : vector<2x80xf32>
    %cst_93 = arith.constant 3.000000e+00 : f32
    %258 = vector.broadcast %cst_93 : f32 to vector<2x80xf32>
    %259 = arith.divf %257, %258 : vector<2x80xf32>
    %260 = math.exp %259 : vector<2x80xf32>
    %cst_94 = arith.constant 1.000000e+00 : f32
    %261 = vector.broadcast %cst_94 : f32 to vector<2x80xf32>
    %262 = arith.subf %260, %261 : vector<2x80xf32>
    %cst_95 = arith.constant 5.000000e-01 : f32
    %263 = vector.broadcast %cst_95 : f32 to vector<2x80xf32>
    %264 = arith.mulf %263, %69 : vector<2x80xf32>
    %cst_96 = arith.constant 5.000000e-01 : f32
    %265 = vector.broadcast %cst_96 : f32 to vector<2x80xf32>
    %266 = arith.mulf %265, %262 : vector<2x80xf32>
    %267 = arith.addf %264, %266 : vector<2x80xf32>
    %268 = arith.cmpf ogt, %256, %267 : vector<2x80xf32>
    %269 = arith.extui %268 : vector<2x80xi1> to vector<2x80xi32>
    %270 = arith.sitofp %269 : vector<2x80xi32> to vector<2x80xf32>
    %271 = vector.shape_cast %256 : vector<2x80xf32> to vector<1x2x80xf32>
    %cst_97 = arith.constant dense<0.000000e+00> : vector<1xf32>
    %272 = vector.multi_reduction <add>, %271, %cst_97 [1, 2] : vector<1x2x80xf32> to vector<1xf32>
    %273 = vector.shape_cast %272 : vector<1xf32> to vector<1x1x1xf32>
    %274 = vector.extract %273[0, 0, 0] : f32 from vector<1x1x1xf32>
    %275 = vector.broadcast %274 : f32 to vector<1x1xf32>
    %cst_98 = arith.constant 1.600000e+02 : f32
    %276 = vector.broadcast %cst_98 : f32 to vector<1x1xf32>
    %277 = arith.divf %275, %276 : vector<1x1xf32>
    %278 = vector.shape_cast %256 : vector<2x80xf32> to vector<1x2x80xf32>
    %cst_99 = arith.constant dense<0xFF800000> : vector<1xf32>
    %279 = vector.multi_reduction <maximumf>, %278, %cst_99 [1, 2] : vector<1x2x80xf32> to vector<1xf32>
    %280 = vector.shape_cast %279 : vector<1xf32> to vector<1x1x1xf32>
    %281 = vector.extract %280[0, 0, 0] : f32 from vector<1x1x1xf32>
    %282 = vector.broadcast %281 : f32 to vector<1x1xf32>
    %283 = vector.shape_cast %256 : vector<2x80xf32> to vector<1x2x80xf32>
    %cst_100 = arith.constant dense<0x7F800000> : vector<1xf32>
    %284 = vector.multi_reduction <minimumf>, %283, %cst_100 [1, 2] : vector<1x2x80xf32> to vector<1xf32>
    %285 = vector.shape_cast %284 : vector<1xf32> to vector<1x1x1xf32>
    %286 = vector.extract %285[0, 0, 0] : f32 from vector<1x1x1xf32>
    %287 = vector.broadcast %286 : f32 to vector<1x1xf32>
    %288 = arith.subf %282, %287 : vector<1x1xf32>
    %cst_101 = arith.constant 2.000000e-01 : f32
    %289 = vector.broadcast %cst_101 : f32 to vector<1x1xf32>
    %290 = arith.mulf %289, %288 : vector<1x1xf32>
    %291 = arith.subf %277, %290 : vector<1x1xf32>
    %292 = vector.shape_cast %267 : vector<2x80xf32> to vector<1x2x80xf32>
    %cst_102 = arith.constant dense<0.000000e+00> : vector<1xf32>
    %293 = vector.multi_reduction <add>, %292, %cst_102 [1, 2] : vector<1x2x80xf32> to vector<1xf32>
    %294 = vector.shape_cast %293 : vector<1xf32> to vector<1x1x1xf32>
    %295 = vector.extract %294[0, 0, 0] : f32 from vector<1x1x1xf32>
    %296 = vector.broadcast %295 : f32 to vector<1x1xf32>
    %cst_103 = arith.constant 1.600000e+02 : f32
    %297 = vector.broadcast %cst_103 : f32 to vector<1x1xf32>
    %298 = arith.divf %296, %297 : vector<1x1xf32>
    %299 = vector.shape_cast %267 : vector<2x80xf32> to vector<1x2x80xf32>
    %cst_104 = arith.constant dense<0xFF800000> : vector<1xf32>
    %300 = vector.multi_reduction <maximumf>, %299, %cst_104 [1, 2] : vector<1x2x80xf32> to vector<1xf32>
    %301 = vector.shape_cast %300 : vector<1xf32> to vector<1x1x1xf32>
    %302 = vector.extract %301[0, 0, 0] : f32 from vector<1x1x1xf32>
    %303 = vector.broadcast %302 : f32 to vector<1x1xf32>
    %304 = vector.shape_cast %267 : vector<2x80xf32> to vector<1x2x80xf32>
    %cst_105 = arith.constant dense<0x7F800000> : vector<1xf32>
    %305 = vector.multi_reduction <minimumf>, %304, %cst_105 [1, 2] : vector<1x2x80xf32> to vector<1xf32>
    %306 = vector.shape_cast %305 : vector<1xf32> to vector<1x1x1xf32>
    %307 = vector.extract %306[0, 0, 0] : f32 from vector<1x1x1xf32>
    %308 = vector.broadcast %307 : f32 to vector<1x1xf32>
    %309 = arith.subf %303, %308 : vector<1x1xf32>
    %cst_106 = arith.constant 2.000000e-01 : f32
    %310 = vector.broadcast %cst_106 : f32 to vector<1x1xf32>
    %311 = arith.mulf %310, %309 : vector<1x1xf32>
    %312 = arith.subf %298, %311 : vector<1x1xf32>
    %313 = vector.broadcast %291 : vector<1x1xf32> to vector<2x80xf32>
    %314 = arith.subf %256, %313 : vector<2x80xf32>
    %cst_107 = arith.constant 0.00999999977 : f32
    %315 = vector.broadcast %cst_107 : f32 to vector<2x80xf32>
    %316 = arith.mulf %315, %314 : vector<2x80xf32>
    %317 = vector.broadcast %312 : vector<1x1xf32> to vector<2x80xf32>
    %318 = arith.addf %316, %317 : vector<2x80xf32>
    %cst_108 = arith.constant 6.000000e+00 : f32
    %319 = vector.broadcast %cst_108 : f32 to vector<2x80xf32>
    %320 = arith.divf %314, %319 : vector<2x80xf32>
    %cst_109 = arith.constant 0.000000e+00 : f32
    %321 = vector.broadcast %cst_109 : f32 to vector<2x80xf32>
    %322 = arith.maximumf %320, %321 : vector<2x80xf32>
    %323 = math.absf %320 : vector<2x80xf32>
    %cst_110 = arith.constant 0.000000e+00 : f32
    %324 = vector.broadcast %cst_110 : f32 to vector<2x80xf32>
    %325 = arith.subf %324, %323 : vector<2x80xf32>
    %326 = math.exp %325 : vector<2x80xf32>
    %cst_111 = arith.constant 1.000000e+00 : f32
    %327 = vector.broadcast %cst_111 : f32 to vector<2x80xf32>
    %328 = arith.addf %327, %326 : vector<2x80xf32>
    %329 = math.log %328 : vector<2x80xf32>
    %330 = arith.addf %322, %329 : vector<2x80xf32>
    %331 = arith.addf %318, %330 : vector<2x80xf32>
    %332 = arith.addf %70, %270 : vector<2x80xf32>
    %cst_112 = arith.constant dense<0.000000e+00> : vector<2x256xf32>
    %333 = tpu.matmul %27, %52, %cst_112 {dimension_numbers = #tpu.dot_dimension_numbers<[1], [0], [0], [1], [0, 0, 1, 1], [], []>} : vector<2x80xf32>, vector<80x256xf32>, vector<2x256xf32> -> vector<2x256xf32>
    %334 = vector.broadcast %53 : vector<1x256xf32> to vector<2x256xf32>
    %335 = arith.addf %333, %334 : vector<2x256xf32>
    %cst_113 = arith.constant 5.000000e-01 : f32
    %336 = vector.broadcast %cst_113 : f32 to vector<2x256xf32>
    %337 = arith.mulf %76, %336 : vector<2x256xf32>
    %338 = arith.addf %337, %335 : vector<2x256xf32>
    %cst_114 = arith.constant 7.500000e-01 : f32
    %339 = vector.broadcast %cst_114 : f32 to vector<2x256xf32>
    %340 = arith.mulf %82, %339 : vector<2x256xf32>
    %cst_115 = arith.constant 1.000000e+00 : f32
    %341 = vector.broadcast %cst_115 : f32 to vector<2x256xf32>
    %342 = arith.subf %341, %96 : vector<2x256xf32>
    %343 = arith.mulf %340, %342 : vector<2x256xf32>
    %344 = arith.addf %343, %338 : vector<2x256xf32>
    %345 = arith.subf %82, %344 : vector<2x256xf32>
    %cst_116 = arith.constant 3.000000e+00 : f32
    %346 = vector.broadcast %cst_116 : f32 to vector<2x256xf32>
    %347 = arith.divf %345, %346 : vector<2x256xf32>
    %348 = math.exp %347 : vector<2x256xf32>
    %cst_117 = arith.constant 1.000000e+00 : f32
    %349 = vector.broadcast %cst_117 : f32 to vector<2x256xf32>
    %350 = arith.subf %348, %349 : vector<2x256xf32>
    %cst_118 = arith.constant 5.000000e-01 : f32
    %351 = vector.broadcast %cst_118 : f32 to vector<2x256xf32>
    %352 = arith.mulf %351, %157 : vector<2x256xf32>
    %cst_119 = arith.constant 5.000000e-01 : f32
    %353 = vector.broadcast %cst_119 : f32 to vector<2x256xf32>
    %354 = arith.mulf %353, %350 : vector<2x256xf32>
    %355 = arith.addf %352, %354 : vector<2x256xf32>
    %356 = arith.cmpf ogt, %344, %355 : vector<2x256xf32>
    %357 = arith.extui %356 : vector<2x256xi1> to vector<2x256xi32>
    %358 = arith.sitofp %357 : vector<2x256xi32> to vector<2x256xf32>
    %359 = vector.shape_cast %344 : vector<2x256xf32> to vector<1x2x256xf32>
    %cst_120 = arith.constant dense<0.000000e+00> : vector<1xf32>
    %360 = vector.multi_reduction <add>, %359, %cst_120 [1, 2] : vector<1x2x256xf32> to vector<1xf32>
    %361 = vector.shape_cast %360 : vector<1xf32> to vector<1x1x1xf32>
    %362 = vector.extract %361[0, 0, 0] : f32 from vector<1x1x1xf32>
    %363 = vector.broadcast %362 : f32 to vector<1x1xf32>
    %cst_121 = arith.constant 5.120000e+02 : f32
    %364 = vector.broadcast %cst_121 : f32 to vector<1x1xf32>
    %365 = arith.divf %363, %364 : vector<1x1xf32>
    %366 = vector.shape_cast %344 : vector<2x256xf32> to vector<1x2x256xf32>
    %cst_122 = arith.constant dense<0xFF800000> : vector<1xf32>
    %367 = vector.multi_reduction <maximumf>, %366, %cst_122 [1, 2] : vector<1x2x256xf32> to vector<1xf32>
    %368 = vector.shape_cast %367 : vector<1xf32> to vector<1x1x1xf32>
    %369 = vector.extract %368[0, 0, 0] : f32 from vector<1x1x1xf32>
    %370 = vector.broadcast %369 : f32 to vector<1x1xf32>
    %371 = vector.shape_cast %344 : vector<2x256xf32> to vector<1x2x256xf32>
    %cst_123 = arith.constant dense<0x7F800000> : vector<1xf32>
    %372 = vector.multi_reduction <minimumf>, %371, %cst_123 [1, 2] : vector<1x2x256xf32> to vector<1xf32>
    %373 = vector.shape_cast %372 : vector<1xf32> to vector<1x1x1xf32>
    %374 = vector.extract %373[0, 0, 0] : f32 from vector<1x1x1xf32>
    %375 = vector.broadcast %374 : f32 to vector<1x1xf32>
    %376 = arith.subf %370, %375 : vector<1x1xf32>
    %cst_124 = arith.constant 2.000000e-01 : f32
    %377 = vector.broadcast %cst_124 : f32 to vector<1x1xf32>
    %378 = arith.mulf %377, %376 : vector<1x1xf32>
    %379 = arith.subf %365, %378 : vector<1x1xf32>
    %380 = vector.shape_cast %355 : vector<2x256xf32> to vector<1x2x256xf32>
    %cst_125 = arith.constant dense<0.000000e+00> : vector<1xf32>
    %381 = vector.multi_reduction <add>, %380, %cst_125 [1, 2] : vector<1x2x256xf32> to vector<1xf32>
    %382 = vector.shape_cast %381 : vector<1xf32> to vector<1x1x1xf32>
    %383 = vector.extract %382[0, 0, 0] : f32 from vector<1x1x1xf32>
    %384 = vector.broadcast %383 : f32 to vector<1x1xf32>
    %cst_126 = arith.constant 5.120000e+02 : f32
    %385 = vector.broadcast %cst_126 : f32 to vector<1x1xf32>
    %386 = arith.divf %384, %385 : vector<1x1xf32>
    %387 = vector.shape_cast %355 : vector<2x256xf32> to vector<1x2x256xf32>
    %cst_127 = arith.constant dense<0xFF800000> : vector<1xf32>
    %388 = vector.multi_reduction <maximumf>, %387, %cst_127 [1, 2] : vector<1x2x256xf32> to vector<1xf32>
    %389 = vector.shape_cast %388 : vector<1xf32> to vector<1x1x1xf32>
    %390 = vector.extract %389[0, 0, 0] : f32 from vector<1x1x1xf32>
    %391 = vector.broadcast %390 : f32 to vector<1x1xf32>
    %392 = vector.shape_cast %355 : vector<2x256xf32> to vector<1x2x256xf32>
    %cst_128 = arith.constant dense<0x7F800000> : vector<1xf32>
    %393 = vector.multi_reduction <minimumf>, %392, %cst_128 [1, 2] : vector<1x2x256xf32> to vector<1xf32>
    %394 = vector.shape_cast %393 : vector<1xf32> to vector<1x1x1xf32>
    %395 = vector.extract %394[0, 0, 0] : f32 from vector<1x1x1xf32>
    %396 = vector.broadcast %395 : f32 to vector<1x1xf32>
    %397 = arith.subf %391, %396 : vector<1x1xf32>
    %cst_129 = arith.constant 2.000000e-01 : f32
    %398 = vector.broadcast %cst_129 : f32 to vector<1x1xf32>
    %399 = arith.mulf %398, %397 : vector<1x1xf32>
    %400 = arith.subf %386, %399 : vector<1x1xf32>
    %401 = vector.broadcast %379 : vector<1x1xf32> to vector<2x256xf32>
    %402 = arith.subf %344, %401 : vector<2x256xf32>
    %cst_130 = arith.constant 0.00999999977 : f32
    %403 = vector.broadcast %cst_130 : f32 to vector<2x256xf32>
    %404 = arith.mulf %403, %402 : vector<2x256xf32>
    %405 = vector.broadcast %400 : vector<1x1xf32> to vector<2x256xf32>
    %406 = arith.addf %404, %405 : vector<2x256xf32>
    %cst_131 = arith.constant 6.000000e+00 : f32
    %407 = vector.broadcast %cst_131 : f32 to vector<2x256xf32>
    %408 = arith.divf %402, %407 : vector<2x256xf32>
    %cst_132 = arith.constant 0.000000e+00 : f32
    %409 = vector.broadcast %cst_132 : f32 to vector<2x256xf32>
    %410 = arith.maximumf %408, %409 : vector<2x256xf32>
    %411 = math.absf %408 : vector<2x256xf32>
    %cst_133 = arith.constant 0.000000e+00 : f32
    %412 = vector.broadcast %cst_133 : f32 to vector<2x256xf32>
    %413 = arith.subf %412, %411 : vector<2x256xf32>
    %414 = math.exp %413 : vector<2x256xf32>
    %cst_134 = arith.constant 1.000000e+00 : f32
    %415 = vector.broadcast %cst_134 : f32 to vector<2x256xf32>
    %416 = arith.addf %415, %414 : vector<2x256xf32>
    %417 = math.log %416 : vector<2x256xf32>
    %418 = arith.addf %410, %417 : vector<2x256xf32>
    %419 = arith.addf %406, %418 : vector<2x256xf32>
    %cst_135 = arith.constant dense<0.000000e+00> : vector<2x256xf32>
    %420 = tpu.matmul %358, %54, %cst_135 {dimension_numbers = #tpu.dot_dimension_numbers<[1], [0], [0], [1], [0, 0, 1, 1], [], []>} : vector<2x256xf32>, vector<256x256xf32>, vector<2x256xf32> -> vector<2x256xf32>
    %421 = vector.broadcast %55 : vector<1x256xf32> to vector<2x256xf32>
    %422 = arith.addf %420, %421 : vector<2x256xf32>
    %cst_136 = arith.constant 5.000000e-01 : f32
    %423 = vector.broadcast %cst_136 : f32 to vector<2x256xf32>
    %424 = arith.mulf %163, %423 : vector<2x256xf32>
    %425 = arith.addf %424, %422 : vector<2x256xf32>
    %cst_137 = arith.constant 7.500000e-01 : f32
    %426 = vector.broadcast %cst_137 : f32 to vector<2x256xf32>
    %427 = arith.mulf %169, %426 : vector<2x256xf32>
    %cst_138 = arith.constant 1.000000e+00 : f32
    %428 = vector.broadcast %cst_138 : f32 to vector<2x256xf32>
    %429 = arith.subf %428, %183 : vector<2x256xf32>
    %430 = arith.mulf %427, %429 : vector<2x256xf32>
    %431 = arith.addf %430, %425 : vector<2x256xf32>
    %432 = arith.subf %169, %431 : vector<2x256xf32>
    %cst_139 = arith.constant 3.000000e+00 : f32
    %433 = vector.broadcast %cst_139 : f32 to vector<2x256xf32>
    %434 = arith.divf %432, %433 : vector<2x256xf32>
    %435 = math.exp %434 : vector<2x256xf32>
    %cst_140 = arith.constant 1.000000e+00 : f32
    %436 = vector.broadcast %cst_140 : f32 to vector<2x256xf32>
    %437 = arith.subf %435, %436 : vector<2x256xf32>
    %cst_141 = arith.constant 5.000000e-01 : f32
    %438 = vector.broadcast %cst_141 : f32 to vector<2x256xf32>
    %439 = arith.mulf %438, %244 : vector<2x256xf32>
    %cst_142 = arith.constant 5.000000e-01 : f32
    %440 = vector.broadcast %cst_142 : f32 to vector<2x256xf32>
    %441 = arith.mulf %440, %437 : vector<2x256xf32>
    %442 = arith.addf %439, %441 : vector<2x256xf32>
    %443 = arith.cmpf ogt, %431, %442 : vector<2x256xf32>
    %444 = arith.extui %443 : vector<2x256xi1> to vector<2x256xi32>
    %445 = arith.sitofp %444 : vector<2x256xi32> to vector<2x256xf32>
    %446 = vector.shape_cast %431 : vector<2x256xf32> to vector<1x2x256xf32>
    %cst_143 = arith.constant dense<0.000000e+00> : vector<1xf32>
    %447 = vector.multi_reduction <add>, %446, %cst_143 [1, 2] : vector<1x2x256xf32> to vector<1xf32>
    %448 = vector.shape_cast %447 : vector<1xf32> to vector<1x1x1xf32>
    %449 = vector.extract %448[0, 0, 0] : f32 from vector<1x1x1xf32>
    %450 = vector.broadcast %449 : f32 to vector<1x1xf32>
    %cst_144 = arith.constant 5.120000e+02 : f32
    %451 = vector.broadcast %cst_144 : f32 to vector<1x1xf32>
    %452 = arith.divf %450, %451 : vector<1x1xf32>
    %453 = vector.shape_cast %431 : vector<2x256xf32> to vector<1x2x256xf32>
    %cst_145 = arith.constant dense<0xFF800000> : vector<1xf32>
    %454 = vector.multi_reduction <maximumf>, %453, %cst_145 [1, 2] : vector<1x2x256xf32> to vector<1xf32>
    %455 = vector.shape_cast %454 : vector<1xf32> to vector<1x1x1xf32>
    %456 = vector.extract %455[0, 0, 0] : f32 from vector<1x1x1xf32>
    %457 = vector.broadcast %456 : f32 to vector<1x1xf32>
    %458 = vector.shape_cast %431 : vector<2x256xf32> to vector<1x2x256xf32>
    %cst_146 = arith.constant dense<0x7F800000> : vector<1xf32>
    %459 = vector.multi_reduction <minimumf>, %458, %cst_146 [1, 2] : vector<1x2x256xf32> to vector<1xf32>
    %460 = vector.shape_cast %459 : vector<1xf32> to vector<1x1x1xf32>
    %461 = vector.extract %460[0, 0, 0] : f32 from vector<1x1x1xf32>
    %462 = vector.broadcast %461 : f32 to vector<1x1xf32>
    %463 = arith.subf %457, %462 : vector<1x1xf32>
    %cst_147 = arith.constant 2.000000e-01 : f32
    %464 = vector.broadcast %cst_147 : f32 to vector<1x1xf32>
    %465 = arith.mulf %464, %463 : vector<1x1xf32>
    %466 = arith.subf %452, %465 : vector<1x1xf32>
    %467 = vector.shape_cast %442 : vector<2x256xf32> to vector<1x2x256xf32>
    %cst_148 = arith.constant dense<0.000000e+00> : vector<1xf32>
    %468 = vector.multi_reduction <add>, %467, %cst_148 [1, 2] : vector<1x2x256xf32> to vector<1xf32>
    %469 = vector.shape_cast %468 : vector<1xf32> to vector<1x1x1xf32>
    %470 = vector.extract %469[0, 0, 0] : f32 from vector<1x1x1xf32>
    %471 = vector.broadcast %470 : f32 to vector<1x1xf32>
    %cst_149 = arith.constant 5.120000e+02 : f32
    %472 = vector.broadcast %cst_149 : f32 to vector<1x1xf32>
    %473 = arith.divf %471, %472 : vector<1x1xf32>
    %474 = vector.shape_cast %442 : vector<2x256xf32> to vector<1x2x256xf32>
    %cst_150 = arith.constant dense<0xFF800000> : vector<1xf32>
    %475 = vector.multi_reduction <maximumf>, %474, %cst_150 [1, 2] : vector<1x2x256xf32> to vector<1xf32>
    %476 = vector.shape_cast %475 : vector<1xf32> to vector<1x1x1xf32>
    %477 = vector.extract %476[0, 0, 0] : f32 from vector<1x1x1xf32>
    %478 = vector.broadcast %477 : f32 to vector<1x1xf32>
    %479 = vector.shape_cast %442 : vector<2x256xf32> to vector<1x2x256xf32>
    %cst_151 = arith.constant dense<0x7F800000> : vector<1xf32>
    %480 = vector.multi_reduction <minimumf>, %479, %cst_151 [1, 2] : vector<1x2x256xf32> to vector<1xf32>
    %481 = vector.shape_cast %480 : vector<1xf32> to vector<1x1x1xf32>
    %482 = vector.extract %481[0, 0, 0] : f32 from vector<1x1x1xf32>
    %483 = vector.broadcast %482 : f32 to vector<1x1xf32>
    %484 = arith.subf %478, %483 : vector<1x1xf32>
    %cst_152 = arith.constant 2.000000e-01 : f32
    %485 = vector.broadcast %cst_152 : f32 to vector<1x1xf32>
    %486 = arith.mulf %485, %484 : vector<1x1xf32>
    %487 = arith.subf %473, %486 : vector<1x1xf32>
    %488 = vector.broadcast %466 : vector<1x1xf32> to vector<2x256xf32>
    %489 = arith.subf %431, %488 : vector<2x256xf32>
    %cst_153 = arith.constant 0.00999999977 : f32
    %490 = vector.broadcast %cst_153 : f32 to vector<2x256xf32>
    %491 = arith.mulf %490, %489 : vector<2x256xf32>
    %492 = vector.broadcast %487 : vector<1x1xf32> to vector<2x256xf32>
    %493 = arith.addf %491, %492 : vector<2x256xf32>
    %cst_154 = arith.constant 6.000000e+00 : f32
    %494 = vector.broadcast %cst_154 : f32 to vector<2x256xf32>
    %495 = arith.divf %489, %494 : vector<2x256xf32>
    %cst_155 = arith.constant 0.000000e+00 : f32
    %496 = vector.broadcast %cst_155 : f32 to vector<2x256xf32>
    %497 = arith.maximumf %495, %496 : vector<2x256xf32>
    %498 = math.absf %495 : vector<2x256xf32>
    %cst_156 = arith.constant 0.000000e+00 : f32
    %499 = vector.broadcast %cst_156 : f32 to vector<2x256xf32>
    %500 = arith.subf %499, %498 : vector<2x256xf32>
    %501 = math.exp %500 : vector<2x256xf32>
    %cst_157 = arith.constant 1.000000e+00 : f32
    %502 = vector.broadcast %cst_157 : f32 to vector<2x256xf32>
    %503 = arith.addf %502, %501 : vector<2x256xf32>
    %504 = math.log %503 : vector<2x256xf32>
    %505 = arith.addf %497, %504 : vector<2x256xf32>
    %506 = arith.addf %493, %505 : vector<2x256xf32>
    %cst_158 = arith.constant dense<0.000000e+00> : vector<2x80xf32>
    %507 = tpu.matmul %445, %56, %cst_158 {dimension_numbers = #tpu.dot_dimension_numbers<[1], [0], [0], [1], [0, 0, 1, 1], [], []>} : vector<2x256xf32>, vector<256x80xf32>, vector<2x80xf32> -> vector<2x80xf32>
    %508 = vector.broadcast %57 : vector<1x80xf32> to vector<2x80xf32>
    %509 = arith.addf %507, %508 : vector<2x80xf32>
    %cst_159 = arith.constant 5.000000e-01 : f32
    %510 = vector.broadcast %cst_159 : f32 to vector<2x80xf32>
    %511 = arith.mulf %250, %510 : vector<2x80xf32>
    %512 = arith.addf %511, %509 : vector<2x80xf32>
    %cst_160 = arith.constant 7.500000e-01 : f32
    %513 = vector.broadcast %cst_160 : f32 to vector<2x80xf32>
    %514 = arith.mulf %256, %513 : vector<2x80xf32>
    %cst_161 = arith.constant 1.000000e+00 : f32
    %515 = vector.broadcast %cst_161 : f32 to vector<2x80xf32>
    %516 = arith.subf %515, %270 : vector<2x80xf32>
    %517 = arith.mulf %514, %516 : vector<2x80xf32>
    %518 = arith.addf %517, %512 : vector<2x80xf32>
    %519 = arith.subf %256, %518 : vector<2x80xf32>
    %cst_162 = arith.constant 3.000000e+00 : f32
    %520 = vector.broadcast %cst_162 : f32 to vector<2x80xf32>
    %521 = arith.divf %519, %520 : vector<2x80xf32>
    %522 = math.exp %521 : vector<2x80xf32>
    %cst_163 = arith.constant 1.000000e+00 : f32
    %523 = vector.broadcast %cst_163 : f32 to vector<2x80xf32>
    %524 = arith.subf %522, %523 : vector<2x80xf32>
    %cst_164 = arith.constant 5.000000e-01 : f32
    %525 = vector.broadcast %cst_164 : f32 to vector<2x80xf32>
    %526 = arith.mulf %525, %331 : vector<2x80xf32>
    %cst_165 = arith.constant 5.000000e-01 : f32
    %527 = vector.broadcast %cst_165 : f32 to vector<2x80xf32>
    %528 = arith.mulf %527, %524 : vector<2x80xf32>
    %529 = arith.addf %526, %528 : vector<2x80xf32>
    %530 = arith.cmpf ogt, %518, %529 : vector<2x80xf32>
    %531 = arith.extui %530 : vector<2x80xi1> to vector<2x80xi32>
    %532 = arith.sitofp %531 : vector<2x80xi32> to vector<2x80xf32>
    %533 = vector.shape_cast %518 : vector<2x80xf32> to vector<1x2x80xf32>
    %cst_166 = arith.constant dense<0.000000e+00> : vector<1xf32>
    %534 = vector.multi_reduction <add>, %533, %cst_166 [1, 2] : vector<1x2x80xf32> to vector<1xf32>
    %535 = vector.shape_cast %534 : vector<1xf32> to vector<1x1x1xf32>
    %536 = vector.extract %535[0, 0, 0] : f32 from vector<1x1x1xf32>
    %537 = vector.broadcast %536 : f32 to vector<1x1xf32>
    %cst_167 = arith.constant 1.600000e+02 : f32
    %538 = vector.broadcast %cst_167 : f32 to vector<1x1xf32>
    %539 = arith.divf %537, %538 : vector<1x1xf32>
    %540 = vector.shape_cast %518 : vector<2x80xf32> to vector<1x2x80xf32>
    %cst_168 = arith.constant dense<0xFF800000> : vector<1xf32>
    %541 = vector.multi_reduction <maximumf>, %540, %cst_168 [1, 2] : vector<1x2x80xf32> to vector<1xf32>
    %542 = vector.shape_cast %541 : vector<1xf32> to vector<1x1x1xf32>
    %543 = vector.extract %542[0, 0, 0] : f32 from vector<1x1x1xf32>
    %544 = vector.broadcast %543 : f32 to vector<1x1xf32>
    %545 = vector.shape_cast %518 : vector<2x80xf32> to vector<1x2x80xf32>
    %cst_169 = arith.constant dense<0x7F800000> : vector<1xf32>
    %546 = vector.multi_reduction <minimumf>, %545, %cst_169 [1, 2] : vector<1x2x80xf32> to vector<1xf32>
    %547 = vector.shape_cast %546 : vector<1xf32> to vector<1x1x1xf32>
    %548 = vector.extract %547[0, 0, 0] : f32 from vector<1x1x1xf32>
    %549 = vector.broadcast %548 : f32 to vector<1x1xf32>
    %550 = arith.subf %544, %549 : vector<1x1xf32>
    %cst_170 = arith.constant 2.000000e-01 : f32
    %551 = vector.broadcast %cst_170 : f32 to vector<1x1xf32>
    %552 = arith.mulf %551, %550 : vector<1x1xf32>
    %553 = arith.subf %539, %552 : vector<1x1xf32>
    %554 = vector.shape_cast %529 : vector<2x80xf32> to vector<1x2x80xf32>
    %cst_171 = arith.constant dense<0.000000e+00> : vector<1xf32>
    %555 = vector.multi_reduction <add>, %554, %cst_171 [1, 2] : vector<1x2x80xf32> to vector<1xf32>
    %556 = vector.shape_cast %555 : vector<1xf32> to vector<1x1x1xf32>
    %557 = vector.extract %556[0, 0, 0] : f32 from vector<1x1x1xf32>
    %558 = vector.broadcast %557 : f32 to vector<1x1xf32>
    %cst_172 = arith.constant 1.600000e+02 : f32
    %559 = vector.broadcast %cst_172 : f32 to vector<1x1xf32>
    %560 = arith.divf %558, %559 : vector<1x1xf32>
    %561 = vector.shape_cast %529 : vector<2x80xf32> to vector<1x2x80xf32>
    %cst_173 = arith.constant dense<0xFF800000> : vector<1xf32>
    %562 = vector.multi_reduction <maximumf>, %561, %cst_173 [1, 2] : vector<1x2x80xf32> to vector<1xf32>
    %563 = vector.shape_cast %562 : vector<1xf32> to vector<1x1x1xf32>
    %564 = vector.extract %563[0, 0, 0] : f32 from vector<1x1x1xf32>
    %565 = vector.broadcast %564 : f32 to vector<1x1xf32>
    %566 = vector.shape_cast %529 : vector<2x80xf32> to vector<1x2x80xf32>
    %cst_174 = arith.constant dense<0x7F800000> : vector<1xf32>
    %567 = vector.multi_reduction <minimumf>, %566, %cst_174 [1, 2] : vector<1x2x80xf32> to vector<1xf32>
    %568 = vector.shape_cast %567 : vector<1xf32> to vector<1x1x1xf32>
    %569 = vector.extract %568[0, 0, 0] : f32 from vector<1x1x1xf32>
    %570 = vector.broadcast %569 : f32 to vector<1x1xf32>
    %571 = arith.subf %565, %570 : vector<1x1xf32>
    %cst_175 = arith.constant 2.000000e-01 : f32
    %572 = vector.broadcast %cst_175 : f32 to vector<1x1xf32>
    %573 = arith.mulf %572, %571 : vector<1x1xf32>
    %574 = arith.subf %560, %573 : vector<1x1xf32>
    %575 = vector.broadcast %553 : vector<1x1xf32> to vector<2x80xf32>
    %576 = arith.subf %518, %575 : vector<2x80xf32>
    %cst_176 = arith.constant 0.00999999977 : f32
    %577 = vector.broadcast %cst_176 : f32 to vector<2x80xf32>
    %578 = arith.mulf %577, %576 : vector<2x80xf32>
    %579 = vector.broadcast %574 : vector<1x1xf32> to vector<2x80xf32>
    %580 = arith.addf %578, %579 : vector<2x80xf32>
    %cst_177 = arith.constant 6.000000e+00 : f32
    %581 = vector.broadcast %cst_177 : f32 to vector<2x80xf32>
    %582 = arith.divf %576, %581 : vector<2x80xf32>
    %cst_178 = arith.constant 0.000000e+00 : f32
    %583 = vector.broadcast %cst_178 : f32 to vector<2x80xf32>
    %584 = arith.maximumf %582, %583 : vector<2x80xf32>
    %585 = math.absf %582 : vector<2x80xf32>
    %cst_179 = arith.constant 0.000000e+00 : f32
    %586 = vector.broadcast %cst_179 : f32 to vector<2x80xf32>
    %587 = arith.subf %586, %585 : vector<2x80xf32>
    %588 = math.exp %587 : vector<2x80xf32>
    %cst_180 = arith.constant 1.000000e+00 : f32
    %589 = vector.broadcast %cst_180 : f32 to vector<2x80xf32>
    %590 = arith.addf %589, %588 : vector<2x80xf32>
    %591 = math.log %590 : vector<2x80xf32>
    %592 = arith.addf %584, %591 : vector<2x80xf32>
    %593 = arith.addf %580, %592 : vector<2x80xf32>
    %594 = arith.addf %332, %532 : vector<2x80xf32>
    %cst_181 = arith.constant dense<0.000000e+00> : vector<2x256xf32>
    %595 = tpu.matmul %35, %52, %cst_181 {dimension_numbers = #tpu.dot_dimension_numbers<[1], [0], [0], [1], [0, 0, 1, 1], [], []>} : vector<2x80xf32>, vector<80x256xf32>, vector<2x256xf32> -> vector<2x256xf32>
    %596 = vector.broadcast %53 : vector<1x256xf32> to vector<2x256xf32>
    %597 = arith.addf %595, %596 : vector<2x256xf32>
    %cst_182 = arith.constant 5.000000e-01 : f32
    %598 = vector.broadcast %cst_182 : f32 to vector<2x256xf32>
    %599 = arith.mulf %338, %598 : vector<2x256xf32>
    %600 = arith.addf %599, %597 : vector<2x256xf32>
    %cst_183 = arith.constant 7.500000e-01 : f32
    %601 = vector.broadcast %cst_183 : f32 to vector<2x256xf32>
    %602 = arith.mulf %344, %601 : vector<2x256xf32>
    %cst_184 = arith.constant 1.000000e+00 : f32
    %603 = vector.broadcast %cst_184 : f32 to vector<2x256xf32>
    %604 = arith.subf %603, %358 : vector<2x256xf32>
    %605 = arith.mulf %602, %604 : vector<2x256xf32>
    %606 = arith.addf %605, %600 : vector<2x256xf32>
    %607 = arith.subf %344, %606 : vector<2x256xf32>
    %cst_185 = arith.constant 3.000000e+00 : f32
    %608 = vector.broadcast %cst_185 : f32 to vector<2x256xf32>
    %609 = arith.divf %607, %608 : vector<2x256xf32>
    %610 = math.exp %609 : vector<2x256xf32>
    %cst_186 = arith.constant 1.000000e+00 : f32
    %611 = vector.broadcast %cst_186 : f32 to vector<2x256xf32>
    %612 = arith.subf %610, %611 : vector<2x256xf32>
    %cst_187 = arith.constant 5.000000e-01 : f32
    %613 = vector.broadcast %cst_187 : f32 to vector<2x256xf32>
    %614 = arith.mulf %613, %419 : vector<2x256xf32>
    %cst_188 = arith.constant 5.000000e-01 : f32
    %615 = vector.broadcast %cst_188 : f32 to vector<2x256xf32>
    %616 = arith.mulf %615, %612 : vector<2x256xf32>
    %617 = arith.addf %614, %616 : vector<2x256xf32>
    %618 = arith.cmpf ogt, %606, %617 : vector<2x256xf32>
    %619 = arith.extui %618 : vector<2x256xi1> to vector<2x256xi32>
    %620 = arith.sitofp %619 : vector<2x256xi32> to vector<2x256xf32>
    %621 = vector.shape_cast %606 : vector<2x256xf32> to vector<1x2x256xf32>
    %cst_189 = arith.constant dense<0.000000e+00> : vector<1xf32>
    %622 = vector.multi_reduction <add>, %621, %cst_189 [1, 2] : vector<1x2x256xf32> to vector<1xf32>
    %623 = vector.shape_cast %622 : vector<1xf32> to vector<1x1x1xf32>
    %624 = vector.extract %623[0, 0, 0] : f32 from vector<1x1x1xf32>
    %625 = vector.broadcast %624 : f32 to vector<1x1xf32>
    %cst_190 = arith.constant 5.120000e+02 : f32
    %626 = vector.broadcast %cst_190 : f32 to vector<1x1xf32>
    %627 = arith.divf %625, %626 : vector<1x1xf32>
    %628 = vector.shape_cast %606 : vector<2x256xf32> to vector<1x2x256xf32>
    %cst_191 = arith.constant dense<0xFF800000> : vector<1xf32>
    %629 = vector.multi_reduction <maximumf>, %628, %cst_191 [1, 2] : vector<1x2x256xf32> to vector<1xf32>
    %630 = vector.shape_cast %629 : vector<1xf32> to vector<1x1x1xf32>
    %631 = vector.extract %630[0, 0, 0] : f32 from vector<1x1x1xf32>
    %632 = vector.broadcast %631 : f32 to vector<1x1xf32>
    %633 = vector.shape_cast %606 : vector<2x256xf32> to vector<1x2x256xf32>
    %cst_192 = arith.constant dense<0x7F800000> : vector<1xf32>
    %634 = vector.multi_reduction <minimumf>, %633, %cst_192 [1, 2] : vector<1x2x256xf32> to vector<1xf32>
    %635 = vector.shape_cast %634 : vector<1xf32> to vector<1x1x1xf32>
    %636 = vector.extract %635[0, 0, 0] : f32 from vector<1x1x1xf32>
    %637 = vector.broadcast %636 : f32 to vector<1x1xf32>
    %638 = arith.subf %632, %637 : vector<1x1xf32>
    %cst_193 = arith.constant 2.000000e-01 : f32
    %639 = vector.broadcast %cst_193 : f32 to vector<1x1xf32>
    %640 = arith.mulf %639, %638 : vector<1x1xf32>
    %641 = arith.subf %627, %640 : vector<1x1xf32>
    %642 = vector.shape_cast %617 : vector<2x256xf32> to vector<1x2x256xf32>
    %cst_194 = arith.constant dense<0.000000e+00> : vector<1xf32>
    %643 = vector.multi_reduction <add>, %642, %cst_194 [1, 2] : vector<1x2x256xf32> to vector<1xf32>
    %644 = vector.shape_cast %643 : vector<1xf32> to vector<1x1x1xf32>
    %645 = vector.extract %644[0, 0, 0] : f32 from vector<1x1x1xf32>
    %646 = vector.broadcast %645 : f32 to vector<1x1xf32>
    %cst_195 = arith.constant 5.120000e+02 : f32
    %647 = vector.broadcast %cst_195 : f32 to vector<1x1xf32>
    %648 = arith.divf %646, %647 : vector<1x1xf32>
    %649 = vector.shape_cast %617 : vector<2x256xf32> to vector<1x2x256xf32>
    %cst_196 = arith.constant dense<0xFF800000> : vector<1xf32>
    %650 = vector.multi_reduction <maximumf>, %649, %cst_196 [1, 2] : vector<1x2x256xf32> to vector<1xf32>
    %651 = vector.shape_cast %650 : vector<1xf32> to vector<1x1x1xf32>
    %652 = vector.extract %651[0, 0, 0] : f32 from vector<1x1x1xf32>
    %653 = vector.broadcast %652 : f32 to vector<1x1xf32>
    %654 = vector.shape_cast %617 : vector<2x256xf32> to vector<1x2x256xf32>
    %cst_197 = arith.constant dense<0x7F800000> : vector<1xf32>
    %655 = vector.multi_reduction <minimumf>, %654, %cst_197 [1, 2] : vector<1x2x256xf32> to vector<1xf32>
    %656 = vector.shape_cast %655 : vector<1xf32> to vector<1x1x1xf32>
    %657 = vector.extract %656[0, 0, 0] : f32 from vector<1x1x1xf32>
    %658 = vector.broadcast %657 : f32 to vector<1x1xf32>
    %659 = arith.subf %653, %658 : vector<1x1xf32>
    %cst_198 = arith.constant 2.000000e-01 : f32
    %660 = vector.broadcast %cst_198 : f32 to vector<1x1xf32>
    %661 = arith.mulf %660, %659 : vector<1x1xf32>
    %662 = arith.subf %648, %661 : vector<1x1xf32>
    %663 = vector.broadcast %641 : vector<1x1xf32> to vector<2x256xf32>
    %664 = arith.subf %606, %663 : vector<2x256xf32>
    %cst_199 = arith.constant 0.00999999977 : f32
    %665 = vector.broadcast %cst_199 : f32 to vector<2x256xf32>
    %666 = arith.mulf %665, %664 : vector<2x256xf32>
    %667 = vector.broadcast %662 : vector<1x1xf32> to vector<2x256xf32>
    %668 = arith.addf %666, %667 : vector<2x256xf32>
    %cst_200 = arith.constant 6.000000e+00 : f32
    %669 = vector.broadcast %cst_200 : f32 to vector<2x256xf32>
    %670 = arith.divf %664, %669 : vector<2x256xf32>
    %cst_201 = arith.constant 0.000000e+00 : f32
    %671 = vector.broadcast %cst_201 : f32 to vector<2x256xf32>
    %672 = arith.maximumf %670, %671 : vector<2x256xf32>
    %673 = math.absf %670 : vector<2x256xf32>
    %cst_202 = arith.constant 0.000000e+00 : f32
    %674 = vector.broadcast %cst_202 : f32 to vector<2x256xf32>
    %675 = arith.subf %674, %673 : vector<2x256xf32>
    %676 = math.exp %675 : vector<2x256xf32>
    %cst_203 = arith.constant 1.000000e+00 : f32
    %677 = vector.broadcast %cst_203 : f32 to vector<2x256xf32>
    %678 = arith.addf %677, %676 : vector<2x256xf32>
    %679 = math.log %678 : vector<2x256xf32>
    %680 = arith.addf %672, %679 : vector<2x256xf32>
    %681 = arith.addf %668, %680 : vector<2x256xf32>
    %cst_204 = arith.constant dense<0.000000e+00> : vector<2x256xf32>
    %682 = tpu.matmul %620, %54, %cst_204 {dimension_numbers = #tpu.dot_dimension_numbers<[1], [0], [0], [1], [0, 0, 1, 1], [], []>} : vector<2x256xf32>, vector<256x256xf32>, vector<2x256xf32> -> vector<2x256xf32>
    %683 = vector.broadcast %55 : vector<1x256xf32> to vector<2x256xf32>
    %684 = arith.addf %682, %683 : vector<2x256xf32>
    %cst_205 = arith.constant 5.000000e-01 : f32
    %685 = vector.broadcast %cst_205 : f32 to vector<2x256xf32>
    %686 = arith.mulf %425, %685 : vector<2x256xf32>
    %687 = arith.addf %686, %684 : vector<2x256xf32>
    %cst_206 = arith.constant 7.500000e-01 : f32
    %688 = vector.broadcast %cst_206 : f32 to vector<2x256xf32>
    %689 = arith.mulf %431, %688 : vector<2x256xf32>
    %cst_207 = arith.constant 1.000000e+00 : f32
    %690 = vector.broadcast %cst_207 : f32 to vector<2x256xf32>
    %691 = arith.subf %690, %445 : vector<2x256xf32>
    %692 = arith.mulf %689, %691 : vector<2x256xf32>
    %693 = arith.addf %692, %687 : vector<2x256xf32>
    %694 = arith.subf %431, %693 : vector<2x256xf32>
    %cst_208 = arith.constant 3.000000e+00 : f32
    %695 = vector.broadcast %cst_208 : f32 to vector<2x256xf32>
    %696 = arith.divf %694, %695 : vector<2x256xf32>
    %697 = math.exp %696 : vector<2x256xf32>
    %cst_209 = arith.constant 1.000000e+00 : f32
    %698 = vector.broadcast %cst_209 : f32 to vector<2x256xf32>
    %699 = arith.subf %697, %698 : vector<2x256xf32>
    %cst_210 = arith.constant 5.000000e-01 : f32
    %700 = vector.broadcast %cst_210 : f32 to vector<2x256xf32>
    %701 = arith.mulf %700, %506 : vector<2x256xf32>
    %cst_211 = arith.constant 5.000000e-01 : f32
    %702 = vector.broadcast %cst_211 : f32 to vector<2x256xf32>
    %703 = arith.mulf %702, %699 : vector<2x256xf32>
    %704 = arith.addf %701, %703 : vector<2x256xf32>
    %705 = arith.cmpf ogt, %693, %704 : vector<2x256xf32>
    %706 = arith.extui %705 : vector<2x256xi1> to vector<2x256xi32>
    %707 = arith.sitofp %706 : vector<2x256xi32> to vector<2x256xf32>
    %708 = vector.shape_cast %693 : vector<2x256xf32> to vector<1x2x256xf32>
    %cst_212 = arith.constant dense<0.000000e+00> : vector<1xf32>
    %709 = vector.multi_reduction <add>, %708, %cst_212 [1, 2] : vector<1x2x256xf32> to vector<1xf32>
    %710 = vector.shape_cast %709 : vector<1xf32> to vector<1x1x1xf32>
    %711 = vector.extract %710[0, 0, 0] : f32 from vector<1x1x1xf32>
    %712 = vector.broadcast %711 : f32 to vector<1x1xf32>
    %cst_213 = arith.constant 5.120000e+02 : f32
    %713 = vector.broadcast %cst_213 : f32 to vector<1x1xf32>
    %714 = arith.divf %712, %713 : vector<1x1xf32>
    %715 = vector.shape_cast %693 : vector<2x256xf32> to vector<1x2x256xf32>
    %cst_214 = arith.constant dense<0xFF800000> : vector<1xf32>
    %716 = vector.multi_reduction <maximumf>, %715, %cst_214 [1, 2] : vector<1x2x256xf32> to vector<1xf32>
    %717 = vector.shape_cast %716 : vector<1xf32> to vector<1x1x1xf32>
    %718 = vector.extract %717[0, 0, 0] : f32 from vector<1x1x1xf32>
    %719 = vector.broadcast %718 : f32 to vector<1x1xf32>
    %720 = vector.shape_cast %693 : vector<2x256xf32> to vector<1x2x256xf32>
    %cst_215 = arith.constant dense<0x7F800000> : vector<1xf32>
    %721 = vector.multi_reduction <minimumf>, %720, %cst_215 [1, 2] : vector<1x2x256xf32> to vector<1xf32>
    %722 = vector.shape_cast %721 : vector<1xf32> to vector<1x1x1xf32>
    %723 = vector.extract %722[0, 0, 0] : f32 from vector<1x1x1xf32>
    %724 = vector.broadcast %723 : f32 to vector<1x1xf32>
    %725 = arith.subf %719, %724 : vector<1x1xf32>
    %cst_216 = arith.constant 2.000000e-01 : f32
    %726 = vector.broadcast %cst_216 : f32 to vector<1x1xf32>
    %727 = arith.mulf %726, %725 : vector<1x1xf32>
    %728 = arith.subf %714, %727 : vector<1x1xf32>
    %729 = vector.shape_cast %704 : vector<2x256xf32> to vector<1x2x256xf32>
    %cst_217 = arith.constant dense<0.000000e+00> : vector<1xf32>
    %730 = vector.multi_reduction <add>, %729, %cst_217 [1, 2] : vector<1x2x256xf32> to vector<1xf32>
    %731 = vector.shape_cast %730 : vector<1xf32> to vector<1x1x1xf32>
    %732 = vector.extract %731[0, 0, 0] : f32 from vector<1x1x1xf32>
    %733 = vector.broadcast %732 : f32 to vector<1x1xf32>
    %cst_218 = arith.constant 5.120000e+02 : f32
    %734 = vector.broadcast %cst_218 : f32 to vector<1x1xf32>
    %735 = arith.divf %733, %734 : vector<1x1xf32>
    %736 = vector.shape_cast %704 : vector<2x256xf32> to vector<1x2x256xf32>
    %cst_219 = arith.constant dense<0xFF800000> : vector<1xf32>
    %737 = vector.multi_reduction <maximumf>, %736, %cst_219 [1, 2] : vector<1x2x256xf32> to vector<1xf32>
    %738 = vector.shape_cast %737 : vector<1xf32> to vector<1x1x1xf32>
    %739 = vector.extract %738[0, 0, 0] : f32 from vector<1x1x1xf32>
    %740 = vector.broadcast %739 : f32 to vector<1x1xf32>
    %741 = vector.shape_cast %704 : vector<2x256xf32> to vector<1x2x256xf32>
    %cst_220 = arith.constant dense<0x7F800000> : vector<1xf32>
    %742 = vector.multi_reduction <minimumf>, %741, %cst_220 [1, 2] : vector<1x2x256xf32> to vector<1xf32>
    %743 = vector.shape_cast %742 : vector<1xf32> to vector<1x1x1xf32>
    %744 = vector.extract %743[0, 0, 0] : f32 from vector<1x1x1xf32>
    %745 = vector.broadcast %744 : f32 to vector<1x1xf32>
    %746 = arith.subf %740, %745 : vector<1x1xf32>
    %cst_221 = arith.constant 2.000000e-01 : f32
    %747 = vector.broadcast %cst_221 : f32 to vector<1x1xf32>
    %748 = arith.mulf %747, %746 : vector<1x1xf32>
    %749 = arith.subf %735, %748 : vector<1x1xf32>
    %750 = vector.broadcast %728 : vector<1x1xf32> to vector<2x256xf32>
    %751 = arith.subf %693, %750 : vector<2x256xf32>
    %cst_222 = arith.constant 0.00999999977 : f32
    %752 = vector.broadcast %cst_222 : f32 to vector<2x256xf32>
    %753 = arith.mulf %752, %751 : vector<2x256xf32>
    %754 = vector.broadcast %749 : vector<1x1xf32> to vector<2x256xf32>
    %755 = arith.addf %753, %754 : vector<2x256xf32>
    %cst_223 = arith.constant 6.000000e+00 : f32
    %756 = vector.broadcast %cst_223 : f32 to vector<2x256xf32>
    %757 = arith.divf %751, %756 : vector<2x256xf32>
    %cst_224 = arith.constant 0.000000e+00 : f32
    %758 = vector.broadcast %cst_224 : f32 to vector<2x256xf32>
    %759 = arith.maximumf %757, %758 : vector<2x256xf32>
    %760 = math.absf %757 : vector<2x256xf32>
    %cst_225 = arith.constant 0.000000e+00 : f32
    %761 = vector.broadcast %cst_225 : f32 to vector<2x256xf32>
    %762 = arith.subf %761, %760 : vector<2x256xf32>
    %763 = math.exp %762 : vector<2x256xf32>
    %cst_226 = arith.constant 1.000000e+00 : f32
    %764 = vector.broadcast %cst_226 : f32 to vector<2x256xf32>
    %765 = arith.addf %764, %763 : vector<2x256xf32>
    %766 = math.log %765 : vector<2x256xf32>
    %767 = arith.addf %759, %766 : vector<2x256xf32>
    %768 = arith.addf %755, %767 : vector<2x256xf32>
    %cst_227 = arith.constant dense<0.000000e+00> : vector<2x80xf32>
    %769 = tpu.matmul %707, %56, %cst_227 {dimension_numbers = #tpu.dot_dimension_numbers<[1], [0], [0], [1], [0, 0, 1, 1], [], []>} : vector<2x256xf32>, vector<256x80xf32>, vector<2x80xf32> -> vector<2x80xf32>
    %770 = vector.broadcast %57 : vector<1x80xf32> to vector<2x80xf32>
    %771 = arith.addf %769, %770 : vector<2x80xf32>
    %cst_228 = arith.constant 5.000000e-01 : f32
    %772 = vector.broadcast %cst_228 : f32 to vector<2x80xf32>
    %773 = arith.mulf %512, %772 : vector<2x80xf32>
    %774 = arith.addf %773, %771 : vector<2x80xf32>
    %cst_229 = arith.constant 7.500000e-01 : f32
    %775 = vector.broadcast %cst_229 : f32 to vector<2x80xf32>
    %776 = arith.mulf %518, %775 : vector<2x80xf32>
    %cst_230 = arith.constant 1.000000e+00 : f32
    %777 = vector.broadcast %cst_230 : f32 to vector<2x80xf32>
    %778 = arith.subf %777, %532 : vector<2x80xf32>
    %779 = arith.mulf %776, %778 : vector<2x80xf32>
    %780 = arith.addf %779, %774 : vector<2x80xf32>
    %781 = arith.subf %518, %780 : vector<2x80xf32>
    %cst_231 = arith.constant 3.000000e+00 : f32
    %782 = vector.broadcast %cst_231 : f32 to vector<2x80xf32>
    %783 = arith.divf %781, %782 : vector<2x80xf32>
    %784 = math.exp %783 : vector<2x80xf32>
    %cst_232 = arith.constant 1.000000e+00 : f32
    %785 = vector.broadcast %cst_232 : f32 to vector<2x80xf32>
    %786 = arith.subf %784, %785 : vector<2x80xf32>
    %cst_233 = arith.constant 5.000000e-01 : f32
    %787 = vector.broadcast %cst_233 : f32 to vector<2x80xf32>
    %788 = arith.mulf %787, %593 : vector<2x80xf32>
    %cst_234 = arith.constant 5.000000e-01 : f32
    %789 = vector.broadcast %cst_234 : f32 to vector<2x80xf32>
    %790 = arith.mulf %789, %786 : vector<2x80xf32>
    %791 = arith.addf %788, %790 : vector<2x80xf32>
    %792 = arith.cmpf ogt, %780, %791 : vector<2x80xf32>
    %793 = arith.extui %792 : vector<2x80xi1> to vector<2x80xi32>
    %794 = arith.sitofp %793 : vector<2x80xi32> to vector<2x80xf32>
    %795 = vector.shape_cast %780 : vector<2x80xf32> to vector<1x2x80xf32>
    %cst_235 = arith.constant dense<0.000000e+00> : vector<1xf32>
    %796 = vector.multi_reduction <add>, %795, %cst_235 [1, 2] : vector<1x2x80xf32> to vector<1xf32>
    %797 = vector.shape_cast %796 : vector<1xf32> to vector<1x1x1xf32>
    %798 = vector.extract %797[0, 0, 0] : f32 from vector<1x1x1xf32>
    %799 = vector.broadcast %798 : f32 to vector<1x1xf32>
    %cst_236 = arith.constant 1.600000e+02 : f32
    %800 = vector.broadcast %cst_236 : f32 to vector<1x1xf32>
    %801 = arith.divf %799, %800 : vector<1x1xf32>
    %802 = vector.shape_cast %780 : vector<2x80xf32> to vector<1x2x80xf32>
    %cst_237 = arith.constant dense<0xFF800000> : vector<1xf32>
    %803 = vector.multi_reduction <maximumf>, %802, %cst_237 [1, 2] : vector<1x2x80xf32> to vector<1xf32>
    %804 = vector.shape_cast %803 : vector<1xf32> to vector<1x1x1xf32>
    %805 = vector.extract %804[0, 0, 0] : f32 from vector<1x1x1xf32>
    %806 = vector.broadcast %805 : f32 to vector<1x1xf32>
    %807 = vector.shape_cast %780 : vector<2x80xf32> to vector<1x2x80xf32>
    %cst_238 = arith.constant dense<0x7F800000> : vector<1xf32>
    %808 = vector.multi_reduction <minimumf>, %807, %cst_238 [1, 2] : vector<1x2x80xf32> to vector<1xf32>
    %809 = vector.shape_cast %808 : vector<1xf32> to vector<1x1x1xf32>
    %810 = vector.extract %809[0, 0, 0] : f32 from vector<1x1x1xf32>
    %811 = vector.broadcast %810 : f32 to vector<1x1xf32>
    %812 = arith.subf %806, %811 : vector<1x1xf32>
    %cst_239 = arith.constant 2.000000e-01 : f32
    %813 = vector.broadcast %cst_239 : f32 to vector<1x1xf32>
    %814 = arith.mulf %813, %812 : vector<1x1xf32>
    %815 = arith.subf %801, %814 : vector<1x1xf32>
    %816 = vector.shape_cast %791 : vector<2x80xf32> to vector<1x2x80xf32>
    %cst_240 = arith.constant dense<0.000000e+00> : vector<1xf32>
    %817 = vector.multi_reduction <add>, %816, %cst_240 [1, 2] : vector<1x2x80xf32> to vector<1xf32>
    %818 = vector.shape_cast %817 : vector<1xf32> to vector<1x1x1xf32>
    %819 = vector.extract %818[0, 0, 0] : f32 from vector<1x1x1xf32>
    %820 = vector.broadcast %819 : f32 to vector<1x1xf32>
    %cst_241 = arith.constant 1.600000e+02 : f32
    %821 = vector.broadcast %cst_241 : f32 to vector<1x1xf32>
    %822 = arith.divf %820, %821 : vector<1x1xf32>
    %823 = vector.shape_cast %791 : vector<2x80xf32> to vector<1x2x80xf32>
    %cst_242 = arith.constant dense<0xFF800000> : vector<1xf32>
    %824 = vector.multi_reduction <maximumf>, %823, %cst_242 [1, 2] : vector<1x2x80xf32> to vector<1xf32>
    %825 = vector.shape_cast %824 : vector<1xf32> to vector<1x1x1xf32>
    %826 = vector.extract %825[0, 0, 0] : f32 from vector<1x1x1xf32>
    %827 = vector.broadcast %826 : f32 to vector<1x1xf32>
    %828 = vector.shape_cast %791 : vector<2x80xf32> to vector<1x2x80xf32>
    %cst_243 = arith.constant dense<0x7F800000> : vector<1xf32>
    %829 = vector.multi_reduction <minimumf>, %828, %cst_243 [1, 2] : vector<1x2x80xf32> to vector<1xf32>
    %830 = vector.shape_cast %829 : vector<1xf32> to vector<1x1x1xf32>
    %831 = vector.extract %830[0, 0, 0] : f32 from vector<1x1x1xf32>
    %832 = vector.broadcast %831 : f32 to vector<1x1xf32>
    %833 = arith.subf %827, %832 : vector<1x1xf32>
    %cst_244 = arith.constant 2.000000e-01 : f32
    %834 = vector.broadcast %cst_244 : f32 to vector<1x1xf32>
    %835 = arith.mulf %834, %833 : vector<1x1xf32>
    %836 = arith.subf %822, %835 : vector<1x1xf32>
    %837 = vector.broadcast %815 : vector<1x1xf32> to vector<2x80xf32>
    %838 = arith.subf %780, %837 : vector<2x80xf32>
    %cst_245 = arith.constant 0.00999999977 : f32
    %839 = vector.broadcast %cst_245 : f32 to vector<2x80xf32>
    %840 = arith.mulf %839, %838 : vector<2x80xf32>
    %841 = vector.broadcast %836 : vector<1x1xf32> to vector<2x80xf32>
    %842 = arith.addf %840, %841 : vector<2x80xf32>
    %cst_246 = arith.constant 6.000000e+00 : f32
    %843 = vector.broadcast %cst_246 : f32 to vector<2x80xf32>
    %844 = arith.divf %838, %843 : vector<2x80xf32>
    %cst_247 = arith.constant 0.000000e+00 : f32
    %845 = vector.broadcast %cst_247 : f32 to vector<2x80xf32>
    %846 = arith.maximumf %844, %845 : vector<2x80xf32>
    %847 = math.absf %844 : vector<2x80xf32>
    %cst_248 = arith.constant 0.000000e+00 : f32
    %848 = vector.broadcast %cst_248 : f32 to vector<2x80xf32>
    %849 = arith.subf %848, %847 : vector<2x80xf32>
    %850 = math.exp %849 : vector<2x80xf32>
    %cst_249 = arith.constant 1.000000e+00 : f32
    %851 = vector.broadcast %cst_249 : f32 to vector<2x80xf32>
    %852 = arith.addf %851, %850 : vector<2x80xf32>
    %853 = math.log %852 : vector<2x80xf32>
    %854 = arith.addf %846, %853 : vector<2x80xf32>
    %855 = arith.addf %842, %854 : vector<2x80xf32>
    %856 = arith.addf %594, %794 : vector<2x80xf32>
    %cst_250 = arith.constant dense<0.000000e+00> : vector<2x256xf32>
    %857 = tpu.matmul %43, %52, %cst_250 {dimension_numbers = #tpu.dot_dimension_numbers<[1], [0], [0], [1], [0, 0, 1, 1], [], []>} : vector<2x80xf32>, vector<80x256xf32>, vector<2x256xf32> -> vector<2x256xf32>
    %858 = vector.broadcast %53 : vector<1x256xf32> to vector<2x256xf32>
    %859 = arith.addf %857, %858 : vector<2x256xf32>
    %cst_251 = arith.constant 5.000000e-01 : f32
    %860 = vector.broadcast %cst_251 : f32 to vector<2x256xf32>
    %861 = arith.mulf %600, %860 : vector<2x256xf32>
    %862 = arith.addf %861, %859 : vector<2x256xf32>
    %cst_252 = arith.constant 7.500000e-01 : f32
    %863 = vector.broadcast %cst_252 : f32 to vector<2x256xf32>
    %864 = arith.mulf %606, %863 : vector<2x256xf32>
    %cst_253 = arith.constant 1.000000e+00 : f32
    %865 = vector.broadcast %cst_253 : f32 to vector<2x256xf32>
    %866 = arith.subf %865, %620 : vector<2x256xf32>
    %867 = arith.mulf %864, %866 : vector<2x256xf32>
    %868 = arith.addf %867, %862 : vector<2x256xf32>
    %869 = arith.subf %606, %868 : vector<2x256xf32>
    %cst_254 = arith.constant 3.000000e+00 : f32
    %870 = vector.broadcast %cst_254 : f32 to vector<2x256xf32>
    %871 = arith.divf %869, %870 : vector<2x256xf32>
    %872 = math.exp %871 : vector<2x256xf32>
    %cst_255 = arith.constant 1.000000e+00 : f32
    %873 = vector.broadcast %cst_255 : f32 to vector<2x256xf32>
    %874 = arith.subf %872, %873 : vector<2x256xf32>
    %cst_256 = arith.constant 5.000000e-01 : f32
    %875 = vector.broadcast %cst_256 : f32 to vector<2x256xf32>
    %876 = arith.mulf %875, %681 : vector<2x256xf32>
    %cst_257 = arith.constant 5.000000e-01 : f32
    %877 = vector.broadcast %cst_257 : f32 to vector<2x256xf32>
    %878 = arith.mulf %877, %874 : vector<2x256xf32>
    %879 = arith.addf %876, %878 : vector<2x256xf32>
    %880 = arith.cmpf ogt, %868, %879 : vector<2x256xf32>
    %881 = arith.extui %880 : vector<2x256xi1> to vector<2x256xi32>
    %882 = arith.sitofp %881 : vector<2x256xi32> to vector<2x256xf32>
    %883 = vector.shape_cast %868 : vector<2x256xf32> to vector<1x2x256xf32>
    %cst_258 = arith.constant dense<0.000000e+00> : vector<1xf32>
    %884 = vector.multi_reduction <add>, %883, %cst_258 [1, 2] : vector<1x2x256xf32> to vector<1xf32>
    %885 = vector.shape_cast %884 : vector<1xf32> to vector<1x1x1xf32>
    %886 = vector.extract %885[0, 0, 0] : f32 from vector<1x1x1xf32>
    %887 = vector.broadcast %886 : f32 to vector<1x1xf32>
    %cst_259 = arith.constant 5.120000e+02 : f32
    %888 = vector.broadcast %cst_259 : f32 to vector<1x1xf32>
    %889 = arith.divf %887, %888 : vector<1x1xf32>
    %890 = vector.shape_cast %868 : vector<2x256xf32> to vector<1x2x256xf32>
    %cst_260 = arith.constant dense<0xFF800000> : vector<1xf32>
    %891 = vector.multi_reduction <maximumf>, %890, %cst_260 [1, 2] : vector<1x2x256xf32> to vector<1xf32>
    %892 = vector.shape_cast %891 : vector<1xf32> to vector<1x1x1xf32>
    %893 = vector.extract %892[0, 0, 0] : f32 from vector<1x1x1xf32>
    %894 = vector.broadcast %893 : f32 to vector<1x1xf32>
    %895 = vector.shape_cast %868 : vector<2x256xf32> to vector<1x2x256xf32>
    %cst_261 = arith.constant dense<0x7F800000> : vector<1xf32>
    %896 = vector.multi_reduction <minimumf>, %895, %cst_261 [1, 2] : vector<1x2x256xf32> to vector<1xf32>
    %897 = vector.shape_cast %896 : vector<1xf32> to vector<1x1x1xf32>
    %898 = vector.extract %897[0, 0, 0] : f32 from vector<1x1x1xf32>
    %899 = vector.broadcast %898 : f32 to vector<1x1xf32>
    %900 = arith.subf %894, %899 : vector<1x1xf32>
    %cst_262 = arith.constant 2.000000e-01 : f32
    %901 = vector.broadcast %cst_262 : f32 to vector<1x1xf32>
    %902 = arith.mulf %901, %900 : vector<1x1xf32>
    %903 = arith.subf %889, %902 : vector<1x1xf32>
    %904 = vector.shape_cast %879 : vector<2x256xf32> to vector<1x2x256xf32>
    %cst_263 = arith.constant dense<0.000000e+00> : vector<1xf32>
    %905 = vector.multi_reduction <add>, %904, %cst_263 [1, 2] : vector<1x2x256xf32> to vector<1xf32>
    %906 = vector.shape_cast %905 : vector<1xf32> to vector<1x1x1xf32>
    %907 = vector.extract %906[0, 0, 0] : f32 from vector<1x1x1xf32>
    %908 = vector.broadcast %907 : f32 to vector<1x1xf32>
    %cst_264 = arith.constant 5.120000e+02 : f32
    %909 = vector.broadcast %cst_264 : f32 to vector<1x1xf32>
    %910 = arith.divf %908, %909 : vector<1x1xf32>
    %911 = vector.shape_cast %879 : vector<2x256xf32> to vector<1x2x256xf32>
    %cst_265 = arith.constant dense<0xFF800000> : vector<1xf32>
    %912 = vector.multi_reduction <maximumf>, %911, %cst_265 [1, 2] : vector<1x2x256xf32> to vector<1xf32>
    %913 = vector.shape_cast %912 : vector<1xf32> to vector<1x1x1xf32>
    %914 = vector.extract %913[0, 0, 0] : f32 from vector<1x1x1xf32>
    %915 = vector.broadcast %914 : f32 to vector<1x1xf32>
    %916 = vector.shape_cast %879 : vector<2x256xf32> to vector<1x2x256xf32>
    %cst_266 = arith.constant dense<0x7F800000> : vector<1xf32>
    %917 = vector.multi_reduction <minimumf>, %916, %cst_266 [1, 2] : vector<1x2x256xf32> to vector<1xf32>
    %918 = vector.shape_cast %917 : vector<1xf32> to vector<1x1x1xf32>
    %919 = vector.extract %918[0, 0, 0] : f32 from vector<1x1x1xf32>
    %920 = vector.broadcast %919 : f32 to vector<1x1xf32>
    %921 = arith.subf %915, %920 : vector<1x1xf32>
    %cst_267 = arith.constant 2.000000e-01 : f32
    %922 = vector.broadcast %cst_267 : f32 to vector<1x1xf32>
    %923 = arith.mulf %922, %921 : vector<1x1xf32>
    %924 = arith.subf %910, %923 : vector<1x1xf32>
    %925 = vector.broadcast %903 : vector<1x1xf32> to vector<2x256xf32>
    %926 = arith.subf %868, %925 : vector<2x256xf32>
    %cst_268 = arith.constant 0.00999999977 : f32
    %927 = vector.broadcast %cst_268 : f32 to vector<2x256xf32>
    %928 = arith.mulf %927, %926 : vector<2x256xf32>
    %929 = vector.broadcast %924 : vector<1x1xf32> to vector<2x256xf32>
    %930 = arith.addf %928, %929 : vector<2x256xf32>
    %cst_269 = arith.constant 6.000000e+00 : f32
    %931 = vector.broadcast %cst_269 : f32 to vector<2x256xf32>
    %932 = arith.divf %926, %931 : vector<2x256xf32>
    %cst_270 = arith.constant 0.000000e+00 : f32
    %933 = vector.broadcast %cst_270 : f32 to vector<2x256xf32>
    %934 = arith.maximumf %932, %933 : vector<2x256xf32>
    %935 = math.absf %932 : vector<2x256xf32>
    %cst_271 = arith.constant 0.000000e+00 : f32
    %936 = vector.broadcast %cst_271 : f32 to vector<2x256xf32>
    %937 = arith.subf %936, %935 : vector<2x256xf32>
    %938 = math.exp %937 : vector<2x256xf32>
    %cst_272 = arith.constant 1.000000e+00 : f32
    %939 = vector.broadcast %cst_272 : f32 to vector<2x256xf32>
    %940 = arith.addf %939, %938 : vector<2x256xf32>
    %941 = math.log %940 : vector<2x256xf32>
    %942 = arith.addf %934, %941 : vector<2x256xf32>
    %943 = arith.addf %930, %942 : vector<2x256xf32>
    %cst_273 = arith.constant dense<0.000000e+00> : vector<2x256xf32>
    %944 = tpu.matmul %882, %54, %cst_273 {dimension_numbers = #tpu.dot_dimension_numbers<[1], [0], [0], [1], [0, 0, 1, 1], [], []>} : vector<2x256xf32>, vector<256x256xf32>, vector<2x256xf32> -> vector<2x256xf32>
    %945 = vector.broadcast %55 : vector<1x256xf32> to vector<2x256xf32>
    %946 = arith.addf %944, %945 : vector<2x256xf32>
    %cst_274 = arith.constant 5.000000e-01 : f32
    %947 = vector.broadcast %cst_274 : f32 to vector<2x256xf32>
    %948 = arith.mulf %687, %947 : vector<2x256xf32>
    %949 = arith.addf %948, %946 : vector<2x256xf32>
    %cst_275 = arith.constant 7.500000e-01 : f32
    %950 = vector.broadcast %cst_275 : f32 to vector<2x256xf32>
    %951 = arith.mulf %693, %950 : vector<2x256xf32>
    %cst_276 = arith.constant 1.000000e+00 : f32
    %952 = vector.broadcast %cst_276 : f32 to vector<2x256xf32>
    %953 = arith.subf %952, %707 : vector<2x256xf32>
    %954 = arith.mulf %951, %953 : vector<2x256xf32>
    %955 = arith.addf %954, %949 : vector<2x256xf32>
    %956 = arith.subf %693, %955 : vector<2x256xf32>
    %cst_277 = arith.constant 3.000000e+00 : f32
    %957 = vector.broadcast %cst_277 : f32 to vector<2x256xf32>
    %958 = arith.divf %956, %957 : vector<2x256xf32>
    %959 = math.exp %958 : vector<2x256xf32>
    %cst_278 = arith.constant 1.000000e+00 : f32
    %960 = vector.broadcast %cst_278 : f32 to vector<2x256xf32>
    %961 = arith.subf %959, %960 : vector<2x256xf32>
    %cst_279 = arith.constant 5.000000e-01 : f32
    %962 = vector.broadcast %cst_279 : f32 to vector<2x256xf32>
    %963 = arith.mulf %962, %768 : vector<2x256xf32>
    %cst_280 = arith.constant 5.000000e-01 : f32
    %964 = vector.broadcast %cst_280 : f32 to vector<2x256xf32>
    %965 = arith.mulf %964, %961 : vector<2x256xf32>
    %966 = arith.addf %963, %965 : vector<2x256xf32>
    %967 = arith.cmpf ogt, %955, %966 : vector<2x256xf32>
    %968 = arith.extui %967 : vector<2x256xi1> to vector<2x256xi32>
    %969 = arith.sitofp %968 : vector<2x256xi32> to vector<2x256xf32>
    %970 = vector.shape_cast %955 : vector<2x256xf32> to vector<1x2x256xf32>
    %cst_281 = arith.constant dense<0.000000e+00> : vector<1xf32>
    %971 = vector.multi_reduction <add>, %970, %cst_281 [1, 2] : vector<1x2x256xf32> to vector<1xf32>
    %972 = vector.shape_cast %971 : vector<1xf32> to vector<1x1x1xf32>
    %973 = vector.extract %972[0, 0, 0] : f32 from vector<1x1x1xf32>
    %974 = vector.broadcast %973 : f32 to vector<1x1xf32>
    %cst_282 = arith.constant 5.120000e+02 : f32
    %975 = vector.broadcast %cst_282 : f32 to vector<1x1xf32>
    %976 = arith.divf %974, %975 : vector<1x1xf32>
    %977 = vector.shape_cast %955 : vector<2x256xf32> to vector<1x2x256xf32>
    %cst_283 = arith.constant dense<0xFF800000> : vector<1xf32>
    %978 = vector.multi_reduction <maximumf>, %977, %cst_283 [1, 2] : vector<1x2x256xf32> to vector<1xf32>
    %979 = vector.shape_cast %978 : vector<1xf32> to vector<1x1x1xf32>
    %980 = vector.extract %979[0, 0, 0] : f32 from vector<1x1x1xf32>
    %981 = vector.broadcast %980 : f32 to vector<1x1xf32>
    %982 = vector.shape_cast %955 : vector<2x256xf32> to vector<1x2x256xf32>
    %cst_284 = arith.constant dense<0x7F800000> : vector<1xf32>
    %983 = vector.multi_reduction <minimumf>, %982, %cst_284 [1, 2] : vector<1x2x256xf32> to vector<1xf32>
    %984 = vector.shape_cast %983 : vector<1xf32> to vector<1x1x1xf32>
    %985 = vector.extract %984[0, 0, 0] : f32 from vector<1x1x1xf32>
    %986 = vector.broadcast %985 : f32 to vector<1x1xf32>
    %987 = arith.subf %981, %986 : vector<1x1xf32>
    %cst_285 = arith.constant 2.000000e-01 : f32
    %988 = vector.broadcast %cst_285 : f32 to vector<1x1xf32>
    %989 = arith.mulf %988, %987 : vector<1x1xf32>
    %990 = arith.subf %976, %989 : vector<1x1xf32>
    %991 = vector.shape_cast %966 : vector<2x256xf32> to vector<1x2x256xf32>
    %cst_286 = arith.constant dense<0.000000e+00> : vector<1xf32>
    %992 = vector.multi_reduction <add>, %991, %cst_286 [1, 2] : vector<1x2x256xf32> to vector<1xf32>
    %993 = vector.shape_cast %992 : vector<1xf32> to vector<1x1x1xf32>
    %994 = vector.extract %993[0, 0, 0] : f32 from vector<1x1x1xf32>
    %995 = vector.broadcast %994 : f32 to vector<1x1xf32>
    %cst_287 = arith.constant 5.120000e+02 : f32
    %996 = vector.broadcast %cst_287 : f32 to vector<1x1xf32>
    %997 = arith.divf %995, %996 : vector<1x1xf32>
    %998 = vector.shape_cast %966 : vector<2x256xf32> to vector<1x2x256xf32>
    %cst_288 = arith.constant dense<0xFF800000> : vector<1xf32>
    %999 = vector.multi_reduction <maximumf>, %998, %cst_288 [1, 2] : vector<1x2x256xf32> to vector<1xf32>
    %1000 = vector.shape_cast %999 : vector<1xf32> to vector<1x1x1xf32>
    %1001 = vector.extract %1000[0, 0, 0] : f32 from vector<1x1x1xf32>
    %1002 = vector.broadcast %1001 : f32 to vector<1x1xf32>
    %1003 = vector.shape_cast %966 : vector<2x256xf32> to vector<1x2x256xf32>
    %cst_289 = arith.constant dense<0x7F800000> : vector<1xf32>
    %1004 = vector.multi_reduction <minimumf>, %1003, %cst_289 [1, 2] : vector<1x2x256xf32> to vector<1xf32>
    %1005 = vector.shape_cast %1004 : vector<1xf32> to vector<1x1x1xf32>
    %1006 = vector.extract %1005[0, 0, 0] : f32 from vector<1x1x1xf32>
    %1007 = vector.broadcast %1006 : f32 to vector<1x1xf32>
    %1008 = arith.subf %1002, %1007 : vector<1x1xf32>
    %cst_290 = arith.constant 2.000000e-01 : f32
    %1009 = vector.broadcast %cst_290 : f32 to vector<1x1xf32>
    %1010 = arith.mulf %1009, %1008 : vector<1x1xf32>
    %1011 = arith.subf %997, %1010 : vector<1x1xf32>
    %1012 = vector.broadcast %990 : vector<1x1xf32> to vector<2x256xf32>
    %1013 = arith.subf %955, %1012 : vector<2x256xf32>
    %cst_291 = arith.constant 0.00999999977 : f32
    %1014 = vector.broadcast %cst_291 : f32 to vector<2x256xf32>
    %1015 = arith.mulf %1014, %1013 : vector<2x256xf32>
    %1016 = vector.broadcast %1011 : vector<1x1xf32> to vector<2x256xf32>
    %1017 = arith.addf %1015, %1016 : vector<2x256xf32>
    %cst_292 = arith.constant 6.000000e+00 : f32
    %1018 = vector.broadcast %cst_292 : f32 to vector<2x256xf32>
    %1019 = arith.divf %1013, %1018 : vector<2x256xf32>
    %cst_293 = arith.constant 0.000000e+00 : f32
    %1020 = vector.broadcast %cst_293 : f32 to vector<2x256xf32>
    %1021 = arith.maximumf %1019, %1020 : vector<2x256xf32>
    %1022 = math.absf %1019 : vector<2x256xf32>
    %cst_294 = arith.constant 0.000000e+00 : f32
    %1023 = vector.broadcast %cst_294 : f32 to vector<2x256xf32>
    %1024 = arith.subf %1023, %1022 : vector<2x256xf32>
    %1025 = math.exp %1024 : vector<2x256xf32>
    %cst_295 = arith.constant 1.000000e+00 : f32
    %1026 = vector.broadcast %cst_295 : f32 to vector<2x256xf32>
    %1027 = arith.addf %1026, %1025 : vector<2x256xf32>
    %1028 = math.log %1027 : vector<2x256xf32>
    %1029 = arith.addf %1021, %1028 : vector<2x256xf32>
    %1030 = arith.addf %1017, %1029 : vector<2x256xf32>
    %cst_296 = arith.constant dense<0.000000e+00> : vector<2x80xf32>
    %1031 = tpu.matmul %969, %56, %cst_296 {dimension_numbers = #tpu.dot_dimension_numbers<[1], [0], [0], [1], [0, 0, 1, 1], [], []>} : vector<2x256xf32>, vector<256x80xf32>, vector<2x80xf32> -> vector<2x80xf32>
    %1032 = vector.broadcast %57 : vector<1x80xf32> to vector<2x80xf32>
    %1033 = arith.addf %1031, %1032 : vector<2x80xf32>
    %cst_297 = arith.constant 5.000000e-01 : f32
    %1034 = vector.broadcast %cst_297 : f32 to vector<2x80xf32>
    %1035 = arith.mulf %774, %1034 : vector<2x80xf32>
    %1036 = arith.addf %1035, %1033 : vector<2x80xf32>
    %cst_298 = arith.constant 7.500000e-01 : f32
    %1037 = vector.broadcast %cst_298 : f32 to vector<2x80xf32>
    %1038 = arith.mulf %780, %1037 : vector<2x80xf32>
    %cst_299 = arith.constant 1.000000e+00 : f32
    %1039 = vector.broadcast %cst_299 : f32 to vector<2x80xf32>
    %1040 = arith.subf %1039, %794 : vector<2x80xf32>
    %1041 = arith.mulf %1038, %1040 : vector<2x80xf32>
    %1042 = arith.addf %1041, %1036 : vector<2x80xf32>
    %1043 = arith.subf %780, %1042 : vector<2x80xf32>
    %cst_300 = arith.constant 3.000000e+00 : f32
    %1044 = vector.broadcast %cst_300 : f32 to vector<2x80xf32>
    %1045 = arith.divf %1043, %1044 : vector<2x80xf32>
    %1046 = math.exp %1045 : vector<2x80xf32>
    %cst_301 = arith.constant 1.000000e+00 : f32
    %1047 = vector.broadcast %cst_301 : f32 to vector<2x80xf32>
    %1048 = arith.subf %1046, %1047 : vector<2x80xf32>
    %cst_302 = arith.constant 5.000000e-01 : f32
    %1049 = vector.broadcast %cst_302 : f32 to vector<2x80xf32>
    %1050 = arith.mulf %1049, %855 : vector<2x80xf32>
    %cst_303 = arith.constant 5.000000e-01 : f32
    %1051 = vector.broadcast %cst_303 : f32 to vector<2x80xf32>
    %1052 = arith.mulf %1051, %1048 : vector<2x80xf32>
    %1053 = arith.addf %1050, %1052 : vector<2x80xf32>
    %1054 = arith.cmpf ogt, %1042, %1053 : vector<2x80xf32>
    %1055 = arith.extui %1054 : vector<2x80xi1> to vector<2x80xi32>
    %1056 = arith.sitofp %1055 : vector<2x80xi32> to vector<2x80xf32>
    %1057 = vector.shape_cast %1042 : vector<2x80xf32> to vector<1x2x80xf32>
    %cst_304 = arith.constant dense<0.000000e+00> : vector<1xf32>
    %1058 = vector.multi_reduction <add>, %1057, %cst_304 [1, 2] : vector<1x2x80xf32> to vector<1xf32>
    %1059 = vector.shape_cast %1058 : vector<1xf32> to vector<1x1x1xf32>
    %1060 = vector.extract %1059[0, 0, 0] : f32 from vector<1x1x1xf32>
    %1061 = vector.broadcast %1060 : f32 to vector<1x1xf32>
    %cst_305 = arith.constant 1.600000e+02 : f32
    %1062 = vector.broadcast %cst_305 : f32 to vector<1x1xf32>
    %1063 = arith.divf %1061, %1062 : vector<1x1xf32>
    %1064 = vector.shape_cast %1042 : vector<2x80xf32> to vector<1x2x80xf32>
    %cst_306 = arith.constant dense<0xFF800000> : vector<1xf32>
    %1065 = vector.multi_reduction <maximumf>, %1064, %cst_306 [1, 2] : vector<1x2x80xf32> to vector<1xf32>
    %1066 = vector.shape_cast %1065 : vector<1xf32> to vector<1x1x1xf32>
    %1067 = vector.extract %1066[0, 0, 0] : f32 from vector<1x1x1xf32>
    %1068 = vector.broadcast %1067 : f32 to vector<1x1xf32>
    %1069 = vector.shape_cast %1042 : vector<2x80xf32> to vector<1x2x80xf32>
    %cst_307 = arith.constant dense<0x7F800000> : vector<1xf32>
    %1070 = vector.multi_reduction <minimumf>, %1069, %cst_307 [1, 2] : vector<1x2x80xf32> to vector<1xf32>
    %1071 = vector.shape_cast %1070 : vector<1xf32> to vector<1x1x1xf32>
    %1072 = vector.extract %1071[0, 0, 0] : f32 from vector<1x1x1xf32>
    %1073 = vector.broadcast %1072 : f32 to vector<1x1xf32>
    %1074 = arith.subf %1068, %1073 : vector<1x1xf32>
    %cst_308 = arith.constant 2.000000e-01 : f32
    %1075 = vector.broadcast %cst_308 : f32 to vector<1x1xf32>
    %1076 = arith.mulf %1075, %1074 : vector<1x1xf32>
    %1077 = arith.subf %1063, %1076 : vector<1x1xf32>
    %1078 = vector.shape_cast %1053 : vector<2x80xf32> to vector<1x2x80xf32>
    %cst_309 = arith.constant dense<0.000000e+00> : vector<1xf32>
    %1079 = vector.multi_reduction <add>, %1078, %cst_309 [1, 2] : vector<1x2x80xf32> to vector<1xf32>
    %1080 = vector.shape_cast %1079 : vector<1xf32> to vector<1x1x1xf32>
    %1081 = vector.extract %1080[0, 0, 0] : f32 from vector<1x1x1xf32>
    %1082 = vector.broadcast %1081 : f32 to vector<1x1xf32>
    %cst_310 = arith.constant 1.600000e+02 : f32
    %1083 = vector.broadcast %cst_310 : f32 to vector<1x1xf32>
    %1084 = arith.divf %1082, %1083 : vector<1x1xf32>
    %1085 = vector.shape_cast %1053 : vector<2x80xf32> to vector<1x2x80xf32>
    %cst_311 = arith.constant dense<0xFF800000> : vector<1xf32>
    %1086 = vector.multi_reduction <maximumf>, %1085, %cst_311 [1, 2] : vector<1x2x80xf32> to vector<1xf32>
    %1087 = vector.shape_cast %1086 : vector<1xf32> to vector<1x1x1xf32>
    %1088 = vector.extract %1087[0, 0, 0] : f32 from vector<1x1x1xf32>
    %1089 = vector.broadcast %1088 : f32 to vector<1x1xf32>
    %1090 = vector.shape_cast %1053 : vector<2x80xf32> to vector<1x2x80xf32>
    %cst_312 = arith.constant dense<0x7F800000> : vector<1xf32>
    %1091 = vector.multi_reduction <minimumf>, %1090, %cst_312 [1, 2] : vector<1x2x80xf32> to vector<1xf32>
    %1092 = vector.shape_cast %1091 : vector<1xf32> to vector<1x1x1xf32>
    %1093 = vector.extract %1092[0, 0, 0] : f32 from vector<1x1x1xf32>
    %1094 = vector.broadcast %1093 : f32 to vector<1x1xf32>
    %1095 = arith.subf %1089, %1094 : vector<1x1xf32>
    %cst_313 = arith.constant 2.000000e-01 : f32
    %1096 = vector.broadcast %cst_313 : f32 to vector<1x1xf32>
    %1097 = arith.mulf %1096, %1095 : vector<1x1xf32>
    %1098 = arith.subf %1084, %1097 : vector<1x1xf32>
    %1099 = vector.broadcast %1077 : vector<1x1xf32> to vector<2x80xf32>
    %1100 = arith.subf %1042, %1099 : vector<2x80xf32>
    %cst_314 = arith.constant 0.00999999977 : f32
    %1101 = vector.broadcast %cst_314 : f32 to vector<2x80xf32>
    %1102 = arith.mulf %1101, %1100 : vector<2x80xf32>
    %1103 = vector.broadcast %1098 : vector<1x1xf32> to vector<2x80xf32>
    %1104 = arith.addf %1102, %1103 : vector<2x80xf32>
    %cst_315 = arith.constant 6.000000e+00 : f32
    %1105 = vector.broadcast %cst_315 : f32 to vector<2x80xf32>
    %1106 = arith.divf %1100, %1105 : vector<2x80xf32>
    %cst_316 = arith.constant 0.000000e+00 : f32
    %1107 = vector.broadcast %cst_316 : f32 to vector<2x80xf32>
    %1108 = arith.maximumf %1106, %1107 : vector<2x80xf32>
    %1109 = math.absf %1106 : vector<2x80xf32>
    %cst_317 = arith.constant 0.000000e+00 : f32
    %1110 = vector.broadcast %cst_317 : f32 to vector<2x80xf32>
    %1111 = arith.subf %1110, %1109 : vector<2x80xf32>
    %1112 = math.exp %1111 : vector<2x80xf32>
    %cst_318 = arith.constant 1.000000e+00 : f32
    %1113 = vector.broadcast %cst_318 : f32 to vector<2x80xf32>
    %1114 = arith.addf %1113, %1112 : vector<2x80xf32>
    %1115 = math.log %1114 : vector<2x80xf32>
    %1116 = arith.addf %1108, %1115 : vector<2x80xf32>
    %1117 = arith.addf %1104, %1116 : vector<2x80xf32>
    %1118 = arith.addf %856, %1056 : vector<2x80xf32>
    %cst_319 = arith.constant dense<0.000000e+00> : vector<2x256xf32>
    %1119 = tpu.matmul %51, %52, %cst_319 {dimension_numbers = #tpu.dot_dimension_numbers<[1], [0], [0], [1], [0, 0, 1, 1], [], []>} : vector<2x80xf32>, vector<80x256xf32>, vector<2x256xf32> -> vector<2x256xf32>
    %1120 = vector.broadcast %53 : vector<1x256xf32> to vector<2x256xf32>
    %1121 = arith.addf %1119, %1120 : vector<2x256xf32>
    %cst_320 = arith.constant 5.000000e-01 : f32
    %1122 = vector.broadcast %cst_320 : f32 to vector<2x256xf32>
    %1123 = arith.mulf %862, %1122 : vector<2x256xf32>
    %1124 = arith.addf %1123, %1121 : vector<2x256xf32>
    %cst_321 = arith.constant 7.500000e-01 : f32
    %1125 = vector.broadcast %cst_321 : f32 to vector<2x256xf32>
    %1126 = arith.mulf %868, %1125 : vector<2x256xf32>
    %cst_322 = arith.constant 1.000000e+00 : f32
    %1127 = vector.broadcast %cst_322 : f32 to vector<2x256xf32>
    %1128 = arith.subf %1127, %882 : vector<2x256xf32>
    %1129 = arith.mulf %1126, %1128 : vector<2x256xf32>
    %1130 = arith.addf %1129, %1124 : vector<2x256xf32>
    %1131 = arith.subf %868, %1130 : vector<2x256xf32>
    %cst_323 = arith.constant 3.000000e+00 : f32
    %1132 = vector.broadcast %cst_323 : f32 to vector<2x256xf32>
    %1133 = arith.divf %1131, %1132 : vector<2x256xf32>
    %1134 = math.exp %1133 : vector<2x256xf32>
    %cst_324 = arith.constant 1.000000e+00 : f32
    %1135 = vector.broadcast %cst_324 : f32 to vector<2x256xf32>
    %1136 = arith.subf %1134, %1135 : vector<2x256xf32>
    %cst_325 = arith.constant 5.000000e-01 : f32
    %1137 = vector.broadcast %cst_325 : f32 to vector<2x256xf32>
    %1138 = arith.mulf %1137, %943 : vector<2x256xf32>
    %cst_326 = arith.constant 5.000000e-01 : f32
    %1139 = vector.broadcast %cst_326 : f32 to vector<2x256xf32>
    %1140 = arith.mulf %1139, %1136 : vector<2x256xf32>
    %1141 = arith.addf %1138, %1140 : vector<2x256xf32>
    %1142 = arith.cmpf ogt, %1130, %1141 : vector<2x256xf32>
    %1143 = arith.extui %1142 : vector<2x256xi1> to vector<2x256xi32>
    %1144 = arith.sitofp %1143 : vector<2x256xi32> to vector<2x256xf32>
    %cst_327 = arith.constant dense<0.000000e+00> : vector<2x256xf32>
    %1145 = tpu.matmul %1144, %54, %cst_327 {dimension_numbers = #tpu.dot_dimension_numbers<[1], [0], [0], [1], [0, 0, 1, 1], [], []>} : vector<2x256xf32>, vector<256x256xf32>, vector<2x256xf32> -> vector<2x256xf32>
    %1146 = vector.broadcast %55 : vector<1x256xf32> to vector<2x256xf32>
    %1147 = arith.addf %1145, %1146 : vector<2x256xf32>
    %cst_328 = arith.constant 5.000000e-01 : f32
    %1148 = vector.broadcast %cst_328 : f32 to vector<2x256xf32>
    %1149 = arith.mulf %949, %1148 : vector<2x256xf32>
    %1150 = arith.addf %1149, %1147 : vector<2x256xf32>
    %cst_329 = arith.constant 7.500000e-01 : f32
    %1151 = vector.broadcast %cst_329 : f32 to vector<2x256xf32>
    %1152 = arith.mulf %955, %1151 : vector<2x256xf32>
    %cst_330 = arith.constant 1.000000e+00 : f32
    %1153 = vector.broadcast %cst_330 : f32 to vector<2x256xf32>
    %1154 = arith.subf %1153, %969 : vector<2x256xf32>
    %1155 = arith.mulf %1152, %1154 : vector<2x256xf32>
    %1156 = arith.addf %1155, %1150 : vector<2x256xf32>
    %1157 = arith.subf %955, %1156 : vector<2x256xf32>
    %cst_331 = arith.constant 3.000000e+00 : f32
    %1158 = vector.broadcast %cst_331 : f32 to vector<2x256xf32>
    %1159 = arith.divf %1157, %1158 : vector<2x256xf32>
    %1160 = math.exp %1159 : vector<2x256xf32>
    %cst_332 = arith.constant 1.000000e+00 : f32
    %1161 = vector.broadcast %cst_332 : f32 to vector<2x256xf32>
    %1162 = arith.subf %1160, %1161 : vector<2x256xf32>
    %cst_333 = arith.constant 5.000000e-01 : f32
    %1163 = vector.broadcast %cst_333 : f32 to vector<2x256xf32>
    %1164 = arith.mulf %1163, %1030 : vector<2x256xf32>
    %cst_334 = arith.constant 5.000000e-01 : f32
    %1165 = vector.broadcast %cst_334 : f32 to vector<2x256xf32>
    %1166 = arith.mulf %1165, %1162 : vector<2x256xf32>
    %1167 = arith.addf %1164, %1166 : vector<2x256xf32>
    %1168 = arith.cmpf ogt, %1156, %1167 : vector<2x256xf32>
    %1169 = arith.extui %1168 : vector<2x256xi1> to vector<2x256xi32>
    %1170 = arith.sitofp %1169 : vector<2x256xi32> to vector<2x256xf32>
    %cst_335 = arith.constant dense<0.000000e+00> : vector<2x80xf32>
    %1171 = tpu.matmul %1170, %56, %cst_335 {dimension_numbers = #tpu.dot_dimension_numbers<[1], [0], [0], [1], [0, 0, 1, 1], [], []>} : vector<2x256xf32>, vector<256x80xf32>, vector<2x80xf32> -> vector<2x80xf32>
    %1172 = vector.broadcast %57 : vector<1x80xf32> to vector<2x80xf32>
    %1173 = arith.addf %1171, %1172 : vector<2x80xf32>
    %cst_336 = arith.constant 5.000000e-01 : f32
    %1174 = vector.broadcast %cst_336 : f32 to vector<2x80xf32>
    %1175 = arith.mulf %1036, %1174 : vector<2x80xf32>
    %1176 = arith.addf %1175, %1173 : vector<2x80xf32>
    %cst_337 = arith.constant 7.500000e-01 : f32
    %1177 = vector.broadcast %cst_337 : f32 to vector<2x80xf32>
    %1178 = arith.mulf %1042, %1177 : vector<2x80xf32>
    %cst_338 = arith.constant 1.000000e+00 : f32
    %1179 = vector.broadcast %cst_338 : f32 to vector<2x80xf32>
    %1180 = arith.subf %1179, %1056 : vector<2x80xf32>
    %1181 = arith.mulf %1178, %1180 : vector<2x80xf32>
    %1182 = arith.addf %1181, %1176 : vector<2x80xf32>
    %1183 = arith.subf %1042, %1182 : vector<2x80xf32>
    %cst_339 = arith.constant 3.000000e+00 : f32
    %1184 = vector.broadcast %cst_339 : f32 to vector<2x80xf32>
    %1185 = arith.divf %1183, %1184 : vector<2x80xf32>
    %1186 = math.exp %1185 : vector<2x80xf32>
    %cst_340 = arith.constant 1.000000e+00 : f32
    %1187 = vector.broadcast %cst_340 : f32 to vector<2x80xf32>
    %1188 = arith.subf %1186, %1187 : vector<2x80xf32>
    %cst_341 = arith.constant 5.000000e-01 : f32
    %1189 = vector.broadcast %cst_341 : f32 to vector<2x80xf32>
    %1190 = arith.mulf %1189, %1117 : vector<2x80xf32>
    %cst_342 = arith.constant 5.000000e-01 : f32
    %1191 = vector.broadcast %cst_342 : f32 to vector<2x80xf32>
    %1192 = arith.mulf %1191, %1188 : vector<2x80xf32>
    %1193 = arith.addf %1190, %1192 : vector<2x80xf32>
    %1194 = arith.cmpf ogt, %1182, %1193 : vector<2x80xf32>
    %1195 = arith.extui %1194 : vector<2x80xi1> to vector<2x80xi32>
    %1196 = arith.sitofp %1195 : vector<2x80xi32> to vector<2x80xf32>
    %1197 = arith.addf %1118, %1196 : vector<2x80xf32>
    %cst_343 = arith.constant 5.000000e+00 : f32
    %1198 = vector.broadcast %cst_343 : f32 to vector<2x80xf32>
    %1199 = arith.divf %1197, %1198 : vector<2x80xf32>
    %c0_344 = arith.constant 0 : index
    %c0_345 = arith.constant 0 : index
    %1200 = vector.load %arg11[%c0_344, %c0_345] : memref<80x8xf32, #tpu.memory_space<vmem>>, vector<80x8xf32>
    %cst_346 = arith.constant dense<0.000000e+00> : vector<2x8xf32>
    %1201 = tpu.matmul %1199, %1200, %cst_346 {dimension_numbers = #tpu.dot_dimension_numbers<[1], [0], [0], [1], [0, 0, 1, 1], [], []>} : vector<2x80xf32>, vector<80x8xf32>, vector<2x8xf32> -> vector<2x8xf32>
    %c0_347 = arith.constant 0 : index
    %c0_348 = arith.constant 0 : index
    %1202 = vector.load %arg12[%c0_347, %c0_348] : memref<1x8xf32, #tpu.memory_space<vmem>>, vector<1x8xf32>
    %1203 = vector.broadcast %1202 : vector<1x8xf32> to vector<2x8xf32>
    %1204 = arith.addf %1201, %1203 : vector<2x8xf32>
    %1205 = math.tanh %1204 : vector<2x8xf32>
    %cst_349 = arith.constant 1.000000e+00 : f32
    %1206 = vector.broadcast %cst_349 : f32 to vector<2x8xf32>
    %1207 = arith.mulf %1205, %1206 : vector<2x8xf32>
    %c0_350 = arith.constant 0 : index
    %c0_351 = arith.constant 0 : index
    %1208 = vector.load %arg13[%c0_350, %c0_351] : memref<2x8xf32, #tpu.memory_space<vmem>>, vector<2x8xf32>
    tpu.vector_store %arg13[%c0_350, %c0_351], %1207 {strides = array<i32>} : memref<2x8xf32, #tpu.memory_space<vmem>>, vector<2x8xf32>,
    return
  }
  func.func @transform_0(%arg0: i32) -> (i32, i32) {
    %c0_i32 = arith.constant 0 : i32
    %c0_i32_0 = arith.constant 0 : i32
    %c0_i32_1 = arith.constant 0 : i32
    return %c0_i32, %c0_i32_0 : i32, i32
  }
  func.func @transform_1(%arg0: i32) -> (i32, i32) {
    %c0_i32 = arith.constant 0 : i32
    %c0_i32_0 = arith.constant 0 : i32
    %c0_i32_1 = arith.constant 0 : i32
    return %c0_i32, %c0_i32_0 : i32, i32
  }
  func.func @transform_2(%arg0: i32) -> (i32, i32) {
    %c0_i32 = arith.constant 0 : i32
    %c0_i32_0 = arith.constant 0 : i32
    %c0_i32_1 = arith.constant 0 : i32
    return %c0_i32, %c0_i32_0 : i32, i32
  }
  func.func @transform_3(%arg0: i32) -> (i32, i32) {
    %c0_i32 = arith.constant 0 : i32
    %c0_i32_0 = arith.constant 0 : i32
    %c0_i32_1 = arith.constant 0 : i32
    return %c0_i32, %c0_i32_0 : i32, i32
  }
  func.func @transform_4(%arg0: i32) -> (i32, i32) {
    %c0_i32 = arith.constant 0 : i32
    %c0_i32_0 = arith.constant 0 : i32
    %c0_i32_1 = arith.constant 0 : i32
    return %c0_i32, %c0_i32_0 : i32, i32
  }
  func.func @transform_5(%arg0: i32) -> (i32, i32) {
    %c0_i32 = arith.constant 0 : i32
    %c0_i32_0 = arith.constant 0 : i32
    %c0_i32_1 = arith.constant 0 : i32
    return %c0_i32, %c0_i32_0 : i32, i32
  }
  func.func @transform_6(%arg0: i32) -> (i32, i32) {
    %c0_i32 = arith.constant 0 : i32
    %c0_i32_0 = arith.constant 0 : i32
    %c0_i32_1 = arith.constant 0 : i32
    return %c0_i32, %c0_i32_0 : i32, i32
  }
  func.func @transform_7(%arg0: i32) -> (i32, i32) {
    %c0_i32 = arith.constant 0 : i32
    %c0_i32_0 = arith.constant 0 : i32
    %c0_i32_1 = arith.constant 0 : i32
    return %c0_i32, %c0_i32_0 : i32, i32
  }
  func.func @transform_8(%arg0: i32) -> (i32, i32) {
    %c0_i32 = arith.constant 0 : i32
    %c0_i32_0 = arith.constant 0 : i32
    %c0_i32_1 = arith.constant 0 : i32
    return %c0_i32, %c0_i32_0 : i32, i32
  }
  func.func @transform_9(%arg0: i32) -> (i32, i32) {
    %c0_i32 = arith.constant 0 : i32
    %c0_i32_0 = arith.constant 0 : i32
    %c0_i32_1 = arith.constant 0 : i32
    return %c0_i32, %c0_i32_0 : i32, i32
  }
  func.func @transform_10(%arg0: i32) -> (i32, i32) {
    %c0_i32 = arith.constant 0 : i32
    %c0_i32_0 = arith.constant 0 : i32
    %c0_i32_1 = arith.constant 0 : i32
    return %c0_i32, %c0_i32_0 : i32, i32
  }
  func.func @transform_11(%arg0: i32) -> (i32, i32) {
    %c0_i32 = arith.constant 0 : i32
    %c0_i32_0 = arith.constant 0 : i32
    %c0_i32_1 = arith.constant 0 : i32
    return %c0_i32, %c0_i32_0 : i32, i32
  }
  func.func @transform_12(%arg0: i32) -> (i32, i32) {
    %c0_i32 = arith.constant 0 : i32
    %c0_i32_0 = arith.constant 0 : i32
    %c0_i32_1 = arith.constant 0 : i32
    return %c0_i32, %c0_i32_0 : i32, i32
  }
}

</mosaic_0001>

<bundles_post_ra>
// kernel: pop_spike_actor_forward.1
= control target key start
LH: loop header
LB: loop body
LE: loop exit
PB: predicated region body
PF: predicated region fallthrough
CT: control target
= control target key end

     0   :  { %17 = vsyncpa [#allocation3], 0  ;;  %s6978_s0 = inlined_call_operand.vmem [shape: f32[2,8], index: 0, kind: input, shape index: {}]   ;;  %s6979_s1 = inlined_call_operand.vmem [shape: f32[8,80], index: 1, kind: input, shape index: {}]   ;;  %s6980_s2 = inlined_call_operand.hbm [shape: f32[1,80], index: 2, kind: input, shape index: {}]   ;;  %s6981_s3 = inlined_call_operand.hbm [shape: f32[1,80], index: 3, kind: input, shape index: {}]   ;;  %s6982_s4 = inlined_call_operand.hbm [shape: f32[80,256], index: 4, kind: input, shape index: {}]   ;;  %s6983_s5 = inlined_call_operand.hbm [shape: f32[1,256], index: 5, kind: input, shape index: {}]   ;;  %s6984_s6 = inlined_call_operand.vmem [shape: f32[256,256], index: 6, kind: input, shape index: {}]   ;;  %s6985_s7 = inlined_call_operand.hbm [shape: f32[1,256], index: 7, kind: input, shape index: {}]   ;;  %s6986_s8 = inlined_call_operand.vmem [shape: f32[256,80], index: 8, kind: input, shape index: {}]   ;;  %s6987_s9 = inlined_call_operand.hbm [shape: f32[1,80], index: 9, kind: input, shape index: {}]   ;;  %s6988_s10 = inlined_call_operand.vmem [shape: f32[80,8], index: 10, kind: input, shape index: {}]   ;;  %s6989_s11 = inlined_call_operand.hbm [shape: f32[1,8], index: 11, kind: input, shape index: {}]   ;;  %s6990_s12 = inlined_call_operand.hbm [shape: f32[2,8], index: 12, kind: output, shape index: {}]  }
   0x1   :  { %18 = vsyncpa [#allocation6], 0 }
   0x2   :  { %19 = vsyncpa [#allocation9], 0 }
   0x3   :  { %20 = vsyncpa [#allocation12], 0 }
   0x4   :  { %21 = vsyncpa [#allocation4], 0  ;;  %s4344_s21 = smov [#allocation5]   ;;  %s4345_s23 = smov [#allocation8]  }
   0x5   :  { %s42_s22 = sshll.u32 %s4344_s21, 4  ;;  %s64_s24 = sshll.u32 %s4345_s23, 4  ;;  %s43_s22 = int_to_ptr.vmem [resolvable:$true] %s42_s22  ;;  %s65_s24 = int_to_ptr.vmem [resolvable:$true] %s64_s24 }
   0x6   :  { %s4182_s25 = scalar_lea.vmem %s43_s22, 16  ;;  %s4186_s26 = scalar_lea.vmem %s43_s22, 32 }
   0x7   :  { %p4183_p0 = scmp.ne.s32.totalorder %s43_s22, %s4182_s25  ;;  %p4187_p1 = scmp.lt.s32.totalorder %s43_s22, %s43_s22 }
   0x8   :  { %p4188_p2 = scmp.lt.s32.totalorder %s4186_s26, %s4182_s25 }
   0xa   :  { %p4189_p3 = por %p4188_p2, %p4187_p1 }
   0xc   :  { %p4190_p4 = pnand %p4189_p3, %p4183_p0 }
   0xe   :  { %4193 = shalt.err (!%p4190_p4)
}
   0xf   :  { %45 = dma.hbm_to_vmem [thread:$0]  %s6981_s3, 16, %s43_s22, [#allocation6]  }
  0x10   :  { %s4202_s29 = scalar_lea.vmem %s65_s24, 32  ;;  %p4207_p6 = scmp.lt.s32.totalorder %s65_s24, %s65_s24 }
  0x11   :  { %p4203_p5 = scmp.ne.s32.totalorder %s65_s24, %s4202_s29  ;;  %p4208_p7 = scmp.lt.s32.totalorder %s4202_s29, %s4202_s29 }
  0x13   :  { %p4209_p8 = por %p4208_p7, %p4207_p6 }
  0x15   :  { %p4210_p9 = pnand %p4209_p8, %p4203_p5 }
  0x17   :  { %4213 = shalt.err (!%p4210_p9)
}
  0x18   :  { %67 = dma.hbm_to_vmem [thread:$0]  %s6983_s5, 32, %s65_s24, [#allocation9]  }
  0x19   :  { %s4346_s14 = smov [#allocation11]   ;;  %s4347_s16 = smov [#allocation2]  }
  0x1a   :  { %s88_s15 = sshll.u32 %s4346_s14, 4  ;;  %s32_s17 = sshll.u32 %s4347_s16, 4  ;;  %s89_s15 = int_to_ptr.vmem [resolvable:$true] %s88_s15  ;;  %s33_s17 = int_to_ptr.vmem [resolvable:$true] %s32_s17 }
  0x1b   :  { %s4222_s18 = scalar_lea.vmem %s89_s15, 16  ;;  %s4226_s3 = scalar_lea.vmem %s89_s15, 32 }
  0x1c   :  { %p4223_p10 = scmp.ne.s32.totalorder %s89_s15, %s4222_s18  ;;  %p4227_p11 = scmp.lt.s32.totalorder %s89_s15, %s89_s15 }
  0x1d   :  { %p4228_p12 = scmp.lt.s32.totalorder %s4226_s3, %s4222_s18 }
  0x1f   :  { %p4229_p13 = por %p4228_p12, %p4227_p11 }
  0x21   :  { %p4230_p0 = pnand %p4229_p13, %p4223_p10 }
  0x23   :  { %4233 = shalt.err (!%p4230_p0)
}
  0x24   :  { %91 = dma.hbm_to_vmem [thread:$0]  %s6987_s9, 16, %s89_s15, [#allocation12]  }
  0x25   :  { %s4242_s21 = scalar_lea.vmem %s33_s17, 16  ;;  %s4246_s5 = scalar_lea.vmem %s33_s17, 32 }
  0x26   :  { %p4243_p1 = scmp.ne.s32.totalorder %s33_s17, %s4242_s21  ;;  %p4247_p2 = scmp.lt.s32.totalorder %s33_s17, %s33_s17 }
  0x27   :  { %p4248_p3 = scmp.lt.s32.totalorder %s4246_s5, %s4242_s21 }
  0x29   :  { %p4249_p4 = por %p4248_p3, %p4247_p2 }
  0x2b   :  { %p4250_p5 = pnand %p4249_p4, %p4243_p1 }
  0x2d   :  { %4253 = shalt.err (!%p4250_p5)
}
  0x2e   :  { %35 = dma.hbm_to_vmem [thread:$0]  %s6980_s2, 16, %s33_s17, [#allocation3]  }
  0x2f   :  { %s4348_s24 = smov [#allocation7]  }
  0x30   :  { %s51_s25 = sshll.u32 %s4348_s24, 4  ;;  %s52_s25 = int_to_ptr.vmem [resolvable:$true] %s51_s25 }
  0x31   :  { %s4262_s26 = scalar_lea.vmem %s52_s25, 2560  ;;  %p4267_p7 = scmp.lt.s32.totalorder %s52_s25, %s52_s25 }
  0x32   :  { %p4263_p6 = scmp.ne.s32.totalorder %s52_s25, %s4262_s26  ;;  %p4268_p8 = scmp.lt.s32.totalorder %s4262_s26, %s4262_s26 }
  0x34   :  { %p4269_p9 = por %p4268_p8, %p4267_p7 }
  0x36   :  { %p4270_p10 = pnand %p4269_p9, %p4263_p6 }
  0x38   :  { %4273 = shalt.err (!%p4270_p10)
}
  0x39   :  { %s4349_s9 = smov 256   ;;  %s4350_s27 = smov 16  }
  0x3a   :  { %57 = dma.hbm_to_vmem [thread:$0]  %s6982_s4, 2560, %s52_s25, [#allocation6], %s4349_s9, %s4349_s9, %s4350_s27  }
  0x3b   :  { %s4351_s30 = smov [#allocation10]   ;;  %s4352_s2 = smov [#allocation13]  }
  0x3c   :  { %s76_s13 = sshll.u32 %s4351_s30, 4  ;;  %s100_s14 = sshll.u32 %s4352_s2, 4  ;;  %s77_s13 = int_to_ptr.vmem [resolvable:$true] %s76_s13  ;;  %s101_s14 = int_to_ptr.vmem [resolvable:$true] %s100_s14 }
  0x3d   :  { %s4282_s15 = scalar_lea.vmem %s77_s13, 32  ;;  %p4287_p12 = scmp.lt.s32.totalorder %s77_s13, %s77_s13 }
  0x3e   :  { %p4283_p11 = scmp.ne.s32.totalorder %s77_s13, %s4282_s15  ;;  %p4288_p13 = scmp.lt.s32.totalorder %s4282_s15, %s4282_s15 }
  0x40   :  { %p4289_p0 = por %p4288_p13, %p4287_p12 }
  0x42   :  { %p4290_p1 = pnand %p4289_p0, %p4283_p11 }
  0x44   :  { %4293 = shalt.err (!%p4290_p1)
}
  0x45   :  { %79 = dma.hbm_to_vmem [thread:$0]  %s6985_s7, 32, %s77_s13, [#allocation9]  }
  0x46   :  { %s4302_s18 = scalar_lea.vmem %s101_s14, 16  ;;  %s4306_s4 = scalar_lea.vmem %s101_s14, 32 }
  0x47   :  { %p4303_p2 = scmp.ne.s32.totalorder %s101_s14, %s4302_s18  ;;  %p4307_p3 = scmp.lt.s32.totalorder %s101_s14, %s101_s14 }
  0x48   :  { %p4308_p4 = scmp.lt.s32.totalorder %s4306_s4, %s4302_s18 }
  0x4a   :  { %p4309_p5 = por %p4308_p4, %p4307_p3 }
  0x4c   :  { %p4310_p6 = pnand %p4309_p5, %p4303_p2 }
  0x4e   :  { %4313 = shalt.err (!%p4310_p6)
}
  0x4f   :  { %103 = dma.hbm_to_vmem [thread:$0]  %s6989_s11, 16, %s101_s14, [#allocation12]  }
  0x50   :  { %4334 = dma.done.wait [#allocation3], 16  }
  0x51   :  { %4335 = vsyncadd [#allocation3], 4294967280 }
  0x52   :  { %4336 = dma.done.wait [#allocation6], 2576  }
  0x53   :  { %4337 = vsyncadd [#allocation6], 4294964720 }
  0x54   :  { %4338 = dma.done.wait [#allocation9], 64  }
  0x55   :  { %4339 = vsyncadd [#allocation9], 4294967232 }
  0x56   :  { %4340 = dma.done.wait [#allocation12], 32  }
  0x57   :  { %4341 = vsyncadd [#allocation12], 4294967264  ;;  %v6991_v0 = vmov 0.0   ;;  %vm4354_vm0 = vmmov 0   ;;  %vm127_vm1 = vcmask 64512   ;;  %v126_v1 = vld [vmem:[%s6979_s1] sm:$0xff]  ;;  %v214_v54 = vlaneseq }
  0x58   :  { %3535 = vmatprep.subr.mxu0 %v6991_v0  ;;  %3537 = vmatprep.mubr.msk.f32.mxu0 %vm4354_vm0, %v6991_v0  ;;  %v125_v2 = vld [vmem:[%s6978_s0] sm:$0x3]  ;;  %v4456_v4 = vld [vmem:[#allocation7 + $0x90] sm:$0xff]  ;;  %v4459_v5 = vld [vmem:[#allocation7 + $0x88] sm:$0xff]  ;;  %vm381_vm2 = vcmask 654336   ;;  %vm481_vm7 = vcmask 1041408  }
  0x59   :  { %449 = vmatprep.mubr.f32.mxu1 %v6991_v0  ;;  %3536 = vmatpush3.msra.mxu0 %v126_v1  ;;  %v4453_v3 = vld [vmem:[#allocation7 + $0x98] sm:$0xff]  ;;  %7054 = vst [vmem:[#allocation21_spill] sm:$0xff] %v4456_v4  ;;  %7055 = vst [vmem:[#allocation22_spill] sm:$0xff] %v4459_v5  ;;  %v4462_v6 = vld [vmem:[#allocation7 + $0x80] sm:$0xff]  ;;  %v4699_v55 = vshrl.u32 %v214_v54, 7  ;;  %vm906_vm12 = vcmask 648192  }
  0x5a   :  { %3538 = vmatmul.mubr.msk.f32.vlgmr.msra.gmra.mxu0 %vm127_vm1, %v125_v2  ;;  %7053 = vst [vmem:[#allocation20_spill] sm:$0xff] %v4453_v3  ;;  %397 = vmatprep.subr.mxu1 %v4453_v3  ;;  %7056 = vst [vmem:[#allocation23_spill] sm:$0xff] %v4462_v6  ;;  %v4465_v7 = vld [vmem:[#allocation7 + $0x78] sm:$0xff]  ;;  %v4468_v8 = vld [vmem:[#allocation7 + $0x70] sm:$0xff] }
  0x5b   :  { %398 = vmatpush1.msra.mxu1 %v4456_v4  ;;  %7057 = vst [vmem:[#allocation24_spill] sm:$0xff] %v4465_v7  ;;  %7058 = vst [vmem:[#allocation25_spill] sm:$0xff] %v4468_v8  ;;  %v4470_v9 = vld [vmem:[#allocation7 + $0x68] sm:$0xff]  ;;  %v4472_v10 = vld [vmem:[#allocation7 + $0x60] sm:$0xff]  ;;  %v4702_v58 = vsub.s32 0, %v4699_v55 }
  0x5c   :  { %399 = vmatprep.subr.mxu1 %v4459_v5  ;;  %7059 = vst [vmem:[#allocation26_spill] sm:$0xff] %v4470_v9  ;;  %7060 = vst [vmem:[#allocation27_spill] sm:$0xff] %v4472_v10  ;;  %v4475_v11 = vld [vmem:[#allocation7 + $0x58] sm:$0xff]  ;;  %v4478_v12 = vld [vmem:[#allocation7 + $0x50] sm:$0xff] }
  0x5d   :  { %400 = vmatpush1.msra.mxu1 %v4462_v6  ;;  %7061 = vst [vmem:[#allocation28_spill] sm:$0xff] %v4475_v11  ;;  %7062 = vst [vmem:[#allocation29_spill] sm:$0xff] %v4478_v12  ;;  %v4481_v13 = vld [vmem:[#allocation7 + $0x48] sm:$0xff]  ;;  %v4484_v14 = vld [vmem:[#allocation7 + $0x40] sm:$0xff] }
  0x5e   :  { %401 = vmatprep.subr.mxu1 %v4465_v7  ;;  %7063 = vst [vmem:[#allocation30_spill] sm:$0xff] %v4481_v13  ;;  %7064 = vst [vmem:[#allocation31_spill] sm:$0xff] %v4484_v14  ;;  %v4487_v15 = vld [vmem:[#allocation7 + $0x38] sm:$0xff]  ;;  %v4490_v16 = vld [vmem:[#allocation7 + $0x30] sm:$0xff] }
  0x5f   :  { %402 = vmatpush1.msra.mxu1 %v4468_v8  ;;  %7065 = vst [vmem:[#allocation32_spill] sm:$0xff] %v4487_v15  ;;  %7066 = vst [vmem:[#allocation33_spill] sm:$0xff] %v4490_v16  ;;  %v4493_v17 = vld [vmem:[#allocation7 + $0x28] sm:$0xff]  ;;  %v4496_v18 = vld [vmem:[#allocation7 + $0x20] sm:$0xff] }
  0x60   :  { %403 = vmatprep.subr.mxu1 %v4470_v9  ;;  %7067 = vst [vmem:[#allocation34_spill] sm:$0xff] %v4493_v17  ;;  %7068 = vst [vmem:[#allocation35_spill] sm:$0xff] %v4496_v18  ;;  %v4499_v19 = vld [vmem:[#allocation7 + $0x18] sm:$0xff]  ;;  %v4502_v20 = vld [vmem:[#allocation7 + $0x10] sm:$0xff] }
  0x61   :  { %404 = vmatpush1.msra.mxu1 %v4472_v10  ;;  %7069 = vst [vmem:[#allocation36_spill] sm:$0xff] %v4499_v19  ;;  %7070 = vst [vmem:[#allocation37_spill] sm:$0xff] %v4502_v20  ;;  %v4505_v21 = vld [vmem:[#allocation7 + $0x8] sm:$0xff]  ;;  %v4508_v22 = vld [vmem:[#allocation7] sm:$0xff] }
  0x62   :  { %405 = vmatprep.subr.mxu1 %v4475_v11  ;;  %7071 = vst [vmem:[#allocation38_spill] sm:$0xff] %v4505_v21  ;;  %7072 = vst [vmem:[#allocation39_spill] sm:$0xff] %v4508_v22  ;;  %v4516_v23 = vld [vmem:[%s6984_s6 + $0xf8] sm:$0xff]  ;;  %v4521_v24 = vld [vmem:[%s6984_s6 + $0xf0] sm:$0xff] }
  0x63   :  { %406 = vmatpush1.msra.mxu1 %v4478_v12  ;;  %v4526_v25 = vld [vmem:[%s6984_s6 + $0xe8] sm:$0xff]  ;;  %609 = vmatprep.subr.mxu0 %v4516_v23  ;;  %v4532_v26 = vld [vmem:[%s6984_s6 + $0xe0] sm:$0xff]  ;;  %v4538_v27 = vld [vmem:[%s6984_s6 + $0xd8] sm:$0xff]  ;;  %7073 = vst [vmem:[#allocation40_spill] sm:$0xff] %v4699_v55 }
  0x64   :  { %407 = vmatprep.subr.mxu1 %v4481_v13  ;;  %610 = vmatpush1.msra.mxu0 %v4521_v24  ;;  %v4544_v28 = vld [vmem:[%s6984_s6 + $0xd0] sm:$0xff]  ;;  %v4550_v29 = vld [vmem:[%s6984_s6 + $0xc8] sm:$0xff]  ;;  %v4556_v30 = vld [vmem:[%s6984_s6 + $0xc0] sm:$0xff]  ;;  %7074 = vst [vmem:[#allocation41_spill] sm:$0xff] %v4702_v58 }
  0x65   :  { %408 = vmatpush1.msra.mxu1 %v4484_v14  ;;  %611 = vmatprep.subr.mxu0 %v4526_v25  ;;  %v4562_v31 = vld [vmem:[%s6984_s6 + $0xb8] sm:$0xff]  ;;  %v4568_v32 = vld [vmem:[%s6984_s6 + $0xb0] sm:$0xff]  ;;  %v4574_v33 = vld [vmem:[%s6984_s6 + $0xa8] sm:$0xff] }
  0x66   :  { %409 = vmatprep.subr.mxu1 %v4487_v15  ;;  %612 = vmatpush1.msra.mxu0 %v4532_v26  ;;  %v4580_v34 = vld [vmem:[%s6984_s6 + $0xa0] sm:$0xff]  ;;  %v4586_v35 = vld [vmem:[%s6984_s6 + $0x98] sm:$0xff]  ;;  %v4592_v36 = vld [vmem:[%s6984_s6 + $0x90] sm:$0xff] }
  0x67   :  { %410 = vmatpush1.msra.mxu1 %v4490_v16  ;;  %613 = vmatprep.subr.mxu0 %v4538_v27  ;;  %v4598_v37 = vld [vmem:[%s6984_s6 + $0x88] sm:$0xff]  ;;  %v4604_v38 = vld [vmem:[%s6984_s6 + $0x80] sm:$0xff]  ;;  %v4610_v39 = vld [vmem:[%s6984_s6 + $0x78] sm:$0xff] }
  0x68   :  { %411 = vmatprep.subr.mxu1 %v4493_v17  ;;  %614 = vmatpush1.msra.mxu0 %v4544_v28  ;;  %v4616_v40 = vld [vmem:[%s6984_s6 + $0x70] sm:$0xff]  ;;  %v4622_v41 = vld [vmem:[%s6984_s6 + $0x68] sm:$0xff]  ;;  %v4628_v42 = vld [vmem:[%s6984_s6 + $0x60] sm:$0xff] }
  0x69   :  { %412 = vmatpush1.msra.mxu1 %v4496_v18  ;;  %615 = vmatprep.subr.mxu0 %v4550_v29  ;;  %v4634_v43 = vld [vmem:[%s6984_s6 + $0x58] sm:$0xff]  ;;  %v4640_v44 = vld [vmem:[%s6984_s6 + $0x50] sm:$0xff]  ;;  %v4646_v45 = vld [vmem:[%s6984_s6 + $0x48] sm:$0xff] }
  0x6a   :  { %413 = vmatprep.subr.mxu1 %v4499_v19  ;;  %616 = vmatpush1.msra.mxu0 %v4556_v30  ;;  %v4652_v46 = vld [vmem:[%s6984_s6 + $0x40] sm:$0xff]  ;;  %v4658_v47 = vld [vmem:[%s6984_s6 + $0x38] sm:$0xff]  ;;  %v4664_v48 = vld [vmem:[%s6984_s6 + $0x30] sm:$0xff] }
  0x6b   :  { %414 = vmatpush1.msra.mxu1 %v4502_v20  ;;  %617 = vmatprep.subr.mxu0 %v4562_v31  ;;  %v4670_v49 = vld [vmem:[%s6984_s6 + $0x28] sm:$0xff]  ;;  %v4676_v50 = vld [vmem:[%s6984_s6 + $0x20] sm:$0xff]  ;;  %v4682_v51 = vld [vmem:[%s6984_s6 + $0x18] sm:$0xff] }
  0x6c   :  { %415 = vmatprep.subr.mxu1 %v4505_v21  ;;  %618 = vmatpush1.msra.mxu0 %v4568_v32  ;;  %v4688_v52 = vld [vmem:[%s6984_s6 + $0x10] sm:$0xff]  ;;  %v4694_v53 = vld [vmem:[%s6984_s6 + $0x8] sm:$0xff]  ;;  %v202_v56 = vld [vmem:[#allocation5] sm:$0x1] }
  0x6d   :  { %416 = vmatpush1.msra.mxu1 %v4508_v22  ;;  %619 = vmatprep.subr.mxu0 %v4574_v33  ;;  %v212_v57 = vmul.f32 %v202_v56, %v202_v56  ;;  %v3263_v60 = vld [vmem:[#allocation2] ss:$0 sm:$0xff]  ;;  %v7075_v56 = vmov 0.0   ;;  %v4807_v18 = vld [vmem:[%s6984_s6 + $0x190] sm:$0xff]  ;;  %v4812_v17 = vld [vmem:[%s6984_s6 + $0x188] sm:$0xff] }
  0x6e   :  { %620 = vmatpush1.msra.mxu0 %v4580_v34  ;;  %7080 = vst [vmem:[#allocation46_spill] sm:$0xff] %v4812_v17  ;;  %v4818_v16 = vld [vmem:[%s6984_s6 + $0x180] sm:$0xff]  ;;  %v4824_v15 = vld [vmem:[%s6984_s6 + $0x178] sm:$0xff]  ;;  %v4830_v14 = vld [vmem:[%s6984_s6 + $0x170] sm:$0xff] }
  0x6f   :  { %621 = vmatprep.subr.mxu0 %v4586_v35  ;;  %v217_v59 = vrot.slane %v212_v57, %v4702_v58  ;;  %7081 = vst [vmem:[#allocation47_spill] sm:$0xff] %v4818_v16  ;;  %7082 = vst [vmem:[#allocation48_spill] sm:$0xff] %v4824_v15  ;;  %v4836_v13 = vld [vmem:[%s6984_s6 + $0x168] sm:$0xff]  ;;  %v4842_v12 = vld [vmem:[%s6984_s6 + $0x160] sm:$0xff] }
  0x70   :  { %622 = vmatpush1.msra.mxu0 %v4592_v36  ;;  %7083 = vst [vmem:[#allocation49_spill] sm:$0xff] %v4830_v14  ;;  %7084 = vst [vmem:[#allocation50_spill] sm:$0xff] %v4836_v13  ;;  %v4848_v11 = vld [vmem:[%s6984_s6 + $0x158] sm:$0xff]  ;;  %v4854_v10 = vld [vmem:[%s6984_s6 + $0x150] sm:$0xff] }
  0x71   :  { %623 = vmatprep.subr.mxu0 %v4598_v37  ;;  %3720 = vrcp.f32 %v217_v59  ;;  %7085 = vst [vmem:[#allocation51_spill] sm:$0xff] %v4842_v12  ;;  %7086 = vst [vmem:[#allocation52_spill] sm:$0xff] %v4848_v11  ;;  %v4860_v9 = vld [vmem:[%s6984_s6 + $0x148] sm:$0xff]  ;;  %v4866_v8 = vld [vmem:[%s6984_s6 + $0x140] sm:$0xff] }
  0x72   :  { %624 = vmatpush1.msra.mxu0 %v4604_v38  ;;  %7087 = vst [vmem:[#allocation53_spill] sm:$0xff] %v4854_v10  ;;  %7088 = vst [vmem:[#allocation54_spill] sm:$0xff] %v4860_v9  ;;  %v4872_v7 = vld [vmem:[%s6984_s6 + $0x138] sm:$0xff]  ;;  %v4884_v6 = vld [vmem:[%s6984_s6 + $0x128] sm:$0xff] }
  0x73   :  { %625 = vmatprep.subr.mxu0 %v4610_v39  ;;  %7089 = vst [vmem:[#allocation55_spill] sm:$0xff] %v4866_v8  ;;  %7090 = vst [vmem:[#allocation56_spill] sm:$0xff] %v4872_v7  ;;  %v4890_v5 = vld [vmem:[%s6984_s6 + $0x120] sm:$0xff]  ;;  %v4896_v4 = vld [vmem:[%s6984_s6 + $0x118] sm:$0xff] }
  0x74   :  { %626 = vmatpush1.msra.mxu0 %v4616_v40  ;;  %7092 = vst [vmem:[#allocation58_spill] sm:$0xff] %v4884_v6  ;;  %7093 = vst [vmem:[#allocation59_spill] sm:$0xff] %v4890_v5  ;;  %v4902_v3 = vld [vmem:[%s6984_s6 + $0x110] sm:$0xff] }
  0x75   :  { %627 = vmatprep.subr.mxu0 %v4622_v41  ;;  %7094 = vst [vmem:[#allocation60_spill] sm:$0xff] %v4896_v4  ;;  %7095 = vst [vmem:[#allocation61_spill] sm:$0xff] %v4902_v3 }
  0x76   :  { %628 = vmatpush1.msra.mxu0 %v4628_v42 }
  0x77   :  { %629 = vmatprep.subr.mxu0 %v4634_v43 }
  0x78   :  { %630 = vmatpush1.msra.mxu0 %v4640_v44 }
  0x79   :  { %631 = vmatprep.subr.mxu0 %v4646_v45 }
  0x7a   :  { %632 = vmatpush1.msra.mxu0 %v4652_v46 }
  0x7b   :  { %633 = vmatprep.subr.mxu0 %v4658_v47 }
  0x7c   :  { %634 = vmatpush1.msra.mxu0 %v4664_v48 }
  0x7d   :  { %635 = vmatprep.subr.mxu0 %v4670_v49 }
  0x7e   :  { %636 = vmatpush1.msra.mxu0 %v4676_v50  ;;  %v3721_v2 = vpop.eup %3720 }
  0x7f   :  { %637 = vmatprep.subr.mxu0 %v4682_v51 }
  0x80   :  { %638 = vmatpush1.msra.mxu0 %v4688_v52 }
  0x81   :  { %639 = vmatprep.subr.mxu0 %v4694_v53 }
 0x11a   :  { %v197_v61 = vpop.f32.mrf.mxu0 }
 0x11b   :  { %v209_v62 = vsub.f32 %v197_v61, %v3263_v60 }
 0x11c   :  { %v3539_v63 = vpop.f32.mrf.mxu0 }
 0x11d   :  { %v210_v1 = vmul.f32 %v209_v62, %v209_v62 }
 0x11f   :  { %v211_v0 = vmul.f32 -0.5, %v210_v1 }
 0x121   :  { %v220_v22 = vmul.f32 %v3721_v2, %v211_v0 }
 0x123   :  { %v221_v21 = vmul.f32 1.442695, %v220_v22 }
 0x125   :  { %3722 = vpow2.f32 %v221_v21 }
 0x132   :  { %v3723_v54 = vpop.eup %3722 }
 0x133   :  { %vm224_vm3 = vcmp.gt.f32.partialorder %v3723_v54, 0.999 }
 0x134   :  { %v3264_v20 = vsel %vm224_vm3, 1.0, %v7075_v56 }
 0x135   :  { %v227_v19 = vmul.f32 0.999, %v3264_v20  ;;  %3269 = vmatmul.mubr.msk.f32.vlgmr.msra.gmra.mxu1 %vm381_vm2, %v3264_v20 }
 0x137   :  { %v228_v57 = vsub.f32 %v3723_v54, %v227_v19 }
 0x139   :  { %v229_v59 = vadd.f32 %v3723_v54, %v228_v57 }
 0x13b   :  { %vm230_vm4 = vcmp.gt.f32.partialorder %v229_v59, 0.999 }
 0x13c   :  { %v4708_v60 = vsel %vm230_vm4, 1.0, %v7075_v56 }
 0x13d   :  { %7076 = vst [vmem:[#allocation42_spill] sm:$0xff] %v4708_v60  ;;  %v233_v61 = vmul.f32 0.999, %v4708_v60  ;;  %v4802_v60 = vld [vmem:[%s6984_s6 + $0x198] sm:$0xff] }
 0x13f   :  { %v234_v62 = vsub.f32 %v229_v59, %v233_v61  ;;  %v4724_v59 = vld [vmem:[%s6984_s6] sm:$0xff]  ;;  %v4730_v61 = vld [vmem:[%s6984_s6 + $0x1f8] sm:$0xff] }
 0x140   :  { %640 = vmatpush1.msra.mxu0 %v4724_v59 }
 0x141   :  { %v235_v0 = vadd.f32 %v3723_v54, %v234_v62  ;;  %641 = vmatprep.subr.mxu0 %v4730_v61  ;;  %v4736_v62 = vld [vmem:[%s6984_s6 + $0x1f0] sm:$0xff] }
 0x142   :  { %642 = vmatpush2.msra.mxu0 %v4736_v62 }
 0x143   :  { %vm236_vm5 = vcmp.gt.f32.partialorder %v235_v0, 0.999 }
 0x144   :  { %v4712_v21 = vsel %vm236_vm5, 1.0, %v7075_v56 }
 0x145   :  { %7077 = vst [vmem:[#allocation43_spill] sm:$0xff] %v4712_v21  ;;  %v239_v22 = vmul.f32 0.999, %v4712_v21  ;;  %v4794_v21 = vld [vmem:[%s6984_s6 + $0x1a0] sm:$0xff] }
 0x147   :  { %v240_v63 = vsub.f32 %v235_v0, %v239_v22  ;;  %v4748_v0 = vld [vmem:[%s6984_s6 + $0x1e0] sm:$0xff]  ;;  %v4753_v22 = vld [vmem:[%s6984_s6 + $0x1d8] sm:$0xff] }
 0x149   :  { %v241_v1 = vadd.f32 %v3723_v54, %v240_v63  ;;  %v4758_v63 = vld [vmem:[%s6984_s6 + $0x1d0] sm:$0xff] }
 0x14b   :  { %vm242_vm6 = vcmp.gt.f32.partialorder %v241_v1, 0.999 }
 0x14c   :  { %v4716_v19 = vsel %vm242_vm6, 1.0, %v7075_v56  ;;  %v4878_v56 = vld [vmem:[%s6984_s6 + $0x130] sm:$0xff] }
 0x14d   :  { %7078 = vst [vmem:[#allocation44_spill] sm:$0xff] %v4716_v19  ;;  %v245_v20 = vmul.f32 0.999, %v4716_v19  ;;  %v4788_v19 = vld [vmem:[%s6984_s6 + $0x1a8] sm:$0xff]  ;;  %7091 = vst [vmem:[#allocation57_spill] sm:$0xff] %v4878_v56 }
 0x14f   :  { %v246_v2 = vsub.f32 %v241_v1, %v245_v20  ;;  %v4764_v1 = vld [vmem:[%s6984_s6 + $0x1c8] sm:$0xff]  ;;  %v4770_v20 = vld [vmem:[%s6984_s6 + $0x1c0] sm:$0xff] }
 0x151   :  { %v4719_v57 = vadd.f32 %v3723_v54, %v246_v2  ;;  %v4742_v54 = vld [vmem:[%s6984_s6 + $0x1e8] sm:$0xff]  ;;  %v4778_v2 = vld [vmem:[%s6984_s6 + $0x1b8] sm:$0xff] }
 0x152   :  { %643 = vmatprep.subr.mxu0 %v4742_v54 }
 0x153   :  { %7079 = vst [vmem:[#allocation45_spill] sm:$0xff] %v4719_v57  ;;  %644 = vmatpush2.msra.mxu0 %v4748_v0  ;;  %v4783_v57 = vld [vmem:[%s6984_s6 + $0x1b0] sm:$0xff] }
 0x154   :  { %645 = vmatprep.subr.mxu0 %v4753_v22 }
 0x155   :  { %646 = vmatpush2.msra.mxu0 %v4758_v63 }
 0x156   :  { %647 = vmatprep.subr.mxu0 %v4764_v1 }
 0x157   :  { %648 = vmatpush2.msra.mxu0 %v4770_v20 }
 0x158   :  { %649 = vmatprep.subr.mxu0 %v4778_v2 }
 0x159   :  { %650 = vmatpush2.msra.mxu0 %v4783_v57 }
 0x15a   :  { %651 = vmatprep.subr.mxu0 %v4788_v19 }
 0x15b   :  { %652 = vmatpush2.msra.mxu0 %v4794_v21 }
 0x15c   :  { %653 = vmatprep.subr.mxu0 %v4802_v60 }
 0x15d   :  { %654 = vmatpush2.msra.mxu0 %v4807_v18 }
 0x15e   :  { %655 = vmatprep.subr.mxu0 %v4812_v17 }
 0x15f   :  { %656 = vmatpush2.msra.mxu0 %v4818_v16 }
 0x160   :  { %657 = vmatprep.subr.mxu0 %v4824_v15 }
 0x161   :  { %658 = vmatpush2.msra.mxu0 %v4830_v14 }
 0x162   :  { %659 = vmatprep.subr.mxu0 %v4836_v13 }
 0x163   :  { %660 = vmatpush2.msra.mxu0 %v4842_v12 }
 0x164   :  { %661 = vmatprep.subr.mxu0 %v4848_v11 }
 0x165   :  { %662 = vmatpush2.msra.mxu0 %v4854_v10 }
 0x166   :  { %663 = vmatprep.subr.mxu0 %v4860_v9 }
 0x167   :  { %664 = vmatpush2.msra.mxu0 %v4866_v8 }
 0x168   :  { %665 = vmatprep.subr.mxu0 %v4872_v7  ;;  %v4908_v7 = vld [vmem:[%s6984_s6 + $0x108] sm:$0xff] }
 0x169   :  { %666 = vmatpush2.msra.mxu0 %v4878_v56  ;;  %7096 = vst [vmem:[#allocation62_spill] sm:$0xff] %v4908_v7  ;;  %v4914_v56 = vld [vmem:[%s6984_s6 + $0x100] sm:$0xff] }
 0x16a   :  { %667 = vmatprep.subr.mxu0 %v4884_v6  ;;  %7097 = vst [vmem:[#allocation63_spill] sm:$0xff] %v4914_v56  ;;  %v7029_v6 = vsub.s32 1, %v4699_v55 }
 0x16b   :  { %668 = vmatpush2.msra.mxu0 %v4890_v5  ;;  %v271_v5 = vld [vmem:[#allocation8] sm:$0x3] }
 0x16c   :  { %669 = vmatprep.subr.mxu0 %v4896_v4  ;;  %v4922_v8 = vrot.slane %v271_v5, %v4702_v58  ;;  %v4926_v4 = vrot.slane %v271_v5, %v7029_v6 }
 0x16d   :  { %670 = vmatpush2.msra.mxu0 %v4902_v3 }
 0x16e   :  { %671 = vmatprep.subr.mxu0 %v4908_v7  ;;  %7098 = vst [vmem:[#allocation64_spill] sm:$0xff] %v4922_v8  ;;  %7099 = vst [vmem:[#allocation65_spill] sm:$0xff] %v4926_v4 }
 0x16f   :  { %672 = vmatpush2.msra.mxu0 %v4914_v56 }
 0x170   :  { %1219 = vmatprep.subr.mxu0 %v4516_v23 }
 0x1f5   :  { %v451_v9 = vpop.f32.mrf.mxu1 }
 0x1f6   :  { %v4929_v10 = vadd.f32 %v451_v9, %v4922_v8 }
 0x1f7   :  { %v453_v7 = vpop.f32.mrf.mxu1 }
 0x1f8   :  { %v4932_v56 = vadd.f32 %v453_v7, %v4926_v4  ;;  %v510_v23 = vsel %vm481_vm7, %v4929_v10, inf  ;;  %v460_v3 = vsub.f32 0.0, %v4929_v10  ;;  %v482_v5 = vsel %vm481_vm7, %v4929_v10, 0.0 }
 0x1f9   :  { %v497_v13 = vsel %vm481_vm7, %v4929_v10, -inf }
 0x1fa   :  { %v511_v58 = vsel %vm481_vm7, %v4932_v56, inf  ;;  %v483_v9 = vsel %vm481_vm7, %v4932_v56, 0.0  ;;  %v461_v6 = vsub.f32 0.0, %v4932_v56  ;;  %v463_v7 = vmul.f32 0.33333334, %v460_v3 }
 0x1fb   :  { %v512_v8 = vmin.f32 %v510_v23, %v511_v58  ;;  %v484_v55 = vadd.f32 %v483_v9, %v482_v5  ;;  %v498_v4 = vsel %vm481_vm7, %v4932_v56, -inf }
 0x1fc   :  { %v464_v11 = vmul.f32 0.33333334, %v461_v6  ;;  %v465_v12 = vmul.f32 1.442695, %v463_v7  ;;  %v499_v15 = vmax.f32 %v497_v13, %v498_v4  ;;  %v7042_v13 = vmov 1.0   ;;  %v5205_v7 = vld [vmem:[%s6986_s8 + $0x10] sm:$0xff] }
 0x1fd   :  { %513 = vmin.xlane.f32.xlu1 %v512_v8  ;;  %485 = vadd.xlane.f32.xlu0 %v484_v55 }
 0x1fe   :  { %v467_v14 = vmul.f32 1.442695, %v464_v11  ;;  %3724 = vpow2.f32 %v465_v12 }
 0x200   :  { %3726 = vpow2.f32 %v467_v14 }
 0x201   :  { %500 = vmax.xlane.f32.xlu0 %v499_v15 }
 0x20b   :  { %v3725_v16 = vpop.eup %3724 }
 0x20c   :  { %v3270_v58 = vadd.f32 -1.0, %v3725_v16 }
 0x20d   :  { %v3727_v17 = vpop.eup %3726 }
 0x20e   :  { %v3271_v23 = vadd.f32 -1.0, %v3727_v17  ;;  %v471_v3 = vmul.f32 0.5, %v3270_v58  ;;  %v5211_v58 = vld [vmem:[%s6986_s8 + $0x88] sm:$0xff] }
 0x210   :  { %v472_v5 = vmul.f32 0.5, %v3271_v23  ;;  %v4948_v9 = vadd.f32 0.25, %v471_v3  ;;  %v5217_v23 = vld [vmem:[%s6986_s8 + $0x8] sm:$0xff]  ;;  %v5223_v3 = vld [vmem:[%s6986_s8 + $0x80] sm:$0xff] }
 0x212   :  { %v4950_v6 = vadd.f32 0.25, %v472_v5  ;;  %v540_v8 = vsel %vm481_vm7, %v4948_v9, -inf  ;;  %v526_v11 = vsel %vm481_vm7, %v4948_v9, 0.0  ;;  %vm475_vm9 = vcmp.gt.f32.partialorder %v4929_v10, %v4948_v9  ;;  %v5229_v5 = vld [vmem:[%s6986_s8] sm:$0xff] }
 0x213   :  { %v553_v17 = vsel %vm481_vm7, %v4948_v9, inf }
 0x214   :  { %vm476_vm8 = vcmp.gt.f32.partialorder %v4932_v56, %v4950_v6  ;;  %v541_v4 = vsel %vm481_vm7, %v4950_v6, -inf  ;;  %v527_v12 = vsel %vm481_vm7, %v4950_v6, 0.0  ;;  %v554_v16 = vsel %vm481_vm7, %v4950_v6, inf }
 0x215   :  { %3274 = vmatprep.mubr.msk.f32.mxu0 %vm476_vm8, %v7042_v13  ;;  %v542_v14 = vmax.f32 %v540_v8, %v541_v4  ;;  %v528_v15 = vadd.f32 %v527_v12, %v526_v11  ;;  %v555_v55 = vmin.f32 %v553_v17, %v554_v16  ;;  %v7118_v8 = vld [vmem:[#allocation20_spill] sm:$0xff] }
 0x216   :  { %3275 = vmatmul.mubr.msk.f32.vlgmr.msra.gmra.mxu0 %vm475_vm9, %v7042_v13 }
 0x217   :  { %543 = vmax.xlane.f32.xlu0 %v542_v14  ;;  %529 = vadd.xlane.f32.xlu1 %v528_v15 }
 0x218   :  { %1220 = vmatpush1.msra.mxu0 %v4521_v24  ;;  %v7100_v24 = vld [vmem:[#allocation46_spill] sm:$0xff] }
 0x219   :  { %1221 = vmatprep.subr.mxu0 %v4526_v25  ;;  %v7101_v25 = vld [vmem:[#allocation47_spill] sm:$0xff] }
 0x21a   :  { %1222 = vmatpush1.msra.mxu0 %v4532_v26  ;;  %v7102_v26 = vld [vmem:[#allocation48_spill] sm:$0xff] }
 0x21b   :  { %556 = vmin.xlane.f32.xlu1 %v555_v55  ;;  %1223 = vmatprep.subr.mxu0 %v4538_v27  ;;  %v7103_v27 = vld [vmem:[#allocation49_spill] sm:$0xff] }
 0x21c   :  { %1224 = vmatpush1.msra.mxu0 %v4544_v28  ;;  %v7104_v28 = vld [vmem:[#allocation50_spill] sm:$0xff] }
 0x21d   :  { %1225 = vmatprep.subr.mxu0 %v4550_v29  ;;  %v7105_v29 = vld [vmem:[#allocation51_spill] sm:$0xff] }
 0x21e   :  { %1226 = vmatpush1.msra.mxu0 %v4556_v30  ;;  %v7106_v30 = vld [vmem:[#allocation52_spill] sm:$0xff] }
 0x21f   :  { %1227 = vmatprep.subr.mxu0 %v4562_v31  ;;  %v7107_v31 = vld [vmem:[#allocation53_spill] sm:$0xff] }
 0x220   :  { %1228 = vmatpush1.msra.mxu0 %v4568_v32  ;;  %v7108_v32 = vld [vmem:[#allocation54_spill] sm:$0xff] }
 0x221   :  { %1229 = vmatprep.subr.mxu0 %v4574_v33  ;;  %v7109_v33 = vld [vmem:[#allocation55_spill] sm:$0xff] }
 0x222   :  { %1230 = vmatpush1.msra.mxu0 %v4580_v34  ;;  %v7111_v34 = vld [vmem:[#allocation57_spill] sm:$0xff] }
 0x223   :  { %1231 = vmatprep.subr.mxu0 %v4586_v35  ;;  %v7112_v35 = vld [vmem:[#allocation58_spill] sm:$0xff] }
 0x224   :  { %1232 = vmatpush1.msra.mxu0 %v4592_v36  ;;  %v7113_v36 = vld [vmem:[#allocation59_spill] sm:$0xff] }
 0x225   :  { %1233 = vmatprep.subr.mxu0 %v4598_v37  ;;  %v7114_v37 = vld [vmem:[#allocation60_spill] sm:$0xff] }
 0x226   :  { %1234 = vmatpush1.msra.mxu0 %v4604_v38  ;;  %v7115_v38 = vld [vmem:[#allocation61_spill] sm:$0xff] }
 0x227   :  { %1235 = vmatprep.subr.mxu0 %v4610_v39  ;;  %v7116_v39 = vld [vmem:[#allocation62_spill] sm:$0xff] }
 0x228   :  { %1236 = vmatpush1.msra.mxu0 %v4616_v40  ;;  %v7117_v40 = vld [vmem:[#allocation63_spill] sm:$0xff] }
 0x229   :  { %1237 = vmatprep.subr.mxu0 %v4622_v41  ;;  %v5042_v41 = vld [vmem:[%s6986_s8 + $0xf8] sm:$0xff] }
 0x22a   :  { %1238 = vmatpush1.msra.mxu0 %v4628_v42  ;;  %3349 = vmatprep.subr.mxu1 %v5042_v41  ;;  %v5048_v42 = vld [vmem:[%s6986_s8 + $0x78] sm:$0xff] }
 0x22b   :  { %1239 = vmatprep.subr.mxu0 %v4634_v43  ;;  %3350 = vmatpush3.msra.mxu1 %v5048_v42  ;;  %v5055_v43 = vld [vmem:[%s6986_s8 + $0xf0] sm:$0xff] }
 0x22c   :  { %1240 = vmatpush1.msra.mxu0 %v4640_v44  ;;  %3351 = vmatprep.subr.mxu1 %v5055_v43  ;;  %v5061_v44 = vld [vmem:[%s6986_s8 + $0x70] sm:$0xff] }
 0x22d   :  { %1241 = vmatprep.subr.mxu0 %v4646_v45  ;;  %3352 = vmatpush3.msra.mxu1 %v5061_v44  ;;  %v5067_v45 = vld [vmem:[%s6986_s8 + $0xe8] sm:$0xff] }
 0x22e   :  { %1242 = vmatpush1.msra.mxu0 %v4652_v46  ;;  %3353 = vmatprep.subr.mxu1 %v5067_v45  ;;  %v5073_v46 = vld [vmem:[%s6986_s8 + $0x68] sm:$0xff] }
 0x22f   :  { %1243 = vmatprep.subr.mxu0 %v4658_v47  ;;  %3354 = vmatpush3.msra.mxu1 %v5073_v46  ;;  %v5079_v47 = vld [vmem:[%s6986_s8 + $0xe0] sm:$0xff] }
 0x230   :  { %1244 = vmatpush1.msra.mxu0 %v4664_v48  ;;  %3355 = vmatprep.subr.mxu1 %v5079_v47  ;;  %v5085_v48 = vld [vmem:[%s6986_s8 + $0x60] sm:$0xff] }
 0x231   :  { %1245 = vmatprep.subr.mxu0 %v4670_v49  ;;  %3356 = vmatpush3.msra.mxu1 %v5085_v48  ;;  %v5091_v49 = vld [vmem:[%s6986_s8 + $0xd8] sm:$0xff] }
 0x232   :  { %1246 = vmatpush1.msra.mxu0 %v4676_v50  ;;  %3357 = vmatprep.subr.mxu1 %v5091_v49  ;;  %v5097_v50 = vld [vmem:[%s6986_s8 + $0x58] sm:$0xff] }
 0x233   :  { %1247 = vmatprep.subr.mxu0 %v4682_v51  ;;  %3358 = vmatpush3.msra.mxu1 %v5097_v50  ;;  %v5103_v51 = vld [vmem:[%s6986_s8 + $0xd0] sm:$0xff] }
 0x234   :  { %1248 = vmatpush1.msra.mxu0 %v4688_v52  ;;  %3359 = vmatprep.subr.mxu1 %v5103_v51  ;;  %v5109_v52 = vld [vmem:[%s6986_s8 + $0x50] sm:$0xff] }
 0x235   :  { %1249 = vmatprep.subr.mxu0 %v4694_v53  ;;  %3360 = vmatpush3.msra.mxu1 %v5109_v52  ;;  %v5115_v53 = vld [vmem:[%s6986_s8 + $0xc8] sm:$0xff] }
 0x236   :  { %1250 = vmatpush1.msra.mxu0 %v4724_v59  ;;  %3361 = vmatprep.subr.mxu1 %v5115_v53  ;;  %v5145_v59 = vld [vmem:[%s6986_s8 + $0x38] sm:$0xff] }
 0x237   :  { %1251 = vmatprep.subr.mxu0 %v4730_v61  ;;  %v5151_v61 = vld [vmem:[%s6986_s8 + $0xb0] sm:$0xff] }
 0x238   :  { %1252 = vmatpush2.msra.mxu0 %v4736_v62  ;;  %v5157_v62 = vld [vmem:[%s6986_s8 + $0x30] sm:$0xff] }
 0x239   :  { %1253 = vmatprep.subr.mxu0 %v4742_v54  ;;  %v5163_v54 = vld [vmem:[%s6986_s8 + $0xa8] sm:$0xff] }
 0x23a   :  { %1254 = vmatpush2.msra.mxu0 %v4748_v0  ;;  %v5169_v0 = vld [vmem:[%s6986_s8 + $0x28] sm:$0xff] }
 0x23b   :  { %1255 = vmatprep.subr.mxu0 %v4753_v22  ;;  %v5175_v22 = vld [vmem:[%s6986_s8 + $0xa0] sm:$0xff] }
 0x23c   :  { %1256 = vmatpush2.msra.mxu0 %v4758_v63  ;;  %v5181_v63 = vld [vmem:[%s6986_s8 + $0x20] sm:$0xff] }
 0x23d   :  { %1257 = vmatprep.subr.mxu0 %v4764_v1  ;;  %v5187_v1 = vld [vmem:[%s6986_s8 + $0x98] sm:$0xff] }
 0x23e   :  { %1258 = vmatpush2.msra.mxu0 %v4770_v20  ;;  %v5193_v20 = vld [vmem:[%s6986_s8 + $0x18] sm:$0xff] }
 0x23f   :  { %1259 = vmatprep.subr.mxu0 %v4778_v2  ;;  %v5199_v2 = vld [vmem:[%s6986_s8 + $0x90] sm:$0xff] }
 0x240   :  { %1260 = vmatpush2.msra.mxu0 %v4783_v57  ;;  %v5139_v57 = vld [vmem:[%s6986_s8 + $0xb8] sm:$0xff] }
 0x241   :  { %1261 = vmatprep.subr.mxu0 %v4788_v19  ;;  %v5133_v19 = vld [vmem:[%s6986_s8 + $0x40] sm:$0xff] }
 0x242   :  { %1262 = vmatpush2.msra.mxu0 %v4794_v21  ;;  %v5127_v21 = vld [vmem:[%s6986_s8 + $0xc0] sm:$0xff] }
 0x243   :  { %1263 = vmatprep.subr.mxu0 %v4802_v60  ;;  %v5121_v60 = vld [vmem:[%s6986_s8 + $0x48] sm:$0xff] }
 0x244   :  { %1264 = vmatpush2.msra.mxu0 %v4807_v18  ;;  %v7110_v18 = vld [vmem:[#allocation56_spill] sm:$0xff]  ;;  %3362 = vmatpush3.msra.mxu1 %v5121_v60 }
 0x245   :  { %1265 = vmatprep.subr.mxu0 %v7100_v24  ;;  %3363 = vmatprep.subr.mxu1 %v5127_v21 }
 0x246   :  { %1266 = vmatpush2.msra.mxu0 %v7101_v25  ;;  %3364 = vmatpush3.msra.mxu1 %v5133_v19 }
 0x247   :  { %1267 = vmatprep.subr.mxu0 %v7102_v26  ;;  %3365 = vmatprep.subr.mxu1 %v5139_v57 }
 0x248   :  { %1268 = vmatpush2.msra.mxu0 %v7103_v27  ;;  %3366 = vmatpush3.msra.mxu1 %v5145_v59 }
 0x249   :  { %1269 = vmatprep.subr.mxu0 %v7104_v28  ;;  %3367 = vmatprep.subr.mxu1 %v5151_v61 }
 0x24a   :  { %1270 = vmatpush2.msra.mxu0 %v7105_v29  ;;  %3368 = vmatpush3.msra.mxu1 %v5157_v62 }
 0x24b   :  { %1271 = vmatprep.subr.mxu0 %v7106_v30  ;;  %3369 = vmatprep.subr.mxu1 %v5163_v54 }
 0x24c   :  { %1272 = vmatpush2.msra.mxu0 %v7107_v31  ;;  %3370 = vmatpush3.msra.mxu1 %v5169_v0 }
 0x24d   :  { %1273 = vmatprep.subr.mxu0 %v7108_v32  ;;  %3371 = vmatprep.subr.mxu1 %v5175_v22 }
 0x24e   :  { %1274 = vmatpush2.msra.mxu0 %v7109_v33  ;;  %3372 = vmatpush3.msra.mxu1 %v5181_v63 }
 0x24f   :  { %1275 = vmatprep.subr.mxu0 %v7110_v18  ;;  %3373 = vmatprep.subr.mxu1 %v5187_v1 }
 0x250   :  { %1276 = vmatpush2.msra.mxu0 %v7111_v34  ;;  %3374 = vmatpush3.msra.mxu1 %v5193_v20 }
 0x251   :  { %1277 = vmatprep.subr.mxu0 %v7112_v35  ;;  %3375 = vmatprep.subr.mxu1 %v5199_v2 }
 0x252   :  { %1278 = vmatpush2.msra.mxu0 %v7113_v36  ;;  %3376 = vmatpush3.msra.mxu1 %v5205_v7 }
 0x253   :  { %1279 = vmatprep.subr.mxu0 %v7114_v37  ;;  %3377 = vmatprep.subr.mxu1 %v5211_v58 }
 0x254   :  { %1280 = vmatpush2.msra.mxu0 %v7115_v38  ;;  %3378 = vmatpush3.msra.mxu1 %v5217_v23 }
 0x255   :  { %1281 = vmatprep.subr.mxu0 %v7116_v39  ;;  %3379 = vmatprep.subr.mxu1 %v5223_v3 }
 0x256   :  { %1282 = vmatpush2.msra.mxu0 %v7117_v40  ;;  %3380 = vmatpush3.msra.mxu1 %v5229_v5 }
 0x257   :  { %3419 = vmatprep.subr.mxu0 %v5042_v41  ;;  %1012 = vmatprep.subr.mxu1 %v7118_v8 }
 0x286   :  { %v514_v4 = vpop.xlane.xlu1 %513  ;;  %v486_v11 = vpop.xlane.xlu0 %485 }
 0x287   :  { %v515_v12 = vrot.slane %v514_v4, 4  ;;  %v487_v14 = vrot.slane %v486_v11, 4 }
 0x289   :  { %v516_v15 = vmin.f32 %v514_v4, %v515_v12  ;;  %v488_v16 = vadd.f32 %v487_v14, %v486_v11 }
 0x28a   :  { %v501_v17 = vpop.xlane.xlu0 %500 }
 0x28b   :  { %v517_v55 = vrot.slane %v516_v15, 2  ;;  %v489_v24 = vrot.slane %v488_v16, 2  ;;  %v502_v25 = vrot.slane %v501_v17, 4 }
 0x28d   :  { %v503_v26 = vmax.f32 %v501_v17, %v502_v25  ;;  %v490_v27 = vadd.f32 %v489_v24, %v488_v16  ;;  %v518_v28 = vmin.f32 %v516_v15, %v517_v55 }
 0x28f   :  { %v504_v29 = vrot.slane %v503_v26, 2  ;;  %v491_v30 = vrot.slane %v490_v27, 1  ;;  %v519_v33 = vrot.slane %v518_v28, 1 }
 0x291   :  { %v492_v31 = vadd.f32 %v491_v30, %v490_v27  ;;  %v505_v32 = vmax.f32 %v503_v26, %v504_v29  ;;  %v520_v35 = vmin.f32 %v518_v28, %v519_v33 }
 0x293   :  { %3563 = vpush %v492_v31  ;;  %v506_v18 = vrot.slane %v505_v32, 1  ;;  %v336_v31 = vld [vmem:[#allocation10] sm:$0x3] }
 0x295   :  { %v507_v34 = vmax.f32 %v505_v32, %v506_v18  ;;  %v7119_v32 = vld [vmem:[#allocation41_spill] sm:$0xff]  ;;  %v7121_v18 = vld [vmem:[#allocation40_spill] sm:$0xff] }
 0x296   :  { %v5234_v33 = vrot.slane %v336_v31, %v7119_v32 }
 0x297   :  { %3565 = vpush %v507_v34  ;;  %v7122_v34 = vsub.s32 1, %v7121_v18 }
 0x298   :  { %3567 = vpush %v520_v35  ;;  %7120 = vst [vmem:[#allocation46_spill] sm:$0xff] %v5234_v33 }
 0x299   :  { %v5238_v35 = vrot.slane %v336_v31, %v7122_v34 }
 0x29b   :  { %7123 = vst [vmem:[#allocation47_spill] sm:$0xff] %v5238_v35 }
 0x2a0   :  { %v544_v36 = vpop.xlane.xlu0 %543  ;;  %v530_v37 = vpop.xlane.xlu1 %529 }
 0x2a1   :  { %v545_v38 = vrot.slane %v544_v36, 4  ;;  %v531_v39 = vrot.slane %v530_v37, 4 }
 0x2a3   :  { %v546_v40 = vmax.f32 %v544_v36, %v545_v38  ;;  %v532_v8 = vadd.f32 %v531_v39, %v530_v37 }
 0x2a4   :  { %v557_v4 = vpop.xlane.xlu1 %556 }
 0x2a5   :  { %v547_v11 = vrot.slane %v546_v40, 2  ;;  %v533_v12 = vrot.slane %v532_v8, 2  ;;  %v558_v14 = vrot.slane %v557_v4, 4 }
 0x2a7   :  { %v559_v15 = vmin.f32 %v557_v4, %v558_v14  ;;  %v534_v16 = vadd.f32 %v533_v12, %v532_v8  ;;  %v548_v17 = vmax.f32 %v546_v40, %v547_v11 }
 0x2a9   :  { %v560_v55 = vrot.slane %v559_v15, 2  ;;  %v535_v24 = vrot.slane %v534_v16, 1  ;;  %v549_v25 = vrot.slane %v548_v17, 1 }
 0x2ab   :  { %v536_v26 = vadd.f32 %v535_v24, %v534_v16  ;;  %v550_v27 = vmax.f32 %v548_v17, %v549_v25  ;;  %v561_v28 = vmin.f32 %v559_v15, %v560_v55 }
 0x2ad   :  { %3569 = vpush %v536_v26  ;;  %v562_v29 = vrot.slane %v561_v28, 1 }
 0x2ae   :  { %3571 = vpush %v550_v27 }
 0x2af   :  { %v563_v30 = vmin.f32 %v561_v28, %v562_v29 }
 0x2b1   :  { %3573 = vpush %v563_v30 }
 0x2c4   :  { %s3564_s22 = spop %3563 }
 0x2c8   :  { %s3566_s23 = spop %3565 }
 0x2c9   :  { %s3568_s24 = spop %3567 }
 0x2d6   :  { %v675_v36 = vpop.f32.mrf.mxu0 }
 0x2d7   :  { %v5241_v37 = vadd.f32 %v675_v36, %v5234_v33 }
 0x2d8   :  { %v677_v38 = vpop.f32.mrf.mxu0 }
 0x2d9   :  { %v5244_v39 = vadd.f32 %v677_v38, %v5238_v35  ;;  %v684_v40 = vsub.f32 0.0, %v5241_v37  ;;  %v718_v8 = vsel %vm481_vm7, %v5241_v37, -inf  ;;  %v704_v11 = vsel %vm481_vm7, %v5241_v37, 0.0 }
 0x2da   :  { %v731_v24 = vsel %vm481_vm7, %v5241_v37, inf }
 0x2db   :  { %v719_v4 = vsel %vm481_vm7, %v5244_v39, -inf  ;;  %v705_v12 = vsel %vm481_vm7, %v5244_v39, 0.0  ;;  %v732_v16 = vsel %vm481_vm7, %v5244_v39, inf  ;;  %v685_v17 = vsub.f32 0.0, %v5244_v39 }
 0x2dc   :  { %v720_v14 = vmax.f32 %v718_v8, %v719_v4  ;;  %v706_v15 = vadd.f32 %v705_v12, %v704_v11  ;;  %v686_v55 = vmul.f32 0.33333334, %v684_v40  ;;  %v733_v27 = vmin.f32 %v731_v24, %v732_v16 }
 0x2dd   :  { %v687_v25 = vmul.f32 0.33333334, %v685_v17  ;;  %v7125_v17 = vld [vmem:[#allocation22_spill] sm:$0xff] }
 0x2de   :  { %721 = vmax.xlane.f32.xlu1 %v720_v14  ;;  %707 = vadd.xlane.f32.xlu0 %v706_v15  ;;  %v688_v26 = vmul.f32 1.442695, %v686_v55  ;;  %v7124_v15 = vld [vmem:[#allocation21_spill] sm:$0xff]  ;;  %v7126_v55 = vld [vmem:[#allocation23_spill] sm:$0xff]  ;;  %s5384_s25 = spop %3569 }
 0x2df   :  { %v690_v28 = vmul.f32 1.442695, %v687_v25  ;;  %v7127_v25 = vmov 0.0   ;;  %s3572_s26 = spop %3571 }
 0x2e0   :  { %3728 = vpow2.f32 %v688_v26  ;;  %v7128_v26 = vld [vmem:[#allocation24_spill] sm:$0xff] }
 0x2e1   :  { %3730 = vpow2.f32 %v690_v28  ;;  %v7129_v28 = vld [vmem:[#allocation25_spill] sm:$0xff] }
 0x2e2   :  { %734 = vmin.xlane.f32.xlu0 %v733_v27  ;;  %s3574_s9 = spop %3573 }
 0x2ed   :  { %v3729_v29 = vpop.eup %3728 }
 0x2ee   :  { %v3276_v30 = vadd.f32 -1.0, %v3729_v29  ;;  %v3731_v31 = vpop.eup %3730  ;;  %v7130_v29 = vld [vmem:[#allocation26_spill] sm:$0xff] }
 0x2ef   :  { %v3277_v32 = vadd.f32 -1.0, %v3731_v31  ;;  %v7132_v31 = vld [vmem:[#allocation28_spill] sm:$0xff] }
 0x2f0   :  { %v694_v18 = vmul.f32 0.5, %v3276_v30  ;;  %v7131_v30 = vld [vmem:[#allocation27_spill] sm:$0xff] }
 0x2f1   :  { %v695_v34 = vmul.f32 0.5, %v3277_v32  ;;  %v7133_v32 = vld [vmem:[#allocation29_spill] sm:$0xff] }
 0x2f2   :  { %v5260_v36 = vadd.f32 0.25, %v694_v18  ;;  %v7134_v18 = vld [vmem:[#allocation30_spill] sm:$0xff] }
 0x2f3   :  { %v5262_v38 = vadd.f32 0.25, %v695_v34  ;;  %v7135_v34 = vld [vmem:[#allocation31_spill] sm:$0xff] }
 0x2f4   :  { %v761_v40 = vsel %vm481_vm7, %v5260_v36, -inf  ;;  %v747_v4 = vsel %vm481_vm7, %v5260_v36, 0.0  ;;  %vm698_vm11 = vcmp.gt.f32.partialorder %v5241_v37, %v5260_v36  ;;  %v774_v24 = vsel %vm481_vm7, %v5260_v36, inf }
 0x2f5   :  { %vm699_vm10 = vcmp.gt.f32.partialorder %v5244_v39, %v5262_v38  ;;  %v762_v8 = vsel %vm481_vm7, %v5262_v38, -inf  ;;  %v748_v11 = vsel %vm481_vm7, %v5262_v38, 0.0  ;;  %v775_v16 = vsel %vm481_vm7, %v5262_v38, inf  ;;  %v7153_v38 = vld [vmem:[#allocation47_spill] sm:$0xff] }
 0x2f6   :  { %3281 = vmatprep.mubr.msk.f32.mxu1 %vm699_vm10, %v7042_v13  ;;  %v763_v12 = vmax.f32 %v761_v40, %v762_v8  ;;  %v749_v14 = vadd.f32 %v748_v11, %v747_v4  ;;  %v776_v27 = vmin.f32 %v774_v24, %v775_v16  ;;  %v7136_v40 = vld [vmem:[#allocation32_spill] sm:$0xff]  ;;  %v7137_v8 = vld [vmem:[#allocation33_spill] sm:$0xff]  ;;  %v7138_v4 = vld [vmem:[#allocation34_spill] sm:$0xff] }
 0x2f7   :  { %3282 = vmatmul.mubr.msk.f32.vlgmr.msra.gmra.mxu1 %vm698_vm11, %v7042_v13  ;;  %v7139_v11 = vld [vmem:[#allocation35_spill] sm:$0xff] }
 0x2f8   :  { %1013 = vmatpush1.msra.mxu1 %v7124_v15  ;;  %764 = vmax.xlane.f32.xlu0 %v763_v12  ;;  %v7140_v12 = vld [vmem:[#allocation36_spill] sm:$0xff]  ;;  %v7142_v15 = vld [vmem:[#allocation38_spill] sm:$0xff]  ;;  %v7143_v16 = vld [vmem:[#allocation39_spill] sm:$0xff] }
 0x2f9   :  { %750 = vadd.xlane.f32.xlu1 %v749_v14  ;;  %1014 = vmatprep.subr.mxu1 %v7125_v17  ;;  %v7141_v14 = vld [vmem:[#allocation37_spill] sm:$0xff]  ;;  %v7144_v17 = vld [vmem:[#allocation42_spill] sm:$0xff] }
 0x2fa   :  { %1015 = vmatpush1.msra.mxu1 %v7126_v55  ;;  %1064 = vmatprep.mubr.f32.mxu1 %v7127_v25 }
 0x2fb   :  { %1016 = vmatprep.subr.mxu1 %v7128_v26 }
 0x2fc   :  { %1017 = vmatpush1.msra.mxu1 %v7129_v28 }
 0x2fd   :  { %777 = vmin.xlane.f32.xlu1 %v776_v27  ;;  %1018 = vmatprep.subr.mxu1 %v7130_v29 }
 0x2fe   :  { %1019 = vmatpush1.msra.mxu1 %v7131_v30 }
 0x2ff   :  { %1020 = vmatprep.subr.mxu1 %v7132_v31 }
 0x300   :  { %1021 = vmatpush1.msra.mxu1 %v7133_v32 }
 0x301   :  { %1022 = vmatprep.subr.mxu1 %v7134_v18 }
 0x302   :  { %1023 = vmatpush1.msra.mxu1 %v7135_v34 }
 0x303   :  { %1024 = vmatprep.subr.mxu1 %v7136_v40 }
 0x304   :  { %1025 = vmatpush1.msra.mxu1 %v7137_v8 }
 0x305   :  { %1026 = vmatprep.subr.mxu1 %v7138_v4 }
 0x306   :  { %1027 = vmatpush1.msra.mxu1 %v7139_v11 }
 0x307   :  { %1028 = vmatprep.subr.mxu1 %v7140_v12 }
 0x308   :  { %1029 = vmatpush1.msra.mxu1 %v7141_v14 }
 0x309   :  { %1030 = vmatprep.subr.mxu1 %v7142_v15 }
 0x30a   :  { %1031 = vmatpush1.msra.mxu1 %v7143_v16 }
 0x30b   :  { %3285 = vmatmul.mubr.msk.f32.vlgmr.msra.gmra.mxu1 %vm381_vm2, %v7144_v17  ;;  %3384 = vmatprep.subr.mxu1 %v5042_v41  ;;  %v5342_v41 = vld [vmem:[#allocation7 + $0x98] sm:$0xff] }
 0x30c   :  { %3385 = vmatpush3.msra.mxu1 %v5048_v42 }
 0x30d   :  { %3386 = vmatprep.subr.mxu1 %v5055_v43 }
 0x30e   :  { %3387 = vmatpush3.msra.mxu1 %v5061_v44 }
 0x30f   :  { %3388 = vmatprep.subr.mxu1 %v5067_v45 }
 0x310   :  { %3389 = vmatpush3.msra.mxu1 %v5073_v46 }
 0x311   :  { %3390 = vmatprep.subr.mxu1 %v5079_v47 }
 0x312   :  { %3391 = vmatpush3.msra.mxu1 %v5085_v48 }
 0x313   :  { %3392 = vmatprep.subr.mxu1 %v5091_v49 }
 0x314   :  { %3393 = vmatpush3.msra.mxu1 %v5097_v50 }
 0x315   :  { %3394 = vmatprep.subr.mxu1 %v5103_v51 }
 0x316   :  { %3395 = vmatpush3.msra.mxu1 %v5109_v52 }
 0x317   :  { %3396 = vmatprep.subr.mxu1 %v5115_v53 }
 0x318   :  { %3397 = vmatpush3.msra.mxu1 %v5121_v60 }
 0x319   :  { %3398 = vmatprep.subr.mxu1 %v5127_v21 }
 0x31a   :  { %3399 = vmatpush3.msra.mxu1 %v5133_v19 }
 0x31b   :  { %3400 = vmatprep.subr.mxu1 %v5139_v57 }
 0x31c   :  { %3401 = vmatpush3.msra.mxu1 %v5145_v59 }
 0x31d   :  { %3402 = vmatprep.subr.mxu1 %v5151_v61 }
 0x31e   :  { %3403 = vmatpush3.msra.mxu1 %v5157_v62 }
 0x31f   :  { %3404 = vmatprep.subr.mxu1 %v5163_v54 }
 0x320   :  { %3405 = vmatpush3.msra.mxu1 %v5169_v0 }
 0x321   :  { %3406 = vmatprep.subr.mxu1 %v5175_v22 }
 0x322   :  { %3407 = vmatpush3.msra.mxu1 %v5181_v63 }
 0x323   :  { %3408 = vmatprep.subr.mxu1 %v5187_v1 }
 0x324   :  { %3409 = vmatpush3.msra.mxu1 %v5193_v20 }
 0x325   :  { %3410 = vmatprep.subr.mxu1 %v5199_v2 }
 0x326   :  { %3411 = vmatpush3.msra.mxu1 %v5205_v7 }
 0x327   :  { %3412 = vmatprep.subr.mxu1 %v5211_v58 }
 0x328   :  { %3413 = vmatpush3.msra.mxu1 %v5217_v23 }
 0x329   :  { %3414 = vmatprep.subr.mxu1 %v5223_v3 }
 0x32a   :  { %3415 = vmatpush3.msra.mxu1 %v5229_v5 }
 0x32b   :  { %1629 = vmatprep.subr.mxu1 %v5342_v41 }
 0x367   :  { %v722_v55 = vpop.xlane.xlu1 %721  ;;  %v708_v24 = vpop.xlane.xlu0 %707 }
 0x368   :  { %v723_v26 = vrot.slane %v722_v55, 4  ;;  %v709_v27 = vrot.slane %v708_v24, 4 }
 0x36a   :  { %v724_v28 = vmax.f32 %v722_v55, %v723_v26  ;;  %v710_v29 = vadd.f32 %v709_v27, %v708_v24 }
 0x36b   :  { %v735_v30 = vpop.xlane.xlu0 %734 }
 0x36c   :  { %v725_v31 = vrot.slane %v724_v28, 2  ;;  %v711_v32 = vrot.slane %v710_v29, 2  ;;  %v736_v18 = vrot.slane %v735_v30, 4 }
 0x36e   :  { %v737_v34 = vmin.f32 %v735_v30, %v736_v18  ;;  %v712_v40 = vadd.f32 %v711_v32, %v710_v29  ;;  %v726_v8 = vmax.f32 %v724_v28, %v725_v31 }
 0x370   :  { %v738_v4 = vrot.slane %v737_v34, 2  ;;  %v713_v11 = vrot.slane %v712_v40, 1  ;;  %v727_v12 = vrot.slane %v726_v8, 1 }
 0x372   :  { %v714_v14 = vadd.f32 %v713_v11, %v712_v40  ;;  %v728_v15 = vmax.f32 %v726_v8, %v727_v12  ;;  %v739_v16 = vmin.f32 %v737_v34, %v738_v4 }
 0x374   :  { %3575 = vpush %v714_v14  ;;  %v740_v17 = vrot.slane %v739_v16, 1 }
 0x375   :  { %3577 = vpush %v728_v15 }
 0x376   :  { %v741_v13 = vmin.f32 %v739_v16, %v740_v17  ;;  %v509_v16 = vstv %s3566_s23  ;;  %v522_v17 = vstv %s3568_s24 }
 0x378   :  { %3579 = vpush %v741_v13 }
 0x381   :  { %v765_v55 = vpop.xlane.xlu0 %764 }
 0x382   :  { %v766_v24 = vrot.slane %v765_v55, 4  ;;  %v751_v26 = vpop.xlane.xlu1 %750 }
 0x383   :  { %v752_v27 = vrot.slane %v751_v26, 4 }
 0x384   :  { %v767_v35 = vmax.f32 %v765_v55, %v766_v24  ;;  %v523_v55 = vsub.f32 %v509_v16, %v522_v17 }
 0x385   :  { %v753_v33 = vadd.f32 %v752_v27, %v751_v26 }
 0x386   :  { %v768_v30 = vrot.slane %v767_v35, 2  ;;  %v778_v29 = vpop.xlane.xlu1 %777  ;;  %v524_v24 = vmul.f32 0.2, %v523_v55 }
 0x387   :  { %v754_v28 = vrot.slane %v753_v33, 2  ;;  %v779_v31 = vrot.slane %v778_v29, 4 }
 0x388   :  { %v769_v32 = vmax.f32 %v767_v35, %v768_v30  ;;  %v494_v35 = vstv %s3564_s22 }
 0x389   :  { %v780_v18 = vmin.f32 %v778_v29, %v779_v31  ;;  %v755_v40 = vadd.f32 %v754_v28, %v753_v33  ;;  %v496_v33 = vmul.f32 0.001953125, %v494_v35 }
 0x38a   :  { %v770_v8 = vrot.slane %v769_v32, 1 }
 0x38b   :  { %v781_v34 = vrot.slane %v780_v18, 2  ;;  %v756_v4 = vrot.slane %v755_v40, 1  ;;  %v525_v26 = vsub.f32 %v496_v33, %v524_v24  ;;  %v3272_v33 = vsel %vm475_vm9, 1.0, %v7127_v25 }
 0x38c   :  { %v771_v11 = vmax.f32 %v769_v32, %v770_v8 }
 0x38d   :  { %v757_v12 = vadd.f32 %v756_v4, %v755_v40  ;;  %v782_v14 = vmin.f32 %v780_v18, %v781_v34  ;;  %v5346_v27 = vsub.f32 %v4932_v56, %v525_v26  ;;  %v5349_v30 = vsub.f32 %v4929_v10, %v525_v26 }
 0x38f   :  { %3581 = vpush %v757_v12  ;;  %v783_v13 = vrot.slane %v782_v14, 1  ;;  %v5352_v29 = vmul.f32 0.16666667, %v5346_v27  ;;  %v5355_v28 = vmul.f32 0.16666667, %v5349_v30 }
 0x390   :  { %3583 = vpush %v771_v11  ;;  %v3280_v11 = vld [vmem:[#allocation11] ss:$0 sm:$0xff] }
 0x391   :  { %v784_v15 = vmin.f32 %v782_v14, %v783_v13  ;;  %v581_v31 = vand.u32 2147483647, %v5352_v29  ;;  %v580_v32 = vand.u32 2147483647, %v5355_v28 }
 0x393   :  { %3585 = vpush %v784_v15  ;;  %v583_v18 = vsub.f32 0.0, %v581_v31  ;;  %v582_v40 = vsub.f32 0.0, %v580_v32  ;;  %v3273_v32 = vsel %vm476_vm8, 1.0, %v7127_v25 }
 0x395   :  { %v586_v8 = vmul.f32 1.442695, %v583_v18  ;;  %v584_v4 = vmul.f32 1.442695, %v582_v40  ;;  %v1077_v18 = vsub.f32 1.0, %v3272_v33 }
 0x397   :  { %3732 = vpow2.f32 %v586_v8 }
 0x398   :  { %3734 = vpow2.f32 %v584_v4  ;;  %v1078_v4 = vsub.f32 1.0, %v3273_v32 }
 0x3a4   :  { %v3733_v26 = vpop.eup %3732 }
 0x3a5   :  { %v3735_v31 = vpop.eup %3734  ;;  %v589_v40 = vadd.f32 1.0, %v3733_v26  ;;  %s3576_s27 = spop %3575 }
 0x3a6   :  { %s3578_s28 = spop %3577 }
 0x3a9   :  { %s3580_s29 = spop %3579 }
 0x3b7   :  { %v3381_v34 = vpop.f32.mrf.mxu1 }
 0x3b9   :  { %v3382_v12 = vpop.f32.mrf.mxu1 }
 0x3ba   :  { %v3383_v14 = vadd.f32 %v3382_v12, %v3381_v34  ;;  %v1071_v34 = vmul.f32 0.5, %v4929_v10  ;;  %v7146_v12 = vld [vmem:[#allocation64_spill] sm:$0xff] }
 0x3bc   :  { %v5359_v13 = vadd.f32 %v3383_v14, %v3280_v11  ;;  %v588_v11 = vadd.f32 1.0, %v3735_v31 }
 0x3be   :  { %7145 = vst [vmem:[#allocation48_spill] sm:$0xff] %v5359_v13  ;;  %v920_v15 = vsel %vm906_vm12, %v5359_v13, -inf  ;;  %v907_v16 = vsel %vm906_vm12, %v5359_v13, 0.0  ;;  %v896_v17 = vsub.f32 0.0, %v5359_v13  ;;  %v931_v35 = vsel %vm906_vm12, %v5359_v13, inf }
 0x3bf   :  { %921 = vmax.xlane.f32.xlu1 %v920_v15  ;;  %908 = vadd.xlane.f32.xlu0 %v907_v16  ;;  %v1075_v15 = vmul.f32 0.75, %v4929_v10  ;;  %v1072_v16 = vmul.f32 0.5, %v4932_v56 }
 0x3c0   :  { %v897_v55 = vmul.f32 0.33333334, %v896_v17  ;;  %s5513_s30 = spop %3581 }
 0x3c1   :  { %s3584_s13 = spop %3583 }
 0x3c2   :  { %v898_v24 = vmul.f32 1.442695, %v897_v55  ;;  %v1079_v55 = vmul.f32 %v1077_v18, %v1075_v15 }
 0x3c3   :  { %932 = vmin.xlane.f32.xlu0 %v931_v35  ;;  %v7148_v35 = vld [vmem:[#allocation65_spill] sm:$0xff] }
 0x3c4   :  { %3736 = vpow2.f32 %v898_v24  ;;  %v1076_v24 = vmul.f32 0.75, %v4932_v56  ;;  %s3586_s2 = spop %3585 }
 0x3c5   :  { %3738 = vlog2.f32 %v589_v40 }
 0x3c6   :  { %3740 = vlog2.f32 %v588_v11  ;;  %v1080_v31 = vmul.f32 %v1078_v4, %v1076_v24  ;;  %v552_v24 = vstv %s3572_s26 }
 0x3cb   :  { %v1066_v8 = vpop.f32.mrf.mxu1 }
 0x3cc   :  { %v1067_v14 = vadd.f32 %v1066_v8, %v7146_v12  ;;  %v578_v12 = vmax.f32 %v5355_v28, 0.0 }
 0x3cd   :  { %v1068_v9 = vpop.f32.mrf.mxu1 }
 0x3ce   :  { %v5380_v17 = vadd.f32 %v1071_v34, %v1067_v14  ;;  %v1069_v6 = vadd.f32 %v1068_v9, %v7148_v35  ;;  %v565_v9 = vstv %s3574_s9 }
 0x3d0   :  { %7147 = vst [vmem:[#allocation49_spill] sm:$0xff] %v5380_v17  ;;  %v5387_v33 = vadd.f32 %v1079_v55, %v5380_v17  ;;  %v5389_v26 = vadd.f32 %v1072_v16, %v1069_v6 }
 0x3d1   :  { %v3737_v32 = vpop.eup %3736 }
 0x3d2   :  { %7149 = vst [vmem:[#allocation50_spill] sm:$0xff] %v5389_v26  ;;  %v5392_v8 = vadd.f32 %v1080_v31, %v5389_v26  ;;  %v3283_v18 = vadd.f32 -1.0, %v3737_v32  ;;  %v1083_v34 = vsub.f32 %v4929_v10, %v5387_v33  ;;  %v1105_v40 = vsel %vm481_vm7, %v5387_v33, 0.0 }
 0x3d3   :  { %v566_v32 = vsub.f32 %v552_v24, %v565_v9  ;;  %v1119_v24 = vsel %vm481_vm7, %v5387_v33, -inf  ;;  %v579_v26 = vmax.f32 %v5352_v29, 0.0 }
 0x3d4   :  { %v1106_v11 = vsel %vm481_vm7, %v5392_v8, 0.0  ;;  %v901_v14 = vmul.f32 0.5, %v3283_v18  ;;  %v1084_v4 = vsub.f32 %v4932_v56, %v5392_v8  ;;  %v1085_v55 = vmul.f32 0.33333334, %v1083_v34  ;;  %v3739_v34 = vpop.eup %3738 }
 0x3d5   :  { %v1107_v15 = vadd.f32 %v1106_v11, %v1105_v40  ;;  %v1133_v56 = vsel %vm481_vm7, %v5392_v8, inf  ;;  %v538_v11 = vstv %s5384_s25  ;;  %v3741_v9 = vpop.eup %3740 }
 0x3d6   :  { %v5402_v16 = vadd.f32 0.25, %v901_v14  ;;  %v1086_v6 = vmul.f32 0.33333334, %v1084_v4  ;;  %v1087_v40 = vmul.f32 1.442695, %v1085_v55  ;;  %v1120_v4 = vsel %vm481_vm7, %v5392_v8, -inf }
 0x3d7   :  { %1108 = vadd.xlane.f32.xlu0 %v1107_v15  ;;  %v1132_v15 = vsel %vm481_vm7, %v5387_v33, inf  ;;  %v591_v35 = vmul.f32 0.6931472, %v3741_v9 }
 0x3d8   :  { %7150 = vst [vmem:[#allocation51_spill] sm:$0xff] %v5402_v16  ;;  %v945_v10 = vsel %vm906_vm12, %v5402_v16, 0.0  ;;  %v957_v31 = vsel %vm906_vm12, %v5402_v16, -inf  ;;  %v1089_v18 = vmul.f32 1.442695, %v1086_v6  ;;  %v968_v14 = vsel %vm906_vm12, %v5402_v16, inf }
 0x3d9   :  { %946 = vadd.xlane.f32.xlu1 %v945_v10  ;;  %v567_v6 = vmul.f32 0.2, %v566_v32  ;;  %v1134_v55 = vmin.f32 %v1132_v15, %v1133_v56  ;;  %v539_v10 = vmul.f32 0.001953125, %v538_v11  ;;  %v571_v32 = vmul.f32 0.01, %v5349_v30 }
 0x3da   :  { %3742 = vpow2.f32 %v1089_v18  ;;  %v1121_v18 = vmax.f32 %v1119_v24, %v1120_v4  ;;  %v594_v56 = vadd.f32 %v591_v35, %v578_v12  ;;  %v7151_v12 = vmov 1.0  }
 0x3db   :  { %958 = vmax.xlane.f32.xlu0 %v957_v31  ;;  %3744 = vpow2.f32 %v1087_v40  ;;  %v593_v31 = vmul.f32 0.6931472, %v3739_v34  ;;  %v568_v17 = vsub.f32 %v539_v10, %v567_v6  ;;  %v572_v40 = vmul.f32 0.01, %v5346_v27 }
 0x3dd   :  { %969 = vmin.xlane.f32.xlu1 %v968_v14  ;;  %v595_v16 = vadd.f32 %v593_v31, %v579_v26  ;;  %v574_v14 = vadd.f32 %v572_v40, %v568_v17  ;;  %v573_v15 = vadd.f32 %v571_v32, %v568_v17 }
 0x3df   :  { %1135 = vmin.xlane.f32.xlu0 %v1134_v55  ;;  %v597_v13 = vadd.f32 %v595_v16, %v574_v14  ;;  %v596_v34 = vadd.f32 %v594_v56, %v573_v15 }
 0x3e1   :  { %1122 = vmax.xlane.f32.xlu1 %v1121_v18  ;;  %v1094_v24 = vmul.f32 0.5, %v597_v13  ;;  %v1093_v6 = vmul.f32 0.5, %v596_v34 }
 0x3e7   :  { %v3743_v11 = vpop.eup %3742 }
 0x3e8   :  { %v3745_v55 = vpop.eup %3744  ;;  %v3287_v4 = vadd.f32 -1.0, %v3743_v11 }
 0x3e9   :  { %v3286_v9 = vadd.f32 -1.0, %v3745_v55 }
 0x3ea   :  { %v1096_v29 = vmul.f32 0.5, %v3287_v4 }
 0x3eb   :  { %v1095_v10 = vmul.f32 0.5, %v3286_v9 }
 0x3ec   :  { %v5423_v18 = vadd.f32 %v1096_v29, %v1094_v24 }
 0x3ed   :  { %v5425_v28 = vadd.f32 %v1095_v10, %v1093_v6 }
 0x3ee   :  { %vm1100_vm13 = vcmp.gt.f32.partialorder %v5392_v8, %v5423_v18  ;;  %v1163_v27 = vsel %vm481_vm7, %v5423_v18, -inf  ;;  %v1149_v30 = vsel %vm481_vm7, %v5423_v18, 0.0  ;;  %v1176_v16 = vsel %vm481_vm7, %v5423_v18, inf }
 0x3ef   :  { %3290 = vmatprep.mubr.msk.f32.mxu0 %vm1100_vm13, %v7151_v12  ;;  %vm1099_vm14 = vcmp.gt.f32.partialorder %v5387_v33, %v5425_v28  ;;  %v1162_v13 = vsel %vm481_vm7, %v5425_v28, -inf  ;;  %v1148_v17 = vsel %vm481_vm7, %v5425_v28, 0.0  ;;  %v1175_v31 = vsel %vm481_vm7, %v5425_v28, inf }
 0x3f0   :  { %3291 = vmatmul.mubr.msk.f32.vlgmr.msra.gmra.mxu0 %vm1099_vm14, %v7151_v12  ;;  %v1164_v35 = vmax.f32 %v1162_v13, %v1163_v27  ;;  %v1150_v26 = vadd.f32 %v1149_v30, %v1148_v17  ;;  %v1177_v40 = vmin.f32 %v1175_v31, %v1176_v16 }
 0x3f1   :  { %3420 = vmatpush3.msra.mxu0 %v5048_v42 }
 0x3f2   :  { %1165 = vmax.xlane.f32.xlu0 %v1164_v35  ;;  %1151 = vadd.xlane.f32.xlu1 %v1150_v26 }
 0x3f3   :  { %3421 = vmatprep.subr.mxu0 %v5055_v43 }
 0x3f4   :  { %3422 = vmatpush3.msra.mxu0 %v5061_v44 }
 0x3f5   :  { %3423 = vmatprep.subr.mxu0 %v5067_v45 }
 0x3f6   :  { %1178 = vmin.xlane.f32.xlu1 %v1177_v40  ;;  %3424 = vmatpush3.msra.mxu0 %v5073_v46 }
 0x3f7   :  { %3425 = vmatprep.subr.mxu0 %v5079_v47 }
 0x3f8   :  { %3426 = vmatpush3.msra.mxu0 %v5085_v48 }
 0x3f9   :  { %3427 = vmatprep.subr.mxu0 %v5091_v49 }
 0x3fa   :  { %3428 = vmatpush3.msra.mxu0 %v5097_v50 }
 0x3fb   :  { %3429 = vmatprep.subr.mxu0 %v5103_v51 }
 0x3fc   :  { %3430 = vmatpush3.msra.mxu0 %v5109_v52 }
 0x3fd   :  { %3431 = vmatprep.subr.mxu0 %v5115_v53 }
 0x3fe   :  { %3432 = vmatpush3.msra.mxu0 %v5121_v60 }
 0x3ff   :  { %3433 = vmatprep.subr.mxu0 %v5127_v21 }
 0x400   :  { %3434 = vmatpush3.msra.mxu0 %v5133_v19 }
 0x401   :  { %3435 = vmatprep.subr.mxu0 %v5139_v57 }
 0x402   :  { %3436 = vmatpush3.msra.mxu0 %v5145_v59 }
 0x403   :  { %3437 = vmatprep.subr.mxu0 %v5151_v61 }
 0x404   :  { %3438 = vmatpush3.msra.mxu0 %v5157_v62 }
 0x405   :  { %3439 = vmatprep.subr.mxu0 %v5163_v54 }
 0x406   :  { %3440 = vmatpush3.msra.mxu0 %v5169_v0 }
 0x407   :  { %3441 = vmatprep.subr.mxu0 %v5175_v22 }
 0x408   :  { %3442 = vmatpush3.msra.mxu0 %v5181_v63 }
 0x409   :  { %3443 = vmatprep.subr.mxu0 %v5187_v1 }
 0x40a   :  { %3444 = vmatpush3.msra.mxu0 %v5193_v20 }
 0x40b   :  { %3445 = vmatprep.subr.mxu0 %v5199_v2 }
 0x40c   :  { %3446 = vmatpush3.msra.mxu0 %v5205_v7 }
 0x40d   :  { %3447 = vmatprep.subr.mxu0 %v5211_v58 }
 0x40e   :  { %3448 = vmatpush3.msra.mxu0 %v5217_v23 }
 0x40f   :  { %3449 = vmatprep.subr.mxu0 %v5223_v3 }
 0x410   :  { %3450 = vmatpush3.msra.mxu0 %v5229_v5 }
 0x411   :  { %2246 = vmatprep.subr.mxu0 %v5342_v41 }
 0x448   :  { %v922_v42 = vpop.xlane.xlu1 %921  ;;  %v909_v43 = vpop.xlane.xlu0 %908 }
 0x449   :  { %v923_v44 = vrot.slane %v922_v42, 4  ;;  %v910_v45 = vrot.slane %v909_v43, 4 }
 0x44b   :  { %v924_v46 = vmax.f32 %v922_v42, %v923_v44  ;;  %v911_v47 = vadd.f32 %v910_v45, %v909_v43 }
 0x44c   :  { %v933_v48 = vpop.xlane.xlu0 %932 }
 0x44d   :  { %v925_v49 = vrot.slane %v924_v46, 2  ;;  %v912_v50 = vrot.slane %v911_v47, 2  ;;  %v934_v51 = vrot.slane %v933_v48, 4 }
 0x44f   :  { %v935_v52 = vmin.f32 %v933_v48, %v934_v51  ;;  %v913_v53 = vadd.f32 %v912_v50, %v911_v47  ;;  %v926_v60 = vmax.f32 %v924_v46, %v925_v49 }
 0x451   :  { %v936_v21 = vrot.slane %v935_v52, 2  ;;  %v914_v19 = vrot.slane %v913_v53, 1  ;;  %v927_v57 = vrot.slane %v926_v60, 1 }
 0x453   :  { %v915_v59 = vadd.f32 %v914_v19, %v913_v53  ;;  %v928_v61 = vmax.f32 %v926_v60, %v927_v57  ;;  %v937_v62 = vmin.f32 %v935_v52, %v936_v21  ;;  %v743_v21 = vstv %s3580_s29 }
 0x455   :  { %3587 = vpush %v915_v59  ;;  %v938_v54 = vrot.slane %v937_v62, 1  ;;  %v730_v59 = vstv %s3578_s28 }
 0x456   :  { %3589 = vpush %v928_v61 }
 0x457   :  { %v939_v0 = vmin.f32 %v937_v62, %v938_v54  ;;  %v744_v62 = vsub.f32 %v730_v59, %v743_v21 }
 0x459   :  { %3591 = vpush %v939_v0 }
 0x460   :  { %v1109_v22 = vpop.xlane.xlu0 %1108 }
 0x461   :  { %v1110_v63 = vrot.slane %v1109_v22, 4 }
 0x462   :  { %v947_v1 = vpop.xlane.xlu1 %946 }
 0x463   :  { %v1111_v20 = vadd.f32 %v1110_v63, %v1109_v22  ;;  %v948_v2 = vrot.slane %v947_v1, 4 }
 0x464   :  { %v959_v7 = vpop.xlane.xlu0 %958 }
 0x465   :  { %v949_v58 = vadd.f32 %v948_v2, %v947_v1  ;;  %v960_v23 = vrot.slane %v959_v7, 4  ;;  %v1112_v3 = vrot.slane %v1111_v20, 2  ;;  %v716_v2 = vstv %s3576_s27 }
 0x466   :  { %v970_v5 = vpop.xlane.xlu1 %969 }
 0x467   :  { %v950_v41 = vrot.slane %v949_v58, 2  ;;  %v961_v32 = vmax.f32 %v959_v7, %v960_v23  ;;  %v971_v56 = vrot.slane %v970_v5, 4  ;;  %v1113_v9 = vadd.f32 %v1112_v3, %v1111_v20 }
 0x468   :  { %v1136_v14 = vpop.xlane.xlu0 %1135  ;;  %v745_v7 = vmul.f32 0.2, %v744_v62 }
 0x469   :  { %v962_v15 = vrot.slane %v961_v32, 2  ;;  %v972_v11 = vmin.f32 %v970_v5, %v971_v56  ;;  %v1137_v34 = vrot.slane %v1136_v14, 4  ;;  %v951_v55 = vadd.f32 %v950_v41, %v949_v58 }
 0x46a   :  { %v1123_v4 = vpop.xlane.xlu1 %1122  ;;  %v1114_v16 = vrot.slane %v1113_v9, 1  ;;  %v717_v5 = vmul.f32 0.001953125, %v716_v2  ;;  %v773_v2 = vstv %s3584_s13 }
 0x46b   :  { %v973_v24 = vrot.slane %v972_v11, 2  ;;  %v1138_v29 = vmin.f32 %v1136_v14, %v1137_v34  ;;  %v1124_v6 = vrot.slane %v1123_v4, 4  ;;  %v952_v10 = vrot.slane %v951_v55, 1 }
 0x46c   :  { %v963_v27 = vmax.f32 %v961_v32, %v962_v15  ;;  %v1115_v46 = vadd.f32 %v1114_v16, %v1113_v9  ;;  %v746_v14 = vsub.f32 %v717_v5, %v745_v7 }
 0x46d   :  { %v1139_v30 = vrot.slane %v1138_v29, 2  ;;  %v1125_v13 = vmax.f32 %v1123_v4, %v1124_v6  ;;  %v953_v17 = vadd.f32 %v952_v10, %v951_v55  ;;  %v974_v35 = vmin.f32 %v972_v11, %v973_v24 }
 0x46e   :  { %v964_v26 = vrot.slane %v963_v27, 1  ;;  %v5484_v34 = vsub.f32 %v5241_v37, %v746_v14  ;;  %v5487_v55 = vsub.f32 %v5244_v39, %v746_v14 }
 0x46f   :  { %v1126_v31 = vrot.slane %v1125_v13, 2  ;;  %3593 = vpush %v953_v17  ;;  %v975_v40 = vrot.slane %v974_v35, 1  ;;  %v1140_v42 = vmin.f32 %v1138_v29, %v1139_v30 }
 0x470   :  { %v965_v43 = vmax.f32 %v963_v27, %v964_v26  ;;  %v5490_v4 = vmul.f32 0.16666667, %v5484_v34  ;;  %v5493_v9 = vmul.f32 0.16666667, %v5487_v55 }
 0x471   :  { %v976_v44 = vmin.f32 %v974_v35, %v975_v40  ;;  %v1127_v45 = vmax.f32 %v1125_v13, %v1126_v31  ;;  %v1141_v47 = vrot.slane %v1140_v42, 1  ;;  %v3278_v13 = vsel %vm698_vm11, 1.0, %v7127_v25 }
 0x472   :  { %3595 = vpush %v965_v43  ;;  %v800_v24 = vand.u32 2147483647, %v5490_v4  ;;  %v801_v29 = vand.u32 2147483647, %v5493_v9  ;;  %v3279_v35 = vsel %vm699_vm10, 1.0, %v7127_v25  ;;  %v1296_v16 = vsub.f32 1.0, %v3278_v13 }
 0x473   :  { %3597 = vpush %v976_v44  ;;  %v1128_v48 = vrot.slane %v1127_v45, 1  ;;  %v1142_v50 = vmin.f32 %v1140_v42, %v1141_v47  ;;  %v1297_v42 = vsub.f32 1.0, %v3279_v35  ;;  %v7152_v43 = vld [vmem:[#allocation46_spill] sm:$0xff]  ;;  %v793_v13 = vmul.f32 0.01, %v5487_v55 }
 0x474   :  { %3599 = vpush %v1115_v46  ;;  %v802_v6 = vsub.f32 0.0, %v800_v24  ;;  %v803_v10 = vsub.f32 0.0, %v801_v29  ;;  %v1294_v46 = vmul.f32 0.75, %v5241_v37 }
 0x475   :  { %v1129_v49 = vmax.f32 %v1127_v45, %v1128_v48  ;;  %v1290_v45 = vmul.f32 0.5, %v5241_v37  ;;  %v1291_v48 = vmul.f32 0.5, %v5244_v39 }
 0x476   :  { %v804_v27 = vmul.f32 1.442695, %v802_v6  ;;  %v806_v30 = vmul.f32 1.442695, %v803_v10  ;;  %v799_v10 = vmax.f32 %v5493_v9, 0.0 }
 0x477   :  { %3601 = vpush %v1129_v49 }
 0x478   :  { %3603 = vpush %v1142_v50  ;;  %3746 = vpow2.f32 %v804_v27  ;;  %v1298_v50 = vmul.f32 %v1296_v16, %v1294_v46  ;;  %v792_v27 = vmul.f32 0.01, %v5484_v34 }
 0x479   :  { %3748 = vpow2.f32 %v806_v30 }
 0x47b   :  { %v1166_v51 = vpop.xlane.xlu0 %1165  ;;  %v1152_v52 = vpop.xlane.xlu1 %1151 }
 0x47c   :  { %v1167_v53 = vrot.slane %v1166_v51, 4  ;;  %v1153_v60 = vrot.slane %v1152_v52, 4 }
 0x47e   :  { %v1168_v19 = vmax.f32 %v1166_v51, %v1167_v53  ;;  %v1154_v57 = vadd.f32 %v1153_v60, %v1152_v52  ;;  %v1295_v52 = vmul.f32 0.75, %v5244_v39 }
 0x47f   :  { %v1179_v61 = vpop.xlane.xlu1 %1178 }
 0x480   :  { %v1169_v54 = vrot.slane %v1168_v19, 2  ;;  %v1155_v0 = vrot.slane %v1154_v57, 2  ;;  %v1180_v22 = vrot.slane %v1179_v61, 4  ;;  %v1299_v21 = vmul.f32 %v1297_v42, %v1295_v52 }
 0x482   :  { %v1181_v63 = vmin.f32 %v1179_v61, %v1180_v22  ;;  %v1156_v1 = vadd.f32 %v1155_v0, %v1154_v57  ;;  %v1170_v20 = vmax.f32 %v1168_v19, %v1169_v54 }
 0x484   :  { %v1182_v58 = vrot.slane %v1181_v63, 2  ;;  %v1157_v23 = vrot.slane %v1156_v1, 1  ;;  %v1171_v3 = vrot.slane %v1170_v20, 1 }
 0x485   :  { %v3747_v17 = vpop.eup %3746 }
 0x486   :  { %v1158_v41 = vadd.f32 %v1157_v23, %v1156_v1  ;;  %v1172_v32 = vmax.f32 %v1170_v20, %v1171_v3  ;;  %v1183_v56 = vmin.f32 %v1181_v63, %v1182_v58  ;;  %v3749_v26 = vpop.eup %3748  ;;  %v808_v31 = vadd.f32 1.0, %v3747_v17  ;;  %s5770_s28 = spop %3587 }
 0x487   :  { %v809_v47 = vadd.f32 1.0, %v3749_v26  ;;  %v786_v63 = vstv %s3586_s2  ;;  %s3590_s29 = spop %3589 }
 0x488   :  { %3605 = vpush %v1158_v41  ;;  %v1184_v15 = vrot.slane %v1183_v56, 1  ;;  %3750 = vlog2.f32 %v808_v31  ;;  %v787_v58 = vsub.f32 %v773_v2, %v786_v63  ;;  %v3861_v63 = vld [vmem:[#allocation7 + $0x70] sm:$0xff] }
 0x489   :  { %3607 = vpush %v1172_v32  ;;  %3752 = vlog2.f32 %v809_v47  ;;  %v3865_v2 = vld [vmem:[#allocation7 + $0x50] sm:$0xff] }
 0x48a   :  { %v1185_v11 = vmin.f32 %v1183_v56, %v1184_v15  ;;  %v759_v56 = vstv %s5513_s30  ;;  %v788_v14 = vmul.f32 0.2, %v787_v58  ;;  %v3867_v58 = vld [vmem:[#allocation7 + $0x40] sm:$0xff]  ;;  %s3592_s30 = spop %3591 }
 0x48c   :  { %3609 = vpush %v1185_v11  ;;  %v760_v11 = vmul.f32 0.001953125, %v759_v56  ;;  %v3873_v56 = vld [vmem:[#allocation7 + $0x10] sm:$0xff] }
 0x48e   :  { %v789_v29 = vsub.f32 %v760_v11, %v788_v14  ;;  %v3874_v14 = vld [vmem:[#allocation7 + $0x8] sm:$0xff] }
 0x48f   :  { %v7154_v11 = vld [vmem:[#allocation43_spill] sm:$0xff] }
 0x490   :  { %v794_v17 = vadd.f32 %v792_v27, %v789_v29  ;;  %v795_v26 = vadd.f32 %v793_v13, %v789_v29  ;;  %v3878_v29 = vld [vmem:[%s6984_s6 + $0xe8] sm:$0xff]  ;;  %v3881_v27 = vld [vmem:[%s6984_s6 + $0xd0] sm:$0xff]  ;;  %v3883_v13 = vld [vmem:[%s6984_s6 + $0xc0] sm:$0xff] }
 0x495   :  { %v3751_v32 = vpop.eup %3750 }
 0x496   :  { %v3753_v15 = vpop.eup %3752  ;;  %v811_v24 = vmul.f32 0.6931472, %v3751_v32  ;;  %v3872_v32 = vld [vmem:[#allocation7 + $0x18] sm:$0xff] }
 0x497   :  { %v813_v6 = vmul.f32 0.6931472, %v3753_v15  ;;  %v3875_v15 = vld [vmem:[#allocation7] sm:$0xff] }
 0x499   :  { %v815_v35 = vadd.f32 %v813_v6, %v799_v10  ;;  %v3879_v6 = vld [vmem:[%s6984_s6 + $0xe0] sm:$0xff]  ;;  %v3880_v10 = vld [vmem:[%s6984_s6 + $0xd8] sm:$0xff] }
 0x4a0   :  { %s5772_s13 = spop %3593 }
 0x4a3   :  { %s5775_s2 = spop %3595 }
 0x4a4   :  { %s5777_s14 = spop %3597 }
 0x4a5   :  { %s3600_s15 = spop %3599 }
 0x4a8   :  { %s3602_s16 = spop %3601 }
 0x4a9   :  { %s3604_s17 = spop %3603 }
 0x4b0   :  { %v1285_v40 = vpop.f32.mrf.mxu0 }
 0x4b1   :  { %v1286_v44 = vadd.f32 %v1285_v40, %v7152_v43  ;;  %v817_v40 = vadd.f32 %v815_v35, %v795_v26  ;;  %v3885_v35 = vld [vmem:[%s6984_s6 + $0xb0] sm:$0xff]  ;;  %v3886_v26 = vld [vmem:[%s6984_s6 + $0xa8] sm:$0xff] }
 0x4b2   :  { %v1287_v36 = vpop.f32.mrf.mxu0 }
 0x4b3   :  { %v5509_v49 = vadd.f32 %v1290_v45, %v1286_v44  ;;  %v1288_v51 = vadd.f32 %v1287_v36, %v7153_v38  ;;  %v1313_v47 = vmul.f32 0.5, %v817_v40  ;;  %v3889_v40 = vld [vmem:[%s6984_s6 + $0x90] sm:$0xff] }
 0x4b5   :  { %v5516_v53 = vadd.f32 %v1298_v50, %v5509_v49  ;;  %v5518_v60 = vadd.f32 %v1291_v48, %v1288_v51 }
 0x4b7   :  { %v5521_v19 = vadd.f32 %v1299_v21, %v5518_v60  ;;  %v1302_v57 = vsub.f32 %v5241_v37, %v5516_v53  ;;  %v1338_v59 = vsel %vm481_vm7, %v5516_v53, -inf  ;;  %v1324_v62 = vsel %vm481_vm7, %v5516_v53, 0.0 }
 0x4b8   :  { %v1351_v7 = vsel %vm481_vm7, %v5516_v53, inf }
 0x4b9   :  { %v1339_v61 = vsel %vm481_vm7, %v5521_v19, -inf  ;;  %v1325_v54 = vsel %vm481_vm7, %v5521_v19, 0.0  ;;  %v1352_v1 = vsel %vm481_vm7, %v5521_v19, inf  ;;  %v1303_v37 = vsub.f32 %v5244_v39, %v5521_v19  ;;  %s5837_s18 = spop %3605 }
 0x4ba   :  { %v1340_v0 = vmax.f32 %v1338_v59, %v1339_v61  ;;  %v1326_v22 = vadd.f32 %v1325_v54, %v1324_v62  ;;  %v1304_v20 = vmul.f32 0.33333334, %v1302_v57  ;;  %v1353_v23 = vmin.f32 %v1351_v7, %v1352_v1  ;;  %v3857_v57 = vld [vmem:[#allocation7 + $0x90] sm:$0xff]  ;;  %v3858_v61 = vld [vmem:[#allocation7 + $0x88] sm:$0xff]  ;;  %v3859_v62 = vld [vmem:[#allocation7 + $0x80] sm:$0xff]  ;;  %s3608_s4 = spop %3607 }
 0x4bb   :  { %v1305_v3 = vmul.f32 0.33333334, %v1303_v37  ;;  %v798_v39 = vmax.f32 %v5490_v4, 0.0  ;;  %v3862_v1 = vld [vmem:[#allocation7 + $0x68] sm:$0xff]  ;;  %v3863_v37 = vld [vmem:[#allocation7 + $0x60] sm:$0xff] }
 0x4bc   :  { %1341 = vmax.xlane.f32.xlu1 %v1340_v0  ;;  %1327 = vadd.xlane.f32.xlu0 %v1326_v22  ;;  %v1306_v5 = vmul.f32 1.442695, %v1304_v20  ;;  %v3860_v0 = vld [vmem:[#allocation7 + $0x78] sm:$0xff]  ;;  %v3866_v7 = vld [vmem:[#allocation7 + $0x48] sm:$0xff] }
 0x4bd   :  { %v1308_v41 = vmul.f32 1.442695, %v1305_v3  ;;  %v814_v30 = vadd.f32 %v811_v24, %v798_v39  ;;  %v3864_v20 = vld [vmem:[#allocation7 + $0x58] sm:$0xff]  ;;  %v3869_v3 = vld [vmem:[#allocation7 + $0x30] sm:$0xff]  ;;  %s3610_s3 = spop %3609 }
 0x4be   :  { %3754 = vpow2.f32 %v1306_v5  ;;  %v3870_v5 = vld [vmem:[#allocation7 + $0x28] sm:$0xff]  ;;  %v3876_v24 = vld [vmem:[%s6984_s6 + $0xf8] sm:$0xff] }
 0x4bf   :  { %3756 = vpow2.f32 %v1308_v41  ;;  %v816_v16 = vadd.f32 %v814_v30, %v794_v17  ;;  %v3871_v41 = vld [vmem:[#allocation7 + $0x20] sm:$0xff]  ;;  %v3877_v39 = vld [vmem:[%s6984_s6 + $0xf0] sm:$0xff]  ;;  %v3884_v17 = vld [vmem:[%s6984_s6 + $0xb8] sm:$0xff] }
 0x4c0   :  { %1354 = vmin.xlane.f32.xlu0 %v1353_v23  ;;  %v3868_v23 = vld [vmem:[#allocation7 + $0x38] sm:$0xff]  ;;  %v3882_v30 = vld [vmem:[%s6984_s6 + $0xc8] sm:$0xff] }
 0x4c1   :  { %v1312_v45 = vmul.f32 0.5, %v816_v16  ;;  %v3887_v16 = vld [vmem:[%s6984_s6 + $0xa0] sm:$0xff] }
 0x4cb   :  { %v3755_v31 = vpop.eup %3754 }
 0x4cc   :  { %v3292_v42 = vadd.f32 -1.0, %v3755_v31  ;;  %v3757_v44 = vpop.eup %3756  ;;  %v3888_v31 = vld [vmem:[%s6984_s6 + $0x98] sm:$0xff] }
 0x4cd   :  { %v3293_v46 = vadd.f32 -1.0, %v3757_v44  ;;  %v3891_v44 = vld [vmem:[%s6984_s6 + $0x80] sm:$0xff] }
 0x4ce   :  { %v1314_v4 = vmul.f32 0.5, %v3292_v42  ;;  %v3890_v42 = vld [vmem:[%s6984_s6 + $0x88] sm:$0xff] }
 0x4cf   :  { %v1315_v36 = vmul.f32 0.5, %v3293_v46  ;;  %v3893_v46 = vld [vmem:[%s6984_s6 + $0x70] sm:$0xff] }
 0x4d0   :  { %v5544_v48 = vadd.f32 %v1314_v4, %v1312_v45  ;;  %v3892_v45 = vld [vmem:[%s6984_s6 + $0x78] sm:$0xff]  ;;  %v3894_v4 = vld [vmem:[%s6984_s6 + $0x68] sm:$0xff] }
 0x4d1   :  { %v5546_v9 = vadd.f32 %v1315_v36, %v1313_v47  ;;  %v3895_v47 = vld [vmem:[%s6984_s6 + $0x60] sm:$0xff]  ;;  %v3896_v36 = vld [vmem:[%s6984_s6 + $0x58] sm:$0xff] }
 0x4d2   :  { %v1381_v34 = vsel %vm481_vm7, %v5544_v48, -inf  ;;  %v1367_v50 = vsel %vm481_vm7, %v5544_v48, 0.0  ;;  %vm1318_vm1 = vcmp.gt.f32.partialorder %v5516_v53, %v5544_v48  ;;  %v1394_v54 = vsel %vm481_vm7, %v5544_v48, inf }
 0x4d3   :  { %vm1319_vm15 = vcmp.gt.f32.partialorder %v5521_v19, %v5546_v9  ;;  %v1382_v55 = vsel %vm481_vm7, %v5546_v9, -inf  ;;  %v1368_v51 = vsel %vm481_vm7, %v5546_v9, 0.0  ;;  %v1395_v59 = vsel %vm481_vm7, %v5546_v9, inf }
 0x4d4   :  { %3296 = vmatprep.mubr.msk.f32.mxu1 %vm1319_vm15, %v7151_v12  ;;  %v1383_v52 = vmax.f32 %v1381_v34, %v1382_v55  ;;  %v1369_v21 = vadd.f32 %v1368_v51, %v1367_v50  ;;  %v1396_v22 = vmin.f32 %v1394_v54, %v1395_v59  ;;  %v3897_v34 = vld [vmem:[%s6984_s6 + $0x50] sm:$0xff]  ;;  %v3898_v55 = vld [vmem:[%s6984_s6 + $0x48] sm:$0xff]  ;;  %v3899_v50 = vld [vmem:[%s6984_s6 + $0x40] sm:$0xff]  ;;  %v1908_v48 = vmul.f32 0.5, %v5518_v60 }
 0x4d5   :  { %3297 = vmatmul.mubr.msk.f32.vlgmr.msra.gmra.mxu1 %vm1318_vm1, %v7151_v12  ;;  %v3900_v51 = vld [vmem:[%s6984_s6 + $0x38] sm:$0xff]  ;;  %v3907_v54 = vld [vmem:[%s6984_s6] sm:$0xff] }
 0x4d6   :  { %1630 = vmatpush1.msra.mxu1 %v3857_v57  ;;  %1384 = vmax.xlane.f32.xlu0 %v1383_v52  ;;  %v3901_v52 = vld [vmem:[%s6984_s6 + $0x30] sm:$0xff]  ;;  %v3903_v57 = vld [vmem:[%s6984_s6 + $0x20] sm:$0xff]  ;;  %v3904_v59 = vld [vmem:[%s6984_s6 + $0x18] sm:$0xff] }
 0x4d7   :  { %1370 = vadd.xlane.f32.xlu1 %v1369_v21  ;;  %1631 = vmatprep.subr.mxu1 %v3858_v61  ;;  %v3902_v21 = vld [vmem:[%s6984_s6 + $0x28] sm:$0xff]  ;;  %v3905_v61 = vld [vmem:[%s6984_s6 + $0x10] sm:$0xff] }
 0x4d8   :  { %1632 = vmatpush1.msra.mxu1 %v3859_v62  ;;  %1681 = vmatprep.mubr.f32.mxu1 %v7127_v25  ;;  %v3906_v62 = vld [vmem:[%s6984_s6 + $0x8] sm:$0xff] }
 0x4d9   :  { %1633 = vmatprep.subr.mxu1 %v3860_v0  ;;  %v3908_v0 = vld [vmem:[%s6984_s6 + $0x1f8] sm:$0xff] }
 0x4da   :  { %1634 = vmatpush1.msra.mxu1 %v3861_v63  ;;  %v3910_v63 = vld [vmem:[%s6984_s6 + $0x1e8] sm:$0xff] }
 0x4db   :  { %1397 = vmin.xlane.f32.xlu1 %v1396_v22  ;;  %1635 = vmatprep.subr.mxu1 %v3862_v1  ;;  %v3909_v22 = vld [vmem:[%s6984_s6 + $0x1f0] sm:$0xff]  ;;  %v3911_v1 = vld [vmem:[%s6984_s6 + $0x1e0] sm:$0xff] }
 0x4dc   :  { %1636 = vmatpush1.msra.mxu1 %v3863_v37  ;;  %v3912_v37 = vld [vmem:[%s6984_s6 + $0x1d8] sm:$0xff] }
 0x4dd   :  { %1637 = vmatprep.subr.mxu1 %v3864_v20  ;;  %v3913_v20 = vld [vmem:[%s6984_s6 + $0x1d0] sm:$0xff] }
 0x4de   :  { %1638 = vmatpush1.msra.mxu1 %v3865_v2  ;;  %v3914_v2 = vld [vmem:[%s6984_s6 + $0x1c8] sm:$0xff] }
 0x4df   :  { %1639 = vmatprep.subr.mxu1 %v3866_v7  ;;  %v3915_v7 = vld [vmem:[%s6984_s6 + $0x1c0] sm:$0xff] }
 0x4e0   :  { %1640 = vmatpush1.msra.mxu1 %v3867_v58  ;;  %v3916_v58 = vld [vmem:[%s6984_s6 + $0x1b8] sm:$0xff] }
 0x4e1   :  { %1641 = vmatprep.subr.mxu1 %v3868_v23  ;;  %v3917_v23 = vld [vmem:[%s6984_s6 + $0x1b0] sm:$0xff] }
 0x4e2   :  { %1642 = vmatpush1.msra.mxu1 %v3869_v3  ;;  %v3918_v3 = vld [vmem:[%s6984_s6 + $0x1a8] sm:$0xff] }
 0x4e3   :  { %1643 = vmatprep.subr.mxu1 %v3870_v5  ;;  %v3919_v5 = vld [vmem:[%s6984_s6 + $0x1a0] sm:$0xff] }
 0x4e4   :  { %1644 = vmatpush1.msra.mxu1 %v3871_v41  ;;  %v3920_v41 = vld [vmem:[%s6984_s6 + $0x198] sm:$0xff] }
 0x4e5   :  { %1645 = vmatprep.subr.mxu1 %v3872_v32  ;;  %v3921_v32 = vld [vmem:[%s6984_s6 + $0x190] sm:$0xff] }
 0x4e6   :  { %1646 = vmatpush1.msra.mxu1 %v3873_v56  ;;  %v3922_v56 = vld [vmem:[%s6984_s6 + $0x188] sm:$0xff] }
 0x4e7   :  { %1647 = vmatprep.subr.mxu1 %v3874_v14  ;;  %v3923_v14 = vld [vmem:[%s6984_s6 + $0x180] sm:$0xff] }
 0x4e8   :  { %1648 = vmatpush1.msra.mxu1 %v3875_v15  ;;  %v3924_v15 = vld [vmem:[%s6984_s6 + $0x178] sm:$0xff] }
 0x4e9   :  { %3300 = vmatmul.mubr.msk.f32.vlgmr.msra.gmra.mxu1 %vm381_vm2, %v7154_v11  ;;  %1836 = vmatprep.subr.mxu1 %v3876_v24  ;;  %v3925_v11 = vld [vmem:[%s6984_s6 + $0x170] sm:$0xff]  ;;  %v3926_v24 = vld [vmem:[%s6984_s6 + $0x168] sm:$0xff] }
 0x4ea   :  { %1837 = vmatpush1.msra.mxu1 %v3877_v39  ;;  %v3927_v39 = vld [vmem:[%s6984_s6 + $0x160] sm:$0xff] }
 0x4eb   :  { %1838 = vmatprep.subr.mxu1 %v3878_v29  ;;  %v3928_v29 = vld [vmem:[%s6984_s6 + $0x158] sm:$0xff] }
 0x4ec   :  { %1839 = vmatpush1.msra.mxu1 %v3879_v6  ;;  %v3929_v6 = vld [vmem:[%s6984_s6 + $0x150] sm:$0xff] }
 0x4ed   :  { %1840 = vmatprep.subr.mxu1 %v3880_v10  ;;  %v3930_v10 = vld [vmem:[%s6984_s6 + $0x148] sm:$0xff] }
 0x4ee   :  { %1841 = vmatpush1.msra.mxu1 %v3881_v27  ;;  %v3931_v27 = vld [vmem:[%s6984_s6 + $0x140] sm:$0xff] }
 0x4ef   :  { %1842 = vmatprep.subr.mxu1 %v3882_v30  ;;  %v3932_v30 = vld [vmem:[%s6984_s6 + $0x138] sm:$0xff] }
 0x4f0   :  { %1843 = vmatpush1.msra.mxu1 %v3883_v13  ;;  %v3933_v13 = vld [vmem:[%s6984_s6 + $0x130] sm:$0xff] }
 0x4f1   :  { %1844 = vmatprep.subr.mxu1 %v3884_v17  ;;  %v3934_v17 = vld [vmem:[%s6984_s6 + $0x128] sm:$0xff] }
 0x4f2   :  { %1845 = vmatpush1.msra.mxu1 %v3885_v35  ;;  %v3935_v35 = vld [vmem:[%s6984_s6 + $0x120] sm:$0xff] }
 0x4f3   :  { %1846 = vmatprep.subr.mxu1 %v3886_v26  ;;  %v3936_v26 = vld [vmem:[%s6984_s6 + $0x118] sm:$0xff] }
 0x4f4   :  { %1847 = vmatpush1.msra.mxu1 %v3887_v16  ;;  %v3937_v16 = vld [vmem:[%s6984_s6 + $0x110] sm:$0xff] }
 0x4f5   :  { %1848 = vmatprep.subr.mxu1 %v3888_v31  ;;  %v3938_v31 = vld [vmem:[%s6984_s6 + $0x108] sm:$0xff] }
 0x4f6   :  { %1849 = vmatpush1.msra.mxu1 %v3889_v40  ;;  %v3939_v40 = vld [vmem:[%s6984_s6 + $0x100] sm:$0xff] }
 0x4f7   :  { %1850 = vmatprep.subr.mxu1 %v3890_v42  ;;  %v3940_v42 = vld [vmem:[%s6986_s8 + $0xf8] sm:$0xff] }
 0x4f8   :  { %1851 = vmatpush1.msra.mxu1 %v3891_v44 }
 0x4f9   :  { %1852 = vmatprep.subr.mxu1 %v3892_v45 }
 0x4fa   :  { %1853 = vmatpush1.msra.mxu1 %v3893_v46 }
 0x4fb   :  { %1854 = vmatprep.subr.mxu1 %v3894_v4 }
 0x4fc   :  { %1855 = vmatpush1.msra.mxu1 %v3895_v47 }
 0x4fd   :  { %1856 = vmatprep.subr.mxu1 %v3896_v36 }
 0x4fe   :  { %1857 = vmatpush1.msra.mxu1 %v3897_v34 }
 0x4ff   :  { %1858 = vmatprep.subr.mxu1 %v3898_v55 }
 0x500   :  { %1859 = vmatpush1.msra.mxu1 %v3899_v50 }
 0x501   :  { %1860 = vmatprep.subr.mxu1 %v3900_v51 }
 0x502   :  { %1861 = vmatpush1.msra.mxu1 %v3901_v52 }
 0x503   :  { %1862 = vmatprep.subr.mxu1 %v3902_v21 }
 0x504   :  { %1863 = vmatpush1.msra.mxu1 %v3903_v57 }
 0x505   :  { %1864 = vmatprep.subr.mxu1 %v3904_v59 }
 0x506   :  { %1865 = vmatpush1.msra.mxu1 %v3905_v61 }
 0x507   :  { %1866 = vmatprep.subr.mxu1 %v3906_v62 }
 0x508   :  { %1867 = vmatpush1.msra.mxu1 %v3907_v54 }
 0x509   :  { %1868 = vmatprep.subr.mxu1 %v3908_v0 }
 0x50a   :  { %1869 = vmatpush2.msra.mxu1 %v3909_v22 }
 0x50b   :  { %1870 = vmatprep.subr.mxu1 %v3910_v63 }
 0x50c   :  { %1871 = vmatpush2.msra.mxu1 %v3911_v1 }
 0x50d   :  { %1872 = vmatprep.subr.mxu1 %v3912_v37 }
 0x50e   :  { %1873 = vmatpush2.msra.mxu1 %v3913_v20 }
 0x50f   :  { %1874 = vmatprep.subr.mxu1 %v3914_v2 }
 0x510   :  { %1875 = vmatpush2.msra.mxu1 %v3915_v7 }
 0x511   :  { %1876 = vmatprep.subr.mxu1 %v3916_v58 }
 0x512   :  { %1877 = vmatpush2.msra.mxu1 %v3917_v23 }
 0x513   :  { %1878 = vmatprep.subr.mxu1 %v3918_v3 }
 0x514   :  { %1879 = vmatpush2.msra.mxu1 %v3919_v5 }
 0x515   :  { %1880 = vmatprep.subr.mxu1 %v3920_v41  ;;  %v941_v41 = vstv %s3592_s30 }
 0x516   :  { %1881 = vmatpush2.msra.mxu1 %v3921_v32 }
 0x517   :  { %1882 = vmatprep.subr.mxu1 %v3922_v56 }
 0x518   :  { %1883 = vmatpush2.msra.mxu1 %v3923_v14 }
 0x519   :  { %1884 = vmatprep.subr.mxu1 %v3924_v15  ;;  %v930_v15 = vstv %s3590_s29 }
 0x51a   :  { %1885 = vmatpush2.msra.mxu1 %v3925_v11 }
 0x51b   :  { %1886 = vmatprep.subr.mxu1 %v3926_v24 }
 0x51c   :  { %1887 = vmatpush2.msra.mxu1 %v3927_v39  ;;  %v942_v39 = vsub.f32 %v930_v15, %v941_v41 }
 0x51d   :  { %1888 = vmatprep.subr.mxu1 %v3928_v29 }
 0x51e   :  { %1889 = vmatpush2.msra.mxu1 %v3929_v6 }
 0x51f   :  { %1890 = vmatprep.subr.mxu1 %v3930_v10 }
 0x520   :  { %1891 = vmatpush2.msra.mxu1 %v3931_v27 }
 0x521   :  { %1892 = vmatprep.subr.mxu1 %v3932_v30  ;;  %v917_v30 = vstv %s5770_s28 }
 0x522   :  { %1893 = vmatpush2.msra.mxu1 %v3933_v13 }
 0x523   :  { %1894 = vmatprep.subr.mxu1 %v3934_v17 }
 0x524   :  { %1895 = vmatpush2.msra.mxu1 %v3935_v35  ;;  %v943_v35 = vmul.f32 0.2, %v942_v39 }
 0x525   :  { %1896 = vmatprep.subr.mxu1 %v3936_v26 }
 0x526   :  { %1897 = vmatpush2.msra.mxu1 %v3937_v16  ;;  %v919_v16 = vmul.f32 0.00625, %v917_v30 }
 0x527   :  { %1898 = vmatprep.subr.mxu1 %v3938_v31 }
 0x528   :  { %1899 = vmatpush2.msra.mxu1 %v3939_v40  ;;  %v944_v40 = vsub.f32 %v919_v16, %v943_v35  ;;  %v967_v35 = vstv %s5775_s2 }
 0x529   :  { %3454 = vmatprep.subr.mxu1 %v3940_v42  ;;  %v7155_v42 = vld [vmem:[#allocation48_spill] sm:$0xff] }
 0x52a   :  { %v1510_v15 = vmul.f32 0.75, %v7155_v42 }
 0x545   :  { %v1342_v44 = vpop.xlane.xlu1 %1341  ;;  %v1328_v45 = vpop.xlane.xlu0 %1327 }
 0x546   :  { %v1343_v46 = vrot.slane %v1342_v44, 4  ;;  %v1329_v4 = vrot.slane %v1328_v45, 4 }
 0x548   :  { %v1344_v47 = vmax.f32 %v1342_v44, %v1343_v46  ;;  %v1330_v36 = vadd.f32 %v1329_v4, %v1328_v45  ;;  %v5780_v44 = vsub.f32 %v7155_v42, %v944_v40  ;;  %v1131_v45 = vstv %s3602_s16 }
 0x549   :  { %v1355_v34 = vpop.xlane.xlu0 %1354  ;;  %v1144_v46 = vstv %s3604_s17 }
 0x54a   :  { %v1345_v55 = vrot.slane %v1344_v47, 2  ;;  %v1331_v50 = vrot.slane %v1330_v36, 2  ;;  %v1356_v51 = vrot.slane %v1355_v34, 4  ;;  %v1145_v4 = vsub.f32 %v1131_v45, %v1144_v46 }
 0x54c   :  { %v1357_v52 = vmin.f32 %v1355_v34, %v1356_v51  ;;  %v1332_v21 = vadd.f32 %v1331_v50, %v1330_v36  ;;  %v1346_v57 = vmax.f32 %v1344_v47, %v1345_v55  ;;  %v5783_v47 = vmul.f32 0.16666667, %v5780_v44 }
 0x54d   :  { %v1117_v36 = vstv %s3600_s15  ;;  %v1146_v34 = vmul.f32 0.2, %v1145_v4  ;;  %v955_v4 = vstv %s5772_s13 }
 0x54e   :  { %v1358_v59 = vrot.slane %v1357_v52, 2  ;;  %v1333_v61 = vrot.slane %v1332_v21, 1  ;;  %v1347_v62 = vrot.slane %v1346_v57, 1  ;;  %v987_v55 = vand.u32 2147483647, %v5783_v47 }
 0x54f   :  { %v1118_v50 = vmul.f32 0.001953125, %v1117_v36 }
 0x550   :  { %v1334_v54 = vadd.f32 %v1333_v61, %v1332_v21  ;;  %v1348_v0 = vmax.f32 %v1346_v57, %v1347_v62  ;;  %v1359_v22 = vmin.f32 %v1357_v52, %v1358_v59  ;;  %v988_v52 = vsub.f32 0.0, %v987_v55 }
 0x551   :  { %v1147_v51 = vsub.f32 %v1118_v50, %v1146_v34  ;;  %v1692_v50 = vmul.f32 0.75, %v5387_v33 }
 0x552   :  { %3611 = vpush %v1334_v54  ;;  %v1360_v63 = vrot.slane %v1359_v22, 1  ;;  %v989_v57 = vmul.f32 1.442695, %v988_v52  ;;  %v7157_v52 = vld [vmem:[#allocation64_spill] sm:$0xff] }
 0x553   :  { %3613 = vpush %v1348_v0  ;;  %v5787_v21 = vsub.f32 %v5387_v33, %v1147_v51  ;;  %v5790_v59 = vsub.f32 %v5392_v8, %v1147_v51 }
 0x554   :  { %v1361_v1 = vmin.f32 %v1359_v22, %v1360_v63  ;;  %3758 = vpow2.f32 %v989_v57 }
 0x555   :  { %v5793_v61 = vmul.f32 0.16666667, %v5787_v21  ;;  %v5796_v62 = vmul.f32 0.16666667, %v5790_v59 }
 0x556   :  { %3615 = vpush %v1361_v1  ;;  %v7156_v1 = vld [vmem:[#allocation51_spill] sm:$0xff] }
 0x557   :  { %v1201_v54 = vand.u32 2147483647, %v5793_v61  ;;  %v1202_v0 = vand.u32 2147483647, %v5796_v62  ;;  %vm903_vm3 = vcmp.gt.f32.partialorder %v7155_v42, %v7156_v1  ;;  %v956_v1 = vmul.f32 0.00625, %v955_v4 }
 0x559   :  { %v1203_v22 = vsub.f32 0.0, %v1201_v54  ;;  %v1204_v63 = vsub.f32 0.0, %v1202_v0  ;;  %v7158_v54 = vld [vmem:[#allocation49_spill] sm:$0xff] }
 0x55a   :  { %v1688_v0 = vmul.f32 0.5, %v7158_v54 }
 0x55f   :  { %v1385_v37 = vpop.xlane.xlu0 %1384 }
 0x560   :  { %v1386_v20 = vrot.slane %v1385_v37, 4  ;;  %v1371_v2 = vpop.xlane.xlu1 %1370 }
 0x561   :  { %v1372_v7 = vrot.slane %v1371_v2, 4 }
 0x562   :  { %v1387_v58 = vmax.f32 %v1385_v37, %v1386_v20  ;;  %v1205_v37 = vmul.f32 1.442695, %v1203_v22  ;;  %v1207_v20 = vmul.f32 1.442695, %v1204_v63  ;;  %v7159_v22 = vld [vmem:[#allocation50_spill] sm:$0xff] }
 0x563   :  { %v1373_v23 = vadd.f32 %v1372_v7, %v1371_v2  ;;  %v3759_v2 = vpop.eup %3758  ;;  %v1689_v63 = vmul.f32 0.5, %v7159_v22 }
 0x564   :  { %v1388_v3 = vrot.slane %v1387_v58, 2  ;;  %v1398_v5 = vpop.xlane.xlu1 %1397  ;;  %3760 = vpow2.f32 %v1205_v37 }
 0x565   :  { %v1374_v32 = vrot.slane %v1373_v23, 2  ;;  %v1399_v56 = vrot.slane %v1398_v5, 4  ;;  %3762 = vpow2.f32 %v1207_v20  ;;  %v1693_v20 = vmul.f32 0.75, %v5392_v8 }
 0x566   :  { %v1389_v14 = vmax.f32 %v1387_v58, %v1388_v3  ;;  %v5803_v58 = vsel %vm903_vm3, 1.0, %v7127_v25  ;;  %v991_v3 = vadd.f32 1.0, %v3759_v2 }
 0x567   :  { %v1400_v11 = vmin.f32 %v1398_v5, %v1399_v56  ;;  %v1375_v24 = vadd.f32 %v1374_v32, %v1373_v23  ;;  %v1511_v41 = vsub.f32 1.0, %v5803_v58  ;;  %v3941_v32 = vld [vmem:[#allocation11] ss:$0 sm:$0xff] }
 0x568   :  { %v1390_v29 = vrot.slane %v1389_v14, 1  ;;  %3764 = vlog2.f32 %v991_v3 }
 0x569   :  { %v1401_v6 = vrot.slane %v1400_v11, 2  ;;  %v1376_v10 = vrot.slane %v1375_v24, 1 }
 0x56a   :  { %v1391_v27 = vmax.f32 %v1389_v14, %v1390_v29  ;;  %v1508_v14 = vmul.f32 0.5, %v7155_v42 }
 0x56b   :  { %v1377_v13 = vadd.f32 %v1376_v10, %v1375_v24  ;;  %v1402_v17 = vmin.f32 %v1400_v11, %v1401_v6  ;;  %v1512_v24 = vmul.f32 %v1511_v41, %v1510_v15  ;;  %v986_v41 = vmax.f32 %v5783_v47, 0.0 }
 0x56c   :  { %v983_v15 = vmul.f32 0.01, %v5780_v44 }
 0x56d   :  { %3617 = vpush %v1377_v13  ;;  %v1403_v26 = vrot.slane %v1402_v17, 1 }
 0x56e   :  { %3619 = vpush %v1391_v27  ;;  %v978_v27 = vstv %s5777_s14 }
 0x56f   :  { %v1404_v31 = vmin.f32 %v1402_v17, %v1403_v26  ;;  %v3288_v17 = vsel %vm1099_vm14, 1.0, %v7127_v25 }
 0x570   :  { %v1694_v45 = vsub.f32 1.0, %v3288_v17 }
 0x571   :  { %3621 = vpush %v1404_v31  ;;  %v3761_v13 = vpop.eup %3760  ;;  %v979_v31 = vsub.f32 %v967_v35, %v978_v27  ;;  %v1187_v27 = vstv %s3610_s3 }
 0x572   :  { %v3763_v16 = vpop.eup %3762  ;;  %v1209_v46 = vadd.f32 1.0, %v3761_v13  ;;  %v1696_v18 = vmul.f32 %v1694_v45, %v1692_v50 }
 0x573   :  { %v1210_v36 = vadd.f32 1.0, %v3763_v16  ;;  %v980_v34 = vmul.f32 0.2, %v979_v31 }
 0x575   :  { %v3765_v28 = vpop.eup %3764 }
 0x576   :  { %v993_v2 = vmul.f32 0.6931472, %v3765_v28 }
 0x583   :  { %s6002_s22 = spop %3611 }
 0x584   :  { %s3614_s23 = spop %3613 }
 0x587   :  { %s3616_s24 = spop %3615 }
 0x595   :  { %v3416_v7 = vpop.f32.mrf.mxu1 }
 0x597   :  { %v3417_v23 = vpop.f32.mrf.mxu1 }
 0x598   :  { %v3418_v5 = vadd.f32 %v3417_v23, %v3416_v7  ;;  %v7160_v23 = vld [vmem:[#allocation65_spill] sm:$0xff] }
 0x59a   :  { %v1505_v56 = vadd.f32 %v3941_v32, %v3418_v5  ;;  %v981_v5 = vsub.f32 %v956_v1, %v980_v34 }
 0x59c   :  { %v5808_v11 = vadd.f32 %v1508_v14, %v1505_v56 }
 0x59e   :  { %v5811_v39 = vadd.f32 %v1512_v24, %v5808_v11  ;;  %v994_v24 = vadd.f32 %v993_v2, %v986_v41  ;;  %s6043_s25 = spop %3617 }
 0x59f   :  { %s3620_s26 = spop %3619 }
 0x5a0   :  { %v1537_v29 = vsel %vm906_vm12, %v5811_v39, -inf  ;;  %v1525_v6 = vsel %vm906_vm12, %v5811_v39, 0.0  ;;  %v1514_v10 = vsub.f32 %v7155_v42, %v5811_v39  ;;  %v1548_v26 = vsel %vm906_vm12, %v5811_v39, inf }
 0x5a1   :  { %1538 = vmax.xlane.f32.xlu1 %v1537_v29  ;;  %1526 = vadd.xlane.f32.xlu0 %v1525_v6  ;;  %v3289_v42 = vsel %vm1100_vm13, 1.0, %v7127_v25  ;;  %v984_v6 = vadd.f32 %v983_v15, %v981_v5  ;;  %v1194_v5 = vmul.f32 0.01, %v5790_v59 }
 0x5a2   :  { %v1515_v30 = vmul.f32 0.33333334, %v1514_v10  ;;  %v1695_v51 = vsub.f32 1.0, %v3289_v42  ;;  %s3622_s9 = spop %3621 }
 0x5a3   :  { %v995_v35 = vadd.f32 %v994_v24, %v984_v6 }
 0x5a4   :  { %v1516_v40 = vmul.f32 1.442695, %v1515_v30  ;;  %v1697_v14 = vmul.f32 %v1695_v51, %v1693_v20  ;;  %v1193_v20 = vmul.f32 0.01, %v5787_v21 }
 0x5a5   :  { %1549 = vmin.xlane.f32.xlu0 %v1548_v26  ;;  %v1174_v26 = vstv %s3608_s4  ;;  %v1519_v4 = vmul.f32 0.5, %v995_v35 }
 0x5a6   :  { %3766 = vpow2.f32 %v1516_v40  ;;  %v1188_v40 = vsub.f32 %v1174_v26, %v1187_v27 }
 0x5a7   :  { %3768 = vlog2.f32 %v1209_v46 }
 0x5a8   :  { %3770 = vlog2.f32 %v1210_v36  ;;  %v1160_v36 = vstv %s5837_s18 }
 0x5a9   :  { %v1683_v55 = vpop.f32.mrf.mxu1  ;;  %v1161_v50 = vmul.f32 0.001953125, %v1160_v36 }
 0x5aa   :  { %v1684_v57 = vadd.f32 %v1683_v55, %v7157_v52  ;;  %v1189_v55 = vmul.f32 0.2, %v1188_v40 }
 0x5ab   :  { %v1685_v37 = vpop.f32.mrf.mxu1 }
 0x5ac   :  { %v5839_v7 = vadd.f32 %v1688_v0, %v1684_v57  ;;  %v1686_v3 = vadd.f32 %v1685_v37, %v7160_v23  ;;  %v1190_v1 = vsub.f32 %v1161_v50, %v1189_v55  ;;  %v3943_v55 = vld [vmem:[%s6986_s8 + $0xf0] sm:$0xff] }
 0x5ad   :  { %v3944_v50 = vld [vmem:[%s6986_s8 + $0x70] sm:$0xff] }
 0x5ae   :  { %v5844_v32 = vadd.f32 %v1696_v18, %v5839_v7  ;;  %v5846_v56 = vadd.f32 %v1689_v63, %v1686_v3  ;;  %v1199_v63 = vmax.f32 %v5793_v61, 0.0  ;;  %v1200_v18 = vmax.f32 %v5796_v62, 0.0 }
 0x5af   :  { %v1195_v15 = vadd.f32 %v1193_v20, %v1190_v1  ;;  %v1196_v62 = vadd.f32 %v1194_v5, %v1190_v1  ;;  %v3951_v1 = vld [vmem:[%s6986_s8 + $0xd0] sm:$0xff]  ;;  %v3954_v20 = vld [vmem:[%s6986_s8 + $0x48] sm:$0xff]  ;;  %v3957_v5 = vld [vmem:[%s6986_s8 + $0xb8] sm:$0xff] }
 0x5b0   :  { %v5850_v29 = vadd.f32 %v1697_v14, %v5846_v56  ;;  %v1700_v10 = vsub.f32 %v5387_v33, %v5844_v32  ;;  %v1722_v47 = vsel %vm481_vm7, %v5844_v32, 0.0  ;;  %v1749_v37 = vsel %vm481_vm7, %v5844_v32, inf }
 0x5b1   :  { %v1736_v24 = vsel %vm481_vm7, %v5844_v32, -inf }
 0x5b2   :  { %v1723_v30 = vsel %vm481_vm7, %v5850_v29, 0.0  ;;  %v1701_v44 = vsub.f32 %v5392_v8, %v5850_v29  ;;  %v1702_v17 = vmul.f32 0.33333334, %v1700_v10  ;;  %v1750_v22 = vsel %vm481_vm7, %v5850_v29, inf }
 0x5b3   :  { %v1724_v13 = vadd.f32 %v1723_v30, %v1722_v47  ;;  %v3767_v31 = vpop.eup %3766  ;;  %v1751_v3 = vmin.f32 %v1749_v37, %v1750_v22  ;;  %v1737_v61 = vsel %vm481_vm7, %v5850_v29, -inf  ;;  %v3949_v22 = vld [vmem:[%s6986_s8 + $0xd8] sm:$0xff]  ;;  %v3953_v37 = vld [vmem:[%s6986_s8 + $0xc8] sm:$0xff] }
 0x5b4   :  { %v1703_v16 = vmul.f32 0.33333334, %v1701_v44  ;;  %v1704_v33 = vmul.f32 1.442695, %v1702_v17  ;;  %v3298_v42 = vadd.f32 -1.0, %v3767_v31  ;;  %v3769_v46 = vpop.eup %3768  ;;  %v1738_v21 = vmax.f32 %v1736_v24, %v1737_v61  ;;  %v3960_v61 = vld [vmem:[%s6986_s8 + $0x30] sm:$0xff] }
 0x5b5   :  { %1725 = vadd.xlane.f32.xlu0 %v1724_v13  ;;  %v3771_v34 = vpop.eup %3770  ;;  %v1212_v51 = vmul.f32 0.6931472, %v3769_v46  ;;  %v3963_v24 = vld [vmem:[%s6986_s8 + $0xa0] sm:$0xff] }
 0x5b6   :  { %v1706_v45 = vmul.f32 1.442695, %v1703_v16  ;;  %3772 = vpow2.f32 %v1704_v33  ;;  %v1520_v28 = vmul.f32 0.5, %v3298_v42  ;;  %v1214_v57 = vmul.f32 0.6931472, %v3771_v34 }
 0x5b7   :  { %v1215_v2 = vadd.f32 %v1212_v51, %v1199_v63  ;;  %v3945_v51 = vld [vmem:[%s6986_s8 + $0xe8] sm:$0xff]  ;;  %v3950_v63 = vld [vmem:[%s6986_s8 + $0x58] sm:$0xff] }
 0x5b8   :  { %3774 = vpow2.f32 %v1706_v45  ;;  %v5861_v8 = vadd.f32 %v1520_v28, %v1519_v4  ;;  %v1216_v41 = vadd.f32 %v1214_v57, %v1200_v18  ;;  %v3942_v28 = vld [vmem:[%s6986_s8 + $0x78] sm:$0xff]  ;;  %v3946_v57 = vld [vmem:[%s6986_s8 + $0x68] sm:$0xff]  ;;  %v3952_v18 = vld [vmem:[%s6986_s8 + $0x50] sm:$0xff] }
 0x5b9   :  { %v1217_v6 = vadd.f32 %v1215_v2, %v1195_v15  ;;  %v3955_v2 = vld [vmem:[%s6986_s8 + $0xc0] sm:$0xff]  ;;  %v3961_v15 = vld [vmem:[%s6986_s8 + $0xa8] sm:$0xff] }
 0x5ba   :  { %v1574_v54 = vsel %vm906_vm12, %v5861_v8, -inf  ;;  %v1562_v0 = vsel %vm906_vm12, %v5861_v8, 0.0  ;;  %v1585_v14 = vsel %vm906_vm12, %v5861_v8, inf  ;;  %v1218_v27 = vadd.f32 %v1216_v41, %v1196_v62  ;;  %v3958_v41 = vld [vmem:[%s6986_s8 + $0x38] sm:$0xff]  ;;  %v3962_v62 = vld [vmem:[%s6986_s8 + $0x28] sm:$0xff] }
 0x5bb   :  { %1575 = vmax.xlane.f32.xlu0 %v1574_v54  ;;  %1563 = vadd.xlane.f32.xlu1 %v1562_v0  ;;  %v1710_v44 = vmul.f32 0.5, %v1217_v6  ;;  %v3947_v54 = vld [vmem:[%s6986_s8 + $0xe0] sm:$0xff]  ;;  %vm1522_vm9 = vcmp.gt.f32.partialorder %v5811_v39, %v5861_v8  ;;  %v2125_v8 = vmul.f32 0.5, %v5808_v11 }
 0x5bc   :  { %v1711_v17 = vmul.f32 0.5, %v1218_v27  ;;  %v3948_v0 = vld [vmem:[%s6986_s8 + $0x60] sm:$0xff]  ;;  %v3967_v27 = vld [vmem:[%s6986_s8 + $0x90] sm:$0xff] }
 0x5bd   :  { %v3964_v6 = vld [vmem:[%s6986_s8 + $0x20] sm:$0xff] }
 0x5bf   :  { %1752 = vmin.xlane.f32.xlu0 %v1751_v3  ;;  %1586 = vmin.xlane.f32.xlu1 %v1585_v14  ;;  %v3956_v3 = vld [vmem:[%s6986_s8 + $0x40] sm:$0xff]  ;;  %v3959_v14 = vld [vmem:[%s6986_s8 + $0xb0] sm:$0xff] }
 0x5c3   :  { %v3773_v10 = vpop.eup %3772  ;;  %1739 = vmax.xlane.f32.xlu1 %v1738_v21  ;;  %v3965_v21 = vld [vmem:[%s6986_s8 + $0x98] sm:$0xff] }
 0x5c4   :  { %v3301_v59 = vadd.f32 -1.0, %v3773_v10  ;;  %v3966_v10 = vld [vmem:[%s6986_s8 + $0x18] sm:$0xff] }
 0x5c5   :  { %v3775_v47 = vpop.eup %3774 }
 0x5c6   :  { %v3302_v30 = vadd.f32 -1.0, %v3775_v47  ;;  %v1712_v13 = vmul.f32 0.5, %v3301_v59  ;;  %v3968_v47 = vld [vmem:[%s6986_s8 + $0x10] sm:$0xff]  ;;  %v3969_v59 = vld [vmem:[%s6986_s8 + $0x88] sm:$0xff] }
 0x5c8   :  { %v1713_v35 = vmul.f32 0.5, %v3302_v30  ;;  %v5881_v26 = vadd.f32 %v1712_v13, %v1710_v44  ;;  %v3970_v30 = vld [vmem:[%s6986_s8 + $0x8] sm:$0xff]  ;;  %v3971_v44 = vld [vmem:[%s6986_s8 + $0x80] sm:$0xff] }
 0x5c9   :  { %v3972_v13 = vld [vmem:[%s6986_s8] sm:$0xff] }
 0x5ca   :  { %v5883_v16 = vadd.f32 %v1713_v35, %v1711_v17  ;;  %v1779_v31 = vsel %vm481_vm7, %v5881_v26, -inf  ;;  %v1765_v33 = vsel %vm481_vm7, %v5881_v26, 0.0  ;;  %vm1716_vm5 = vcmp.gt.f32.partialorder %v5844_v32, %v5881_v26  ;;  %v3973_v17 = vld [vmem:[#allocation7 + $0x98] sm:$0xff] }
 0x5cb   :  { %v1792_v36 = vsel %vm481_vm7, %v5881_v26, inf  ;;  %v2305_v26 = vmul.f32 0.5, %v5839_v7 }
 0x5cc   :  { %vm1717_vm4 = vcmp.gt.f32.partialorder %v5850_v29, %v5883_v16  ;;  %v1780_v40 = vsel %vm481_vm7, %v5883_v16, -inf  ;;  %v1766_v42 = vsel %vm481_vm7, %v5883_v16, 0.0  ;;  %v1793_v4 = vsel %vm481_vm7, %v5883_v16, inf }
 0x5cd   :  { %3305 = vmatprep.mubr.msk.f32.mxu1 %vm1717_vm4, %v7151_v12  ;;  %v1781_v45 = vmax.f32 %v1779_v31, %v1780_v40  ;;  %v1767_v46 = vadd.f32 %v1766_v42, %v1765_v33  ;;  %v1794_v34 = vmin.f32 %v1792_v36, %v1793_v4  ;;  %v2306_v16 = vmul.f32 0.5, %v5846_v56 }
 0x5ce   :  { %3306 = vmatmul.mubr.msk.f32.vlgmr.msra.gmra.mxu1 %vm1716_vm5, %v7151_v12 }
 0x5cf   :  { %1782 = vmax.xlane.f32.xlu0 %v1781_v45  ;;  %1768 = vadd.xlane.f32.xlu1 %v1767_v46 }
 0x5d0   :  { %3455 = vmatpush3.msra.mxu1 %v3942_v28 }
 0x5d1   :  { %3456 = vmatprep.subr.mxu1 %v3943_v55 }
 0x5d2   :  { %3457 = vmatpush3.msra.mxu1 %v3944_v50 }
 0x5d3   :  { %1795 = vmin.xlane.f32.xlu1 %v1794_v34  ;;  %3458 = vmatprep.subr.mxu1 %v3945_v51 }
 0x5d4   :  { %3459 = vmatpush3.msra.mxu1 %v3946_v57 }
 0x5d5   :  { %3460 = vmatprep.subr.mxu1 %v3947_v54 }
 0x5d6   :  { %3461 = vmatpush3.msra.mxu1 %v3948_v0 }
 0x5d7   :  { %3462 = vmatprep.subr.mxu1 %v3949_v22 }
 0x5d8   :  { %3463 = vmatpush3.msra.mxu1 %v3950_v63 }
 0x5d9   :  { %3464 = vmatprep.subr.mxu1 %v3951_v1 }
 0x5da   :  { %3465 = vmatpush3.msra.mxu1 %v3952_v18 }
 0x5db   :  { %3466 = vmatprep.subr.mxu1 %v3953_v37 }
 0x5dc   :  { %3467 = vmatpush3.msra.mxu1 %v3954_v20 }
 0x5dd   :  { %3468 = vmatprep.subr.mxu1 %v3955_v2 }
 0x5de   :  { %3469 = vmatpush3.msra.mxu1 %v3956_v3 }
 0x5df   :  { %3470 = vmatprep.subr.mxu1 %v3957_v5 }
 0x5e0   :  { %3471 = vmatpush3.msra.mxu1 %v3958_v41 }
 0x5e1   :  { %3472 = vmatprep.subr.mxu1 %v3959_v14 }
 0x5e2   :  { %3473 = vmatpush3.msra.mxu1 %v3960_v61 }
 0x5e3   :  { %3474 = vmatprep.subr.mxu1 %v3961_v15 }
 0x5e4   :  { %3475 = vmatpush3.msra.mxu1 %v3962_v62 }
 0x5e5   :  { %3476 = vmatprep.subr.mxu1 %v3963_v24 }
 0x5e6   :  { %3477 = vmatpush3.msra.mxu1 %v3964_v6 }
 0x5e7   :  { %3478 = vmatprep.subr.mxu1 %v3965_v21 }
 0x5e8   :  { %3479 = vmatpush3.msra.mxu1 %v3966_v10 }
 0x5e9   :  { %3480 = vmatprep.subr.mxu1 %v3967_v27 }
 0x5ea   :  { %3481 = vmatpush3.msra.mxu1 %v3968_v47 }
 0x5eb   :  { %3482 = vmatprep.subr.mxu1 %v3969_v59 }
 0x5ec   :  { %3483 = vmatpush3.msra.mxu1 %v3970_v30 }
 0x5ed   :  { %3484 = vmatprep.subr.mxu1 %v3971_v44 }
 0x5ee   :  { %3485 = vmatpush3.msra.mxu1 %v3972_v13 }
 0x5ef   :  { %2863 = vmatprep.subr.mxu1 %v3973_v17 }
 0x62a   :  { %v1539_v35 = vpop.xlane.xlu1 %1538  ;;  %v1527_v31 = vpop.xlane.xlu0 %1526 }
 0x62b   :  { %v1540_v40 = vrot.slane %v1539_v35, 4  ;;  %v1528_v33 = vrot.slane %v1527_v31, 4 }
 0x62d   :  { %v1541_v42 = vmax.f32 %v1539_v35, %v1540_v40  ;;  %v1529_v45 = vadd.f32 %v1528_v33, %v1527_v31 }
 0x62e   :  { %v1550_v46 = vpop.xlane.xlu0 %1549 }
 0x62f   :  { %v1542_v4 = vrot.slane %v1541_v42, 2  ;;  %v1530_v36 = vrot.slane %v1529_v45, 2  ;;  %v1551_v28 = vrot.slane %v1550_v46, 4 }
 0x631   :  { %v1552_v34 = vmin.f32 %v1550_v46, %v1551_v28  ;;  %v1531_v55 = vadd.f32 %v1530_v36, %v1529_v45  ;;  %v1543_v50 = vmax.f32 %v1541_v42, %v1542_v4 }
 0x633   :  { %v1553_v51 = vrot.slane %v1552_v34, 2  ;;  %v1532_v57 = vrot.slane %v1531_v55, 1  ;;  %v1544_v54 = vrot.slane %v1543_v50, 1 }
 0x635   :  { %v1533_v0 = vadd.f32 %v1532_v57, %v1531_v55  ;;  %v1545_v22 = vmax.f32 %v1543_v50, %v1544_v54  ;;  %v1554_v63 = vmin.f32 %v1552_v34, %v1553_v51 }
 0x637   :  { %3623 = vpush %v1533_v0  ;;  %v1555_v1 = vrot.slane %v1554_v63, 1 }
 0x638   :  { %3625 = vpush %v1545_v22 }
 0x639   :  { %v1556_v18 = vmin.f32 %v1554_v63, %v1555_v1 }
 0x63b   :  { %3627 = vpush %v1556_v18 }
 0x63e   :  { %v1726_v37 = vpop.xlane.xlu0 %1725 }
 0x63f   :  { %v1727_v20 = vrot.slane %v1726_v37, 4 }
 0x641   :  { %v1728_v2 = vadd.f32 %v1727_v20, %v1726_v37 }
 0x643   :  { %v1729_v62 = vrot.slane %v1728_v2, 2 }
 0x644   :  { %v1576_v3 = vpop.xlane.xlu0 %1575  ;;  %v1564_v5 = vpop.xlane.xlu1 %1563 }
 0x645   :  { %v1577_v41 = vrot.slane %v1576_v3, 4  ;;  %v1565_v14 = vrot.slane %v1564_v5, 4  ;;  %v1730_v35 = vadd.f32 %v1729_v62, %v1728_v2 }
 0x647   :  { %v1578_v61 = vmax.f32 %v1576_v3, %v1577_v41  ;;  %v1566_v15 = vadd.f32 %v1565_v14, %v1564_v5  ;;  %v1731_v34 = vrot.slane %v1730_v35, 1 }
 0x648   :  { %v1753_v24 = vpop.xlane.xlu0 %1752  ;;  %v1587_v6 = vpop.xlane.xlu1 %1586 }
 0x649   :  { %v1579_v21 = vrot.slane %v1578_v61, 2  ;;  %v1567_v10 = vrot.slane %v1566_v15, 2  ;;  %v1754_v27 = vrot.slane %v1753_v24, 4  ;;  %v1588_v47 = vrot.slane %v1587_v6, 4 }
 0x64a   :  { %v1732_v0 = vadd.f32 %v1731_v34, %v1730_v35 }
 0x64b   :  { %v1755_v59 = vmin.f32 %v1753_v24, %v1754_v27  ;;  %v1589_v30 = vmin.f32 %v1587_v6, %v1588_v47  ;;  %v1568_v44 = vadd.f32 %v1567_v10, %v1566_v15  ;;  %v1580_v13 = vmax.f32 %v1578_v61, %v1579_v21 }
 0x64c   :  { %v1740_v17 = vpop.xlane.xlu1 %1739  ;;  %v1363_v24 = vstv %s3616_s24  ;;  %v1350_v27 = vstv %s3614_s23 }
 0x64d   :  { %v1756_v31 = vrot.slane %v1755_v59, 2  ;;  %v1590_v40 = vrot.slane %v1589_v30, 2  ;;  %v1741_v33 = vrot.slane %v1740_v17, 4  ;;  %v1569_v42 = vrot.slane %v1568_v44, 1 }
 0x64e   :  { %v1581_v45 = vrot.slane %v1580_v13, 1  ;;  %v1364_v47 = vsub.f32 %v1350_v27, %v1363_v24 }
 0x64f   :  { %v1742_v46 = vmax.f32 %v1740_v17, %v1741_v33  ;;  %v1570_v4 = vadd.f32 %v1569_v42, %v1568_v44  ;;  %v1591_v36 = vmin.f32 %v1589_v30, %v1590_v40  ;;  %v1757_v55 = vmin.f32 %v1755_v59, %v1756_v31 }
 0x650   :  { %v1582_v28 = vmax.f32 %v1580_v13, %v1581_v45  ;;  %v1336_v31 = vstv %s6002_s22  ;;  %v1365_v40 = vmul.f32 0.2, %v1364_v47 }
 0x651   :  { %v1743_v50 = vrot.slane %v1742_v46, 2  ;;  %3629 = vpush %v1570_v4  ;;  %v1592_v51 = vrot.slane %v1591_v36, 1  ;;  %v1758_v22 = vrot.slane %v1757_v55, 1  ;;  %v1337_v42 = vmul.f32 0.001953125, %v1336_v31 }
 0x652   :  { %3631 = vpush %v1582_v28  ;;  %v1406_v31 = vstv %s3622_s9 }
 0x653   :  { %v1593_v57 = vmin.f32 %v1591_v36, %v1592_v51  ;;  %v1744_v54 = vmax.f32 %v1742_v46, %v1743_v50  ;;  %v1759_v3 = vmin.f32 %v1757_v55, %v1758_v22  ;;  %v1366_v46 = vsub.f32 %v1337_v42, %v1365_v40 }
 0x654   :  { %v3294_v22 = vsel %vm1318_vm1, 1.0, %v7127_v25  ;;  %v1393_v42 = vstv %s3620_s26 }
 0x655   :  { %3633 = vpush %v1593_v57  ;;  %v1745_v63 = vrot.slane %v1744_v54, 1  ;;  %v6006_v4 = vsub.f32 %v5521_v19, %v1366_v46  ;;  %v6009_v36 = vsub.f32 %v5516_v53, %v1366_v46 }
 0x656   :  { %3635 = vpush %v1732_v0 }
 0x657   :  { %v1746_v2 = vmax.f32 %v1744_v54, %v1745_v63  ;;  %v6012_v28 = vmul.f32 0.16666667, %v6006_v4  ;;  %v6015_v34 = vmul.f32 0.16666667, %v6009_v36  ;;  %v3295_v63 = vsel %vm1319_vm15, 1.0, %v7127_v25 }
 0x658   :  { %v1783_v1 = vpop.xlane.xlu0 %1782  ;;  %v1769_v18 = vpop.xlane.xlu1 %1768 }
 0x659   :  { %v1784_v37 = vrot.slane %v1783_v1, 4  ;;  %v1770_v20 = vrot.slane %v1769_v18, 4  ;;  %3637 = vpush %v1746_v2  ;;  %v1421_v55 = vand.u32 2147483647, %v6012_v28  ;;  %v1420_v50 = vand.u32 2147483647, %v6015_v34 }
 0x65a   :  { %3639 = vpush %v1759_v3  ;;  %v1914_v2 = vsub.f32 1.0, %v3295_v63 }
 0x65b   :  { %v1785_v5 = vmax.f32 %v1783_v1, %v1784_v37  ;;  %v1771_v41 = vadd.f32 %v1770_v20, %v1769_v18  ;;  %v1423_v51 = vsub.f32 0.0, %v1421_v55  ;;  %v1422_v57 = vsub.f32 0.0, %v1420_v50 }
 0x65c   :  { %v1796_v14 = vpop.xlane.xlu1 %1795  ;;  %v1913_v1 = vsub.f32 1.0, %v3294_v22  ;;  %v1407_v55 = vsub.f32 %v1393_v42, %v1406_v31  ;;  %v3974_v31 = vld [vmem:[#allocation7 + $0x90] sm:$0xff]  ;;  %v3976_v42 = vld [vmem:[#allocation7 + $0x80] sm:$0xff] }
 0x65d   :  { %v1786_v61 = vrot.slane %v1785_v5, 2  ;;  %v1772_v15 = vrot.slane %v1771_v41, 2  ;;  %v1797_v62 = vrot.slane %v1796_v14, 4  ;;  %v1426_v54 = vmul.f32 1.442695, %v1423_v51 }
 0x65e   :  { %v1424_v0 = vmul.f32 1.442695, %v1422_v57  ;;  %v1379_v57 = vstv %s6043_s25 }
 0x65f   :  { %v1798_v6 = vmin.f32 %v1796_v14, %v1797_v62  ;;  %v1773_v21 = vadd.f32 %v1772_v15, %v1771_v41  ;;  %v1787_v10 = vmax.f32 %v1785_v5, %v1786_v61  ;;  %3776 = vpow2.f32 %v1426_v54 }
 0x660   :  { %3778 = vpow2.f32 %v1424_v0  ;;  %v1907_v5 = vmul.f32 0.5, %v5509_v49  ;;  %v1911_v41 = vmul.f32 0.75, %v5516_v53  ;;  %v1912_v61 = vmul.f32 0.75, %v5521_v19 }
 0x661   :  { %v1799_v59 = vrot.slane %v1798_v6, 2  ;;  %v1774_v30 = vrot.slane %v1773_v21, 1  ;;  %v1788_v44 = vrot.slane %v1787_v10, 1  ;;  %v1408_v0 = vmul.f32 0.2, %v1407_v55  ;;  %v3978_v55 = vld [vmem:[#allocation7 + $0x70] sm:$0xff] }
 0x662   :  { %v1915_v9 = vmul.f32 %v1913_v1, %v1911_v41  ;;  %v1916_v49 = vmul.f32 %v1914_v2, %v1912_v61  ;;  %v1380_v22 = vmul.f32 0.001953125, %v1379_v57  ;;  %v1413_v2 = vmul.f32 0.01, %v6006_v4  ;;  %v3982_v57 = vld [vmem:[#allocation7 + $0x50] sm:$0xff] }
 0x663   :  { %v1775_v13 = vadd.f32 %v1774_v30, %v1773_v21  ;;  %v1789_v17 = vmax.f32 %v1787_v10, %v1788_v44  ;;  %v1800_v35 = vmin.f32 %v1798_v6, %v1799_v59 }
 0x665   :  { %3641 = vpush %v1775_v13  ;;  %v1801_v33 = vrot.slane %v1800_v35, 1 }
 0x666   :  { %3643 = vpush %v1789_v17 }
 0x667   :  { %v1802_v45 = vmin.f32 %v1800_v35, %v1801_v33 }
 0x668   :  { %s3624_s23 = spop %3623 }
 0x669   :  { %3645 = vpush %v1802_v45  ;;  %s3626_s24 = spop %3625 }
 0x66c   :  { %v3777_v18 = vpop.eup %3776  ;;  %s3628_s25 = spop %3627 }
 0x66d   :  { %v3779_v20 = vpop.eup %3778  ;;  %v1429_v15 = vadd.f32 1.0, %v3777_v18  ;;  %v1419_v18 = vmax.f32 %v6012_v28, 0.0 }
 0x66e   :  { %v1428_v6 = vadd.f32 1.0, %v3779_v20  ;;  %v1418_v20 = vmax.f32 %v6015_v34, 0.0 }
 0x66f   :  { %3780 = vlog2.f32 %v1429_v15 }
 0x670   :  { %3782 = vlog2.f32 %v1428_v6 }
 0x682   :  { %s6292_s26 = spop %3629 }
 0x683   :  { %s6294_s9 = spop %3631 }
 0x686   :  { %s6296_s27 = spop %3633 }
 0x687   :  { %s3636_s28 = spop %3635 }
 0x68a   :  { %s3638_s29 = spop %3637 }
 0x68b   :  { %s3640_s30 = spop %3639 }
 0x68e   :  { %v1902_v37 = vpop.f32.mrf.mxu1 }
 0x68f   :  { %v1903_v3 = vadd.f32 %v1902_v37, %v7152_v43  ;;  %v1409_v37 = vsub.f32 %v1380_v22, %v1408_v0  ;;  %v3984_v0 = vld [vmem:[#allocation7 + $0x40] sm:$0xff]  ;;  %v3985_v22 = vld [vmem:[#allocation7 + $0x38] sm:$0xff] }
 0x690   :  { %v1904_v14 = vpop.f32.mrf.mxu1 }
 0x691   :  { %v6032_v62 = vadd.f32 %v1907_v5, %v1903_v3  ;;  %v1905_v24 = vadd.f32 %v1904_v14, %v7153_v38  ;;  %v1412_v5 = vmul.f32 0.01, %v6009_v36  ;;  %v1415_v14 = vadd.f32 %v1413_v2, %v1409_v37  ;;  %v3991_v2 = vld [vmem:[#allocation7 + $0x8] sm:$0xff] }
 0x693   :  { %v6036_v21 = vadd.f32 %v1915_v9, %v6032_v62  ;;  %v6038_v10 = vadd.f32 %v1908_v48, %v1905_v24  ;;  %v1414_v48 = vadd.f32 %v1412_v5, %v1409_v37  ;;  %v3989_v37 = vld [vmem:[#allocation7 + $0x18] sm:$0xff]  ;;  %v7161_v5 = vld [vmem:[#allocation44_spill] sm:$0xff] }
 0x695   :  { %v6041_v27 = vadd.f32 %v1916_v49, %v6038_v10  ;;  %v1955_v47 = vsel %vm481_vm7, %v6036_v21, -inf  ;;  %v1919_v59 = vsub.f32 %v5516_v53, %v6036_v21  ;;  %v1941_v44 = vsel %vm481_vm7, %v6036_v21, 0.0 }
 0x696   :  { %v1968_v45 = vsel %vm481_vm7, %v6036_v21, inf  ;;  %s6356_s13 = spop %3641 }
 0x697   :  { %v1956_v60 = vsel %vm481_vm7, %v6041_v27, -inf  ;;  %v1942_v13 = vsel %vm481_vm7, %v6041_v27, 0.0  ;;  %v1920_v17 = vsub.f32 %v5521_v19, %v6041_v27  ;;  %v1969_v40 = vsel %vm481_vm7, %v6041_v27, inf  ;;  %v3781_v19 = vpop.eup %3780  ;;  %s3644_s2 = spop %3643 }
 0x698   :  { %v1957_v30 = vmax.f32 %v1955_v47, %v1956_v60  ;;  %v1943_v35 = vadd.f32 %v1942_v13, %v1941_v44  ;;  %v1921_v53 = vmul.f32 0.33333334, %v1919_v59  ;;  %v1970_v50 = vmin.f32 %v1968_v45, %v1969_v40  ;;  %v3783_v54 = vpop.eup %3782 }
 0x699   :  { %v1922_v33 = vmul.f32 0.33333334, %v1920_v17  ;;  %v1433_v63 = vmul.f32 0.6931472, %v3781_v19  ;;  %v1431_v1 = vmul.f32 0.6931472, %v3783_v54 }
 0x69a   :  { %1958 = vmax.xlane.f32.xlu1 %v1957_v30  ;;  %1944 = vadd.xlane.f32.xlu0 %v1943_v35  ;;  %v1923_v51 = vmul.f32 1.442695, %v1921_v53  ;;  %v3981_v19 = vld [vmem:[#allocation7 + $0x58] sm:$0xff]  ;;  %v3983_v54 = vld [vmem:[#allocation7 + $0x48] sm:$0xff]  ;;  %s3646_s14 = spop %3645 }
 0x69b   :  { %v1925_v46 = vmul.f32 1.442695, %v1922_v33  ;;  %v1435_v3 = vadd.f32 %v1433_v63, %v1419_v18  ;;  %v1434_v41 = vadd.f32 %v1431_v1, %v1418_v20  ;;  %v3975_v33 = vld [vmem:[#allocation7 + $0x88] sm:$0xff]  ;;  %v3986_v63 = vld [vmem:[#allocation7 + $0x30] sm:$0xff]  ;;  %v3988_v18 = vld [vmem:[#allocation7 + $0x20] sm:$0xff] }
 0x69c   :  { %v3987_v1 = vld [vmem:[#allocation7 + $0x28] sm:$0xff]  ;;  %v3990_v20 = vld [vmem:[#allocation7 + $0x10] sm:$0xff] }
 0x69d   :  { %3784 = vpow2.f32 %v1925_v46  ;;  %v1437_v61 = vadd.f32 %v1435_v3, %v1415_v14  ;;  %v1436_v9 = vadd.f32 %v1434_v41, %v1414_v48  ;;  %v3977_v46 = vld [vmem:[#allocation7 + $0x78] sm:$0xff]  ;;  %v3992_v3 = vld [vmem:[#allocation7] sm:$0xff]  ;;  %v3994_v14 = vld [vmem:[%s6984_s6 + $0xf0] sm:$0xff] }
 0x69e   :  { %1971 = vmin.xlane.f32.xlu0 %v1970_v50  ;;  %3786 = vpow2.f32 %v1923_v51  ;;  %v3979_v50 = vld [vmem:[#allocation7 + $0x68] sm:$0xff]  ;;  %v3980_v51 = vld [vmem:[#allocation7 + $0x60] sm:$0xff]  ;;  %v3993_v41 = vld [vmem:[%s6984_s6 + $0xf8] sm:$0xff] }
 0x69f   :  { %v1930_v60 = vmul.f32 0.5, %v1437_v61  ;;  %v1929_v28 = vmul.f32 0.5, %v1436_v9  ;;  %v3995_v48 = vld [vmem:[%s6984_s6 + $0xe8] sm:$0xff]  ;;  %v3996_v61 = vld [vmem:[%s6984_s6 + $0xe0] sm:$0xff]  ;;  %v3998_v9 = vld [vmem:[%s6984_s6 + $0xd0] sm:$0xff] }
 0x6aa   :  { %v3785_v15 = vpop.eup %3784 }
 0x6ab   :  { %v3787_v24 = vpop.eup %3786  ;;  %v3308_v6 = vadd.f32 -1.0, %v3785_v15  ;;  %v3997_v15 = vld [vmem:[%s6984_s6 + $0xd8] sm:$0xff] }
 0x6ac   :  { %v3307_v49 = vadd.f32 -1.0, %v3787_v24  ;;  %v3999_v24 = vld [vmem:[%s6984_s6 + $0xc8] sm:$0xff] }
 0x6ad   :  { %v1932_v47 = vmul.f32 0.5, %v3308_v6  ;;  %v4000_v6 = vld [vmem:[%s6984_s6 + $0xc0] sm:$0xff] }
 0x6ae   :  { %v1931_v59 = vmul.f32 0.5, %v3307_v49  ;;  %v4001_v49 = vld [vmem:[%s6984_s6 + $0xb8] sm:$0xff] }
 0x6af   :  { %v6066_v30 = vadd.f32 %v1932_v47, %v1930_v60  ;;  %v4002_v60 = vld [vmem:[%s6984_s6 + $0xb0] sm:$0xff]  ;;  %v4003_v47 = vld [vmem:[%s6984_s6 + $0xa8] sm:$0xff] }
 0x6b0   :  { %v6068_v34 = vadd.f32 %v1931_v59, %v1929_v28  ;;  %v4004_v28 = vld [vmem:[%s6984_s6 + $0xa0] sm:$0xff]  ;;  %v4005_v59 = vld [vmem:[%s6984_s6 + $0x98] sm:$0xff] }
 0x6b1   :  { %vm1936_vm6 = vcmp.gt.f32.partialorder %v6041_v27, %v6066_v30  ;;  %v1999_v4 = vsel %vm481_vm7, %v6066_v30, -inf  ;;  %v1985_v36 = vsel %vm481_vm7, %v6066_v30, 0.0  ;;  %v2012_v40 = vsel %vm481_vm7, %v6066_v30, inf }
 0x6b2   :  { %3311 = vmatprep.mubr.msk.f32.mxu0 %vm1936_vm6, %v7151_v12  ;;  %vm1935_vm8 = vcmp.gt.f32.partialorder %v6036_v21, %v6068_v34  ;;  %v1998_v44 = vsel %vm481_vm7, %v6068_v34, -inf  ;;  %v1984_v13 = vsel %vm481_vm7, %v6068_v34, 0.0  ;;  %v2011_v53 = vsel %vm481_vm7, %v6068_v34, inf }
 0x6b3   :  { %3312 = vmatmul.mubr.msk.f32.vlgmr.msra.gmra.mxu0 %vm1935_vm8, %v7151_v12  ;;  %v2000_v17 = vmax.f32 %v1998_v44, %v1999_v4  ;;  %v1986_v35 = vadd.f32 %v1985_v36, %v1984_v13  ;;  %v2013_v45 = vmin.f32 %v2011_v53, %v2012_v40  ;;  %v4006_v4 = vld [vmem:[%s6984_s6 + $0x90] sm:$0xff]  ;;  %v4007_v36 = vld [vmem:[%s6984_s6 + $0x88] sm:$0xff]  ;;  %v4008_v44 = vld [vmem:[%s6984_s6 + $0x80] sm:$0xff]  ;;  %v2525_v34 = vmul.f32 0.5, %v6038_v10 }
 0x6b4   :  { %2247 = vmatpush1.msra.mxu0 %v3974_v31  ;;  %2298 = vmatprep.mubr.f32.mxu0 %v7127_v25  ;;  %v4009_v13 = vld [vmem:[%s6984_s6 + $0x78] sm:$0xff]  ;;  %v4012_v31 = vld [vmem:[%s6984_s6 + $0x60] sm:$0xff]  ;;  %v4015_v53 = vld [vmem:[%s6984_s6 + $0x48] sm:$0xff] }
 0x6b5   :  { %2001 = vmax.xlane.f32.xlu0 %v2000_v17  ;;  %1987 = vadd.xlane.f32.xlu1 %v1986_v35  ;;  %v4010_v17 = vld [vmem:[%s6984_s6 + $0x70] sm:$0xff]  ;;  %v4011_v35 = vld [vmem:[%s6984_s6 + $0x68] sm:$0xff]  ;;  %v4013_v40 = vld [vmem:[%s6984_s6 + $0x58] sm:$0xff] }
 0x6b6   :  { %2248 = vmatprep.subr.mxu0 %v3975_v33  ;;  %v4014_v33 = vld [vmem:[%s6984_s6 + $0x50] sm:$0xff] }
 0x6b7   :  { %2249 = vmatpush1.msra.mxu0 %v3976_v42  ;;  %v4016_v42 = vld [vmem:[%s6984_s6 + $0x40] sm:$0xff] }
 0x6b8   :  { %2250 = vmatprep.subr.mxu0 %v3977_v46  ;;  %v4018_v46 = vld [vmem:[%s6984_s6 + $0x30] sm:$0xff] }
 0x6b9   :  { %2251 = vmatpush1.msra.mxu0 %v3978_v55  ;;  %2014 = vmin.xlane.f32.xlu1 %v2013_v45  ;;  %v4017_v45 = vld [vmem:[%s6984_s6 + $0x38] sm:$0xff]  ;;  %v4019_v55 = vld [vmem:[%s6984_s6 + $0x28] sm:$0xff] }
 0x6ba   :  { %2252 = vmatprep.subr.mxu0 %v3979_v50  ;;  %v4020_v50 = vld [vmem:[%s6984_s6 + $0x20] sm:$0xff] }
 0x6bb   :  { %2253 = vmatpush1.msra.mxu0 %v3980_v51  ;;  %v4021_v51 = vld [vmem:[%s6984_s6 + $0x18] sm:$0xff] }
 0x6bc   :  { %2254 = vmatprep.subr.mxu0 %v3981_v19  ;;  %v4022_v19 = vld [vmem:[%s6984_s6 + $0x10] sm:$0xff] }
 0x6bd   :  { %2255 = vmatpush1.msra.mxu0 %v3982_v57  ;;  %v4023_v57 = vld [vmem:[%s6984_s6 + $0x8] sm:$0xff] }
 0x6be   :  { %2256 = vmatprep.subr.mxu0 %v3983_v54  ;;  %v4024_v54 = vld [vmem:[%s6984_s6] sm:$0xff] }
 0x6bf   :  { %2257 = vmatpush1.msra.mxu0 %v3984_v0  ;;  %v4025_v0 = vld [vmem:[%s6984_s6 + $0x1f8] sm:$0xff] }
 0x6c0   :  { %2258 = vmatprep.subr.mxu0 %v3985_v22  ;;  %v4026_v22 = vld [vmem:[%s6984_s6 + $0x1f0] sm:$0xff] }
 0x6c1   :  { %2259 = vmatpush1.msra.mxu0 %v3986_v63  ;;  %v4027_v63 = vld [vmem:[%s6984_s6 + $0x1e8] sm:$0xff] }
 0x6c2   :  { %2260 = vmatprep.subr.mxu0 %v3987_v1  ;;  %v4028_v1 = vld [vmem:[%s6984_s6 + $0x1e0] sm:$0xff] }
 0x6c3   :  { %2261 = vmatpush1.msra.mxu0 %v3988_v18  ;;  %v4029_v18 = vld [vmem:[%s6984_s6 + $0x1d8] sm:$0xff] }
 0x6c4   :  { %2262 = vmatprep.subr.mxu0 %v3989_v37  ;;  %v4030_v37 = vld [vmem:[%s6984_s6 + $0x1d0] sm:$0xff] }
 0x6c5   :  { %2263 = vmatpush1.msra.mxu0 %v3990_v20  ;;  %v4031_v20 = vld [vmem:[%s6984_s6 + $0x1c8] sm:$0xff] }
 0x6c6   :  { %2264 = vmatprep.subr.mxu0 %v3991_v2  ;;  %v4032_v2 = vld [vmem:[%s6984_s6 + $0x1c0] sm:$0xff] }
 0x6c7   :  { %2265 = vmatpush1.msra.mxu0 %v3992_v3  ;;  %v4033_v3 = vld [vmem:[%s6984_s6 + $0x1b8] sm:$0xff] }
 0x6c8   :  { %3315 = vmatmul.mubr.msk.f32.vlgmr.msra.gmra.mxu0 %vm381_vm2, %v7161_v5  ;;  %2453 = vmatprep.subr.mxu0 %v3993_v41  ;;  %v4034_v5 = vld [vmem:[%s6984_s6 + $0x1b0] sm:$0xff]  ;;  %v4035_v41 = vld [vmem:[%s6984_s6 + $0x1a8] sm:$0xff] }
 0x6c9   :  { %2454 = vmatpush1.msra.mxu0 %v3994_v14  ;;  %v4036_v14 = vld [vmem:[%s6984_s6 + $0x1a0] sm:$0xff] }
 0x6ca   :  { %2455 = vmatprep.subr.mxu0 %v3995_v48  ;;  %v4037_v48 = vld [vmem:[%s6984_s6 + $0x198] sm:$0xff] }
 0x6cb   :  { %2456 = vmatpush1.msra.mxu0 %v3996_v61  ;;  %v4038_v61 = vld [vmem:[%s6984_s6 + $0x190] sm:$0xff] }
 0x6cc   :  { %2457 = vmatprep.subr.mxu0 %v3997_v15  ;;  %v4039_v15 = vld [vmem:[%s6984_s6 + $0x188] sm:$0xff] }
 0x6cd   :  { %2458 = vmatpush1.msra.mxu0 %v3998_v9  ;;  %v4040_v9 = vld [vmem:[%s6984_s6 + $0x180] sm:$0xff] }
 0x6ce   :  { %2459 = vmatprep.subr.mxu0 %v3999_v24  ;;  %v4041_v24 = vld [vmem:[%s6984_s6 + $0x178] sm:$0xff] }
 0x6cf   :  { %2460 = vmatpush1.msra.mxu0 %v4000_v6  ;;  %v4042_v6 = vld [vmem:[%s6984_s6 + $0x170] sm:$0xff] }
 0x6d0   :  { %2461 = vmatprep.subr.mxu0 %v4001_v49  ;;  %v4043_v49 = vld [vmem:[%s6984_s6 + $0x168] sm:$0xff] }
 0x6d1   :  { %2462 = vmatpush1.msra.mxu0 %v4002_v60  ;;  %v4044_v60 = vld [vmem:[%s6984_s6 + $0x160] sm:$0xff] }
 0x6d2   :  { %2463 = vmatprep.subr.mxu0 %v4003_v47  ;;  %v4045_v47 = vld [vmem:[%s6984_s6 + $0x158] sm:$0xff] }
 0x6d3   :  { %2464 = vmatpush1.msra.mxu0 %v4004_v28  ;;  %v4046_v28 = vld [vmem:[%s6984_s6 + $0x150] sm:$0xff] }
 0x6d4   :  { %2465 = vmatprep.subr.mxu0 %v4005_v59  ;;  %v4047_v59 = vld [vmem:[%s6984_s6 + $0x148] sm:$0xff] }
 0x6d5   :  { %2466 = vmatpush1.msra.mxu0 %v4006_v4  ;;  %v4048_v4 = vld [vmem:[%s6984_s6 + $0x140] sm:$0xff] }
 0x6d6   :  { %2467 = vmatprep.subr.mxu0 %v4007_v36  ;;  %v4049_v36 = vld [vmem:[%s6984_s6 + $0x138] sm:$0xff] }
 0x6d7   :  { %2468 = vmatpush1.msra.mxu0 %v4008_v44  ;;  %v4050_v44 = vld [vmem:[%s6984_s6 + $0x130] sm:$0xff] }
 0x6d8   :  { %2469 = vmatprep.subr.mxu0 %v4009_v13  ;;  %v4051_v13 = vld [vmem:[%s6984_s6 + $0x128] sm:$0xff] }
 0x6d9   :  { %2470 = vmatpush1.msra.mxu0 %v4010_v17  ;;  %v4052_v17 = vld [vmem:[%s6984_s6 + $0x120] sm:$0xff] }
 0x6da   :  { %2471 = vmatprep.subr.mxu0 %v4011_v35  ;;  %v4053_v35 = vld [vmem:[%s6984_s6 + $0x118] sm:$0xff] }
 0x6db   :  { %2472 = vmatpush1.msra.mxu0 %v4012_v31  ;;  %v4054_v31 = vld [vmem:[%s6984_s6 + $0x110] sm:$0xff] }
 0x6dc   :  { %2473 = vmatprep.subr.mxu0 %v4013_v40  ;;  %v4055_v40 = vld [vmem:[%s6984_s6 + $0x108] sm:$0xff] }
 0x6dd   :  { %2474 = vmatpush1.msra.mxu0 %v4014_v33  ;;  %v4056_v33 = vld [vmem:[%s6984_s6 + $0x100] sm:$0xff] }
 0x6de   :  { %2475 = vmatprep.subr.mxu0 %v4015_v53  ;;  %v4057_v53 = vld [vmem:[%s6986_s8 + $0xf8] sm:$0xff] }
 0x6df   :  { %2476 = vmatpush1.msra.mxu0 %v4016_v42 }
 0x6e0   :  { %2477 = vmatprep.subr.mxu0 %v4017_v45 }
 0x6e1   :  { %2478 = vmatpush1.msra.mxu0 %v4018_v46 }
 0x6e2   :  { %2479 = vmatprep.subr.mxu0 %v4019_v55 }
 0x6e3   :  { %2480 = vmatpush1.msra.mxu0 %v4020_v50 }
 0x6e4   :  { %2481 = vmatprep.subr.mxu0 %v4021_v51 }
 0x6e5   :  { %2482 = vmatpush1.msra.mxu0 %v4022_v19 }
 0x6e6   :  { %2483 = vmatprep.subr.mxu0 %v4023_v57 }
 0x6e7   :  { %2484 = vmatpush1.msra.mxu0 %v4024_v54 }
 0x6e8   :  { %2485 = vmatprep.subr.mxu0 %v4025_v0 }
 0x6e9   :  { %2486 = vmatpush2.msra.mxu0 %v4026_v22 }
 0x6ea   :  { %2487 = vmatprep.subr.mxu0 %v4027_v63 }
 0x6eb   :  { %2488 = vmatpush2.msra.mxu0 %v4028_v1 }
 0x6ec   :  { %2489 = vmatprep.subr.mxu0 %v4029_v18 }
 0x6ed   :  { %2490 = vmatpush2.msra.mxu0 %v4030_v37 }
 0x6ee   :  { %2491 = vmatprep.subr.mxu0 %v4031_v20 }
 0x6ef   :  { %2492 = vmatpush2.msra.mxu0 %v4032_v2 }
 0x6f0   :  { %2493 = vmatprep.subr.mxu0 %v4033_v3 }
 0x6f1   :  { %2494 = vmatpush2.msra.mxu0 %v4034_v5 }
 0x6f2   :  { %2495 = vmatprep.subr.mxu0 %v4035_v41 }
 0x6f3   :  { %2496 = vmatpush2.msra.mxu0 %v4036_v14 }
 0x6f4   :  { %2497 = vmatprep.subr.mxu0 %v4037_v48 }
 0x6f5   :  { %2498 = vmatpush2.msra.mxu0 %v4038_v61 }
 0x6f6   :  { %2499 = vmatprep.subr.mxu0 %v4039_v15 }
 0x6f7   :  { %2500 = vmatpush2.msra.mxu0 %v4040_v9 }
 0x6f8   :  { %2501 = vmatprep.subr.mxu0 %v4041_v24 }
 0x6f9   :  { %2502 = vmatpush2.msra.mxu0 %v4042_v6 }
 0x6fa   :  { %2503 = vmatprep.subr.mxu0 %v4043_v49  ;;  %v1558_v49 = vstv %s3628_s25 }
 0x6fb   :  { %2504 = vmatpush2.msra.mxu0 %v4044_v60 }
 0x6fc   :  { %2505 = vmatprep.subr.mxu0 %v4045_v47 }
 0x6fd   :  { %2506 = vmatpush2.msra.mxu0 %v4046_v28 }
 0x6fe   :  { %2507 = vmatprep.subr.mxu0 %v4047_v59 }
 0x6ff   :  { %2508 = vmatpush2.msra.mxu0 %v4048_v4  ;;  %v1547_v4 = vstv %s3626_s24 }
 0x700   :  { %2509 = vmatprep.subr.mxu0 %v4049_v36  ;;  %v1559_v36 = vsub.f32 %v1547_v4, %v1558_v49 }
 0x701   :  { %2510 = vmatpush2.msra.mxu0 %v4050_v44 }
 0x702   :  { %2511 = vmatprep.subr.mxu0 %v4051_v13 }
 0x703   :  { %2512 = vmatpush2.msra.mxu0 %v4052_v17 }
 0x704   :  { %2513 = vmatprep.subr.mxu0 %v4053_v35 }
 0x705   :  { %2514 = vmatpush2.msra.mxu0 %v4054_v31 }
 0x706   :  { %2515 = vmatprep.subr.mxu0 %v4055_v40 }
 0x707   :  { %2516 = vmatpush2.msra.mxu0 %v4056_v33  ;;  %v1535_v33 = vstv %s3624_s23 }
 0x708   :  { %3489 = vmatprep.subr.mxu0 %v4057_v53  ;;  %v1560_v53 = vmul.f32 0.2, %v1559_v36 }
 0x723   :  { %v1959_v42 = vpop.xlane.xlu1 %1958  ;;  %v1945_v46 = vpop.xlane.xlu0 %1944 }
 0x724   :  { %v1960_v45 = vrot.slane %v1959_v42, 4  ;;  %v1946_v55 = vrot.slane %v1945_v46, 4 }
 0x726   :  { %v1961_v50 = vmax.f32 %v1959_v42, %v1960_v45  ;;  %v1947_v51 = vadd.f32 %v1946_v55, %v1945_v46  ;;  %v1536_v55 = vmul.f32 0.00625, %v1535_v33 }
 0x727   :  { %v1972_v57 = vpop.xlane.xlu0 %1971 }
 0x728   :  { %v1962_v19 = vrot.slane %v1961_v50, 2  ;;  %v1948_v54 = vrot.slane %v1947_v51, 2  ;;  %v1973_v0 = vrot.slane %v1972_v57, 4 }
 0x72a   :  { %v1963_v22 = vmax.f32 %v1961_v50, %v1962_v19  ;;  %v1974_v63 = vmin.f32 %v1972_v57, %v1973_v0  ;;  %v1949_v1 = vadd.f32 %v1948_v54, %v1947_v51  ;;  %v1561_v51 = vsub.f32 %v1536_v55, %v1560_v53 }
 0x72b   :  { %v1748_v54 = vstv %s3638_s29  ;;  %v1761_v0 = vstv %s3640_s30 }
 0x72c   :  { %v1964_v18 = vrot.slane %v1963_v22, 1  ;;  %v1975_v37 = vrot.slane %v1974_v63, 2  ;;  %v1950_v20 = vrot.slane %v1949_v1, 1  ;;  %v6299_v57 = vsub.f32 %v5811_v39, %v1561_v51 }
 0x72e   :  { %v1965_v2 = vmax.f32 %v1963_v22, %v1964_v18  ;;  %v1951_v3 = vadd.f32 %v1950_v20, %v1949_v1  ;;  %v1976_v5 = vmin.f32 %v1974_v63, %v1975_v37  ;;  %v6302_v22 = vmul.f32 0.16666667, %v6299_v57 }
 0x72f   :  { %v1762_v63 = vsub.f32 %v1748_v54, %v1761_v0  ;;  %v1734_v18 = vstv %s3636_s28  ;;  %v3303_v54 = vsel %vm1716_vm5, 1.0, %v7127_v25 }
 0x730   :  { %3647 = vpush %v1951_v3  ;;  %v1977_v41 = vrot.slane %v1976_v5, 1  ;;  %v1604_v1 = vand.u32 2147483647, %v6302_v22  ;;  %v1735_v20 = vmul.f32 0.001953125, %v1734_v18 }
 0x731   :  { %3649 = vpush %v1965_v2  ;;  %v1763_v37 = vmul.f32 0.2, %v1762_v63 }
 0x732   :  { %v1978_v14 = vmin.f32 %v1976_v5, %v1977_v41  ;;  %v1605_v2 = vsub.f32 0.0, %v1604_v1 }
 0x733   :  { %v1764_v3 = vsub.f32 %v1735_v20, %v1763_v37  ;;  %v2311_v37 = vsub.f32 1.0, %v3303_v54  ;;  %v1572_v20 = vstv %s6292_s26  ;;  %v1791_v54 = vstv %s3644_s2 }
 0x734   :  { %3651 = vpush %v1978_v14  ;;  %v1606_v5 = vmul.f32 1.442695, %v1605_v2 }
 0x735   :  { %v6306_v41 = vsub.f32 %v5844_v32, %v1764_v3  ;;  %v6309_v14 = vsub.f32 %v5850_v29, %v1764_v3 }
 0x736   :  { %3788 = vpow2.f32 %v1606_v5 }
 0x73e   :  { %v2002_v48 = vpop.xlane.xlu0 %2001  ;;  %v1988_v61 = vpop.xlane.xlu1 %1987 }
 0x73f   :  { %v2003_v15 = vrot.slane %v2002_v48, 4  ;;  %v1989_v9 = vrot.slane %v1988_v61, 4 }
 0x741   :  { %v2004_v24 = vmax.f32 %v2002_v48, %v2003_v15  ;;  %v1990_v6 = vadd.f32 %v1989_v9, %v1988_v61  ;;  %v6312_v48 = vmul.f32 0.16666667, %v6306_v41  ;;  %v6315_v61 = vmul.f32 0.16666667, %v6309_v14 }
 0x742   :  { %v2015_v60 = vpop.xlane.xlu1 %2014 }
 0x743   :  { %v2005_v47 = vrot.slane %v2004_v24, 2  ;;  %v1991_v28 = vrot.slane %v1990_v6, 2  ;;  %v2016_v59 = vrot.slane %v2015_v60, 4  ;;  %v1818_v15 = vand.u32 2147483647, %v6312_v48  ;;  %v3789_v49 = vpop.eup %3788 }
 0x744   :  { %v1819_v9 = vand.u32 2147483647, %v6315_v61  ;;  %v1608_v4 = vadd.f32 1.0, %v3789_v49 }
 0x745   :  { %v2017_v44 = vmin.f32 %v2015_v60, %v2016_v59  ;;  %v1992_v13 = vadd.f32 %v1991_v28, %v1990_v6  ;;  %v2006_v17 = vmax.f32 %v2004_v24, %v2005_v47  ;;  %v1820_v24 = vsub.f32 0.0, %v1818_v15 }
 0x746   :  { %v1821_v6 = vsub.f32 0.0, %v1819_v9  ;;  %v6322_v59 = vsel %vm1522_vm9, 1.0, %v7127_v25 }
 0x747   :  { %v2018_v35 = vrot.slane %v2017_v44, 2  ;;  %v1993_v31 = vrot.slane %v1992_v13, 1  ;;  %v2007_v40 = vrot.slane %v2006_v17, 1  ;;  %v1822_v60 = vmul.f32 1.442695, %v1820_v24 }
 0x748   :  { %v1824_v47 = vmul.f32 1.442695, %v1821_v6  ;;  %v2309_v24 = vmul.f32 0.75, %v5844_v32  ;;  %v1573_v6 = vmul.f32 0.00625, %v1572_v20 }
 0x749   :  { %v1994_v42 = vadd.f32 %v1993_v31, %v1992_v13  ;;  %v2008_v45 = vmax.f32 %v2006_v17, %v2007_v40  ;;  %v2019_v46 = vmin.f32 %v2017_v44, %v2018_v35  ;;  %3790 = vpow2.f32 %v1822_v60  ;;  %v4058_v17 = vld [vmem:[#allocation11] ss:$0 sm:$0xff] }
 0x74a   :  { %v2128_v13 = vsub.f32 1.0, %v6322_v59  ;;  %3792 = vpow2.f32 %v1824_v47  ;;  %v2127_v31 = vmul.f32 0.75, %v5811_v39  ;;  %v1603_v47 = vmax.f32 %v6302_v22, 0.0 }
 0x74b   :  { %3653 = vpush %v1994_v42  ;;  %v2020_v50 = vrot.slane %v2019_v46, 1  ;;  %3794 = vlog2.f32 %v1608_v4 }
 0x74c   :  { %3655 = vpush %v2008_v45  ;;  %v2129_v33 = vmul.f32 %v2128_v13, %v2127_v31 }
 0x74d   :  { %v2021_v19 = vmin.f32 %v2019_v46, %v2020_v50  ;;  %v1595_v46 = vstv %s6296_s27  ;;  %v1584_v50 = vstv %s6294_s9 }
 0x74e   :  { %v1596_v0 = vsub.f32 %v1584_v50, %v1595_v46 }
 0x74f   :  { %3657 = vpush %v2021_v19 }
 0x750   :  { %v1597_v3 = vmul.f32 0.2, %v1596_v0 }
 0x756   :  { %v3791_v19 = vpop.eup %3790 }
 0x757   :  { %v3793_v1 = vpop.eup %3792  ;;  %v1826_v2 = vadd.f32 1.0, %v3791_v19 }
 0x758   :  { %v3795_v18 = vpop.eup %3794  ;;  %v1827_v5 = vadd.f32 1.0, %v3793_v1 }
 0x759   :  { %v1610_v49 = vmul.f32 0.6931472, %v3795_v18 }
 0x75b   :  { %v1611_v56 = vadd.f32 %v1610_v49, %v1603_v47  ;;  %v1613_v49 = vadd.f32 %v6322_v59, %v5803_v58  ;;  %v1817_v58 = vmax.f32 %v6315_v61, 0.0 }
 0x773   :  { %v3451_v28 = vpop.f32.mrf.mxu0 }
 0x775   :  { %v3452_v36 = vpop.f32.mrf.mxu0 }
 0x776   :  { %v3453_v44 = vadd.f32 %v3452_v36, %v3451_v28  ;;  %v2313_v28 = vmul.f32 %v2311_v37, %v2309_v24  ;;  %v2310_v36 = vmul.f32 0.75, %v5850_v29 }
 0x778   :  { %v2122_v35 = vadd.f32 %v4058_v17, %v3453_v44  ;;  %v1598_v44 = vsub.f32 %v1573_v6, %v1597_v3 }
 0x77a   :  { %v6327_v40 = vadd.f32 %v2125_v8, %v2122_v35  ;;  %v1600_v35 = vmul.f32 0.01, %v6299_v57 }
 0x77c   :  { %v6330_v53 = vadd.f32 %v2129_v33, %v6327_v40  ;;  %v1601_v31 = vadd.f32 %v1600_v35, %v1598_v44 }
 0x77e   :  { %v2154_v42 = vsel %vm906_vm12, %v6330_v53, -inf  ;;  %v2142_v45 = vsel %vm906_vm12, %v6330_v53, 0.0  ;;  %v2131_v11 = vsub.f32 %v5811_v39, %v6330_v53  ;;  %v2165_v51 = vsel %vm906_vm12, %v6330_v53, inf }
 0x77f   :  { %2155 = vmax.xlane.f32.xlu1 %v2154_v42  ;;  %2143 = vadd.xlane.f32.xlu0 %v2142_v45  ;;  %v3304_v39 = vsel %vm1717_vm4, 1.0, %v7127_v25  ;;  %v1804_v42 = vstv %s3646_s14 }
 0x780   :  { %v2132_v55 = vmul.f32 0.33333334, %v2131_v11  ;;  %v2312_v15 = vsub.f32 1.0, %v3304_v39  ;;  %v1612_v11 = vadd.f32 %v1611_v56, %v1601_v31  ;;  %v1805_v1 = vsub.f32 %v1791_v54, %v1804_v42 }
 0x781   :  { %v1811_v56 = vmul.f32 0.01, %v6309_v14 }
 0x782   :  { %v2133_v63 = vmul.f32 1.442695, %v2132_v55  ;;  %v2314_v17 = vmul.f32 %v2312_v15, %v2310_v36  ;;  %v2136_v39 = vmul.f32 0.5, %v1612_v11  ;;  %v1806_v15 = vmul.f32 0.2, %v1805_v1 }
 0x783   :  { %2166 = vmin.xlane.f32.xlu0 %v2165_v51 }
 0x784   :  { %3796 = vpow2.f32 %v2133_v63 }
 0x785   :  { %3798 = vlog2.f32 %v1826_v2  ;;  %v1777_v2 = vstv %s6356_s13 }
 0x786   :  { %3800 = vlog2.f32 %v1827_v5  ;;  %v1778_v24 = vmul.f32 0.001953125, %v1777_v2 }
 0x788   :  { %v2300_v9 = vpop.f32.mrf.mxu0 }
 0x789   :  { %v2301_v60 = vadd.f32 %v2300_v9, %v7157_v52 }
 0x78a   :  { %v2302_v4 = vpop.f32.mrf.mxu0 }
 0x78b   :  { %v6359_v7 = vadd.f32 %v2305_v26, %v2301_v60  ;;  %v2303_v13 = vadd.f32 %v2302_v4, %v7160_v23  ;;  %v1807_v4 = vsub.f32 %v1778_v24, %v1806_v15  ;;  %v4063_v24 = vld [vmem:[%s6986_s8 + $0x68] sm:$0xff] }
 0x78d   :  { %v6364_v22 = vadd.f32 %v2313_v28, %v6359_v7  ;;  %v6366_v8 = vadd.f32 %v2306_v16, %v2303_v13  ;;  %v1816_v28 = vmax.f32 %v6312_v48, 0.0  ;;  %v1813_v11 = vadd.f32 %v1811_v56, %v1807_v4  ;;  %v4076_v56 = vld [vmem:[%s6986_s8 + $0xb0] sm:$0xff] }
 0x78f   :  { %v6369_v33 = vadd.f32 %v2314_v17, %v6366_v8  ;;  %v2317_v45 = vsub.f32 %v5844_v32, %v6364_v22  ;;  %v2339_v46 = vsel %vm481_vm7, %v6364_v22, 0.0  ;;  %v2366_v16 = vsel %vm481_vm7, %v6364_v22, inf }
 0x790   :  { %v1810_v17 = vmul.f32 0.01, %v6306_v41  ;;  %v2353_v31 = vsel %vm481_vm7, %v6364_v22, -inf }
 0x791   :  { %v2340_v57 = vsel %vm481_vm7, %v6369_v33, 0.0  ;;  %v2318_v55 = vsub.f32 %v5850_v29, %v6369_v33  ;;  %v3797_v50 = vpop.eup %3796  ;;  %v2319_v19 = vmul.f32 0.33333334, %v2317_v45  ;;  %v2367_v26 = vsel %vm481_vm7, %v6369_v33, inf }
 0x792   :  { %v2341_v51 = vadd.f32 %v2340_v57, %v2339_v46  ;;  %v3313_v0 = vadd.f32 -1.0, %v3797_v50  ;;  %v3799_v20 = vpop.eup %3798  ;;  %v2368_v36 = vmin.f32 %v2366_v16, %v2367_v26  ;;  %v2354_v13 = vsel %vm481_vm7, %v6369_v33, -inf  ;;  %v4062_v26 = vld [vmem:[%s6986_s8 + $0xe8] sm:$0xff]  ;;  %v4067_v16 = vld [vmem:[%s6986_s8 + $0x58] sm:$0xff] }
 0x793   :  { %v2320_v63 = vmul.f32 0.33333334, %v2318_v55  ;;  %v2321_v32 = vmul.f32 1.442695, %v2319_v19  ;;  %v3801_v5 = vpop.eup %3800  ;;  %v1829_v6 = vmul.f32 0.6931472, %v3799_v20  ;;  %v1812_v42 = vadd.f32 %v1810_v17, %v1807_v4 }
 0x794   :  { %2342 = vadd.xlane.f32.xlu0 %v2341_v51  ;;  %v2137_v18 = vmul.f32 0.5, %v3313_v0  ;;  %v1831_v60 = vmul.f32 0.6931472, %v3801_v5  ;;  %v2355_v45 = vmax.f32 %v2353_v31, %v2354_v13  ;;  %v4059_v5 = vld [vmem:[%s6986_s8 + $0x78] sm:$0xff]  ;;  %v4069_v4 = vld [vmem:[%s6986_s8 + $0x50] sm:$0xff]  ;;  %v4073_v13 = vld [vmem:[%s6986_s8 + $0x40] sm:$0xff] }
 0x795   :  { %v2323_v37 = vmul.f32 1.442695, %v2320_v63  ;;  %3802 = vpow2.f32 %v2321_v32  ;;  %v1832_v35 = vadd.f32 %v1829_v6, %v1816_v28  ;;  %v4064_v6 = vld [vmem:[%s6986_s8 + $0xe0] sm:$0xff]  ;;  %v4068_v28 = vld [vmem:[%s6986_s8 + $0xd0] sm:$0xff]  ;;  %v4074_v17 = vld [vmem:[%s6986_s8 + $0xb8] sm:$0xff] }
 0x796   :  { %v2138_v3 = vadd.f32 %v2137_v18, %v2136_v39  ;;  %v1833_v48 = vadd.f32 %v1831_v60, %v1817_v58  ;;  %v4066_v60 = vld [vmem:[%s6986_s8 + $0xd8] sm:$0xff]  ;;  %v4071_v58 = vld [vmem:[%s6986_s8 + $0x48] sm:$0xff] }
 0x797   :  { %3804 = vpow2.f32 %v2323_v37  ;;  %v1834_v61 = vadd.f32 %v1832_v35, %v1812_v42  ;;  %v4075_v35 = vld [vmem:[%s6986_s8 + $0x38] sm:$0xff]  ;;  %v4078_v31 = vld [vmem:[%s6986_s8 + $0xa8] sm:$0xff] }
 0x798   :  { %v2191_v29 = vsel %vm906_vm12, %v2138_v3, -inf  ;;  %v2179_v9 = vsel %vm906_vm12, %v2138_v3, 0.0  ;;  %vm2139_vm10 = vcmp.gt.f32.partialorder %v6330_v53, %v2138_v3  ;;  %v2202_v59 = vsel %vm906_vm12, %v2138_v3, inf  ;;  %v4079_v42 = vld [vmem:[%s6986_s8 + $0x28] sm:$0xff] }
 0x799   :  { %2192 = vmax.xlane.f32.xlu0 %v2191_v29  ;;  %2180 = vadd.xlane.f32.xlu1 %v2179_v9  ;;  %v6390_v47 = vsel %vm2139_vm10, 1.0, %v7127_v25  ;;  %v1835_v57 = vadd.f32 %v1833_v48, %v1813_v11  ;;  %v2327_v41 = vmul.f32 0.5, %v1834_v61  ;;  %v4060_v29 = vld [vmem:[%s6986_s8 + $0xf0] sm:$0xff]  ;;  %v4081_v11 = vld [vmem:[%s6986_s8 + $0x20] sm:$0xff]  ;;  %v4082_v61 = vld [vmem:[%s6986_s8 + $0x98] sm:$0xff] }
 0x79a   :  { %v6394_v44 = vadd.f32 %v6390_v47, %v1613_v49  ;;  %v4061_v9 = vld [vmem:[%s6986_s8 + $0x70] sm:$0xff]  ;;  %v4065_v49 = vld [vmem:[%s6986_s8 + $0x60] sm:$0xff] }
 0x79b   :  { %v2328_v54 = vmul.f32 0.5, %v1835_v57  ;;  %v4077_v48 = vld [vmem:[%s6986_s8 + $0x30] sm:$0xff] }
 0x79c   :  { %v4084_v57 = vld [vmem:[%s6986_s8 + $0x90] sm:$0xff] }
 0x79d   :  { %2369 = vmin.xlane.f32.xlu0 %v2368_v36  ;;  %2203 = vmin.xlane.f32.xlu1 %v2202_v59  ;;  %v4070_v36 = vld [vmem:[%s6986_s8 + $0xc8] sm:$0xff]  ;;  %v4072_v59 = vld [vmem:[%s6986_s8 + $0xc0] sm:$0xff] }
 0x7a1   :  { %2356 = vmax.xlane.f32.xlu1 %v2355_v45  ;;  %v4080_v45 = vld [vmem:[%s6986_s8 + $0xa0] sm:$0xff] }
 0x7a2   :  { %v3803_v46 = vpop.eup %3802 }
 0x7a3   :  { %v3316_v50 = vadd.f32 -1.0, %v3803_v46  ;;  %v4083_v46 = vld [vmem:[%s6986_s8 + $0x18] sm:$0xff] }
 0x7a4   :  { %v3805_v55 = vpop.eup %3804 }
 0x7a5   :  { %v3317_v51 = vadd.f32 -1.0, %v3805_v55  ;;  %v2329_v19 = vmul.f32 0.5, %v3316_v50  ;;  %v4085_v55 = vld [vmem:[%s6986_s8 + $0x10] sm:$0xff]  ;;  %v4086_v50 = vld [vmem:[%s6986_s8 + $0x88] sm:$0xff] }
 0x7a7   :  { %v2330_v0 = vmul.f32 0.5, %v3317_v51  ;;  %v6404_v63 = vadd.f32 %v2329_v19, %v2327_v41  ;;  %v4087_v51 = vld [vmem:[%s6986_s8 + $0x8] sm:$0xff]  ;;  %v4088_v41 = vld [vmem:[%s6986_s8 + $0x80] sm:$0xff] }
 0x7a8   :  { %v4089_v19 = vld [vmem:[%s6986_s8] sm:$0xff]  ;;  %s6526_s8 = spop %3647 }
 0x7a9   :  { %v6406_v14 = vadd.f32 %v2330_v0, %v2328_v54  ;;  %v2396_v1 = vsel %vm481_vm7, %v6404_v63, -inf  ;;  %v2382_v39 = vsel %vm481_vm7, %v6404_v63, 0.0  ;;  %vm2333_vm13 = vcmp.gt.f32.partialorder %v6364_v22, %v6404_v63  ;;  %s3650_s11 = spop %3649 }
 0x7aa   :  { %v2409_v3 = vsel %vm481_vm7, %v6404_v63, inf  ;;  %s3652_s20 = spop %3651  ;;  %v2922_v63 = vmul.f32 0.5, %v6359_v7 }
 0x7ab   :  { %vm2334_vm11 = vcmp.gt.f32.partialorder %v6369_v33, %v6406_v14  ;;  %v2397_v32 = vsel %vm481_vm7, %v6406_v14, -inf  ;;  %v2383_v18 = vsel %vm481_vm7, %v6406_v14, 0.0  ;;  %v2410_v2 = vsel %vm481_vm7, %v6406_v14, inf  ;;  %s6564_s21 = spop %3653 }
 0x7ac   :  { %3320 = vmatprep.mubr.msk.f32.mxu0 %vm2334_vm11, %v7151_v12  ;;  %v2398_v37 = vmax.f32 %v2396_v1, %v2397_v32  ;;  %v2384_v20 = vadd.f32 %v2383_v18, %v2382_v39  ;;  %v2411_v15 = vmin.f32 %v2409_v3, %v2410_v2  ;;  %s3656_s0 = spop %3655  ;;  %v2923_v14 = vmul.f32 0.5, %v6366_v8 }
 0x7ad   :  { %3321 = vmatmul.mubr.msk.f32.vlgmr.msra.gmra.mxu0 %vm2333_vm13, %v7151_v12  ;;  %s3658_s1 = spop %3657 }
 0x7ae   :  { %2399 = vmax.xlane.f32.xlu0 %v2398_v37  ;;  %2385 = vadd.xlane.f32.xlu1 %v2384_v20 }
 0x7af   :  { %3490 = vmatpush3.msra.mxu0 %v4059_v5 }
 0x7b0   :  { %3491 = vmatprep.subr.mxu0 %v4060_v29 }
 0x7b1   :  { %3492 = vmatpush3.msra.mxu0 %v4061_v9 }
 0x7b2   :  { %2412 = vmin.xlane.f32.xlu1 %v2411_v15  ;;  %3493 = vmatprep.subr.mxu0 %v4062_v26 }
 0x7b3   :  { %3494 = vmatpush3.msra.mxu0 %v4063_v24 }
 0x7b4   :  { %3495 = vmatprep.subr.mxu0 %v4064_v6 }
 0x7b5   :  { %3496 = vmatpush3.msra.mxu0 %v4065_v49 }
 0x7b6   :  { %3497 = vmatprep.subr.mxu0 %v4066_v60 }
 0x7b7   :  { %3498 = vmatpush3.msra.mxu0 %v4067_v16 }
 0x7b8   :  { %3499 = vmatprep.subr.mxu0 %v4068_v28 }
 0x7b9   :  { %3500 = vmatpush3.msra.mxu0 %v4069_v4 }
 0x7ba   :  { %3501 = vmatprep.subr.mxu0 %v4070_v36 }
 0x7bb   :  { %3502 = vmatpush3.msra.mxu0 %v4071_v58 }
 0x7bc   :  { %3503 = vmatprep.subr.mxu0 %v4072_v59 }
 0x7bd   :  { %3504 = vmatpush3.msra.mxu0 %v4073_v13 }
 0x7be   :  { %3505 = vmatprep.subr.mxu0 %v4074_v17 }
 0x7bf   :  { %3506 = vmatpush3.msra.mxu0 %v4075_v35 }
 0x7c0   :  { %3507 = vmatprep.subr.mxu0 %v4076_v56 }
 0x7c1   :  { %3508 = vmatpush3.msra.mxu0 %v4077_v48 }
 0x7c2   :  { %3509 = vmatprep.subr.mxu0 %v4078_v31 }
 0x7c3   :  { %3510 = vmatpush3.msra.mxu0 %v4079_v42 }
 0x7c4   :  { %3511 = vmatprep.subr.mxu0 %v4080_v45 }
 0x7c5   :  { %3512 = vmatpush3.msra.mxu0 %v4081_v11 }
 0x7c6   :  { %3513 = vmatprep.subr.mxu0 %v4082_v61 }
 0x7c7   :  { %3514 = vmatpush3.msra.mxu0 %v4083_v46 }
 0x7c8   :  { %3515 = vmatprep.subr.mxu0 %v4084_v57 }
 0x7c9   :  { %3516 = vmatpush3.msra.mxu0 %v4085_v55 }
 0x7ca   :  { %3517 = vmatprep.subr.mxu0 %v4086_v50 }
 0x7cb   :  { %3518 = vmatpush3.msra.mxu0 %v4087_v51 }
 0x7cc   :  { %3519 = vmatprep.subr.mxu0 %v4088_v41 }
 0x7cd   :  { %3520 = vmatpush3.msra.mxu0 %v4089_v19 }
 0x7ce   :  { %3540 = vmatprep.subr.mxu0 %v7127_v25 }
 0x808   :  { %v2156_v54 = vpop.xlane.xlu1 %2155  ;;  %v2144_v0 = vpop.xlane.xlu0 %2143 }
 0x809   :  { %v2157_v1 = vrot.slane %v2156_v54, 4  ;;  %v2145_v32 = vrot.slane %v2144_v0, 4 }
 0x80b   :  { %v2158_v39 = vmax.f32 %v2156_v54, %v2157_v1  ;;  %v2146_v18 = vadd.f32 %v2145_v32, %v2144_v0 }
 0x80c   :  { %v2167_v37 = vpop.xlane.xlu0 %2166 }
 0x80d   :  { %v2159_v20 = vrot.slane %v2158_v39, 2  ;;  %v2147_v2 = vrot.slane %v2146_v18, 2  ;;  %v2168_v3 = vrot.slane %v2167_v37, 4 }
 0x80f   :  { %v2169_v5 = vmin.f32 %v2167_v37, %v2168_v3  ;;  %v2148_v15 = vadd.f32 %v2147_v2, %v2146_v18  ;;  %v2160_v29 = vmax.f32 %v2158_v39, %v2159_v20 }
 0x811   :  { %v2170_v9 = vrot.slane %v2169_v5, 2  ;;  %v2149_v26 = vrot.slane %v2148_v15, 1  ;;  %v2161_v24 = vrot.slane %v2160_v29, 1 }
 0x813   :  { %v2150_v6 = vadd.f32 %v2149_v26, %v2148_v15  ;;  %v2162_v49 = vmax.f32 %v2160_v29, %v2161_v24  ;;  %v2171_v60 = vmin.f32 %v2169_v5, %v2170_v9 }
 0x815   :  { %3659 = vpush %v2150_v6  ;;  %v2172_v16 = vrot.slane %v2171_v60, 1 }
 0x816   :  { %3661 = vpush %v2162_v49 }
 0x817   :  { %v2173_v28 = vmin.f32 %v2171_v60, %v2172_v16 }
 0x819   :  { %3663 = vpush %v2173_v28 }
 0x81d   :  { %v2343_v4 = vpop.xlane.xlu0 %2342 }
 0x81e   :  { %v2344_v36 = vrot.slane %v2343_v4, 4 }
 0x820   :  { %v2345_v58 = vadd.f32 %v2344_v36, %v2343_v4 }
 0x822   :  { %v2193_v59 = vpop.xlane.xlu0 %2192  ;;  %v2181_v13 = vpop.xlane.xlu1 %2180  ;;  %v2346_v31 = vrot.slane %v2345_v58, 2 }
 0x823   :  { %v2194_v17 = vrot.slane %v2193_v59, 4  ;;  %v2182_v35 = vrot.slane %v2181_v13, 4 }
 0x824   :  { %v2347_v54 = vadd.f32 %v2346_v31, %v2345_v58 }
 0x825   :  { %v2195_v56 = vmax.f32 %v2193_v59, %v2194_v17  ;;  %v2183_v48 = vadd.f32 %v2182_v35, %v2181_v13 }
 0x826   :  { %v2370_v42 = vpop.xlane.xlu0 %2369  ;;  %v2204_v45 = vpop.xlane.xlu1 %2203  ;;  %v2348_v5 = vrot.slane %v2347_v54, 1 }
 0x827   :  { %v2196_v11 = vrot.slane %v2195_v56, 2  ;;  %v2184_v61 = vrot.slane %v2183_v48, 2  ;;  %v2371_v46 = vrot.slane %v2370_v42, 4  ;;  %v2205_v57 = vrot.slane %v2204_v45, 4 }
 0x828   :  { %v2349_v6 = vadd.f32 %v2348_v5, %v2347_v54 }
 0x829   :  { %v2372_v55 = vmin.f32 %v2370_v42, %v2371_v46  ;;  %v2206_v50 = vmin.f32 %v2204_v45, %v2205_v57  ;;  %v2185_v51 = vadd.f32 %v2184_v61, %v2183_v48  ;;  %v2197_v41 = vmax.f32 %v2195_v56, %v2196_v11 }
 0x82a   :  { %v2357_v19 = vpop.xlane.xlu1 %2356  ;;  %v1980_v56 = vstv %s3652_s20  ;;  %v1967_v45 = vstv %s3650_s11 }
 0x82b   :  { %v2373_v0 = vrot.slane %v2372_v55, 2  ;;  %v2207_v1 = vrot.slane %v2206_v50, 2  ;;  %v2358_v32 = vrot.slane %v2357_v19, 4  ;;  %v2186_v39 = vrot.slane %v2185_v51, 1 }
 0x82c   :  { %v2198_v18 = vrot.slane %v2197_v41, 1  ;;  %v1981_v57 = vsub.f32 %v1967_v45, %v1980_v56 }
 0x82d   :  { %v2359_v37 = vmax.f32 %v2357_v19, %v2358_v32  ;;  %v2187_v20 = vadd.f32 %v2186_v39, %v2185_v51  ;;  %v2208_v2 = vmin.f32 %v2206_v50, %v2207_v1  ;;  %v2374_v15 = vmin.f32 %v2372_v55, %v2373_v0 }
 0x82e   :  { %v2199_v3 = vmax.f32 %v2197_v41, %v2198_v18  ;;  %v1953_v41 = vstv %s6526_s8  ;;  %v1982_v1 = vmul.f32 0.2, %v1981_v57 }
 0x82f   :  { %v2360_v29 = vrot.slane %v2359_v37, 2  ;;  %3665 = vpush %v2187_v20  ;;  %v2209_v9 = vrot.slane %v2208_v2, 1  ;;  %v2375_v49 = vrot.slane %v2374_v15, 1  ;;  %v1954_v39 = vmul.f32 0.001953125, %v1953_v41 }
 0x830   :  { %3667 = vpush %v2199_v3 }
 0x831   :  { %v2210_v26 = vmin.f32 %v2208_v2, %v2209_v9  ;;  %v2361_v24 = vmax.f32 %v2359_v37, %v2360_v29  ;;  %v2376_v36 = vmin.f32 %v2374_v15, %v2375_v49  ;;  %v1983_v37 = vsub.f32 %v1954_v39, %v1982_v1 }
 0x832   :  { %v3309_v49 = vsel %vm1935_vm8, 1.0, %v7127_v25 }
 0x833   :  { %3669 = vpush %v2210_v26  ;;  %v2362_v60 = vrot.slane %v2361_v24, 1  ;;  %v6530_v20 = vsub.f32 %v6041_v27, %v1983_v37  ;;  %v6533_v2 = vsub.f32 %v6036_v21, %v1983_v37 }
 0x834   :  { %3671 = vpush %v2349_v6 }
 0x835   :  { %v2363_v16 = vmax.f32 %v2361_v24, %v2362_v60  ;;  %v6536_v3 = vmul.f32 0.16666667, %v6530_v20  ;;  %v6539_v5 = vmul.f32 0.16666667, %v6533_v2  ;;  %v3310_v60 = vsel %vm1936_vm6, 1.0, %v7127_v25 }
 0x836   :  { %vm3242_vm6 = vcmask 58368  }
 0x837   :  { %v2400_v28 = vpop.xlane.xlu0 %2399  ;;  %v2386_v4 = vpop.xlane.xlu1 %2385  ;;  %3673 = vpush %v2363_v16  ;;  %v2038_v15 = vand.u32 2147483647, %v6536_v3  ;;  %v2037_v29 = vand.u32 2147483647, %v6539_v5 }
 0x838   :  { %v2401_v58 = vrot.slane %v2400_v28, 4  ;;  %v2387_v59 = vrot.slane %v2386_v4, 4  ;;  %3675 = vpush %v2376_v36 }
 0x839   :  { %v2040_v9 = vsub.f32 0.0, %v2038_v15  ;;  %v2039_v26 = vsub.f32 0.0, %v2037_v29 }
 0x83a   :  { %v2402_v13 = vmax.f32 %v2400_v28, %v2401_v58  ;;  %v2388_v17 = vadd.f32 %v2387_v59, %v2386_v4  ;;  %v2530_v28 = vsub.f32 1.0, %v3309_v49  ;;  %v2531_v58 = vsub.f32 1.0, %v3310_v60 }
 0x83b   :  { %v2413_v35 = vpop.xlane.xlu1 %2412  ;;  %v2043_v24 = vmul.f32 1.442695, %v2040_v9  ;;  %v2041_v6 = vmul.f32 1.442695, %v2039_v26  ;;  %v1996_v26 = vstv %s6564_s21 }
 0x83c   :  { %v2403_v48 = vrot.slane %v2402_v13, 2  ;;  %v2389_v31 = vrot.slane %v2388_v17, 2  ;;  %v2414_v42 = vrot.slane %v2413_v35, 4  ;;  %v1997_v49 = vmul.f32 0.001953125, %v1996_v26  ;;  %v4098_v26 = vld [vmem:[#allocation7 + $0x50] sm:$0xff] }
 0x83d   :  { %3806 = vpow2.f32 %v2043_v24 }
 0x83e   :  { %v2415_v11 = vmin.f32 %v2413_v35, %v2414_v42  ;;  %v2390_v61 = vadd.f32 %v2389_v31, %v2388_v17  ;;  %v2404_v46 = vmax.f32 %v2402_v13, %v2403_v48  ;;  %3808 = vpow2.f32 %v2041_v6 }
 0x83f   :  { %v2524_v13 = vmul.f32 0.5, %v6032_v62  ;;  %v2528_v17 = vmul.f32 0.75, %v6036_v21  ;;  %v2529_v48 = vmul.f32 0.75, %v6041_v27 }
 0x840   :  { %v2416_v55 = vrot.slane %v2415_v11, 2  ;;  %v2391_v50 = vrot.slane %v2390_v61, 1  ;;  %v2405_v51 = vrot.slane %v2404_v46, 1 }
 0x841   :  { %v2532_v42 = vmul.f32 %v2530_v28, %v2528_v17  ;;  %v2533_v62 = vmul.f32 %v2531_v58, %v2529_v48  ;;  %v2036_v28 = vmax.f32 %v6536_v3, 0.0  ;;  %v2030_v58 = vmul.f32 0.01, %v6530_v20 }
 0x842   :  { %v2392_v19 = vadd.f32 %v2391_v50, %v2390_v61  ;;  %v2406_v54 = vmax.f32 %v2404_v46, %v2405_v51  ;;  %v2417_v0 = vmin.f32 %v2415_v11, %v2416_v55 }
 0x844   :  { %3677 = vpush %v2392_v19  ;;  %v2418_v32 = vrot.slane %v2417_v0, 1 }
 0x845   :  { %3679 = vpush %v2406_v54 }
 0x846   :  { %v2419_v18 = vmin.f32 %v2417_v0, %v2418_v32  ;;  %v2023_v0 = vstv %s3658_s1 }
 0x848   :  { %3681 = vpush %v2419_v18  ;;  %v2010_v18 = vstv %s3656_s0 }
 0x849   :  { %v2024_v15 = vsub.f32 %v2010_v18, %v2023_v0  ;;  %v4090_v0 = vld [vmem:[#allocation7 + $0x90] sm:$0xff]  ;;  %v4092_v18 = vld [vmem:[#allocation7 + $0x80] sm:$0xff] }
 0x84a   :  { %v3807_v16 = vpop.eup %3806 }
 0x84b   :  { %v3809_v4 = vpop.eup %3808  ;;  %v2046_v35 = vadd.f32 1.0, %v3807_v16  ;;  %v2025_v6 = vmul.f32 0.2, %v2024_v15  ;;  %v4093_v15 = vld [vmem:[#allocation7 + $0x78] sm:$0xff] }
 0x84c   :  { %v2045_v31 = vadd.f32 1.0, %v3809_v4 }
 0x84d   :  { %3810 = vlog2.f32 %v2046_v35  ;;  %v2026_v4 = vsub.f32 %v1997_v49, %v2025_v6  ;;  %v4100_v6 = vld [vmem:[#allocation7 + $0x40] sm:$0xff]  ;;  %v4101_v49 = vld [vmem:[#allocation7 + $0x38] sm:$0xff] }
 0x84e   :  { %3812 = vlog2.f32 %v2045_v31 }
 0x84f   :  { %v2032_v35 = vadd.f32 %v2030_v58, %v2026_v4  ;;  %v4106_v58 = vld [vmem:[#allocation7 + $0x10] sm:$0xff] }
 0x86d   :  { %v2519_v36 = vpop.f32.mrf.mxu0 }
 0x86e   :  { %v2520_v59 = vadd.f32 %v2519_v36, %v7152_v43  ;;  %v2035_v36 = vmax.f32 %v6539_v5, 0.0 }
 0x86f   :  { %v2521_v56 = vpop.f32.mrf.mxu0 }
 0x870   :  { %v6556_v30 = vadd.f32 %v2524_v13, %v2520_v59  ;;  %v2522_v45 = vadd.f32 %v2521_v56, %v7153_v38  ;;  %v2029_v13 = vmul.f32 0.01, %v6533_v2 }
 0x872   :  { %v6560_v11 = vadd.f32 %v2532_v42, %v6556_v30  ;;  %v6562_v61 = vadd.f32 %v2525_v34, %v2522_v45  ;;  %v2031_v56 = vadd.f32 %v2029_v13, %v2026_v4  ;;  %v4105_v4 = vld [vmem:[#allocation7 + $0x18] sm:$0xff]  ;;  %v4108_v13 = vld [vmem:[#allocation7] sm:$0xff] }
 0x874   :  { %v6567_v10 = vadd.f32 %v2533_v62, %v6562_v61  ;;  %v2572_v46 = vsel %vm481_vm7, %v6560_v11, -inf  ;;  %v2558_v51 = vsel %vm481_vm7, %v6560_v11, 0.0  ;;  %v2536_v54 = vsub.f32 %v6036_v21, %v6560_v11  ;;  %v3811_v21 = vpop.eup %3810 }
 0x875   :  { %v2585_v37 = vsel %vm481_vm7, %v6560_v11, inf  ;;  %v3813_v24 = vpop.eup %3812  ;;  %v2050_v60 = vmul.f32 0.6931472, %v3811_v21  ;;  %v4097_v21 = vld [vmem:[#allocation7 + $0x58] sm:$0xff] }
 0x876   :  { %v2573_v57 = vsel %vm481_vm7, %v6567_v10, -inf  ;;  %v2559_v55 = vsel %vm481_vm7, %v6567_v10, 0.0  ;;  %v2537_v19 = vsub.f32 %v6041_v27, %v6567_v10  ;;  %v2586_v1 = vsel %vm481_vm7, %v6567_v10, inf }
 0x877   :  { %v2574_v50 = vmax.f32 %v2572_v46, %v2573_v57  ;;  %v2560_v41 = vadd.f32 %v2559_v55, %v2558_v51  ;;  %v2538_v39 = vmul.f32 0.33333334, %v2536_v54  ;;  %v2587_v29 = vmin.f32 %v2585_v37, %v2586_v1 }
 0x878   :  { %v2539_v32 = vmul.f32 0.33333334, %v2537_v19  ;;  %v2048_v16 = vmul.f32 0.6931472, %v3813_v24  ;;  %v2052_v59 = vadd.f32 %v2050_v60, %v2036_v28  ;;  %v4099_v24 = vld [vmem:[#allocation7 + $0x48] sm:$0xff]  ;;  %v4102_v60 = vld [vmem:[#allocation7 + $0x30] sm:$0xff] }
 0x879   :  { %2575 = vmax.xlane.f32.xlu1 %v2574_v50  ;;  %2561 = vadd.xlane.f32.xlu0 %v2560_v41  ;;  %v2540_v27 = vmul.f32 1.442695, %v2538_v39  ;;  %v4104_v28 = vld [vmem:[#allocation7 + $0x20] sm:$0xff] }
 0x87a   :  { %v2542_v9 = vmul.f32 1.442695, %v2539_v32  ;;  %v2051_v17 = vadd.f32 %v2048_v16, %v2035_v36  ;;  %v2054_v34 = vadd.f32 %v2052_v59, %v2032_v35  ;;  %v4091_v32 = vld [vmem:[#allocation7 + $0x88] sm:$0xff]  ;;  %v7162_v36 = vld [vmem:[#allocation45_spill] sm:$0xff] }
 0x87b   :  { %v4103_v16 = vld [vmem:[#allocation7 + $0x28] sm:$0xff]  ;;  %v4109_v35 = vld [vmem:[%s6984_s6 + $0xf8] sm:$0xff] }
 0x87c   :  { %3814 = vpow2.f32 %v2542_v9  ;;  %v2053_v31 = vadd.f32 %v2051_v17, %v2031_v56  ;;  %v2547_v46 = vmul.f32 0.5, %v2054_v34  ;;  %v4095_v9 = vld [vmem:[#allocation7 + $0x68] sm:$0xff] }
 0x87d   :  { %2588 = vmin.xlane.f32.xlu0 %v2587_v29  ;;  %3816 = vpow2.f32 %v2540_v27  ;;  %v4094_v29 = vld [vmem:[#allocation7 + $0x70] sm:$0xff]  ;;  %v4096_v27 = vld [vmem:[#allocation7 + $0x60] sm:$0xff]  ;;  %v4107_v59 = vld [vmem:[#allocation7 + $0x8] sm:$0xff] }
 0x87e   :  { %v2546_v3 = vmul.f32 0.5, %v2053_v31  ;;  %v4110_v56 = vld [vmem:[%s6984_s6 + $0xf0] sm:$0xff]  ;;  %v4111_v34 = vld [vmem:[%s6984_s6 + $0xe8] sm:$0xff]  ;;  %v4113_v31 = vld [vmem:[%s6984_s6 + $0xd8] sm:$0xff] }
 0x889   :  { %v3815_v48 = vpop.eup %3814 }
 0x88a   :  { %v3817_v42 = vpop.eup %3816  ;;  %v3323_v45 = vadd.f32 -1.0, %v3815_v48  ;;  %v4112_v48 = vld [vmem:[%s6984_s6 + $0xe0] sm:$0xff] }
 0x88b   :  { %v3322_v62 = vadd.f32 -1.0, %v3817_v42  ;;  %v4114_v42 = vld [vmem:[%s6984_s6 + $0xd0] sm:$0xff] }
 0x88c   :  { %v2549_v57 = vmul.f32 0.5, %v3323_v45  ;;  %v4115_v45 = vld [vmem:[%s6984_s6 + $0xc8] sm:$0xff] }
 0x88d   :  { %v2548_v55 = vmul.f32 0.5, %v3322_v62  ;;  %v4116_v62 = vld [vmem:[%s6984_s6 + $0xc0] sm:$0xff] }
 0x88e   :  { %v6590_v50 = vadd.f32 %v2549_v57, %v2547_v46  ;;  %v4117_v46 = vld [vmem:[%s6984_s6 + $0xb8] sm:$0xff]  ;;  %v4118_v57 = vld [vmem:[%s6984_s6 + $0xb0] sm:$0xff] }
 0x88f   :  { %v6592_v5 = vadd.f32 %v2548_v55, %v2546_v3  ;;  %v4119_v3 = vld [vmem:[%s6984_s6 + $0xa8] sm:$0xff]  ;;  %v4120_v55 = vld [vmem:[%s6984_s6 + $0xa0] sm:$0xff] }
 0x890   :  { %vm2553_vm14 = vcmp.gt.f32.partialorder %v6567_v10, %v6590_v50  ;;  %v2616_v20 = vsel %vm481_vm7, %v6590_v50, -inf  ;;  %v2602_v2 = vsel %vm481_vm7, %v6590_v50, 0.0  ;;  %v2629_v1 = vsel %vm481_vm7, %v6590_v50, inf }
 0x891   :  { %3326 = vmatprep.mubr.msk.f32.mxu1 %vm2553_vm14, %v7151_v12  ;;  %vm2552_vm15 = vcmp.gt.f32.partialorder %v6560_v11, %v6592_v5  ;;  %v2615_v51 = vsel %vm481_vm7, %v6592_v5, -inf  ;;  %v2601_v41 = vsel %vm481_vm7, %v6592_v5, 0.0  ;;  %v2628_v39 = vsel %vm481_vm7, %v6592_v5, inf }
 0x892   :  { %3327 = vmatmul.mubr.msk.f32.vlgmr.msra.gmra.mxu1 %vm2552_vm15, %v7151_v12  ;;  %v2617_v19 = vmax.f32 %v2615_v51, %v2616_v20  ;;  %v2603_v54 = vadd.f32 %v2602_v2, %v2601_v41  ;;  %v2630_v37 = vmin.f32 %v2628_v39, %v2629_v1  ;;  %vm248_vm7 = vcmp.gt.f32.partialorder %v7162_v36, 0.999  ;;  %v4121_v20 = vld [vmem:[%s6984_s6 + $0x98] sm:$0xff]  ;;  %v4122_v2 = vld [vmem:[%s6984_s6 + $0x90] sm:$0xff]  ;;  %v4123_v51 = vld [vmem:[%s6984_s6 + $0x88] sm:$0xff] }
 0x893   :  { %2864 = vmatpush1.msra.mxu1 %v4090_v0  ;;  %2915 = vmatprep.mubr.f32.mxu1 %v7127_v25  ;;  %v3268_v17 = vsel %vm248_vm7, 1.0, %v7127_v25  ;;  %v4124_v41 = vld [vmem:[%s6984_s6 + $0x80] sm:$0xff]  ;;  %v4127_v0 = vld [vmem:[%s6984_s6 + $0x68] sm:$0xff]  ;;  %v4130_v39 = vld [vmem:[%s6984_s6 + $0x50] sm:$0xff]  ;;  %v3028_v5 = vmul.f32 0.5, %v6562_v61 }
 0x894   :  { %2618 = vmax.xlane.f32.xlu0 %v2617_v19  ;;  %2604 = vadd.xlane.f32.xlu1 %v2603_v54  ;;  %v4125_v19 = vld [vmem:[%s6984_s6 + $0x78] sm:$0xff]  ;;  %v4126_v54 = vld [vmem:[%s6984_s6 + $0x70] sm:$0xff]  ;;  %v4128_v1 = vld [vmem:[%s6984_s6 + $0x60] sm:$0xff] }
 0x895   :  { %2865 = vmatprep.subr.mxu1 %v4091_v32  ;;  %v4129_v32 = vld [vmem:[%s6984_s6 + $0x58] sm:$0xff]  ;;  %v4146_v36 = vld [vmem:[%s6984_s6 + $0x1d0] sm:$0xff] }
 0x896   :  { %2866 = vmatpush1.msra.mxu1 %v4092_v18  ;;  %v4131_v18 = vld [vmem:[%s6984_s6 + $0x48] sm:$0xff] }
 0x897   :  { %2867 = vmatprep.subr.mxu1 %v4093_v15  ;;  %v4133_v15 = vld [vmem:[%s6984_s6 + $0x38] sm:$0xff] }
 0x898   :  { %2868 = vmatpush1.msra.mxu1 %v4094_v29  ;;  %2631 = vmin.xlane.f32.xlu1 %v2630_v37  ;;  %v4132_v37 = vld [vmem:[%s6984_s6 + $0x40] sm:$0xff]  ;;  %v4134_v29 = vld [vmem:[%s6984_s6 + $0x30] sm:$0xff] }
 0x899   :  { %2869 = vmatprep.subr.mxu1 %v4095_v9  ;;  %v4135_v9 = vld [vmem:[%s6984_s6 + $0x28] sm:$0xff] }
 0x89a   :  { %2870 = vmatpush1.msra.mxu1 %v4096_v27  ;;  %v4136_v27 = vld [vmem:[%s6984_s6 + $0x20] sm:$0xff] }
 0x89b   :  { %2871 = vmatprep.subr.mxu1 %v4097_v21  ;;  %v4137_v21 = vld [vmem:[%s6984_s6 + $0x18] sm:$0xff] }
 0x89c   :  { %2872 = vmatpush1.msra.mxu1 %v4098_v26  ;;  %v4138_v26 = vld [vmem:[%s6984_s6 + $0x10] sm:$0xff] }
 0x89d   :  { %2873 = vmatprep.subr.mxu1 %v4099_v24  ;;  %v4139_v24 = vld [vmem:[%s6984_s6 + $0x8] sm:$0xff] }
 0x89e   :  { %2874 = vmatpush1.msra.mxu1 %v4100_v6  ;;  %v4140_v6 = vld [vmem:[%s6984_s6] sm:$0xff] }
 0x89f   :  { %2875 = vmatprep.subr.mxu1 %v4101_v49  ;;  %v4141_v49 = vld [vmem:[%s6984_s6 + $0x1f8] sm:$0xff] }
 0x8a0   :  { %2876 = vmatpush1.msra.mxu1 %v4102_v60  ;;  %v4142_v60 = vld [vmem:[%s6984_s6 + $0x1f0] sm:$0xff] }
 0x8a1   :  { %2877 = vmatprep.subr.mxu1 %v4103_v16  ;;  %v4143_v16 = vld [vmem:[%s6984_s6 + $0x1e8] sm:$0xff] }
 0x8a2   :  { %2878 = vmatpush1.msra.mxu1 %v4104_v28  ;;  %v4144_v28 = vld [vmem:[%s6984_s6 + $0x1e0] sm:$0xff] }
 0x8a3   :  { %2879 = vmatprep.subr.mxu1 %v4105_v4  ;;  %v4145_v4 = vld [vmem:[%s6984_s6 + $0x1d8] sm:$0xff] }
 0x8a4   :  { %2880 = vmatpush1.msra.mxu1 %v4106_v58  ;;  %v4147_v58 = vld [vmem:[%s6984_s6 + $0x1c8] sm:$0xff] }
 0x8a5   :  { %2881 = vmatprep.subr.mxu1 %v4107_v59  ;;  %v4148_v59 = vld [vmem:[%s6984_s6 + $0x1c0] sm:$0xff] }
 0x8a6   :  { %2882 = vmatpush1.msra.mxu1 %v4108_v13  ;;  %v4149_v13 = vld [vmem:[%s6984_s6 + $0x1b8] sm:$0xff] }
 0x8a7   :  { %3330 = vmatmul.mubr.msk.f32.vlgmr.msra.gmra.mxu1 %vm381_vm2, %v3268_v17  ;;  %2956 = vmatprep.subr.mxu1 %v4109_v35  ;;  %v4150_v17 = vld [vmem:[%s6984_s6 + $0x1b0] sm:$0xff]  ;;  %v4151_v35 = vld [vmem:[%s6984_s6 + $0x1a8] sm:$0xff] }
 0x8a8   :  { %2957 = vmatpush1.msra.mxu1 %v4110_v56  ;;  %v4152_v56 = vld [vmem:[%s6984_s6 + $0x1a0] sm:$0xff] }
 0x8a9   :  { %2958 = vmatprep.subr.mxu1 %v4111_v34  ;;  %v4153_v34 = vld [vmem:[%s6984_s6 + $0x198] sm:$0xff] }
 0x8aa   :  { %2959 = vmatpush1.msra.mxu1 %v4112_v48  ;;  %v4154_v48 = vld [vmem:[%s6984_s6 + $0x190] sm:$0xff] }
 0x8ab   :  { %2960 = vmatprep.subr.mxu1 %v4113_v31  ;;  %v4155_v31 = vld [vmem:[%s6984_s6 + $0x188] sm:$0xff] }
 0x8ac   :  { %2961 = vmatpush1.msra.mxu1 %v4114_v42  ;;  %v4156_v42 = vld [vmem:[%s6984_s6 + $0x180] sm:$0xff] }
 0x8ad   :  { %2962 = vmatprep.subr.mxu1 %v4115_v45  ;;  %v4157_v45 = vld [vmem:[%s6984_s6 + $0x178] sm:$0xff] }
 0x8ae   :  { %2963 = vmatpush1.msra.mxu1 %v4116_v62  ;;  %v4158_v62 = vld [vmem:[%s6984_s6 + $0x170] sm:$0xff] }
 0x8af   :  { %2964 = vmatprep.subr.mxu1 %v4117_v46  ;;  %v4159_v46 = vld [vmem:[%s6984_s6 + $0x168] sm:$0xff] }
 0x8b0   :  { %2965 = vmatpush1.msra.mxu1 %v4118_v57  ;;  %v4160_v57 = vld [vmem:[%s6984_s6 + $0x160] sm:$0xff] }
 0x8b1   :  { %2966 = vmatprep.subr.mxu1 %v4119_v3  ;;  %v4161_v3 = vld [vmem:[%s6984_s6 + $0x158] sm:$0xff] }
 0x8b2   :  { %2967 = vmatpush1.msra.mxu1 %v4120_v55  ;;  %v4162_v55 = vld [vmem:[%s6984_s6 + $0x150] sm:$0xff] }
 0x8b3   :  { %2968 = vmatprep.subr.mxu1 %v4121_v20  ;;  %v4163_v20 = vld [vmem:[%s6984_s6 + $0x148] sm:$0xff] }
 0x8b4   :  { %2969 = vmatpush1.msra.mxu1 %v4122_v2  ;;  %v4164_v2 = vld [vmem:[%s6984_s6 + $0x140] sm:$0xff] }
 0x8b5   :  { %2970 = vmatprep.subr.mxu1 %v4123_v51  ;;  %v4165_v51 = vld [vmem:[%s6984_s6 + $0x138] sm:$0xff] }
 0x8b6   :  { %2971 = vmatpush1.msra.mxu1 %v4124_v41  ;;  %v4166_v41 = vld [vmem:[%s6984_s6 + $0x130] sm:$0xff] }
 0x8b7   :  { %2972 = vmatprep.subr.mxu1 %v4125_v19  ;;  %v4167_v19 = vld [vmem:[%s6984_s6 + $0x128] sm:$0xff] }
 0x8b8   :  { %2973 = vmatpush1.msra.mxu1 %v4126_v54  ;;  %v4168_v54 = vld [vmem:[%s6984_s6 + $0x120] sm:$0xff] }
 0x8b9   :  { %2974 = vmatprep.subr.mxu1 %v4127_v0  ;;  %v4169_v0 = vld [vmem:[%s6984_s6 + $0x118] sm:$0xff] }
 0x8ba   :  { %2975 = vmatpush1.msra.mxu1 %v4128_v1  ;;  %v4170_v1 = vld [vmem:[%s6984_s6 + $0x110] sm:$0xff] }
 0x8bb   :  { %2976 = vmatprep.subr.mxu1 %v4129_v32  ;;  %v4171_v32 = vld [vmem:[%s6984_s6 + $0x108] sm:$0xff] }
 0x8bc   :  { %2977 = vmatpush1.msra.mxu1 %v4130_v39  ;;  %v4172_v39 = vld [vmem:[%s6984_s6 + $0x100] sm:$0xff]  ;;  %s3660_s6 = spop %3659 }
 0x8bd   :  { %2978 = vmatprep.subr.mxu1 %v4131_v18  ;;  %s3662_s17 = spop %3661 }
 0x8be   :  { %2979 = vmatpush1.msra.mxu1 %v4132_v37  ;;  %s3664_s18 = spop %3663 }
 0x8bf   :  { %2980 = vmatprep.subr.mxu1 %v4133_v15  ;;  %s6814_s4 = spop %3665 }
 0x8c0   :  { %2981 = vmatpush1.msra.mxu1 %v4134_v29  ;;  %s6816_s3 = spop %3667 }
 0x8c1   :  { %2982 = vmatprep.subr.mxu1 %v4135_v9  ;;  %s6818_s19 = spop %3669 }
 0x8c2   :  { %2983 = vmatpush1.msra.mxu1 %v4136_v27  ;;  %s3672_s7 = spop %3671 }
 0x8c3   :  { %2984 = vmatprep.subr.mxu1 %v4137_v21  ;;  %s3674_s8 = spop %3673 }
 0x8c4   :  { %2985 = vmatpush1.msra.mxu1 %v4138_v26  ;;  %s3676_s11 = spop %3675 }
 0x8c5   :  { %2986 = vmatprep.subr.mxu1 %v4139_v24  ;;  %s6877_s20 = spop %3677 }
 0x8c6   :  { %2987 = vmatpush1.msra.mxu1 %v4140_v6  ;;  %s3680_s21 = spop %3679 }
 0x8c7   :  { %2988 = vmatprep.subr.mxu1 %v4141_v49  ;;  %s3682_s0 = spop %3681 }
 0x8c8   :  { %2989 = vmatpush2.msra.mxu1 %v4142_v60 }
 0x8c9   :  { %2990 = vmatprep.subr.mxu1 %v4143_v16 }
 0x8ca   :  { %2991 = vmatpush2.msra.mxu1 %v4144_v28 }
 0x8cb   :  { %2992 = vmatprep.subr.mxu1 %v4145_v4 }
 0x8cc   :  { %2993 = vmatpush2.msra.mxu1 %v4146_v36 }
 0x8cd   :  { %2994 = vmatprep.subr.mxu1 %v4147_v58 }
 0x8ce   :  { %2995 = vmatpush2.msra.mxu1 %v4148_v59 }
 0x8cf   :  { %2996 = vmatprep.subr.mxu1 %v4149_v13 }
 0x8d0   :  { %2997 = vmatpush2.msra.mxu1 %v4150_v17 }
 0x8d1   :  { %2998 = vmatprep.subr.mxu1 %v4151_v35 }
 0x8d2   :  { %2999 = vmatpush2.msra.mxu1 %v4152_v56 }
 0x8d3   :  { %3000 = vmatprep.subr.mxu1 %v4153_v34 }
 0x8d4   :  { %3001 = vmatpush2.msra.mxu1 %v4154_v48 }
 0x8d5   :  { %3002 = vmatprep.subr.mxu1 %v4155_v31 }
 0x8d6   :  { %3003 = vmatpush2.msra.mxu1 %v4156_v42 }
 0x8d7   :  { %3004 = vmatprep.subr.mxu1 %v4157_v45 }
 0x8d8   :  { %3005 = vmatpush2.msra.mxu1 %v4158_v62  ;;  %v2175_v62 = vstv %s3664_s18 }
 0x8d9   :  { %3006 = vmatprep.subr.mxu1 %v4159_v46 }
 0x8da   :  { %3007 = vmatpush2.msra.mxu1 %v4160_v57 }
 0x8db   :  { %3008 = vmatprep.subr.mxu1 %v4161_v3 }
 0x8dc   :  { %3009 = vmatpush2.msra.mxu1 %v4162_v55 }
 0x8dd   :  { %3010 = vmatprep.subr.mxu1 %v4163_v20  ;;  %v2164_v20 = vstv %s3662_s17 }
 0x8de   :  { %3011 = vmatpush2.msra.mxu1 %v4164_v2  ;;  %v2176_v2 = vsub.f32 %v2164_v20, %v2175_v62 }
 0x8df   :  { %3012 = vmatprep.subr.mxu1 %v4165_v51 }
 0x8e0   :  { %3013 = vmatpush2.msra.mxu1 %v4166_v41 }
 0x8e1   :  { %3014 = vmatprep.subr.mxu1 %v4167_v19 }
 0x8e2   :  { %3015 = vmatpush2.msra.mxu1 %v4168_v54 }
 0x8e3   :  { %3016 = vmatprep.subr.mxu1 %v4169_v0 }
 0x8e4   :  { %3017 = vmatpush2.msra.mxu1 %v4170_v1 }
 0x8e5   :  { %3018 = vmatprep.subr.mxu1 %v4171_v32  ;;  %v2152_v32 = vstv %s3660_s6 }
 0x8e6   :  { %3019 = vmatpush2.msra.mxu1 %v4172_v39  ;;  %v2177_v39 = vmul.f32 0.2, %v2176_v2 }
 0x902   :  { %v2576_v18 = vpop.xlane.xlu1 %2575  ;;  %v2562_v15 = vpop.xlane.xlu0 %2561 }
 0x903   :  { %v2577_v37 = vrot.slane %v2576_v18, 4  ;;  %v2563_v29 = vrot.slane %v2562_v15, 4 }
 0x905   :  { %v2578_v9 = vmax.f32 %v2576_v18, %v2577_v37  ;;  %v2564_v27 = vadd.f32 %v2563_v29, %v2562_v15  ;;  %v2153_v29 = vmul.f32 0.00625, %v2152_v32 }
 0x906   :  { %v2589_v26 = vpop.xlane.xlu0 %2588 }
 0x907   :  { %v2579_v21 = vrot.slane %v2578_v9, 2  ;;  %v2565_v24 = vrot.slane %v2564_v27, 2  ;;  %v2590_v6 = vrot.slane %v2589_v26, 4 }
 0x909   :  { %v2580_v49 = vmax.f32 %v2578_v9, %v2579_v21  ;;  %v2591_v60 = vmin.f32 %v2589_v26, %v2590_v6  ;;  %v2566_v16 = vadd.f32 %v2565_v24, %v2564_v27  ;;  %v2178_v27 = vsub.f32 %v2153_v29, %v2177_v39 }
 0x90a   :  { %v2365_v24 = vstv %s3674_s8  ;;  %v2378_v6 = vstv %s3676_s11  ;;  %v2201_v29 = vstv %s6816_s3 }
 0x90b   :  { %v2581_v28 = vrot.slane %v2580_v49, 1  ;;  %v2592_v4 = vrot.slane %v2591_v60, 2  ;;  %v2567_v36 = vrot.slane %v2566_v16, 1  ;;  %v6821_v26 = vsub.f32 %v6330_v53, %v2178_v27 }
 0x90d   :  { %v2582_v58 = vmax.f32 %v2580_v49, %v2581_v28  ;;  %v2568_v59 = vadd.f32 %v2567_v36, %v2566_v16  ;;  %v2593_v13 = vmin.f32 %v2591_v60, %v2592_v4  ;;  %v6824_v49 = vmul.f32 0.16666667, %v6821_v26 }
 0x90e   :  { %v2379_v60 = vsub.f32 %v2365_v24, %v2378_v6  ;;  %v2351_v28 = vstv %s3672_s7 }
 0x90f   :  { %3683 = vpush %v2568_v59  ;;  %v2594_v17 = vrot.slane %v2593_v13, 1  ;;  %v2221_v16 = vand.u32 2147483647, %v6824_v49  ;;  %v2352_v36 = vmul.f32 0.001953125, %v2351_v28 }
 0x910   :  { %3685 = vpush %v2582_v58  ;;  %v2380_v4 = vmul.f32 0.2, %v2379_v60 }
 0x911   :  { %v2595_v35 = vmin.f32 %v2593_v13, %v2594_v17  ;;  %v2222_v58 = vsub.f32 0.0, %v2221_v16 }
 0x912   :  { %v2381_v59 = vsub.f32 %v2352_v36, %v2380_v4  ;;  %v2189_v4 = vstv %s6814_s4 }
 0x913   :  { %3687 = vpush %v2595_v35  ;;  %v2223_v13 = vmul.f32 1.442695, %v2222_v58 }
 0x914   :  { %v6828_v17 = vsub.f32 %v6364_v22, %v2381_v59  ;;  %v6831_v35 = vsub.f32 %v6369_v33, %v2381_v59 }
 0x915   :  { %3818 = vpow2.f32 %v2223_v13 }
 0x91d   :  { %v2619_v56 = vpop.xlane.xlu0 %2618  ;;  %v2605_v34 = vpop.xlane.xlu1 %2604 }
 0x91e   :  { %v2620_v48 = vrot.slane %v2619_v56, 4  ;;  %v2606_v31 = vrot.slane %v2605_v34, 4 }
 0x920   :  { %v2621_v42 = vmax.f32 %v2619_v56, %v2620_v48  ;;  %v2607_v45 = vadd.f32 %v2606_v31, %v2605_v34  ;;  %v6834_v56 = vmul.f32 0.16666667, %v6828_v17  ;;  %v6837_v34 = vmul.f32 0.16666667, %v6831_v35 }
 0x921   :  { %v2632_v46 = vpop.xlane.xlu1 %2631 }
 0x922   :  { %v2622_v57 = vrot.slane %v2621_v42, 2  ;;  %v2608_v3 = vrot.slane %v2607_v45, 2  ;;  %v2633_v55 = vrot.slane %v2632_v46, 4  ;;  %v2435_v48 = vand.u32 2147483647, %v6834_v56  ;;  %v3819_v62 = vpop.eup %3818 }
 0x923   :  { %v2436_v31 = vand.u32 2147483647, %v6837_v34 }
 0x924   :  { %v2634_v51 = vmin.f32 %v2632_v46, %v2633_v55  ;;  %v2609_v41 = vadd.f32 %v2608_v3, %v2607_v45  ;;  %v2623_v19 = vmax.f32 %v2621_v42, %v2622_v57  ;;  %v2437_v42 = vsub.f32 0.0, %v2435_v48 }
 0x925   :  { %v2438_v45 = vsub.f32 0.0, %v2436_v31  ;;  %v2225_v55 = vadd.f32 1.0, %v3819_v62  ;;  %v2926_v31 = vmul.f32 0.75, %v6364_v22 }
 0x926   :  { %v2635_v54 = vrot.slane %v2634_v51, 2  ;;  %v2610_v0 = vrot.slane %v2609_v41, 1  ;;  %v2624_v1 = vrot.slane %v2623_v19, 1  ;;  %v2439_v46 = vmul.f32 1.442695, %v2437_v42 }
 0x927   :  { %v2441_v57 = vmul.f32 1.442695, %v2438_v45  ;;  %v2190_v42 = vmul.f32 0.00625, %v2189_v4 }
 0x928   :  { %v2611_v18 = vadd.f32 %v2610_v0, %v2609_v41  ;;  %v2625_v37 = vmax.f32 %v2623_v19, %v2624_v1  ;;  %v2636_v15 = vmin.f32 %v2634_v51, %v2635_v54  ;;  %3820 = vpow2.f32 %v2439_v46  ;;  %v6842_v41 = vld [vmem:[#allocation11] ss:$0 sm:$0xff] }
 0x929   :  { %v2745_v51 = vsub.f32 1.0, %v6390_v47  ;;  %3822 = vpow2.f32 %v2441_v57  ;;  %v2742_v54 = vmul.f32 0.5, %v6327_v40  ;;  %v2744_v0 = vmul.f32 0.75, %v6330_v53 }
 0x92a   :  { %3689 = vpush %v2611_v18  ;;  %v2637_v9 = vrot.slane %v2636_v15, 1  ;;  %3824 = vlog2.f32 %v2225_v55  ;;  %v2220_v46 = vmax.f32 %v6824_v49, 0.0  ;;  %v2927_v55 = vmul.f32 0.75, %v6369_v33 }
 0x92b   :  { %3691 = vpush %v2625_v37  ;;  %v2746_v32 = vmul.f32 %v2745_v51, %v2744_v0  ;;  %v2212_v37 = vstv %s6818_s19 }
 0x92c   :  { %v2638_v21 = vmin.f32 %v2636_v15, %v2637_v9  ;;  %v2213_v24 = vsub.f32 %v2201_v29, %v2212_v37 }
 0x92e   :  { %3693 = vpush %v2638_v21  ;;  %v3318_v21 = vsel %vm2333_vm13, 1.0, %v7127_v25  ;;  %v2214_v58 = vmul.f32 0.2, %v2213_v24 }
 0x92f   :  { %v2928_v28 = vsub.f32 1.0, %v3318_v21 }
 0x931   :  { %v2930_v57 = vmul.f32 %v2928_v28, %v2926_v31 }
 0x935   :  { %v3821_v27 = vpop.eup %3820 }
 0x936   :  { %v3823_v60 = vpop.eup %3822  ;;  %v2443_v36 = vadd.f32 1.0, %v3821_v27 }
 0x937   :  { %v3825_v16 = vpop.eup %3824  ;;  %v2444_v59 = vadd.f32 1.0, %v3823_v60 }
 0x938   :  { %v2227_v45 = vmul.f32 0.6931472, %v3825_v16 }
 0x940   :  { %s3684_s1 = spop %3683 }
 0x941   :  { %s3686_s5 = spop %3685 }
 0x944   :  { %s3688_s22 = spop %3687 }
 0x952   :  { %v3486_v3 = vpop.f32.mrf.mxu1 }
 0x954   :  { %v3487_v20 = vpop.f32.mrf.mxu1 }
 0x955   :  { %v3488_v2 = vadd.f32 %v3487_v20, %v3486_v3  ;;  %v2215_v20 = vsub.f32 %v2190_v42, %v2214_v58  ;;  %v2434_v42 = vmax.f32 %v6837_v34, 0.0 }
 0x957   :  { %v2739_v19 = vadd.f32 %v6842_v41, %v3488_v2 }
 0x959   :  { %v6847_v1 = vadd.f32 %v2742_v54, %v2739_v19  ;;  %v2217_v19 = vmul.f32 0.01, %v6821_v26 }
 0x95b   :  { %v6850_v39 = vadd.f32 %v2746_v32, %v6847_v1  ;;  %v2218_v54 = vadd.f32 %v2217_v19, %v2215_v20  ;;  %s3690_s23 = spop %3689 }
 0x95c   :  { %s3692_s24 = spop %3691 }
 0x95d   :  { %v2771_v47 = vsel %vm906_vm12, %v6850_v39, -inf  ;;  %v2759_v18 = vsel %vm906_vm12, %v6850_v39, 0.0  ;;  %v2748_v40 = vsub.f32 %v6330_v53, %v6850_v39  ;;  %v2782_v9 = vsel %vm906_vm12, %v6850_v39, inf }
 0x95e   :  { %2772 = vmax.xlane.f32.xlu1 %v2771_v47  ;;  %2760 = vadd.xlane.f32.xlu0 %v2759_v18  ;;  %v3319_v53 = vsel %vm2334_vm11, 1.0, %v7127_v25  ;;  %v2421_v18 = vstv %s3682_s0 }
 0x95f   :  { %v2749_v15 = vmul.f32 0.33333334, %v2748_v40  ;;  %v2929_v13 = vsub.f32 1.0, %v3319_v53  ;;  %v2394_v53 = vstv %s6877_s20  ;;  %s3694_s25 = spop %3693 }
 0x961   :  { %v2750_v6 = vmul.f32 1.442695, %v2749_v15  ;;  %v2931_v51 = vmul.f32 %v2929_v13, %v2927_v55  ;;  %v2408_v15 = vstv %s3680_s21 }
 0x962   :  { %2783 = vmin.xlane.f32.xlu0 %v2782_v9  ;;  %v2422_v27 = vsub.f32 %v2408_v15, %v2421_v18 }
 0x963   :  { %3826 = vpow2.f32 %v2750_v6 }
 0x964   :  { %3828 = vlog2.f32 %v2443_v36  ;;  %v2423_v28 = vmul.f32 0.2, %v2422_v27  ;;  %v2395_v36 = vmul.f32 0.001953125, %v2394_v53 }
 0x965   :  { %3830 = vlog2.f32 %v2444_v59 }
 0x967   :  { %v2917_v48 = vpop.f32.mrf.mxu1 }
 0x968   :  { %v2918_v62 = vadd.f32 %v2917_v48, %v7157_v52  ;;  %v2228_v52 = vadd.f32 %v2227_v45, %v2220_v46  ;;  %v2433_v48 = vmax.f32 %v6834_v56, 0.0  ;;  %v2428_v46 = vmul.f32 0.01, %v6831_v35 }
 0x969   :  { %v2919_v3 = vpop.f32.mrf.mxu1 }
 0x96a   :  { %v2924_v2 = vadd.f32 %v2922_v63, %v2918_v62  ;;  %v2920_v7 = vadd.f32 %v2919_v3, %v7160_v23  ;;  %v2229_v47 = vadd.f32 %v2228_v52, %v2218_v54  ;;  %v2424_v63 = vsub.f32 %v2395_v36, %v2423_v28 }
 0x96b   :  { %v2427_v62 = vmul.f32 0.01, %v6828_v17 }
 0x96c   :  { %v6881_v8 = vadd.f32 %v2930_v57, %v2924_v2  ;;  %v2925_v49 = vadd.f32 %v2923_v14, %v2920_v7  ;;  %v2753_v21 = vmul.f32 0.5, %v2229_v47  ;;  %v2430_v55 = vadd.f32 %v2428_v46, %v2424_v63 }
 0x96d   :  { %v2429_v3 = vadd.f32 %v2427_v62, %v2424_v63 }
 0x96e   :  { %v2934_v0 = vsub.f32 %v6364_v22, %v6881_v8  ;;  %v2933_v32 = vadd.f32 %v2931_v51, %v2925_v49 }
 0x970   :  { %v2936_v40 = vmul.f32 0.33333334, %v2934_v0  ;;  %v2935_v23 = vsub.f32 %v6369_v33, %v2933_v32  ;;  %v3827_v37 = vpop.eup %3826 }
 0x971   :  { %v3328_v9 = vadd.f32 -1.0, %v3827_v37  ;;  %v3829_v60 = vpop.eup %3828 }
 0x972   :  { %v2938_v26 = vmul.f32 1.442695, %v2936_v40  ;;  %v2937_v29 = vmul.f32 0.33333334, %v2935_v23  ;;  %v3831_v16 = vpop.eup %3830  ;;  %v2446_v58 = vmul.f32 0.6931472, %v3829_v60 }
 0x973   :  { %v2754_v6 = vmul.f32 0.5, %v3328_v9  ;;  %v2448_v59 = vmul.f32 0.6931472, %v3831_v16 }
 0x974   :  { %3832 = vpow2.f32 %v2938_v26  ;;  %v2940_v24 = vmul.f32 1.442695, %v2937_v29  ;;  %v2449_v14 = vadd.f32 %v2446_v58, %v2433_v48 }
 0x975   :  { %v2755_v22 = vadd.f32 %v2754_v6, %v2753_v21  ;;  %v2450_v57 = vadd.f32 %v2448_v59, %v2434_v42 }
 0x976   :  { %3834 = vpow2.f32 %v2940_v24  ;;  %v2451_v56 = vadd.f32 %v2449_v14, %v2429_v3 }
 0x977   :  { %v2808_v4 = vsel %vm906_vm12, %v2755_v22, -inf  ;;  %v2796_v33 = vsel %vm906_vm12, %v2755_v22, 0.0  ;;  %vm2756_vm1 = vcmp.gt.f32.partialorder %v6850_v39, %v2755_v22  ;;  %v2819_v45 = vsel %vm906_vm12, %v2755_v22, inf }
 0x978   :  { %2809 = vmax.xlane.f32.xlu0 %v2808_v4  ;;  %2797 = vadd.xlane.f32.xlu1 %v2796_v33  ;;  %v6891_v13 = vsel %vm2756_vm1, 1.0, %v7127_v25  ;;  %v2452_v2 = vadd.f32 %v2450_v57, %v2430_v55  ;;  %v2944_v52 = vmul.f32 0.5, %v2451_v56 }
 0x979   :  { %v6896_v31 = vadd.f32 %v6891_v13, %v6394_v44 }
 0x97a   :  { %v2945_v34 = vmul.f32 0.5, %v2452_v2 }
 0x97c   :  { %2820 = vmin.xlane.f32.xlu1 %v2819_v45 }
 0x981   :  { %v3833_v20 = vpop.eup %3832 }
 0x982   :  { %v3331_v7 = vadd.f32 -1.0, %v3833_v20 }
 0x983   :  { %v3835_v51 = vpop.eup %3834 }
 0x984   :  { %v3332_v44 = vadd.f32 -1.0, %v3835_v51  ;;  %v2946_v19 = vmul.f32 0.5, %v3331_v7 }
 0x986   :  { %v2947_v49 = vmul.f32 0.5, %v3332_v44  ;;  %v2948_v54 = vadd.f32 %v2946_v19, %v2944_v52  ;;  %v2597_v44 = vstv %s3688_s22  ;;  %v2584_v19 = vstv %s3686_s5  ;;  %s4356_s22 = smov [#allocation14]  }
 0x987   :  { %v2598_v52 = vsub.f32 %v2584_v19, %v2597_v44 }
 0x988   :  { %v2949_v0 = vadd.f32 %v2947_v49, %v2945_v34  ;;  %vm2950_vm3 = vcmp.gt.f32.partialorder %v6881_v8, %v2948_v54  ;;  %v2570_v34 = vstv %s3684_s1 }
 0x989   :  { %v2599_v49 = vmul.f32 0.2, %v2598_v52  ;;  %v2571_v54 = vmul.f32 0.001953125, %v2570_v34 }
 0x98a   :  { %vm2951_vm12 = vcmp.gt.f32.partialorder %v2933_v32, %v2949_v0 }
 0x98b   :  { %3335 = vmatprep.mubr.msk.f32.mxu1 %vm2951_vm12, %v7151_v12  ;;  %v2600_v0 = vsub.f32 %v2571_v54, %v2599_v49 }
 0x98c   :  { %3336 = vmatmul.mubr.msk.f32.vlgmr.msra.gmra.mxu1 %vm2950_vm3, %v7151_v12 }
 0x9e7   :  { %v2773_v17 = vpop.xlane.xlu1 %2772  ;;  %v2761_v35 = vpop.xlane.xlu0 %2760 }
 0x9e8   :  { %v2774_v47 = vrot.slane %v2773_v17, 4  ;;  %v2762_v18 = vrot.slane %v2761_v35, 4 }
 0x9ea   :  { %v2775_v40 = vmax.f32 %v2773_v17, %v2774_v47  ;;  %v2763_v23 = vadd.f32 %v2762_v18, %v2761_v35  ;;  %v2644_v17 = vsub.f32 %v6560_v11, %v2600_v0  ;;  %v2645_v35 = vsub.f32 %v6567_v10, %v2600_v0 }
 0x9eb   :  { %v2784_v37 = vpop.xlane.xlu0 %2783 }
 0x9ec   :  { %v2776_v15 = vrot.slane %v2775_v40, 2  ;;  %v2764_v26 = vrot.slane %v2763_v23, 2  ;;  %v2785_v29 = vrot.slane %v2784_v37, 4  ;;  %v2650_v47 = vmul.f32 0.16666667, %v2644_v17 }
 0x9ed   :  { %v2651_v18 = vmul.f32 0.16666667, %v2645_v35  ;;  %v2646_v52 = vmul.f32 0.01, %v2644_v17  ;;  %v3160_v17 = vld [vmem:[%s6988_s10 + $0x48] sm:$0xff] }
 0x9ee   :  { %v2786_v9 = vmin.f32 %v2784_v37, %v2785_v29  ;;  %v2765_v27 = vadd.f32 %v2764_v26, %v2763_v23  ;;  %v2777_v21 = vmax.f32 %v2775_v40, %v2776_v15  ;;  %v2654_v40 = vand.u32 2147483647, %v2650_v47 }
 0x9ef   :  { %v2655_v23 = vand.u32 2147483647, %v2651_v18  ;;  %v2653_v19 = vmax.f32 %v2651_v18, 0.0  ;;  %v3157_v18 = vld [vmem:[%s6988_s10 + $0x30] sm:$0xff] }
 0x9f0   :  { %v2787_v32 = vrot.slane %v2786_v9, 2  ;;  %v2766_v24 = vrot.slane %v2765_v27, 1  ;;  %v2778_v6 = vrot.slane %v2777_v21, 1  ;;  %v2656_v37 = vsub.f32 0.0, %v2654_v40 }
 0x9f1   :  { %v2657_v15 = vsub.f32 0.0, %v2655_v23 }
 0x9f2   :  { %v2767_v60 = vadd.f32 %v2766_v24, %v2765_v27  ;;  %v2779_v8 = vmax.f32 %v2777_v21, %v2778_v6  ;;  %v2788_v53 = vmin.f32 %v2786_v9, %v2787_v32  ;;  %v2658_v26 = vmul.f32 1.442695, %v2656_v37 }
 0x9f3   :  { %v2660_v29 = vmul.f32 1.442695, %v2657_v15  ;;  %v3324_v21 = vsel %vm2552_vm15, 1.0, %v7127_v25  ;;  %v3325_v32 = vsel %vm2553_vm14, 1.0, %v7127_v25 }
 0x9f4   :  { %3695 = vpush %v2767_v60  ;;  %v2789_v22 = vrot.slane %v2788_v53, 1  ;;  %3836 = vpow2.f32 %v2658_v26  ;;  %v3033_v6 = vsub.f32 1.0, %v3324_v21 }
 0x9f5   :  { %3697 = vpush %v2779_v8  ;;  %3838 = vpow2.f32 %v2660_v29 }
 0x9f6   :  { %v2790_v16 = vmin.f32 %v2788_v53, %v2789_v22  ;;  %v3034_v53 = vsub.f32 1.0, %v3325_v32 }
 0x9f8   :  { %3699 = vpush %v2790_v16  ;;  %v3027_v16 = vmul.f32 0.5, %v6556_v30 }
 0xa01   :  { %v2810_v28 = vpop.xlane.xlu0 %2809  ;;  %v2798_v4 = vpop.xlane.xlu1 %2797 }
 0xa02   :  { %v2811_v33 = vrot.slane %v2810_v28, 4  ;;  %v2799_v36 = vrot.slane %v2798_v4, 4  ;;  %v3837_v9 = vpop.eup %3836 }
 0xa03   :  { %v3839_v27 = vpop.eup %3838  ;;  %v2662_v24 = vadd.f32 1.0, %v3837_v9 }
 0xa04   :  { %v2812_v58 = vmax.f32 %v2810_v28, %v2811_v33  ;;  %v2800_v59 = vadd.f32 %v2799_v36, %v2798_v4  ;;  %v2663_v60 = vadd.f32 1.0, %v3839_v27  ;;  %v3031_v28 = vmul.f32 0.75, %v6560_v11 }
 0xa05   :  { %v2821_v48 = vpop.xlane.xlu1 %2820  ;;  %3840 = vlog2.f32 %v2662_v24  ;;  %v3032_v33 = vmul.f32 0.75, %v6567_v10 }
 0xa06   :  { %v2813_v63 = vrot.slane %v2812_v58, 2  ;;  %v2801_v42 = vrot.slane %v2800_v59, 2  ;;  %v2822_v45 = vrot.slane %v2821_v48, 4  ;;  %v3035_v36 = vmul.f32 %v3033_v6, %v3031_v28  ;;  %v3156_v6 = vld [vmem:[%s6988_s10 + $0x28] sm:$0xff] }
 0xa07   :  { %3842 = vlog2.f32 %v2663_v60  ;;  %v3155_v60 = vld [vmem:[%s6988_s10 + $0x20] sm:$0xff] }
 0xa08   :  { %v2814_v62 = vmax.f32 %v2812_v58, %v2813_v63  ;;  %v2823_v14 = vmin.f32 %v2821_v48, %v2822_v45  ;;  %v2802_v46 = vadd.f32 %v2801_v42, %v2800_v59  ;;  %v2640_v42 = vstv %s3694_s25 }
 0xa0a   :  { %v2824_v57 = vrot.slane %v2823_v14, 2  ;;  %v2803_v3 = vrot.slane %v2802_v46, 1  ;;  %v2815_v55 = vrot.slane %v2814_v62, 1 }
 0xa0c   :  { %v2825_v20 = vmin.f32 %v2823_v14, %v2824_v57  ;;  %v2804_v56 = vadd.f32 %v2803_v3, %v2802_v46  ;;  %v2816_v2 = vmax.f32 %v2814_v62, %v2815_v55  ;;  %v2627_v62 = vstv %s3692_s24 }
 0xa0d   :  { %v2641_v57 = vsub.f32 %v2627_v62, %v2640_v42  ;;  %v2613_v55 = vstv %s3690_s23  ;;  %s3250_s23 = sshll.u32 %s4356_s22, 4  ;;  %s3251_s23 = int_to_ptr.vmem [resolvable:$true] %s3250_s23 }
 0xa0e   :  { %3701 = vpush %v2804_v56  ;;  %v2826_v7 = vrot.slane %v2825_v20, 1  ;;  %s4314_s24 = scalar_lea.vmem %s3251_s23, 32  ;;  %p4319_p8 = scmp.lt.s32.totalorder %s3251_s23, %s3251_s23 }
 0xa0f   :  { %3703 = vpush %v2816_v2  ;;  %v2642_v56 = vmul.f32 0.2, %v2641_v57  ;;  %v2614_v2 = vmul.f32 0.001953125, %v2613_v55  ;;  %p4315_p7 = scmp.ne.s32.totalorder %s3251_s23, %s4314_s24  ;;  %p4320_p9 = scmp.lt.s32.totalorder %s4314_s24, %s4314_s24 }
 0xa10   :  { %v2827_v51 = vmin.f32 %v2825_v20, %v2826_v7 }
 0xa11   :  { %v2643_v44 = vsub.f32 %v2614_v2, %v2642_v56  ;;  %p4321_p10 = por %p4320_p9, %p4319_p8 }
 0xa12   :  { %3705 = vpush %v2827_v51 }
 0xa13   :  { %v2648_v54 = vadd.f32 %v2646_v52, %v2643_v44  ;;  %p4322_p11 = pnand %p4321_p10, %p4315_p7 }
 0xa25   :  { %s3696_s20 = spop %3695 }
 0xa26   :  { %s3698_s21 = spop %3697 }
 0xa29   :  { %s3700_s0 = spop %3699 }
 0xa2a   :  { %v2792_v28 = vstv %s3700_s0 }
 0xa4c   :  { %v3022_v8 = vpop.f32.mrf.mxu1 }
 0xa4d   :  { %v3023_v22 = vadd.f32 %v3022_v8, %v7152_v43  ;;  %v3036_v43 = vmul.f32 %v3034_v53, %v3032_v33  ;;  %v3154_v8 = vld [vmem:[%s6988_s10 + $0x18] sm:$0xff]  ;;  %v3153_v53 = vld [vmem:[%s6988_s10 + $0x10] sm:$0xff]  ;;  %v2769_v33 = vstv %s3696_s20 }
 0xa4e   :  { %v3024_v4 = vpop.f32.mrf.mxu1 }
 0xa4f   :  { %v3029_v50 = vadd.f32 %v3027_v16, %v3023_v22  ;;  %v3025_v58 = vadd.f32 %v3024_v4, %v7153_v38  ;;  %v3841_v38 = vpop.eup %3840  ;;  %v3152_v22 = vld [vmem:[%s6988_s10 + $0x8] sm:$0xff]  ;;  %v3151_v16 = vld [vmem:[%s6988_s10] sm:$0xff]  ;;  %v2781_v4 = vstv %s3698_s21 }
 0xa50   :  { %v3843_v20 = vpop.eup %3842  ;;  %v2665_v7 = vmul.f32 0.6931472, %v3841_v38  ;;  %v3133_v38 = vmul.f32 0.75, %v6850_v39 }
 0xa51   :  { %v3037_v59 = vadd.f32 %v3035_v36, %v3029_v50  ;;  %v3030_v48 = vadd.f32 %v3028_v5, %v3025_v58  ;;  %v2667_v51 = vmul.f32 0.6931472, %v3843_v20  ;;  %v2793_v5 = vsub.f32 %v2781_v4, %v2792_v28 }
 0xa52   :  { %v2770_v36 = vmul.f32 0.00625, %v2769_v33 }
 0xa53   :  { %v3039_v30 = vsub.f32 %v6560_v11, %v3037_v59  ;;  %v3038_v63 = vadd.f32 %v3036_v43, %v3030_v48  ;;  %v2652_v11 = vmax.f32 %v2650_v47, 0.0  ;;  %v2669_v49 = vadd.f32 %v2667_v51, %v2653_v19 }
 0xa54   :  { %v2794_v50 = vmul.f32 0.2, %v2793_v5 }
 0xa55   :  { %v3041_v45 = vmul.f32 0.33333334, %v3039_v30  ;;  %v3040_v61 = vsub.f32 %v6567_v10, %v3038_v63  ;;  %v2668_v34 = vadd.f32 %v2665_v7, %v2652_v11  ;;  %v2647_v10 = vmul.f32 0.01, %v2645_v35  ;;  %v3159_v35 = vld [vmem:[%s6988_s10 + $0x40] sm:$0xff] }
 0xa56   :  { %v2795_v58 = vsub.f32 %v2770_v36, %v2794_v50 }
 0xa57   :  { %v3043_v14 = vmul.f32 1.442695, %v3041_v45  ;;  %v3042_v46 = vmul.f32 0.33333334, %v3040_v61  ;;  %v2649_v0 = vadd.f32 %v2647_v10, %v2643_v44  ;;  %v2670_v23 = vadd.f32 %v2668_v34, %v2648_v54 }
 0xa59   :  { %3844 = vpow2.f32 %v3043_v14  ;;  %v3045_v3 = vmul.f32 1.442695, %v3042_v46  ;;  %v2671_v37 = vadd.f32 %v2669_v49, %v2649_v0  ;;  %v3049_v27 = vmul.f32 0.5, %v2670_v23 }
 0xa5a   :  { %v3134_v46 = vsub.f32 1.0, %v6891_v13 }
 0xa5b   :  { %3846 = vpow2.f32 %v3045_v3  ;;  %v3050_v21 = vmul.f32 0.5, %v2671_v37  ;;  %v3131_v3 = vmul.f32 0.5, %v6847_v1 }
 0xa5c   :  { %v3135_v20 = vmul.f32 %v3134_v46, %v3133_v38 }
 0xa66   :  { %v3845_v40 = vpop.eup %3844 }
 0xa67   :  { %v3337_v15 = vadd.f32 -1.0, %v3845_v40 }
 0xa68   :  { %v3847_v26 = vpop.eup %3846 }
 0xa69   :  { %v3338_v29 = vadd.f32 -1.0, %v3847_v26  ;;  %v3051_v9 = vmul.f32 0.5, %v3337_v15 }
 0xa6b   :  { %v3052_v32 = vmul.f32 0.5, %v3338_v29  ;;  %v3053_v24 = vadd.f32 %v3051_v9, %v3049_v27 }
 0xa6d   :  { %v3054_v47 = vadd.f32 %v3052_v32, %v3050_v21  ;;  %vm3055_vm5 = vcmp.gt.f32.partialorder %v3037_v59, %v3053_v24  ;;  %v2833_v59 = vsub.f32 %v6850_v39, %v2795_v58  ;;  %v3345_v32 = vld [vmem:[#allocation13] ss:$0 sm:$0xff] }
 0xa6f   :  { %vm3056_vm4 = vcmp.gt.f32.partialorder %v3038_v63, %v3054_v47  ;;  %v2836_v48 = vmul.f32 0.16666667, %v2833_v59  ;;  %v2834_v54 = vmul.f32 0.01, %v2833_v59 }
 0xa70   :  { %3341 = vmatprep.mubr.msk.f32.mxu0 %vm3056_vm4, %v7151_v12 }
 0xa71   :  { %3342 = vmatmul.mubr.msk.f32.vlgmr.msra.gmra.mxu0 %vm3055_vm5, %v7151_v12  ;;  %v3158_v12 = vld [vmem:[%s6988_s10 + $0x38] sm:$0xff]  ;;  %v2838_v43 = vand.u32 2147483647, %v2836_v48  ;;  %s3702_s10 = spop %3701  ;;  %v2837_v10 = vmax.f32 %v2836_v48, 0.0 }
 0xa72   :  { %3560 = vmatprep.mubr.msk.f32.mxu0 %vm4354_vm0, %v7127_v25  ;;  %3541 = vmatpush3.msra.mxu0 %v3160_v17  ;;  %s3704_s1 = spop %3703 }
 0xa73   :  { %3542 = vmatprep.subr.mxu0 %v7127_v25  ;;  %v2839_v30 = vsub.f32 0.0, %v2838_v43  ;;  %s3706_s5 = spop %3705  ;;  %v2818_v11 = vstv %s3704_s1 }
 0xa74   :  { %3543 = vmatpush3.msra.mxu0 %v3159_v35  ;;  %v2829_v7 = vstv %s3706_s5 }
 0xa75   :  { %3544 = vmatprep.subr.mxu0 %v7127_v25  ;;  %v2840_v63 = vmul.f32 1.442695, %v2839_v30  ;;  %v2830_v44 = vsub.f32 %v2818_v11, %v2829_v7 }
 0xa76   :  { %3545 = vmatpush3.msra.mxu0 %v3158_v12 }
 0xa77   :  { %3546 = vmatprep.subr.mxu0 %v7127_v25  ;;  %3848 = vpow2.f32 %v2840_v63  ;;  %v2831_v52 = vmul.f32 0.2, %v2830_v44 }
 0xa78   :  { %3547 = vmatpush3.msra.mxu0 %v3157_v18 }
 0xa79   :  { %3548 = vmatprep.subr.mxu0 %v7127_v25 }
 0xa7a   :  { %3549 = vmatpush3.msra.mxu0 %v3156_v6 }
 0xa7b   :  { %3550 = vmatprep.subr.mxu0 %v7127_v25 }
 0xa7c   :  { %3551 = vmatpush3.msra.mxu0 %v3155_v60 }
 0xa7d   :  { %3552 = vmatprep.subr.mxu0 %v7127_v25 }
 0xa7e   :  { %3553 = vmatpush3.msra.mxu0 %v3154_v8 }
 0xa7f   :  { %3554 = vmatprep.subr.mxu0 %v7127_v25 }
 0xa80   :  { %3555 = vmatpush3.msra.mxu0 %v3153_v53 }
 0xa81   :  { %3556 = vmatprep.subr.mxu0 %v7127_v25 }
 0xa82   :  { %3557 = vmatpush3.msra.mxu0 %v3152_v22 }
 0xa83   :  { %3558 = vmatprep.subr.mxu0 %v7127_v25 }
 0xa84   :  { %3559 = vmatpush3.msra.mxu0 %v3151_v16  ;;  %v3849_v42 = vpop.eup %3848 }
 0xa85   :  { %v2842_v61 = vadd.f32 1.0, %v3849_v42 }
 0xa87   :  { %3850 = vlog2.f32 %v2842_v61 }
 0xa94   :  { %v3851_v19 = vpop.eup %3850 }
 0xa95   :  { %v2844_v34 = vmul.f32 0.6931472, %v3851_v19 }
 0xa97   :  { %v2845_v0 = vadd.f32 %v2844_v34, %v2837_v10 }
 0xb31   :  { %v3521_v45 = vpop.f32.mrf.mxu0 }
 0xb33   :  { %v3522_v62 = vpop.f32.mrf.mxu0 }
 0xb34   :  { %v3523_v14 = vadd.f32 %v3522_v62, %v3521_v45 }
 0xb36   :  { %v3128_v57 = vadd.f32 %v6842_v41, %v3523_v14  ;;  %v2806_v41 = vstv %s3702_s10 }
 0xb37   :  { %v2807_v1 = vmul.f32 0.00625, %v2806_v41 }
 0xb38   :  { %v3132_v55 = vadd.f32 %v3131_v3, %v3128_v57 }
 0xb39   :  { %v2832_v49 = vsub.f32 %v2807_v1, %v2831_v52 }
 0xb3a   :  { %v3136_v56 = vadd.f32 %v3135_v20, %v3132_v55 }
 0xb3b   :  { %v2835_v40 = vadd.f32 %v2834_v54, %v2832_v49 }
 0xb3c   :  { %v3137_v2 = vsub.f32 %v6850_v39, %v3136_v56 }
 0xb3d   :  { %v2846_v23 = vadd.f32 %v2845_v0, %v2835_v40 }
 0xb3e   :  { %v3138_v51 = vmul.f32 0.33333334, %v3137_v2 }
 0xb3f   :  { %v3142_v39 = vmul.f32 0.5, %v2846_v23 }
 0xb40   :  { %v3139_v13 = vmul.f32 1.442695, %v3138_v51 }
 0xb42   :  { %3852 = vpow2.f32 %v3139_v13 }
 0xb4f   :  { %v3853_v37 = vpop.eup %3852 }
 0xb50   :  { %v3343_v15 = vadd.f32 -1.0, %v3853_v37 }
 0xb52   :  { %v3143_v26 = vmul.f32 0.5, %v3343_v15 }
 0xb54   :  { %v3144_v29 = vadd.f32 %v3143_v26, %v3142_v39 }
 0xb56   :  { %vm3145_vm0 = vcmp.gt.f32.partialorder %v3136_v56, %v3144_v29 }
 0xb57   :  { %v3344_v9 = vsel %vm3145_vm0, 1.0, %v7127_v25 }
 0xb58   :  { %v3148_v27 = vadd.f32 %v3344_v9, %v6896_v31 }
 0xb5a   :  { %v3150_v21 = vmul.f32 0.2, %v3148_v27 }
 0xb5c   :  { %3561 = vmatmul.mubr.msk.f32.vlgmr.msra.gmra.mxu0 %vm381_vm2, %v3150_v21 }
 0xc1c   :  { %v3237_v24 = vpop.f32.mrf.mxu0 }
 0xc1d   :  { %v3238_v47 = vadd.f32 %v3345_v32, %v3237_v24 }
 0xc1e   :  { %v3562_v17 = vpop.f32.mrf.mxu0 }
 0xc1f   :  { %3854 = vtanh.f32 %v3238_v47 }
 0xc2c   :  { %v3855_v35 = vpop.eup %3854 }
 0xc2d   :  { %3243 = vst.msk [vmem:[#allocation14] sm:$0x3] %vm3242_vm6, %v3855_v35 }
 0xc2e   :  { %4325 = shalt.err (!%p4322_p11)
}
 0xc2f   :  { %3253 = dma.vmem_to_hbm [thread:$0]  %s3251_s23, 32, %s6990_s12, [#allocation4]  }
 0xc30   :  { %4342 = dma.done.wait [#allocation4], 32  }
 0xc31   :  { %4343 = vsyncadd [#allocation4], 4294967264 }
 0xc32   :  { %3257 = vsyncpa [#allocation3], 1 }
 0xc33   :  { %3258 = vsyncpa [#allocation6], 1 }
 0xc34   :  { %3259 = vsyncpa [#allocation9], 1 }
 0xc35   :  { %3260 = vsyncpa [#allocation12], 1 }
 0xc36   :  { %3261 = vsyncpa [#allocation4], 1 }

</bundles_post_ra>
